<compile_context>
chip_gen: v7x
topology: tpu7x:2x2x1
jax: 0.10.0
libtpu: 0.0.40
codegen_flags: <defaults>
</compile_context>

<pallas_src>
import functools
import math

import jax
import jax.numpy as jnp
from jax.experimental import pallas as pl
from jax.experimental.pallas import tpu as pltpu


def _round_up(x: int, m: int) -> int:
    return (x + m - 1) // m * m


# ----------------------------------------------------------------------------
# Fused kernel: per-tile QKV projection + flash attention (online softmax).
# Grid = (num_q_tiles, num_kv_tiles); kv (reduction) axis last / "arbitrary".
# ----------------------------------------------------------------------------
def _fused_attn_kernel(xq_ref, xkv_ref, wq_ref, wkv_ref, o_ref,
                       q_sc, m_sc, l_sc, acc_sc,
                       *, seq_len, tk, d_out_p, scale, need_mask):
    kv = pl.program_id(1)
    last = pl.num_programs(1) - 1

    @pl.when(kv == 0)
    def _():
        # Project this q tile once (bf16 x bf16 -> f32 acc), fold the 1/sqrt(d)
        # scale here (once per q tile, not per kv step), keep it as bf16 for
        # the QK^T matmul.
        q = jnp.dot(xq_ref[...], wq_ref[...], preferred_element_type=jnp.float32)
        q_sc[...] = (q * scale).astype(q_sc.dtype)
        m_sc[...] = jnp.full_like(m_sc, -jnp.inf)
        l_sc[...] = jnp.zeros_like(l_sc)
        acc_sc[...] = jnp.zeros_like(acc_sc)

    # Project K and V for this kv tile with one wide matmul (weights are
    # VMEM-resident via the constant index_map below).
    kvp = jnp.dot(xkv_ref[...], wkv_ref[...],
                  preferred_element_type=jnp.float32)      # (tk, 2*d_out_p) f32
    k = kvp[:, :d_out_p].astype(jnp.bfloat16)
    v = kvp[:, d_out_p:].astype(jnp.bfloat16)

    # Scores: Q @ K^T without materializing K.T (contract last dims on the MXU).
    s = jax.lax.dot_general(q_sc[...], k, (((1,), (1,)), ((), ())),
                            preferred_element_type=jnp.float32)   # (tq, tk) f32

    def online_softmax_update(s_val):
        m_prev = m_sc[...]
        m_new = jnp.maximum(m_prev, s_val.max(axis=-1, keepdims=True))
        alpha = jnp.exp(m_prev - m_new)
        p = jnp.exp(s_val - m_new)                                # f32
        l_sc[...] = alpha * l_sc[...] + p.sum(axis=-1, keepdims=True)
        acc_sc[...] = alpha * acc_sc[...] + jnp.dot(
            p.astype(jnp.bfloat16), v, preferred_element_type=jnp.float32)
        m_sc[...] = m_new

    if need_mask:
        # Only the last kv tile contains padded key rows (S_pad - S < tk), so
        # only it pays for the iota/compare/select.
        @pl.when(kv == last)
        def _():
            col = kv * tk + jax.lax.broadcasted_iota(jnp.int32, s.shape, 1)
            online_softmax_update(jnp.where(col < seq_len, s, -1e30))

        @pl.when(kv != last)
        def _():
            online_softmax_update(s)
    else:
        online_softmax_update(s)

    @pl.when(kv == last)
    def _():
        # Exact reciprocal: runs once per q tile, negligible cost, tighter parity.
        inv_l = pl.reciprocal(l_sc[...], approx=False)
        o_ref[...] = (acc_sc[...] * inv_l).astype(o_ref.dtype)


# ----------------------------------------------------------------------------
# Wrapper
# ----------------------------------------------------------------------------
def self_attention_v2(x, w_query, w_key, w_value):
    """x: (S, d_in); w_*: (d_out, d_in) as in nn.Linear. Returns (S, d_out)."""
    S, d_in = x.shape
    d_out = w_query.shape[0]
    scale = 1.0 / math.sqrt(d_out)

    # Lane-dense feature padding (multiples of 128).
    # TODO(synk): for a real multi-head model with tiny head dims, pack heads
    # along the 128-lane feature dim instead of zero-padding a single head.
    d_in_p = _round_up(d_in, 128)
    d_out_p = _round_up(d_out, 128)

    # Tile selection: large decoupled tiles for long sequences (fills the
    # 256-wide MXU, minimizes grid-step overhead and K/V re-fetch) while
    # guaranteeing >=2 q tiles for v7x megacore whenever S > 256.
    S8 = _round_up(max(S, 1), 8)
    if S8 <= 256:
        tq = tk = S8
        S_pad = S8
    else:
        tq, tk = 256, 512
        S_pad = _round_up(S, 512)          # divisible by both tq and tk
    need_mask = S_pad != S                  # S_pad - S < tk by construction

    # bf16 MXU operands; softmax / accumulators stay fp32 inside the kernel.
    x_p = jnp.pad(x, ((0, S_pad - S), (0, d_in_p - d_in))).astype(jnp.bfloat16)

    def pad_w(w):
        return jnp.pad(w, ((0, d_out_p - d_out), (0, d_in_p - d_in)))

    # Pre-transpose ONCE in the wrapper -> plain [t,K]x[K,N] dots in-kernel.
    wq_t = pad_w(w_query).T.astype(jnp.bfloat16)                    # (d_in_p, d_out_p)
    wkv_t = jnp.concatenate(
        [pad_w(w_key), pad_w(w_value)], axis=0).T.astype(jnp.bfloat16)  # (d_in_p, 2*d_out_p)

    grid = (S_pad // tq, S_pad // tk)

    out_p = pl.pallas_call(
        functools.partial(_fused_attn_kernel, seq_len=S, tk=tk,
                          d_out_p=d_out_p, scale=scale, need_mask=need_mask),
        out_shape=jax.ShapeDtypeStruct((S_pad, d_out_p), x.dtype),
        grid_spec=pltpu.PrefetchScalarGridSpec(
            num_scalar_prefetch=0,
            grid=grid,
            in_specs=[
                # x tile for the query rows of this q tile
                pl.BlockSpec((tq, d_in_p), lambda qi, ki: (qi, 0)),
                # x tile for the key/value rows of this kv tile
                pl.BlockSpec((tk, d_in_p), lambda qi, ki: (ki, 0)),
                # constant index_map -> weights stay VMEM-resident.
                # (For large d, additionally mark these pipeline_mode=pl.Buffered(1)
                #  to avoid reserving 2x their VMEM, and Buffered(3) on the x_kv
                #  stream on v5e if DMA is exposed.)
                pl.BlockSpec((d_in_p, d_out_p), lambda qi, ki: (0, 0)),
                pl.BlockSpec((d_in_p, 2 * d_out_p), lambda qi, ki: (0, 0)),
            ],
            out_specs=pl.BlockSpec((tq, d_out_p), lambda qi, ki: (qi, 0)),
            scratch_shapes=[
                pltpu.VMEM((tq, d_out_p), jnp.bfloat16),   # projected, scaled Q tile
                pltpu.VMEM((tq, 1), jnp.float32),          # running max m
                pltpu.VMEM((tq, 1), jnp.float32),          # running sum l
                pltpu.VMEM((tq, d_out_p), jnp.float32),    # fp32 output accumulator
            ],
        ),
        compiler_params=pltpu.CompilerParams(
            dimension_semantics=("parallel", "arbitrary")),
    )(x_p, x_p, wq_t, wkv_t)

    return out_p[:S, :d_out]


def _init_linear_weight(key, d_out, d_in):
    # Deterministic stand-in for nn.Linear's kaiming-uniform init:
    # U(-1/sqrt(d_in), 1/sqrt(d_in)), shape (d_out, d_in).
    bound = 1.0 / math.sqrt(d_in)
    return jax.random.uniform(
        key, (d_out, d_in), dtype=jnp.float32, minval=-bound, maxval=bound)


if __name__ == "__main__":
    # Small shapes; seq chosen so the run exercises the large-tile path:
    # tq=256, tk=512, grid=(4, 2), sequence padding + mask-on-last-kv-tile.
    seq_len, d_in, d_out = 600, 16, 32

    root = jax.random.PRNGKey(0)
    kx, kq, kk, kv = jax.random.split(root, 4)

    x = jax.random.normal(kx, (seq_len, d_in), dtype=jnp.float32)
    w_query = _init_linear_weight(kq, d_out, d_in)
    w_key = _init_linear_weight(kk, d_out, d_in)
    w_value = _init_linear_weight(kv, d_out, d_in)

    out = self_attention_v2(x, w_query, w_key, w_value)
    out = jax.block_until_ready(out)

    # Pure-JAX fp32 reference (same math as the PyTorch forward).
    q = x @ w_query.T
    k = x @ w_key.T
    v = x @ w_value.T
    scores = (q @ k.T) / math.sqrt(d_out)
    ref = jax.nn.softmax(scores, axis=-1) @ v

    assert out.shape == (seq_len, d_out)
    # Tolerance accounts for bf16 matmul operands (softmax/accumulation is fp32).
    err = float(jnp.max(jnp.abs(out - ref)))
    assert jnp.allclose(out, ref, atol=2e-2, rtol=2e-2), err

    print("KERNEL_OK")
</pallas_src>

<mosaic_0001>
module attributes {stable_mosaic.version = 11 : i64} {
  func.func @_fused_attn_kernel(%arg0: i32, %arg1: i32, %arg2: memref<256x128xbf16, #tpu.memory_space<vmem>>, %arg3: memref<512x128xbf16, #tpu.memory_space<vmem>>, %arg4: memref<128x128xbf16, #tpu.memory_space<vmem>>, %arg5: memref<128x256xbf16, #tpu.memory_space<vmem>>, %arg6: memref<256x128xf32, #tpu.memory_space<vmem>>, %arg7: memref<256x128xbf16, #tpu.memory_space<vmem>>, %arg8: memref<256x1xf32, #tpu.memory_space<vmem>>, %arg9: memref<256x1xf32, #tpu.memory_space<vmem>>, %arg10: memref<256x128xf32, #tpu.memory_space<vmem>>) attributes {dimension_semantics = [#tpu.dimension_semantics<parallel>, #tpu.dimension_semantics<arbitrary>], iteration_bounds = array<i64: 4, 2>, scalar_prefetch = 0 : i64, scratch_operands = 4 : i64, tpu.core_type = #tpu.core_type<tc>, window_params = [{transform_indices = @transform_0, window_bounds = array<i64: 256, 128>}, {transform_indices = @transform_1, window_bounds = array<i64: 512, 128>}, {pipeline_mode = #tpu.pipeline_mode<synchronous>, transform_indices = @transform_2, window_bounds = array<i64: 128, 128>}, {pipeline_mode = #tpu.pipeline_mode<synchronous>, transform_indices = @transform_3, window_bounds = array<i64: 128, 256>}, {transform_indices = @transform_4, window_bounds = array<i64: 256, 128>}]} {
    %c0_i32 = arith.constant 0 : i32
    %0 = arith.cmpi eq, %arg1, %c0_i32 : i32
    %1 = arith.extui %0 : i1 to i32
    %c0_i32_0 = arith.constant 0 : i32
    %2 = arith.cmpi ne, %1, %c0_i32_0 : i32
    scf.if %2 {
      %c0_12 = arith.constant 0 : index
      %c0_13 = arith.constant 0 : index
      %21 = vector.load %arg2[%c0_12, %c0_13] : memref<256x128xbf16, #tpu.memory_space<vmem>>, vector<256x128xbf16>
      %c0_14 = arith.constant 0 : index
      %c0_15 = arith.constant 0 : index
      %22 = vector.load %arg4[%c0_14, %c0_15] : memref<128x128xbf16, #tpu.memory_space<vmem>>, vector<128x128xbf16>
      %cst_16 = arith.constant dense<0.000000e+00> : vector<256x128xf32>
      %23 = tpu.matmul %21, %22, %cst_16 {dimension_numbers = #tpu.dot_dimension_numbers<[1], [0], [0], [1], [0, 0, 1, 1], [], []>} : vector<256x128xbf16>, vector<128x128xbf16>, vector<256x128xf32> -> vector<256x128xf32>
      %cst_17 = arith.constant 0.176776692 : f32
      %24 = vector.broadcast %cst_17 : f32 to vector<256x128xf32>
      %25 = arith.mulf %23, %24 : vector<256x128xf32>
      %26 = arith.truncf %25 : vector<256x128xf32> to vector<256x128xbf16>
      %c0_18 = arith.constant 0 : index
      %c0_19 = arith.constant 0 : index
      %27 = vector.load %arg7[%c0_18, %c0_19] : memref<256x128xbf16, #tpu.memory_space<vmem>>, vector<256x128xbf16>
      tpu.vector_store %arg7[%c0_18, %c0_19], %26 {strides = array<i32>} : memref<256x128xbf16, #tpu.memory_space<vmem>>, vector<256x128xbf16>,
      %cst_20 = arith.constant 0xFF800000 : f32
      %28 = vector.broadcast %cst_20 : f32 to vector<256x1xf32>
      %c0_21 = arith.constant 0 : index
      %c0_22 = arith.constant 0 : index
      %29 = vector.load %arg8[%c0_21, %c0_22] : memref<256x1xf32, #tpu.memory_space<vmem>>, vector<256x1xf32>
      tpu.vector_store %arg8[%c0_21, %c0_22], %28 {strides = array<i32>} : memref<256x1xf32, #tpu.memory_space<vmem>>, vector<256x1xf32>,
      %cst_23 = arith.constant 0.000000e+00 : f32
      %30 = vector.broadcast %cst_23 : f32 to vector<256x1xf32>
      %c0_24 = arith.constant 0 : index
      %c0_25 = arith.constant 0 : index
      %31 = vector.load %arg9[%c0_24, %c0_25] : memref<256x1xf32, #tpu.memory_space<vmem>>, vector<256x1xf32>
      tpu.vector_store %arg9[%c0_24, %c0_25], %30 {strides = array<i32>} : memref<256x1xf32, #tpu.memory_space<vmem>>, vector<256x1xf32>,
      %cst_26 = arith.constant 0.000000e+00 : f32
      %32 = vector.broadcast %cst_26 : f32 to vector<256x128xf32>
      %c0_27 = arith.constant 0 : index
      %c0_28 = arith.constant 0 : index
      %33 = vector.load %arg10[%c0_27, %c0_28] : memref<256x128xf32, #tpu.memory_space<vmem>>, vector<256x128xf32>
      tpu.vector_store %arg10[%c0_27, %c0_28], %32 {strides = array<i32>} : memref<256x128xf32, #tpu.memory_space<vmem>>, vector<256x128xf32>,
    } else {
    }
    %c0 = arith.constant 0 : index
    %c0_1 = arith.constant 0 : index
    %3 = vector.load %arg3[%c0, %c0_1] : memref<512x128xbf16, #tpu.memory_space<vmem>>, vector<512x128xbf16>
    %c0_2 = arith.constant 0 : index
    %c0_3 = arith.constant 0 : index
    %4 = vector.load %arg5[%c0_2, %c0_3] : memref<128x256xbf16, #tpu.memory_space<vmem>>, vector<128x256xbf16>
    %cst = arith.constant dense<0.000000e+00> : vector<512x256xf32>
    %5 = tpu.matmul %3, %4, %cst {dimension_numbers = #tpu.dot_dimension_numbers<[1], [0], [0], [1], [0, 0, 1, 1], [], []>} : vector<512x128xbf16>, vector<128x256xbf16>, vector<512x256xf32> -> vector<512x256xf32>
    %6 = vector.extract_strided_slice %5 {offsets = [0, 0], sizes = [512, 128], strides = [1, 1]} : vector<512x256xf32> to vector<512x128xf32>
    %7 = arith.truncf %6 : vector<512x128xf32> to vector<512x128xbf16>
    %8 = vector.extract_strided_slice %5 {offsets = [0, 128], sizes = [512, 128], strides = [1, 1]} : vector<512x256xf32> to vector<512x128xf32>
    %9 = arith.truncf %8 : vector<512x128xf32> to vector<512x128xbf16>
    %c0_4 = arith.constant 0 : index
    %c0_5 = arith.constant 0 : index
    %10 = vector.load %arg7[%c0_4, %c0_5] : memref<256x128xbf16, #tpu.memory_space<vmem>>, vector<256x128xbf16>
    %cst_6 = arith.constant dense<0.000000e+00> : vector<256x512xf32>
    %11 = tpu.matmul %10, %7, %cst_6 {dimension_numbers = #tpu.dot_dimension_numbers<[1], [1], [0], [0], [0, 0, 1, 0], [], []>} : vector<256x128xbf16>, vector<512x128xbf16>, vector<256x512xf32> -> vector<256x512xf32>
    %c1_i32 = arith.constant 1 : i32
    %12 = arith.cmpi eq, %arg1, %c1_i32 : i32
    %13 = arith.extui %12 : i1 to i32
    %c0_i32_7 = arith.constant 0 : i32
    %14 = arith.cmpi ne, %13, %c0_i32_7 : i32
    scf.if %14 {
      %c512_i32 = arith.constant 512 : i32
      %21 = arith.muli %arg1, %c512_i32 : i32
      %22 = tpu.iota {dimensions = array<i32: 1>} : vector<256x512xi32>
      %23 = vector.broadcast %21 : i32 to vector<256x512xi32>
      %24 = arith.addi %23, %22 : vector<256x512xi32>
      %c600_i32 = arith.constant 600 : i32
      %25 = vector.broadcast %c600_i32 : i32 to vector<256x512xi32>
      %26 = arith.cmpi slt, %24, %25 : vector<256x512xi32>
      %cst_12 = arith.constant -1.000000e+30 : f32
      %27 = vector.broadcast %cst_12 : f32 to vector<256x512xf32>
      %28 = arith.select %26, %11, %27 : vector<256x512xi1>, vector<256x512xf32>
      %c0_13 = arith.constant 0 : index
      %c0_14 = arith.constant 0 : index
      %29 = vector.load %arg8[%c0_13, %c0_14] : memref<256x1xf32, #tpu.memory_space<vmem>>, vector<256x1xf32>
      %cst_15 = arith.constant dense<0xFF800000> : vector<256xf32>
      %30 = vector.multi_reduction <maximumf>, %28, %cst_15 [1] : vector<256x512xf32> to vector<256xf32>
      %31 = vector.shape_cast %30 : vector<256xf32> to vector<256x1xf32>
      %32 = arith.maximumf %29, %31 : vector<256x1xf32>
      %33 = arith.subf %29, %32 : vector<256x1xf32>
      %34 = math.exp %33 : vector<256x1xf32>
      %35 = vector.broadcast %32 : vector<256x1xf32> to vector<256x512xf32>
      %36 = arith.subf %28, %35 : vector<256x512xf32>
      %37 = math.exp %36 : vector<256x512xf32>
      %c0_16 = arith.constant 0 : index
      %c0_17 = arith.constant 0 : index
      %38 = vector.load %arg9[%c0_16, %c0_17] : memref<256x1xf32, #tpu.memory_space<vmem>>, vector<256x1xf32>
      %39 = arith.mulf %34, %38 : vector<256x1xf32>
      %cst_18 = arith.constant dense<0.000000e+00> : vector<256xf32>
      %40 = vector.multi_reduction <add>, %37, %cst_18 [1] : vector<256x512xf32> to vector<256xf32>
      %41 = vector.shape_cast %40 : vector<256xf32> to vector<256x1xf32>
      %42 = arith.addf %39, %41 : vector<256x1xf32>
      %c0_19 = arith.constant 0 : index
      %c0_20 = arith.constant 0 : index
      %43 = vector.load %arg9[%c0_19, %c0_20] : memref<256x1xf32, #tpu.memory_space<vmem>>, vector<256x1xf32>
      tpu.vector_store %arg9[%c0_19, %c0_20], %42 {strides = array<i32>} : memref<256x1xf32, #tpu.memory_space<vmem>>, vector<256x1xf32>,
      %c0_21 = arith.constant 0 : index
      %c0_22 = arith.constant 0 : index
      %44 = vector.load %arg10[%c0_21, %c0_22] : memref<256x128xf32, #tpu.memory_space<vmem>>, vector<256x128xf32>
      %45 = vector.broadcast %34 : vector<256x1xf32> to vector<256x128xf32>
      %46 = arith.mulf %45, %44 : vector<256x128xf32>
      %47 = arith.truncf %37 : vector<256x512xf32> to vector<256x512xbf16>
      %cst_23 = arith.constant dense<0.000000e+00> : vector<256x128xf32>
      %48 = tpu.matmul %47, %9, %cst_23 {dimension_numbers = #tpu.dot_dimension_numbers<[1], [0], [0], [1], [0, 0, 1, 1], [], []>} : vector<256x512xbf16>, vector<512x128xbf16>, vector<256x128xf32> -> vector<256x128xf32>
      %49 = arith.addf %46, %48 : vector<256x128xf32>
      %c0_24 = arith.constant 0 : index
      %c0_25 = arith.constant 0 : index
      %50 = vector.load %arg10[%c0_24, %c0_25] : memref<256x128xf32, #tpu.memory_space<vmem>>, vector<256x128xf32>
      tpu.vector_store %arg10[%c0_24, %c0_25], %49 {strides = array<i32>} : memref<256x128xf32, #tpu.memory_space<vmem>>, vector<256x128xf32>,
      %c0_26 = arith.constant 0 : index
      %c0_27 = arith.constant 0 : index
      %51 = vector.load %arg8[%c0_26, %c0_27] : memref<256x1xf32, #tpu.memory_space<vmem>>, vector<256x1xf32>
      tpu.vector_store %arg8[%c0_26, %c0_27], %32 {strides = array<i32>} : memref<256x1xf32, #tpu.memory_space<vmem>>, vector<256x1xf32>,
    } else {
    }
    %c1_i32_8 = arith.constant 1 : i32
    %15 = arith.cmpi ne, %arg1, %c1_i32_8 : i32
    %16 = arith.extui %15 : i1 to i32
    %c0_i32_9 = arith.constant 0 : i32
    %17 = arith.cmpi ne, %16, %c0_i32_9 : i32
    scf.if %17 {
      %c0_12 = arith.constant 0 : index
      %c0_13 = arith.constant 0 : index
      %21 = vector.load %arg8[%c0_12, %c0_13] : memref<256x1xf32, #tpu.memory_space<vmem>>, vector<256x1xf32>
      %cst_14 = arith.constant dense<0xFF800000> : vector<256xf32>
      %22 = vector.multi_reduction <maximumf>, %11, %cst_14 [1] : vector<256x512xf32> to vector<256xf32>
      %23 = vector.shape_cast %22 : vector<256xf32> to vector<256x1xf32>
      %24 = arith.maximumf %21, %23 : vector<256x1xf32>
      %25 = arith.subf %21, %24 : vector<256x1xf32>
      %26 = math.exp %25 : vector<256x1xf32>
      %27 = vector.broadcast %24 : vector<256x1xf32> to vector<256x512xf32>
      %28 = arith.subf %11, %27 : vector<256x512xf32>
      %29 = math.exp %28 : vector<256x512xf32>
      %c0_15 = arith.constant 0 : index
      %c0_16 = arith.constant 0 : index
      %30 = vector.load %arg9[%c0_15, %c0_16] : memref<256x1xf32, #tpu.memory_space<vmem>>, vector<256x1xf32>
      %31 = arith.mulf %26, %30 : vector<256x1xf32>
      %cst_17 = arith.constant dense<0.000000e+00> : vector<256xf32>
      %32 = vector.multi_reduction <add>, %29, %cst_17 [1] : vector<256x512xf32> to vector<256xf32>
      %33 = vector.shape_cast %32 : vector<256xf32> to vector<256x1xf32>
      %34 = arith.addf %31, %33 : vector<256x1xf32>
      %c0_18 = arith.constant 0 : index
      %c0_19 = arith.constant 0 : index
      %35 = vector.load %arg9[%c0_18, %c0_19] : memref<256x1xf32, #tpu.memory_space<vmem>>, vector<256x1xf32>
      tpu.vector_store %arg9[%c0_18, %c0_19], %34 {strides = array<i32>} : memref<256x1xf32, #tpu.memory_space<vmem>>, vector<256x1xf32>,
      %c0_20 = arith.constant 0 : index
      %c0_21 = arith.constant 0 : index
      %36 = vector.load %arg10[%c0_20, %c0_21] : memref<256x128xf32, #tpu.memory_space<vmem>>, vector<256x128xf32>
      %37 = vector.broadcast %26 : vector<256x1xf32> to vector<256x128xf32>
      %38 = arith.mulf %37, %36 : vector<256x128xf32>
      %39 = arith.truncf %29 : vector<256x512xf32> to vector<256x512xbf16>
      %cst_22 = arith.constant dense<0.000000e+00> : vector<256x128xf32>
      %40 = tpu.matmul %39, %9, %cst_22 {dimension_numbers = #tpu.dot_dimension_numbers<[1], [0], [0], [1], [0, 0, 1, 1], [], []>} : vector<256x512xbf16>, vector<512x128xbf16>, vector<256x128xf32> -> vector<256x128xf32>
      %41 = arith.addf %38, %40 : vector<256x128xf32>
      %c0_23 = arith.constant 0 : index
      %c0_24 = arith.constant 0 : index
      %42 = vector.load %arg10[%c0_23, %c0_24] : memref<256x128xf32, #tpu.memory_space<vmem>>, vector<256x128xf32>
      tpu.vector_store %arg10[%c0_23, %c0_24], %41 {strides = array<i32>} : memref<256x128xf32, #tpu.memory_space<vmem>>, vector<256x128xf32>,
      %c0_25 = arith.constant 0 : index
      %c0_26 = arith.constant 0 : index
      %43 = vector.load %arg8[%c0_25, %c0_26] : memref<256x1xf32, #tpu.memory_space<vmem>>, vector<256x1xf32>
      tpu.vector_store %arg8[%c0_25, %c0_26], %24 {strides = array<i32>} : memref<256x1xf32, #tpu.memory_space<vmem>>, vector<256x1xf32>,
    } else {
    }
    %c1_i32_10 = arith.constant 1 : i32
    %18 = arith.cmpi eq, %arg1, %c1_i32_10 : i32
    %19 = arith.extui %18 : i1 to i32
    %c0_i32_11 = arith.constant 0 : i32
    %20 = arith.cmpi ne, %19, %c0_i32_11 : i32
    scf.if %20 {
      %c0_12 = arith.constant 0 : index
      %c0_13 = arith.constant 0 : index
      %21 = vector.load %arg9[%c0_12, %c0_13] : memref<256x1xf32, #tpu.memory_space<vmem>>, vector<256x1xf32>
      %22 = tpu.reciprocal %21 : vector<256x1xf32> -> vector<256x1xf32>
      %c0_14 = arith.constant 0 : index
      %c0_15 = arith.constant 0 : index
      %23 = vector.load %arg10[%c0_14, %c0_15] : memref<256x128xf32, #tpu.memory_space<vmem>>, vector<256x128xf32>
      %24 = vector.broadcast %22 : vector<256x1xf32> to vector<256x128xf32>
      %25 = arith.mulf %23, %24 : vector<256x128xf32>
      %c0_16 = arith.constant 0 : index
      %c0_17 = arith.constant 0 : index
      %26 = vector.load %arg6[%c0_16, %c0_17] : memref<256x128xf32, #tpu.memory_space<vmem>>, vector<256x128xf32>
      tpu.vector_store %arg6[%c0_16, %c0_17], %25 {strides = array<i32>} : memref<256x128xf32, #tpu.memory_space<vmem>>, vector<256x128xf32>,
    } else {
    }
    return
  }
  func.func @transform_0(%arg0: i32, %arg1: i32) -> (i32, i32) {
    %c0_i32 = arith.constant 0 : i32
    %c0_i32_0 = arith.constant 0 : i32
    return %arg0, %c0_i32 : i32, i32
  }
  func.func @transform_1(%arg0: i32, %arg1: i32) -> (i32, i32) {
    %c0_i32 = arith.constant 0 : i32
    %c0_i32_0 = arith.constant 0 : i32
    return %arg1, %c0_i32 : i32, i32
  }
  func.func @transform_2(%arg0: i32, %arg1: i32) -> (i32, i32) {
    %c0_i32 = arith.constant 0 : i32
    %c0_i32_0 = arith.constant 0 : i32
    %c0_i32_1 = arith.constant 0 : i32
    return %c0_i32, %c0_i32_0 : i32, i32
  }
  func.func @transform_3(%arg0: i32, %arg1: i32) -> (i32, i32) {
    %c0_i32 = arith.constant 0 : i32
    %c0_i32_0 = arith.constant 0 : i32
    %c0_i32_1 = arith.constant 0 : i32
    return %c0_i32, %c0_i32_0 : i32, i32
  }
  func.func @transform_4(%arg0: i32, %arg1: i32) -> (i32, i32) {
    %c0_i32 = arith.constant 0 : i32
    %c0_i32_0 = arith.constant 0 : i32
    return %arg0, %c0_i32 : i32, i32
  }
}

</mosaic_0001>

<bundles_post_ra>
// kernel: tpu_custom_call.1
= control target key start
LH: loop header
LB: loop body
LE: loop exit
PB: predicated region body
PF: predicated region fallthrough
CT: control target
= control target key end

     0   :  { %s12687_s0 = inlined_call_operand.hbm [shape: bf16[1024,128], index: 0, kind: input, shape index: {}]   ;;  %s12688_s1 = inlined_call_operand.hbm [shape: bf16[1024,128], index: 1, kind: input, shape index: {}]   ;;  %s12689_s2 = inlined_call_operand.hbm [shape: bf16[128,128], index: 2, kind: input, shape index: {}]   ;;  %s12690_s3 = inlined_call_operand.hbm [shape: bf16[128,256], index: 3, kind: input, shape index: {}]   ;;  %s12691_s4 = inlined_call_operand.hbm [shape: f32[1024,128], index: 4, kind: output, shape index: {}]  }
   0x1   :  { %13117 = sst [smem:[#allocation400_spill]] %s12687_s0 }
   0x2   :  { %13118 = sst [smem:[#allocation401_spill]] %s12689_s2 }
   0x3   :  { %13119 = sst [smem:[#allocation402_spill]] %s12690_s3 }
   0x4   :  { %13120 = sst [smem:[#allocation403_spill]] %s12691_s4 }
   0x5   :  { %9 = vsyncpa [#allocation7], 0 }
   0x6   :  { %11 = vsyncpa [#allocation7 + $0x1], 0 }
   0x7   :  { %12 = vsyncpa [#allocation10], 0 }
   0x8   :  { %14 = vsyncpa [#allocation10 + $0x1], 0 }
   0x9   :  { %15 = vsyncpa [#allocation13], 0 }
   0xa   :  { %16 = vsyncpa [#allocation8], 0 }
   0xb   :  { %18 = vsyncpa [#allocation8 + $0x1], 0  ;;  %s8297_s15 = smov 0   ;;  %s8299_s16 = smov 0  }
   0xc   :  { %s8301_s17 = smov 0   ;;  %s8303_s18 = smov 0  }
   0xd   :  { %s8305_s19 = smov 0   ;;  %s8307_s20 = smov 0  }
   0xe   :  { %s8309_s21 = smov 0   ;;  %s8311_s22 = smov 0  }
   0xf   :  { %s8313_s23 = smov 0   ;;  %s8315_s24 = smov 0  }
  0x10   :  { %s8317_s25 = smov 0  }
  0x11 LB: > { %13121 = sst [smem:[#allocation20_spill]] %s8225_s18  ;;  %s8351_s26 = sadd.s32 4294967295, %s8253_s25   ;;  %s8253_s25 = sphi %s8317_s25, %s24_s25   ;;  %s8249_s24 = sphi %s8315_s24, %s14194_s24   ;;  %s8245_s23 = sphi %s8313_s23, %s14193_s23   ;;  %s8241_s22 = sphi %s8311_s22, %s14192_s22   ;;  %s8237_s21 = sphi %s8309_s21, %s14191_s21   ;;  %s8233_s20 = sphi %s8307_s20, %s14190_s20   ;;  %s8229_s19 = sphi %s8305_s19, %s14189_s19   ;;  %s8225_s18 = sphi %s8303_s18, %s14188_s18   ;;  %s8221_s17 = sphi %s8301_s17, %s14187_s17   ;;  %s8217_s16 = sphi %s8299_s16, %s14186_s16   ;;  %s8213_s15 = sphi %s8297_s15, %s14185_s15  }
  0x12   : > { %s6323_s27 = sadd.s32 4294967294, %s8253_s25   ;;  %p56_p0 = scmp.ne.s32.totalorder %s8229_s19, %s8225_s18 }
  0x13   : > { %p12692_p1 = scmp.eq.s32.totalorder %s8351_s26, 0  ;;  %p82_p2 = scmp.ne.s32.totalorder %s8217_s16, %s8213_s15 }
  0x14   : > { %p154_p5 = scmp.eq.s32.totalorder %s6323_s27, 7  ;;  %p6324_p7 = scmp.ge.s32.totalorder %s8253_s25, 1 }
  0x15   : > { %p8361_p4 = por %p12692_p1, %p56_p0  ;;  %p8367_p6 = por %p82_p2, %p12692_p1 }
  0x16   : > { %p8372_p8 = por %p154_p5, %p56_p0  ;;  %p161_p9 = scmp.lt.s32.totalorder %s8253_s25, 9 }
  0x17   : > { %s13122_s28 = scalar_select %p8361_p4, 1, 0 }
  0x18   : > { %s13123_s29 = scalar_select %p8367_p6, 1, 0 }
  0x19   : > { %s13124_s30 = scalar_select %p8372_p8, 1, 0 }
  0x1a   : > { %p8377_p10 = pnand %p6324_p7, %p161_p9  ;;  %s8255_s6 = smov [#allocation11]  }
  0x1b   : > { %13125 = sst [smem:[#allocation21_spill]] %s13124_s30  ;;  %s173_s7 = sshll.u32 %s8255_s6, 4  ;;  %s174_s7 = int_to_ptr.vmem [resolvable:$true] %s173_s7 }
  0x1c   : > { %s13126_s5 = scalar_select %p8377_p10, 1, 0 }
  0x1d   : > { %p7087_p11 = pneg %p8377_p10  ;;  %s8256_s9 = smov [#allocation12]  }
  0x1e   : > { %s186_s10 = sshll.u32 %s8256_s9, 4  ;;  %s13128_s2 = sld [smem:[#allocation401_spill]]  ;;  %s8389_s10 = int_to_ptr.vmem [resolvable:$true] %s186_s10 }
  0x1f   : > { %p8385_p12 = pnand %p7087_p11, %p12692_p1 }
  0x21   : > { %p8005_p0 = pneg %p8385_p12 }
  0x24   : > { %s8003_s13 = scalar_lea.hbm %s13128_s2, 1024 }
  0x25   : > { %p8004_p13 = scmp.ne.s32.totalorder %s13128_s2, %s8003_s13  ;;  %p8010_p7 = scmp.lt.u32.totalorder %s8003_s13, %s13128_s2 }
  0x27   : > { %p8006_p2 = pnand %p8005_p0, %p8004_p13 }
  0x29   : > { %p8007_p5 = pneg %p8006_p2 }
  0x2b   : > { %p8012_p9 = pnand %p8010_p7, %p8007_p5 }
  0x2d   : > { %8015 = shalt.err (!%p8012_p9)
}
  0x2e   : > { %s8016_s9 = scalar_lea.vmem %s174_s7, 1024  ;;  %p8024_p8 = scmp.lt.s32.totalorder %s174_s7, %s174_s7 }
  0x2f   : > { %p8017_p11 = scmp.ne.s32.totalorder %s174_s7, %s8016_s9  ;;  %p8025_p6 = scmp.lt.s32.totalorder %s8016_s9, %s8016_s9 }
  0x31   : > { %p8019_p1 = pnand %p8017_p11, %p8005_p0  ;;  %p8026_p4 = por %p8025_p6, %p8024_p8 }
  0x33   : > { %p8020_p3 = pneg %p8019_p1 }
  0x35   : > { %p8027_p10 = pnand %p8026_p4, %p8020_p3 }
  0x37   : > { %8030 = shalt.err (!%p8027_p10)
}
  0x38   : > { %s12699_s11 = smov 64   ;;  %s12703_s12 = smov 4  }
  0x39   : > { %7090 = dma.hbm_to_vmem [thread:$0]  (!%p8385_p12), %s13128_s2, 1024, %s174_s7, [#allocation10], %s12699_s11, %s12699_s11, %s12703_s12  }
  0x3a   : > { %s13129_s3 = sld [smem:[#allocation402_spill]] }
  0x40   : > { %s8031_s6 = scalar_lea.hbm %s13129_s3, 2048 }
  0x41   : > { %p8032_p1 = scmp.ne.s32.totalorder %s13129_s3, %s8031_s6  ;;  %p8038_p6 = scmp.lt.u32.totalorder %s8031_s6, %s13129_s3 }
  0x43   : > { %p8034_p3 = pnand %p8032_p1, %p8005_p0 }
  0x45   : > { %p8035_p4 = pneg %p8034_p3 }
  0x47   : > { %p8040_p8 = pnand %p8038_p6, %p8035_p4 }
  0x49   : > { %8043 = shalt.err (!%p8040_p8)
}
  0x4a   : > { %s8044_s7 = scalar_lea.vmem %s8389_s10, 2048  ;;  %p8052_p5 = scmp.lt.s32.totalorder %s8389_s10, %s8389_s10 }
  0x4b   : > { %p8045_p10 = scmp.ne.s32.totalorder %s8389_s10, %s8044_s7  ;;  %p8053_p7 = scmp.lt.s32.totalorder %s8044_s7, %s8044_s7 }
  0x4d   : > { %p8047_p13 = pnand %p8045_p10, %p8005_p0  ;;  %p8054_p9 = por %p8053_p7, %p8052_p5 }
  0x4f   : > { %p8048_p2 = pneg %p8047_p13 }
  0x51   : > { %p8055_p11 = pnand %p8054_p9, %p8048_p2 }
  0x53   : > { %8058 = shalt.err (!%p8055_p11)
}
  0x54   : > { %s8259_s4 = smov 128   ;;  %s8260_s18 = smov 8  }
  0x55   : > { %7093 = dma.hbm_to_vmem [thread:$0]  (!%p8385_p12), %s13129_s3, 2048, %s8389_s10, [#allocation13], %s8259_s4, %s8259_s4, %s8260_s18  }
  0x56   : > { %s36_s14 = sadd.s32 1, %s8249_s24  ;;  %p50_p0 = scmp.ne.s32.totalorder %s8233_s20, %s8229_s19 }
  0x57   : > { %p12702_p1 = scmp.eq.s32.totalorder %s8253_s25, 0  ;;  %p12701_p3 = scmp.lt.s32.totalorder %s8253_s25, 8 }
  0x58   : > { %s200_s15 = sand.u32 1, %s8233_s20   ;;  %p13130_p6 = scmp.eq.s32.totalorder %s8351_s26, 7 }
  0x59   : > { %p52_p4 = por %p12702_p1, %p50_p0  ;;  %s6328_s6 = sshll.u32 %s200_s15, 7 }
  0x5a   : > { %p8451_p8 = por %p13130_p6, %p50_p0  ;;  %s6422_s9 = sshll.u32 %s8249_s24, 11 }
  0x5b   : > { %s13133_s0 = sld [smem:[#allocation400_spill]]  ;;  %s204_s10 = scalar_lea.vmem [#allocation6], %s6328_s6 }
  0x5c   : > { %s13131_s27 = scalar_select %p8451_p8, 1, 0 }
  0x5d   : > { %s211_s4 = sshll.u32 %s204_s10, 4  ;;  %p8465_p12 = pnand %p12701_p3, %p52_p4  ;;  %s8461_s4 = int_to_ptr.vmem [resolvable:$true] %s211_s4 }
  0x5e   : > { %13132 = sst [smem:[#allocation22_spill]] %s13131_s27  ;;  %s8469_s30 = scalar_lea.sflag [#allocation7], %s200_s15 }
  0x5f   : > { %p8061_p13 = pneg %p8465_p12 }
  0x61   : > { %s8459_s11 = scalar_lea.hbm %s13133_s0, %s6422_s9  ;;  %s8064_s7 = scalar_lea.hbm %s13133_s0, 8192 }
  0x62   : > { %s8059_s13 = scalar_lea.hbm %s8459_s11, 2048  ;;  %p8065_p7 = scmp.lt.u32.totalorder %s8459_s11, %s13133_s0 }
  0x63   : > { %p8060_p10 = scmp.ne.s32.totalorder %s8459_s11, %s8059_s13  ;;  %p8066_p9 = scmp.lt.u32.totalorder %s8064_s7, %s8059_s13 }
  0x64   : > { %p8068_p0 = scmp.lt.u32.totalorder %s8059_s13, %s8459_s11 }
  0x65   : > { %p8062_p2 = pnand %p8061_p13, %p8060_p10  ;;  %p8067_p11 = por %p8066_p9, %p8065_p7 }
  0x67   : > { %p8063_p5 = pneg %p8062_p2  ;;  %p8069_p4 = por %p8068_p0, %p8067_p11 }
  0x69   : > { %p8070_p6 = pnand %p8069_p4, %p8063_p5 }
  0x6b   : > { %8073 = shalt.err (!%p8070_p6)
}
  0x6c   : > { %s8074_s15 = scalar_lea.vmem %s8461_s4, 2048  ;;  %s8261_s6 = smov [#allocation6]  }
  0x6d   : > { %p8075_p10 = scmp.ne.s32.totalorder %s8461_s4, %s8074_s15  ;;  %s8079_s9 = sshll.u32 %s8261_s6, 4  ;;  %s8080_s9 = int_to_ptr.vmem [resolvable:$false] %s8079_s9 }
  0x6e   : > { %s8081_s8 = scalar_lea.vmem %s8080_s9, 4096  ;;  %p8082_p1 = scmp.lt.s32.totalorder %s8461_s4, %s8080_s9 }
  0x6f   : > { %p8077_p2 = pnand %p8075_p10, %p8061_p13  ;;  %p8083_p7 = scmp.lt.s32.totalorder %s8081_s8, %s8074_s15 }
  0x71   : > { %p8078_p3 = pneg %p8077_p2  ;;  %p8084_p9 = por %p8083_p7, %p8082_p1 }
  0x73   : > { %p8085_p11 = pnand %p8084_p9, %p8078_p3 }
  0x75   : > { %8088 = shalt.err (!%p8085_p11)
}
  0x76   : > { %s13135_s13 = smov 64   ;;  %s33_s18 = sadd.s32 1, %s8245_s23 }
  0x77   : > { %7097 = dma.hbm_to_vmem [thread:$0]  (!%p8465_p12), %s8459_s11, 2048, %s8461_s4, %s8469_s30, %s13135_s13, %s13135_s13, %s12703_s12  }
  0x78   : > { %s43_s7 = sadd.s32 1, %s8233_s20  ;;  %p34_p1 = scmp.ge.s32.totalorder %s33_s18, 2 }
  0x79   : > { %s69_s10 = sadd.s32 1, %s8221_s17  ;;  %p76_p3 = scmp.ne.s32.totalorder %s8221_s17, %s8217_s16 }
  0x7a   : > { %s14196_s18 = smov (%p34_p1, %s33_s18), 0  ;;  %s14198_s14 = smov (!%p34_p1, %s36_s14), %s8249_s24 }
  0x7b   : > { %13136 = sst [smem:[#allocation23_spill]] %s14196_s18  ;;  %s66_s15 = ssub.s32 %s8245_s23, %s14196_s18 }
  0x7c   : > { %s221_s6 = sand.u32 1, %s8253_s25   ;;  %p38_p13 = scmp.ge.s32.totalorder %s14198_s14, 4 }
  0x7d   : > { %p67_p5 = scmp.eq.s32.totalorder %s66_s15, 0  ;;  %p13137_p0 = scmp.eq.s32.totalorder %s8253_s25, 0 }
  0x7e   : > { %s223_s4 = sand.u32 1, %s8221_s17   ;;  %s14200_s14 = smov (%p38_p13, %s14198_s14), 0 }
  0x7f   : > { %p8515_p12 = por %p76_p3, %p13137_p0  ;;  %s40_s9 = ssub.s32 %s8249_s24, %s14200_s14 }
  0x80   : > { %s8523_s30 = scalar_select %p67_p5, %s8221_s17, %s69_s10  }
  0x81   : > { %s6331_s8 = sshll.u32 %s223_s4, 8  ;;  %p41_p4 = scmp.eq.s32.totalorder %s40_s9, 0 }
  0x82   : > { %s6423_s12 = sshll.u32 %s8245_s23, 12  ;;  %s225_s0 = scalar_lea.vmem [#allocation9], %s6331_s8 }
  0x83   : > { %s232_s2 = sshll.u32 %s225_s0, 4  ;;  %s8534_s27 = scalar_lea.hbm %s12688_s1, %s6423_s12  ;;  %s8536_s2 = int_to_ptr.vmem [resolvable:$true] %s232_s2 }
  0x84   : > { %s8529_s3 = scalar_select %p41_p4, %s8233_s20, %s43_s7  }
  0x85   : > { %p13139_p6 = scmp.lt.s32.totalorder %s8253_s25, 8  ;;  %s8546_s0 = scalar_lea.sflag [#allocation10], %s221_s6 }
  0x86   : > { %s8089_s7 = scalar_lea.hbm %s8534_s27, 4096  ;;  %s8094_s11 = scalar_lea.hbm %s12688_s1, 8192 }
  0x87   : > { %p8542_p10 = pnand %p13139_p6, %p8515_p12  ;;  %p8090_p2 = scmp.ne.s32.totalorder %s8534_s27, %s8089_s7 }
  0x88   : > { %p8095_p1 = scmp.lt.u32.totalorder %s8534_s27, %s12688_s1  ;;  %p8096_p3 = scmp.lt.u32.totalorder %s8094_s11, %s8089_s7 }
  0x89   : > { %p8091_p7 = pneg %p8542_p10  ;;  %p8098_p5 = scmp.lt.u32.totalorder %s8089_s7, %s8534_s27 }
  0x8a   : > { %p8097_p13 = por %p8096_p3, %p8095_p1 }
  0x8b   : > { %p8092_p9 = pnand %p8091_p7, %p8090_p2 }
  0x8c   : > { %p8099_p0 = por %p8098_p5, %p8097_p13 }
  0x8d   : > { %p8093_p11 = pneg %p8092_p9 }
  0x8f   : > { %p8100_p12 = pnand %p8099_p0, %p8093_p11 }
  0x91   : > { %8103 = shalt.err (!%p8100_p12)
}
  0x92   : > { %s8104_s6 = scalar_lea.vmem %s8536_s2, 4096  ;;  %s8262_s8 = smov [#allocation9]  }
  0x93   : > { %p8105_p4 = scmp.ne.s32.totalorder %s8536_s2, %s8104_s6  ;;  %s8109_s15 = sshll.u32 %s8262_s8, 4  ;;  %s8110_s15 = int_to_ptr.vmem [resolvable:$false] %s8109_s15 }
  0x94   : > { %s8111_s12 = scalar_lea.vmem %s8110_s15, 8192  ;;  %p8112_p9 = scmp.lt.s32.totalorder %s8536_s2, %s8110_s15 }
  0x95   : > { %p8107_p6 = pnand %p8105_p4, %p8091_p7  ;;  %p8113_p1 = scmp.lt.s32.totalorder %s8111_s12, %s8104_s6 }
  0x97   : > { %p8108_p2 = pneg %p8107_p6  ;;  %p8114_p3 = por %p8113_p1, %p8112_p9 }
  0x99   : > { %p8115_p13 = pnand %p8114_p3, %p8108_p2 }
  0x9b   : > { %8118 = shalt.err (!%p8115_p13)
}
  0x9c   : > { %s13141_s7 = smov 4   ;;  %p13142_p7 = scmp.ne.s32.totalorder %s13126_s5, 0 }
  0x9d   : > { %7100 = dma.hbm_to_vmem [thread:$0]  (!%p8542_p10), %s8534_s27, 4096, %s8536_s2, %s8546_s0, %s13135_s13, %s13135_s13, %s13141_s7  }
  0x9e   : > { %244 = sbr.rel (%p13142_p7) target bundleno = 3011 (0xbc3), region = 36 }
  0xa5   : > { %s8580_s18 = sand.u32 1, %s8229_s19   ;;  %p13143_p11 = scmp.ne.s32.totalorder %s13122_s28, 0 }
  0xa6   : > { %s6335_s11 = sshll.u32 %s8580_s18, 7  ;;  %s247_s4 = scalar_lea.sflag [#allocation7], %s8580_s18 }
  0xa7   : > { %s8584_s9 = scalar_lea.vmem [#allocation6], %s6335_s11 }
  0xa8   : > { %8192 = dma.done.wait (%p13143_p11), %s247_s4, 2048  }
  0xa9   : > { %8194 = vsyncadd (%p13143_p11), %s247_s4, 4294965248  ;;  %s255_s2 = sand.u32 1, %s8351_s26   ;;  %s257_s5 = sand.u32 1, %s8217_s16  }
  0xaa   : > { %s6336_s27 = sshll.u32 %s257_s5, 8  ;;  %s256_s13 = scalar_lea.sflag [#allocation10], %s255_s2 }
  0xab   : > { %s8592_s10 = scalar_lea.vmem [#allocation9], %s6336_s27  ;;  %p13144_p10 = scmp.ne.s32.totalorder %s13123_s29, 0 }
  0xad   : > { %8196 = dma.done.wait (%p13144_p10), %s256_s13, 4096  }
  0xae   : > { %8198 = vsyncadd (%p13144_p10), %s256_s13, 4294963200  ;;  %p13145_p5 = scmp.eq.s32.totalorder %s8351_s26, 0 }
  0xb0   : > { %8200 = dma.done.wait (%p13145_p5), [#allocation10], 1024   ;;  %p13146_p0 = pmov %p13145_p5 }
  0xb2   : > { %8202 = vsyncadd (%p13146_p0), [#allocation10], 4294966272  ;;  %p13147_p12 = pmov %p13146_p0 }
  0xb3   : > { %p13148_p4 = pmov %p13146_p0 }
  0xb4   : > { %8204 = dma.done.wait (%p13147_p12), [#allocation13], 2048  }
  0xb5   : > { %8206 = vsyncadd (%p13148_p4), [#allocation13], 4294965248  ;;  %s6339_s28 = sshll.u32 %s8580_s18, 8  ;;  %p6340_p6 = scmp.ne.s32.totalorder %s8237_s21, 0 }
  0xb6   : > { %s8607_s0 = scalar_lea.vmem [#allocation14], %s6339_s28  ;;  %v7213_v0 = vld [vmem:[#allocation11] sm:$0xff] (!%p6340_p6)   ;;  %v7214_v1 = vld [vmem:[#allocation11 + $0x8] sm:$0xff] (!%p6340_p6)   ;;  %v7215_v2 = vld [vmem:[#allocation11 + $0x10] sm:$0xff] (!%p6340_p6)   ;;  %vm722_vm0 = vcmask (!%p6340_p6), 7168   ;;  %v8263_v24 = vmov (!%p6340_p6), -inf  }
  0xb7   : > { %304 = sbr.rel (%p6340_p6) target bundleno = 459 (0x1cb), region = 56  ;;  %6993 = vmatprep.subr.bf16.mxu0 (!%p6340_p6), %v7213_v0  ;;  %7041 = vmatprep.subr.bf16.mxu1 (!%p6340_p6), %v7213_v0  ;;  %v7216_v3 = vld [vmem:[#allocation11 + $0x18] sm:$0xff] (!%p6340_p6)   ;;  %v7221_v4 = vld [vmem:[%s8584_s9] sm:$0xff] (!%p6340_p6)   ;;  %v7218_v7 = vld [vmem:[#allocation11 + $0x28] sm:$0xff] (!%p6340_p6)   ;;  %723 = vst.msk [vmem:[#allocation3] sm:$0xff] (!%p6340_p6), %vm722_vm0, %v8263_v24  ;;  %v8264_v25 = vmov (!%p6340_p6), 0.0  }
  0xb8   : > { %6994 = vmatpush3.bf16.msra.mxu0 (!%p6340_p6), %v7213_v0  ;;  %7049 = vmatpush3.bf16.msra.mxu1 (!%p6340_p6), %v7213_v0  ;;  %v7222_v5 = vld [vmem:[%s8584_s9 + $0x40] sm:$0xff] (!%p6340_p6)   ;;  %v7219_v8 = vld [vmem:[#allocation11 + $0x30] sm:$0xff] (!%p6340_p6)   ;;  %v7220_v9 = vld [vmem:[#allocation11 + $0x38] sm:$0xff] (!%p6340_p6)   ;;  %724 = vst.msk [vmem:[#allocation3 + $0x8] sm:$0xff] (!%p6340_p6), %vm722_vm0, %v8263_v24 }
  0xb9   : > { %6995 = vmatprep.subr.bf16.mxu0 (!%p6340_p6), %v7214_v1  ;;  %7042 = vmatprep.subr.bf16.mxu1 (!%p6340_p6), %v7214_v1  ;;  %v7217_v6 = vld [vmem:[#allocation11 + $0x20] sm:$0xff] (!%p6340_p6)   ;;  %v7223_v10 = vld [vmem:[%s8584_s9 + $0x8] sm:$0xff] (!%p6340_p6)   ;;  %v7225_v12 = vld [vmem:[%s8584_s9 + $0x10] sm:$0xff] (!%p6340_p6)   ;;  %725 = vst.msk [vmem:[#allocation3 + $0x10] sm:$0xff] (!%p6340_p6), %vm722_vm0, %v8263_v24 }
  0xba   : > { %7009 = vmatprep.mubr.bf16.mxu0 (!%p6340_p6), %v7221_v4  ;;  %7025 = vmatprep.mubr.bf16.mxu1 (!%p6340_p6), %v7222_v5  ;;  %v7224_v11 = vld [vmem:[%s8584_s9 + $0x48] sm:$0xff] (!%p6340_p6)   ;;  %v7226_v13 = vld [vmem:[%s8584_s9 + $0x50] sm:$0xff] (!%p6340_p6)   ;;  %v7227_v14 = vld [vmem:[%s8584_s9 + $0x18] sm:$0xff] (!%p6340_p6)   ;;  %726 = vst.msk [vmem:[#allocation3 + $0x18] sm:$0xff] (!%p6340_p6), %vm722_vm0, %v8263_v24 }
  0xbb   : > { %v7228_v15 = vld [vmem:[%s8584_s9 + $0x58] sm:$0xff] (!%p6340_p6)   ;;  %v7229_v16 = vld [vmem:[%s8584_s9 + $0x20] sm:$0xff] (!%p6340_p6)   ;;  %v7231_v18 = vld [vmem:[%s8584_s9 + $0x28] sm:$0xff] (!%p6340_p6)   ;;  %727 = vst.msk [vmem:[#allocation3 + $0x20] sm:$0xff] (!%p6340_p6), %vm722_vm0, %v8263_v24 }
  0xbc   : > { %6996 = vmatpush3.bf16.msra.mxu0 (!%p6340_p6), %v7214_v1  ;;  %7050 = vmatpush3.bf16.msra.mxu1 (!%p6340_p6), %v7214_v1  ;;  %v7230_v17 = vld [vmem:[%s8584_s9 + $0x60] sm:$0xff] (!%p6340_p6)   ;;  %v7232_v19 = vld [vmem:[%s8584_s9 + $0x68] sm:$0xff] (!%p6340_p6)   ;;  %v7233_v20 = vld [vmem:[%s8584_s9 + $0x30] sm:$0xff] (!%p6340_p6)   ;;  %728 = vst.msk [vmem:[#allocation3 + $0x28] sm:$0xff] (!%p6340_p6), %vm722_vm0, %v8263_v24 }
  0xbd   : > { %6997 = vmatprep.subr.bf16.mxu0 (!%p6340_p6), %v7215_v2  ;;  %7043 = vmatprep.subr.bf16.mxu1 (!%p6340_p6), %v7215_v2  ;;  %v7234_v21 = vld [vmem:[%s8584_s9 + $0x70] sm:$0xff] (!%p6340_p6)   ;;  %v7235_v22 = vld [vmem:[%s8584_s9 + $0x38] sm:$0xff] (!%p6340_p6)   ;;  %729 = vst.msk [vmem:[#allocation3 + $0x30] sm:$0xff] (!%p6340_p6), %vm722_vm0, %v8263_v24  ;;  %730 = vst.msk [vmem:[#allocation3 + $0x38] sm:$0xff] (!%p6340_p6), %vm722_vm0, %v8263_v24 }
  0xbe   : > { %v7236_v23 = vld [vmem:[%s8584_s9 + $0x78] sm:$0xff]   ;;  %731 = vst.msk [vmem:[#allocation3 + $0x40] sm:$0xff] %vm722_vm0, %v8263_v24  ;;  %732 = vst.msk [vmem:[#allocation3 + $0x48] sm:$0xff] %vm722_vm0, %v8263_v24 }
  0xbf   : > { %733 = vst.msk [vmem:[#allocation3 + $0x50] sm:$0xff] %vm722_vm0, %v8263_v24  ;;  %734 = vst.msk [vmem:[#allocation3 + $0x58] sm:$0xff] %vm722_vm0, %v8263_v24 }
  0xc0   : > { %6998 = vmatpush3.bf16.msra.mxu0 %v7215_v2  ;;  %7051 = vmatpush3.bf16.msra.mxu1 %v7215_v2  ;;  %735 = vst.msk [vmem:[#allocation3 + $0x60] sm:$0xff] %vm722_vm0, %v8263_v24  ;;  %736 = vst.msk [vmem:[#allocation3 + $0x68] sm:$0xff] %vm722_vm0, %v8263_v24 }
  0xc1   : > { %6999 = vmatprep.subr.bf16.mxu0 %v7216_v3  ;;  %7044 = vmatprep.subr.bf16.mxu1 %v7216_v3  ;;  %737 = vst.msk [vmem:[#allocation3 + $0x70] sm:$0xff] %vm722_vm0, %v8263_v24  ;;  %738 = vst.msk [vmem:[#allocation3 + $0x78] sm:$0xff] %vm722_vm0, %v8263_v24 }
  0xc2   : > { %739 = vst.msk [vmem:[#allocation3 + $0x80] sm:$0xff] %vm722_vm0, %v8263_v24  ;;  %740 = vst.msk [vmem:[#allocation3 + $0x88] sm:$0xff] %vm722_vm0, %v8263_v24 }
  0xc3   : > { %741 = vst.msk [vmem:[#allocation3 + $0x90] sm:$0xff] %vm722_vm0, %v8263_v24  ;;  %742 = vst.msk [vmem:[#allocation3 + $0x98] sm:$0xff] %vm722_vm0, %v8263_v24 }
  0xc4   : > { %7000 = vmatpush3.bf16.msra.mxu0 %v7216_v3  ;;  %7052 = vmatpush3.bf16.msra.mxu1 %v7216_v3  ;;  %743 = vst.msk [vmem:[#allocation3 + $0xa0] sm:$0xff] %vm722_vm0, %v8263_v24  ;;  %744 = vst.msk [vmem:[#allocation3 + $0xa8] sm:$0xff] %vm722_vm0, %v8263_v24 }
  0xc5   : > { %7001 = vmatprep.subr.bf16.mxu0 %v7217_v6  ;;  %7045 = vmatprep.subr.bf16.mxu1 %v7217_v6  ;;  %745 = vst.msk [vmem:[#allocation3 + $0xb0] sm:$0xff] %vm722_vm0, %v8263_v24  ;;  %746 = vst.msk [vmem:[#allocation3 + $0xb8] sm:$0xff] %vm722_vm0, %v8263_v24 }
  0xc6   : > { %747 = vst.msk [vmem:[#allocation3 + $0xc0] sm:$0xff] %vm722_vm0, %v8263_v24  ;;  %748 = vst.msk [vmem:[#allocation3 + $0xc8] sm:$0xff] %vm722_vm0, %v8263_v24 }
  0xc7   : > { %749 = vst.msk [vmem:[#allocation3 + $0xd0] sm:$0xff] %vm722_vm0, %v8263_v24  ;;  %750 = vst.msk [vmem:[#allocation3 + $0xd8] sm:$0xff] %vm722_vm0, %v8263_v24 }
  0xc8   : > { %7002 = vmatpush3.bf16.msra.mxu0 %v7217_v6  ;;  %7053 = vmatpush3.bf16.msra.mxu1 %v7217_v6  ;;  %751 = vst.msk [vmem:[#allocation3 + $0xe0] sm:$0xff] %vm722_vm0, %v8263_v24  ;;  %752 = vst.msk [vmem:[#allocation3 + $0xe8] sm:$0xff] %vm722_vm0, %v8263_v24 }
  0xc9   : > { %7003 = vmatprep.subr.bf16.mxu0 %v7218_v7  ;;  %7046 = vmatprep.subr.bf16.mxu1 %v7218_v7  ;;  %753 = vst.msk [vmem:[#allocation3 + $0xf0] sm:$0xff] %vm722_vm0, %v8263_v24  ;;  %754 = vst.msk [vmem:[#allocation3 + $0xf8] sm:$0xff] %vm722_vm0, %v8263_v24 }
  0xca   : > { %755 = vst.msk [vmem:[#allocation4] sm:$0xff] %vm722_vm0, %v8264_v25  ;;  %756 = vst.msk [vmem:[#allocation4 + $0x8] sm:$0xff] %vm722_vm0, %v8264_v25 }
  0xcb   : > { %757 = vst.msk [vmem:[#allocation4 + $0x10] sm:$0xff] %vm722_vm0, %v8264_v25  ;;  %758 = vst.msk [vmem:[#allocation4 + $0x18] sm:$0xff] %vm722_vm0, %v8264_v25 }
  0xcc   : > { %7004 = vmatpush3.bf16.msra.mxu0 %v7218_v7  ;;  %7054 = vmatpush3.bf16.msra.mxu1 %v7218_v7  ;;  %759 = vst.msk [vmem:[#allocation4 + $0x20] sm:$0xff] %vm722_vm0, %v8264_v25  ;;  %760 = vst.msk [vmem:[#allocation4 + $0x28] sm:$0xff] %vm722_vm0, %v8264_v25 }
  0xcd   : > { %7005 = vmatprep.subr.bf16.mxu0 %v7219_v8  ;;  %7047 = vmatprep.subr.bf16.mxu1 %v7219_v8  ;;  %761 = vst.msk [vmem:[#allocation4 + $0x30] sm:$0xff] %vm722_vm0, %v8264_v25  ;;  %762 = vst.msk [vmem:[#allocation4 + $0x38] sm:$0xff] %vm722_vm0, %v8264_v25 }
  0xce   : > { %763 = vst.msk [vmem:[#allocation4 + $0x40] sm:$0xff] %vm722_vm0, %v8264_v25  ;;  %764 = vst.msk [vmem:[#allocation4 + $0x48] sm:$0xff] %vm722_vm0, %v8264_v25 }
  0xcf   : > { %765 = vst.msk [vmem:[#allocation4 + $0x50] sm:$0xff] %vm722_vm0, %v8264_v25  ;;  %766 = vst.msk [vmem:[#allocation4 + $0x58] sm:$0xff] %vm722_vm0, %v8264_v25 }
  0xd0   : > { %7006 = vmatpush3.bf16.msra.mxu0 %v7219_v8  ;;  %7055 = vmatpush3.bf16.msra.mxu1 %v7219_v8  ;;  %767 = vst.msk [vmem:[#allocation4 + $0x60] sm:$0xff] %vm722_vm0, %v8264_v25  ;;  %768 = vst.msk [vmem:[#allocation4 + $0x68] sm:$0xff] %vm722_vm0, %v8264_v25 }
  0xd1   : > { %7007 = vmatprep.subr.bf16.mxu0 %v7220_v9  ;;  %7048 = vmatprep.subr.bf16.mxu1 %v7220_v9  ;;  %769 = vst.msk [vmem:[#allocation4 + $0x70] sm:$0xff] %vm722_vm0, %v8264_v25  ;;  %770 = vst.msk [vmem:[#allocation4 + $0x78] sm:$0xff] %vm722_vm0, %v8264_v25 }
  0xd2   : > { %771 = vst.msk [vmem:[#allocation4 + $0x80] sm:$0xff] %vm722_vm0, %v8264_v25  ;;  %772 = vst.msk [vmem:[#allocation4 + $0x88] sm:$0xff] %vm722_vm0, %v8264_v25 }
  0xd3   : > { %773 = vst.msk [vmem:[#allocation4 + $0x90] sm:$0xff] %vm722_vm0, %v8264_v25  ;;  %774 = vst.msk [vmem:[#allocation4 + $0x98] sm:$0xff] %vm722_vm0, %v8264_v25 }
  0xd4   : > { %7008 = vmatpush3.bf16.msra.mxu0 %v7220_v9  ;;  %7056 = vmatpush3.bf16.msra.mxu1 %v7220_v9  ;;  %775 = vst.msk [vmem:[#allocation4 + $0xa0] sm:$0xff] %vm722_vm0, %v8264_v25  ;;  %776 = vst.msk [vmem:[#allocation4 + $0xa8] sm:$0xff] %vm722_vm0, %v8264_v25 }
  0xd5   : > { %777 = vst.msk [vmem:[#allocation4 + $0xb0] sm:$0xff] %vm722_vm0, %v8264_v25  ;;  %778 = vst.msk [vmem:[#allocation4 + $0xb8] sm:$0xff] %vm722_vm0, %v8264_v25 }
  0xd6   : > { %779 = vst.msk [vmem:[#allocation4 + $0xc0] sm:$0xff] %vm722_vm0, %v8264_v25  ;;  %780 = vst.msk [vmem:[#allocation4 + $0xc8] sm:$0xff] %vm722_vm0, %v8264_v25 }
  0xd7   : > { %7010 = vmatmul.mubr.bf16.vlgmr.msra.gmra.mrb[0].mxu0 %v7223_v10  ;;  %7026 = vmatmul.mubr.bf16.vlgmr.msra.gmra.mrb[0].mxu1 %v7224_v11  ;;  %781 = vst.msk [vmem:[#allocation4 + $0xd0] sm:$0xff] %vm722_vm0, %v8264_v25  ;;  %782 = vst.msk [vmem:[#allocation4 + $0xd8] sm:$0xff] %vm722_vm0, %v8264_v25 }
  0xd8   : > { %7013 = vmatprep.mubr.bf16.mxu0 %v7225_v12  ;;  %7029 = vmatprep.mubr.bf16.mxu1 %v7226_v13  ;;  %783 = vst.msk [vmem:[#allocation4 + $0xe0] sm:$0xff] %vm722_vm0, %v8264_v25  ;;  %784 = vst.msk [vmem:[#allocation4 + $0xe8] sm:$0xff] %vm722_vm0, %v8264_v25 }
  0xd9   : > { %785 = vst.msk [vmem:[#allocation4 + $0xf0] sm:$0xff] %vm722_vm0, %v8264_v25  ;;  %786 = vst.msk [vmem:[#allocation4 + $0xf8] sm:$0xff] %vm722_vm0, %v8264_v25 }
  0xda   : > { %787 = vst [vmem:[#allocation5] sm:$0xff] %v8264_v25  ;;  %788 = vst [vmem:[#allocation5 + $0x8] sm:$0xff] %v8264_v25 }
  0xdb   : > { %789 = vst [vmem:[#allocation5 + $0x10] sm:$0xff] %v8264_v25  ;;  %790 = vst [vmem:[#allocation5 + $0x18] sm:$0xff] %v8264_v25 }
  0xdc   : > { %791 = vst [vmem:[#allocation5 + $0x20] sm:$0xff] %v8264_v25  ;;  %792 = vst [vmem:[#allocation5 + $0x28] sm:$0xff] %v8264_v25 }
  0xdd   : > { %793 = vst [vmem:[#allocation5 + $0x30] sm:$0xff] %v8264_v25  ;;  %794 = vst [vmem:[#allocation5 + $0x38] sm:$0xff] %v8264_v25 }
  0xde   : > { %795 = vst [vmem:[#allocation5 + $0x40] sm:$0xff] %v8264_v25  ;;  %796 = vst [vmem:[#allocation5 + $0x48] sm:$0xff] %v8264_v25 }
  0xdf   : > { %7014 = vmatmul.mubr.bf16.gmra.mrb[4].mxu0 %v7227_v14  ;;  %7030 = vmatmul.mubr.bf16.gmra.mrb[4].mxu1 %v7228_v15  ;;  %797 = vst [vmem:[#allocation5 + $0x50] sm:$0xff] %v8264_v25  ;;  %798 = vst [vmem:[#allocation5 + $0x58] sm:$0xff] %v8264_v25 }
  0xe0   : > { %7017 = vmatprep.mubr.bf16.mxu0 %v7229_v16  ;;  %7033 = vmatprep.mubr.bf16.mxu1 %v7230_v17  ;;  %799 = vst [vmem:[#allocation5 + $0x60] sm:$0xff] %v8264_v25  ;;  %800 = vst [vmem:[#allocation5 + $0x68] sm:$0xff] %v8264_v25 }
  0xe1   : > { %801 = vst [vmem:[#allocation5 + $0x70] sm:$0xff] %v8264_v25  ;;  %802 = vst [vmem:[#allocation5 + $0x78] sm:$0xff] %v8264_v25 }
  0xe2   : > { %803 = vst [vmem:[#allocation5 + $0x80] sm:$0xff] %v8264_v25  ;;  %804 = vst [vmem:[#allocation5 + $0x88] sm:$0xff] %v8264_v25 }
  0xe3   : > { %805 = vst [vmem:[#allocation5 + $0x90] sm:$0xff] %v8264_v25  ;;  %806 = vst [vmem:[#allocation5 + $0x98] sm:$0xff] %v8264_v25 }
  0xe4   : > { %807 = vst [vmem:[#allocation5 + $0xa0] sm:$0xff] %v8264_v25  ;;  %808 = vst [vmem:[#allocation5 + $0xa8] sm:$0xff] %v8264_v25 }
  0xe5   : > { %809 = vst [vmem:[#allocation5 + $0xb0] sm:$0xff] %v8264_v25  ;;  %810 = vst [vmem:[#allocation5 + $0xb8] sm:$0xff] %v8264_v25 }
  0xe6   : > { %811 = vst [vmem:[#allocation5 + $0xc0] sm:$0xff] %v8264_v25  ;;  %812 = vst [vmem:[#allocation5 + $0xc8] sm:$0xff] %v8264_v25 }
  0xe7   : > { %7018 = vmatmul.mubr.bf16.gmra.mrb[8].mxu0 %v7231_v18  ;;  %7034 = vmatmul.mubr.bf16.gmra.mrb[8].mxu1 %v7232_v19  ;;  %813 = vst [vmem:[#allocation5 + $0xd0] sm:$0xff] %v8264_v25  ;;  %814 = vst [vmem:[#allocation5 + $0xd8] sm:$0xff] %v8264_v25 }
  0xe8   : > { %7021 = vmatprep.mubr.bf16.mxu0 %v7233_v20  ;;  %7037 = vmatprep.mubr.bf16.mxu1 %v7234_v21  ;;  %815 = vst [vmem:[#allocation5 + $0xe0] sm:$0xff] %v8264_v25  ;;  %816 = vst [vmem:[#allocation5 + $0xe8] sm:$0xff] %v8264_v25 }
  0xe9   : > { %817 = vst [vmem:[#allocation5 + $0xf0] sm:$0xff] %v8264_v25  ;;  %818 = vst [vmem:[#allocation5 + $0xf8] sm:$0xff] %v8264_v25 }
  0xef   : > { %7022 = vmatmul.mubr.bf16.gmra.mrb[12].mxu0 %v7235_v22  ;;  %7038 = vmatmul.mubr.bf16.gmra.mrb[12].mxu1 %v7236_v23 }
 0x1aa   : > { %v7011_v26 = vpop.f32.mrb[0].mxu0  ;;  %v7027_v27 = vpop.f32.mrb[0].mxu1 }
 0x1ab   : > { %v660_v28 = vmul.f32 0.17677669, %v7011_v26  ;;  %v531_v29 = vpop.f32.mrb[1].mxu0  ;;  %v595_v30 = vpop.f32.mrb[1].mxu1  ;;  %v676_v31 = vmul.f32 0.17677669, %v7027_v27 }
 0x1ac   : > { %v658_v32 = vmul.f32 0.17677669, %v531_v29  ;;  %v7012_v33 = vpop.f32.mrb[2].mxu0  ;;  %v7028_v34 = vpop.f32.mrb[2].mxu1  ;;  %v674_v39 = vmul.f32 0.17677669, %v595_v30 }
 0x1ad   : > { %v661_v35 = vmul.f32 0.17677669, %v7012_v33  ;;  %v677_v36 = vmul.f32 0.17677669, %v7028_v34  ;;  %v534_v37 = vpop.f32.mrb[3].mxu0  ;;  %v598_v38 = vpop.f32.mrb[3].mxu1 }
 0x1ae   : > { %v659_v40 = vmul.f32 0.17677669, %v534_v37  ;;  %v675_v41 = vmul.f32 0.17677669, %v598_v38 }
 0x1af   : > { %v691_v42 = vpack.c.bf16 %v661_v35, %v660_v28  ;;  %v699_v43 = vpack.c.bf16 %v677_v36, %v676_v31 }
 0x1b0   : > { %v690_v44 = vpack.c.bf16 %v659_v40, %v658_v32  ;;  %v698_v45 = vpack.c.bf16 %v675_v41, %v674_v39 }
 0x1b1   : > { %707 = vst [vmem:[#allocation2 + $0x8] sm:$0xff] %v691_v42  ;;  %715 = vst [vmem:[#allocation2 + $0x48] sm:$0xff] %v699_v43 }
 0x1b2   : > { %706 = vst [vmem:[#allocation2] sm:$0xff] %v690_v44  ;;  %714 = vst [vmem:[#allocation2 + $0x40] sm:$0xff] %v698_v45  ;;  %v7015_v46 = vpop.f32.mrb[4].mxu0  ;;  %v7031_v47 = vpop.f32.mrb[4].mxu1 }
 0x1b3   : > { %v664_v48 = vmul.f32 0.17677669, %v7015_v46  ;;  %v547_v49 = vpop.f32.mrb[5].mxu0  ;;  %v611_v50 = vpop.f32.mrb[5].mxu1  ;;  %v680_v51 = vmul.f32 0.17677669, %v7031_v47 }
 0x1b4   : > { %v662_v52 = vmul.f32 0.17677669, %v547_v49  ;;  %v7016_v53 = vpop.f32.mrb[6].mxu0  ;;  %v7032_v54 = vpop.f32.mrb[6].mxu1  ;;  %v678_v59 = vmul.f32 0.17677669, %v611_v50 }
 0x1b5   : > { %v665_v55 = vmul.f32 0.17677669, %v7016_v53  ;;  %v681_v56 = vmul.f32 0.17677669, %v7032_v54  ;;  %v550_v57 = vpop.f32.mrb[7].mxu0  ;;  %v614_v58 = vpop.f32.mrb[7].mxu1 }
 0x1b6   : > { %v663_v60 = vmul.f32 0.17677669, %v550_v57  ;;  %v679_v61 = vmul.f32 0.17677669, %v614_v58 }
 0x1b7   : > { %v693_v62 = vpack.c.bf16 %v665_v55, %v664_v48  ;;  %v701_v63 = vpack.c.bf16 %v681_v56, %v680_v51 }
 0x1b8   : > { %v692_v0 = vpack.c.bf16 %v663_v60, %v662_v52  ;;  %v700_v1 = vpack.c.bf16 %v679_v61, %v678_v59 }
 0x1b9   : > { %709 = vst [vmem:[#allocation2 + $0x18] sm:$0xff] %v693_v62  ;;  %717 = vst [vmem:[#allocation2 + $0x58] sm:$0xff] %v701_v63 }
 0x1ba   : > { %708 = vst [vmem:[#allocation2 + $0x10] sm:$0xff] %v692_v0  ;;  %716 = vst [vmem:[#allocation2 + $0x50] sm:$0xff] %v700_v1  ;;  %v7019_v2 = vpop.f32.mrb[8].mxu0  ;;  %v7035_v3 = vpop.f32.mrb[8].mxu1 }
 0x1bb   : > { %v668_v4 = vmul.f32 0.17677669, %v7019_v2  ;;  %v563_v5 = vpop.f32.mrb[9].mxu0  ;;  %v627_v6 = vpop.f32.mrb[9].mxu1  ;;  %v684_v7 = vmul.f32 0.17677669, %v7035_v3 }
 0x1bc   : > { %v666_v8 = vmul.f32 0.17677669, %v563_v5  ;;  %v7020_v9 = vpop.f32.mrb[10].mxu0  ;;  %v7036_v10 = vpop.f32.mrb[10].mxu1  ;;  %v682_v15 = vmul.f32 0.17677669, %v627_v6 }
 0x1bd   : > { %v669_v11 = vmul.f32 0.17677669, %v7020_v9  ;;  %v685_v12 = vmul.f32 0.17677669, %v7036_v10  ;;  %v566_v13 = vpop.f32.mrb[11].mxu0  ;;  %v630_v14 = vpop.f32.mrb[11].mxu1 }
 0x1be   : > { %v667_v16 = vmul.f32 0.17677669, %v566_v13  ;;  %v683_v17 = vmul.f32 0.17677669, %v630_v14 }
 0x1bf   : > { %v695_v18 = vpack.c.bf16 %v669_v11, %v668_v4  ;;  %v703_v19 = vpack.c.bf16 %v685_v12, %v684_v7 }
 0x1c0   : > { %v694_v20 = vpack.c.bf16 %v667_v16, %v666_v8  ;;  %v702_v21 = vpack.c.bf16 %v683_v17, %v682_v15 }
 0x1c1   : > { %711 = vst [vmem:[#allocation2 + $0x28] sm:$0xff] %v695_v18  ;;  %719 = vst [vmem:[#allocation2 + $0x68] sm:$0xff] %v703_v19 }
 0x1c2   : > { %710 = vst [vmem:[#allocation2 + $0x20] sm:$0xff] %v694_v20  ;;  %718 = vst [vmem:[#allocation2 + $0x60] sm:$0xff] %v702_v21  ;;  %v7023_v22 = vpop.f32.mrb[12].mxu0  ;;  %v7039_v23 = vpop.f32.mrb[12].mxu1 }
 0x1c3   : > { %v672_v24 = vmul.f32 0.17677669, %v7023_v22  ;;  %v579_v25 = vpop.f32.mrb[13].mxu0  ;;  %v643_v26 = vpop.f32.mrb[13].mxu1  ;;  %v688_v27 = vmul.f32 0.17677669, %v7039_v23 }
 0x1c4   : > { %v670_v28 = vmul.f32 0.17677669, %v579_v25  ;;  %v7024_v29 = vpop.f32.mrb[14].mxu0  ;;  %v7040_v30 = vpop.f32.mrb[14].mxu1  ;;  %v686_v35 = vmul.f32 0.17677669, %v643_v26 }
 0x1c5   : > { %v673_v31 = vmul.f32 0.17677669, %v7024_v29  ;;  %v689_v32 = vmul.f32 0.17677669, %v7040_v30  ;;  %v582_v33 = vpop.f32.mrb[15].mxu0  ;;  %v646_v34 = vpop.f32.mrb[15].mxu1 }
 0x1c6   : > { %v671_v36 = vmul.f32 0.17677669, %v582_v33  ;;  %v687_v37 = vmul.f32 0.17677669, %v646_v34 }
 0x1c7   : > { %v697_v38 = vpack.c.bf16 %v673_v31, %v672_v24  ;;  %v705_v39 = vpack.c.bf16 %v689_v32, %v688_v27 }
 0x1c8   : > { %v696_v40 = vpack.c.bf16 %v671_v36, %v670_v28  ;;  %v704_v41 = vpack.c.bf16 %v687_v37, %v686_v35 }
 0x1c9   : > { %713 = vst [vmem:[#allocation2 + $0x38] sm:$0xff] %v697_v38  ;;  %721 = vst [vmem:[#allocation2 + $0x78] sm:$0xff] %v705_v39 }
 0x1ca   : > { %712 = vst [vmem:[#allocation2 + $0x30] sm:$0xff] %v696_v40  ;;  %720 = vst [vmem:[#allocation2 + $0x70] sm:$0xff] %v704_v41 }
 0x1cb PF: > { %v7237_v42 = vld [vmem:[#allocation12 + $0x4] ss:$8 sps:$4 sm:$0xff]   ;;  %v7239_v43 = vld [vmem:[#allocation12] ss:$8 sps:$4 sm:$0xff]   ;;  %v8265_v44 = vmov 0   ;;  %v7263_v61 = vld [vmem:[%s8592_s10 + $0x10] sm:$0xff]  }
 0x1cc   : > { %1203 = vmatprep.mubr.bf16.mxu0 %v8265_v44  ;;  %1171 = vmatprep.subr.bf16.mxu0 %v7237_v42  ;;  %v7240_v45 = vld [vmem:[#allocation12 + $0x14] ss:$8 sps:$4 sm:$0xff]   ;;  %v7242_v46 = vld [vmem:[#allocation12 + $0x10] ss:$8 sps:$4 sm:$0xff]   ;;  %v7243_v47 = vld [vmem:[#allocation12 + $0x24] ss:$8 sps:$4 sm:$0xff]  }
 0x1cd   : > { %1172 = vmatpush1.bf16.msra.mxu0 %v7239_v43  ;;  %v7245_v48 = vld [vmem:[#allocation12 + $0x20] ss:$8 sps:$4 sm:$0xff]   ;;  %v7246_v49 = vld [vmem:[#allocation12 + $0x34] ss:$8 sps:$4 sm:$0xff]   ;;  %v7248_v50 = vld [vmem:[#allocation12 + $0x30] ss:$8 sps:$4 sm:$0xff]  }
 0x1ce   : > { %1173 = vmatprep.subr.bf16.mxu0 %v7240_v45  ;;  %v7249_v51 = vld [vmem:[#allocation12 + $0x44] ss:$8 sps:$4 sm:$0xff]   ;;  %v7251_v52 = vld [vmem:[#allocation12 + $0x40] ss:$8 sps:$4 sm:$0xff]   ;;  %v7252_v53 = vld [vmem:[#allocation12 + $0x54] ss:$8 sps:$4 sm:$0xff]  }
 0x1cf   : > { %v7254_v54 = vld [vmem:[#allocation12 + $0x50] ss:$8 sps:$4 sm:$0xff]   ;;  %v7255_v55 = vld [vmem:[#allocation12 + $0x64] ss:$8 sps:$4 sm:$0xff]   ;;  %v7257_v56 = vld [vmem:[#allocation12 + $0x60] ss:$8 sps:$4 sm:$0xff]  }
 0x1d0   : > { %v7258_v57 = vld [vmem:[#allocation12 + $0x74] ss:$8 sps:$4 sm:$0xff]   ;;  %v7260_v58 = vld [vmem:[#allocation12 + $0x70] ss:$8 sps:$4 sm:$0xff]   ;;  %v7261_v59 = vld [vmem:[%s8592_s10] sm:$0xff]   ;;  %p6413_p2 = scmp.ne.s32.totalorder %s8237_s21, 1 }
 0x1d1   : > { %1174 = vmatpush1.bf16.msra.mxu0 %v7242_v46  ;;  %v7262_v60 = vld [vmem:[%s8592_s10 + $0x8] sm:$0xff]   ;;  %v7264_v62 = vld [vmem:[%s8592_s10 + $0x18] sm:$0xff]   ;;  %v7265_v63 = vld [vmem:[%s8592_s10 + $0x20] sm:$0xff]  }
 0x1d2   : > { %1175 = vmatprep.subr.bf16.mxu0 %v7243_v47  ;;  %v7266_v0 = vld [vmem:[%s8592_s10 + $0x28] sm:$0xff]   ;;  %v7267_v1 = vld [vmem:[%s8592_s10 + $0x30] sm:$0xff]   ;;  %v7268_v2 = vld [vmem:[%s8592_s10 + $0x38] sm:$0xff]  }
 0x1d3   : > { %v7269_v3 = vld [vmem:[%s8592_s10 + $0x40] sm:$0xff]   ;;  %v7270_v4 = vld [vmem:[%s8592_s10 + $0x48] sm:$0xff]   ;;  %v7271_v5 = vld [vmem:[%s8592_s10 + $0x50] sm:$0xff]  }
 0x1d4   : > { %v7272_v6 = vld [vmem:[%s8592_s10 + $0x58] sm:$0xff]   ;;  %v7273_v7 = vld [vmem:[%s8592_s10 + $0x60] sm:$0xff]   ;;  %v7274_v8 = vld [vmem:[%s8592_s10 + $0x68] sm:$0xff]  }
 0x1d5   : > { %1176 = vmatpush1.bf16.msra.mxu0 %v7245_v48  ;;  %v7275_v9 = vld [vmem:[%s8592_s10 + $0x70] sm:$0xff]   ;;  %v7276_v10 = vld [vmem:[%s8592_s10 + $0x78] sm:$0xff]   ;;  %v7277_v11 = vld [vmem:[%s8592_s10 + $0x80] sm:$0xff]  }
 0x1d6   : > { %1177 = vmatprep.subr.bf16.mxu0 %v7246_v49  ;;  %v7278_v12 = vld [vmem:[%s8592_s10 + $0x88] sm:$0xff]   ;;  %v7279_v13 = vld [vmem:[%s8592_s10 + $0x90] sm:$0xff]   ;;  %v7280_v14 = vld [vmem:[%s8592_s10 + $0x98] sm:$0xff]  }
 0x1d7   : > { %v7281_v15 = vld [vmem:[%s8592_s10 + $0xa0] sm:$0xff]   ;;  %v7282_v16 = vld [vmem:[%s8592_s10 + $0xa8] sm:$0xff]   ;;  %v7283_v17 = vld [vmem:[%s8592_s10 + $0xb0] sm:$0xff]  }
 0x1d8   : > { %v7284_v18 = vld [vmem:[%s8592_s10 + $0xb8] sm:$0xff]   ;;  %v7285_v19 = vld [vmem:[%s8592_s10 + $0xc0] sm:$0xff]   ;;  %v7286_v20 = vld [vmem:[%s8592_s10 + $0xc8] sm:$0xff]  }
 0x1d9   : > { %1178 = vmatpush1.bf16.msra.mxu0 %v7248_v50  ;;  %v7287_v21 = vld [vmem:[%s8592_s10 + $0xd0] sm:$0xff]   ;;  %v7288_v24 = vld [vmem:[%s8592_s10 + $0xd8] sm:$0xff]   ;;  %v7289_v31 = vld [vmem:[%s8592_s10 + $0xe0] sm:$0xff]  }
 0x1da   : > { %1179 = vmatprep.subr.bf16.mxu0 %v7249_v51  ;;  %v8821_v37 = vld [vmem:[#allocation2 + $0x10] sm:$0xff]  ;;  %v7290_v39 = vld [vmem:[%s8592_s10 + $0xe8] sm:$0xff]  }
 0x1db   : > { %6469 = vmatprep.mubr.bf16.mxu1 %v8821_v37  ;;  %v7291_v47 = vld [vmem:[%s8592_s10 + $0xf0] sm:$0xff]  }
 0x1dd   : > { %1180 = vmatpush1.bf16.msra.mxu0 %v7251_v52 }
 0x1de   : > { %1181 = vmatprep.subr.bf16.mxu0 %v7252_v53 }
 0x1e1   : > { %1182 = vmatpush1.bf16.msra.mxu0 %v7254_v54  ;;  %v7292_v54 = vld [vmem:[%s8592_s10 + $0xf8] sm:$0xff]  }
 0x1e2   : > { %1183 = vmatprep.subr.bf16.mxu0 %v7255_v55 }
 0x1e5   : > { %1184 = vmatpush1.bf16.msra.mxu0 %v7257_v56 }
 0x1e6   : > { %1185 = vmatprep.subr.bf16.mxu0 %v7258_v57 }
 0x1e9   : > { %1186 = vmatpush1.bf16.msra.mxu0 %v7260_v58 }
 0x1ec   : > { %1204 = vmatmul.mubr.bf16.vlgmr.msra.gmra.mrb[0].mxu0 %v7261_v59 }
 0x1ed   : > { %1213 = vmatprep.mubr.bf16.mxu0 %v8265_v44 }
 0x1f4   : > { %1214 = vmatmul.mubr.bf16.gmra.mrb[4].mxu0 %v7262_v60 }
 0x1f5   : > { %1223 = vmatprep.mubr.bf16.mxu0 %v8265_v44 }
 0x1fc   : > { %1224 = vmatmul.mubr.bf16.gmra.mrb[8].mxu0 %v7263_v61 }
 0x1fd   : > { %1233 = vmatprep.mubr.bf16.mxu0 %v8265_v44 }
 0x204   : > { %1234 = vmatmul.mubr.bf16.gmra.mrb[12].mxu0 %v7264_v62 }
 0x205   : > { %1243 = vmatprep.mubr.bf16.mxu0 %v8265_v44 }
 0x20c   : > { %1244 = vmatmul.mubr.bf16.gmra.mrb[16].mxu0 %v7265_v63 }
 0x20d   : > { %1253 = vmatprep.mubr.bf16.mxu0 %v8265_v44 }
 0x214   : > { %1254 = vmatmul.mubr.bf16.gmra.mrb[20].mxu0 %v7266_v0 }
 0x215   : > { %1263 = vmatprep.mubr.bf16.mxu0 %v8265_v44 }
 0x21c   : > { %1264 = vmatmul.mubr.bf16.gmra.mrb[24].mxu0 %v7267_v1 }
 0x21d   : > { %1273 = vmatprep.mubr.bf16.mxu0 %v8265_v44 }
 0x224   : > { %1274 = vmatmul.mubr.bf16.gmra.mrb[28].mxu0 %v7268_v2 }
 0x225   : > { %1283 = vmatprep.mubr.bf16.mxu0 %v8265_v44 }
 0x22c   : > { %1284 = vmatmul.mubr.bf16.gmra.mrb[32].mxu0 %v7269_v3 }
 0x22d   : > { %1293 = vmatprep.mubr.bf16.mxu0 %v8265_v44 }
 0x234   : > { %1294 = vmatmul.mubr.bf16.gmra.mrb[36].mxu0 %v7270_v4 }
 0x235   : > { %1303 = vmatprep.mubr.bf16.mxu0 %v8265_v44 }
 0x23c   : > { %1304 = vmatmul.mubr.bf16.gmra.mrb[40].mxu0 %v7271_v5 }
 0x23d   : > { %1313 = vmatprep.mubr.bf16.mxu0 %v8265_v44 }
 0x244   : > { %1314 = vmatmul.mubr.bf16.gmra.mrb[44].mxu0 %v7272_v6 }
 0x245   : > { %1323 = vmatprep.mubr.bf16.mxu0 %v8265_v44 }
 0x24c   : > { %1324 = vmatmul.mubr.bf16.gmra.mrb[48].mxu0 %v7273_v7 }
 0x24d   : > { %1333 = vmatprep.mubr.bf16.mxu0 %v8265_v44 }
 0x254   : > { %1334 = vmatmul.mubr.bf16.gmra.mrb[52].mxu0 %v7274_v8 }
 0x255   : > { %1343 = vmatprep.mubr.bf16.mxu0 %v8265_v44 }
 0x25c   : > { %1344 = vmatmul.mubr.bf16.gmra.mrb[56].mxu0 %v7275_v9 }
 0x25d   : > { %1353 = vmatprep.mubr.bf16.mxu0 %v8265_v44 }
 0x264   : > { %1354 = vmatmul.mubr.bf16.gmra.mrb[60].mxu0 %v7276_v10 }
 0x265   : > { %1363 = vmatprep.mubr.bf16.mxu0 %v8265_v44 }
 0x26c   : > { %1364 = vmatmul.mubr.bf16.gmra.mrb[64].mxu0 %v7277_v11 }
 0x26d   : > { %1373 = vmatprep.mubr.bf16.mxu0 %v8265_v44 }
 0x274   : > { %1374 = vmatmul.mubr.bf16.gmra.mrb[68].mxu0 %v7278_v12 }
 0x275   : > { %1383 = vmatprep.mubr.bf16.mxu0 %v8265_v44 }
 0x27c   : > { %1384 = vmatmul.mubr.bf16.gmra.mrb[72].mxu0 %v7279_v13 }
 0x27d   : > { %1393 = vmatprep.mubr.bf16.mxu0 %v8265_v44 }
 0x284   : > { %1394 = vmatmul.mubr.bf16.gmra.mrb[76].mxu0 %v7280_v14 }
 0x285   : > { %1403 = vmatprep.mubr.bf16.mxu0 %v8265_v44 }
 0x28c   : > { %1404 = vmatmul.mubr.bf16.gmra.mrb[80].mxu0 %v7281_v15 }
 0x28d   : > { %1413 = vmatprep.mubr.bf16.mxu0 %v8265_v44 }
 0x294   : > { %1414 = vmatmul.mubr.bf16.gmra.mrb[84].mxu0 %v7282_v16 }
 0x295   : > { %1423 = vmatprep.mubr.bf16.mxu0 %v8265_v44 }
 0x29c   : > { %1424 = vmatmul.mubr.bf16.gmra.mrb[88].mxu0 %v7283_v17 }
 0x29d   : > { %1433 = vmatprep.mubr.bf16.mxu0 %v8265_v44 }
 0x2a4   : > { %1434 = vmatmul.mubr.bf16.gmra.mrb[92].mxu0 %v7284_v18 }
 0x2a5   : > { %1443 = vmatprep.mubr.bf16.mxu0 %v8265_v44 }
 0x2ac   : > { %1444 = vmatmul.mubr.bf16.gmra.mrb[96].mxu0 %v7285_v19 }
 0x2ad   : > { %1453 = vmatprep.mubr.bf16.mxu0 %v8265_v44 }
 0x2b4   : > { %1454 = vmatmul.mubr.bf16.gmra.mrb[100].mxu0 %v7286_v20 }
 0x2b5   : > { %1463 = vmatprep.mubr.bf16.mxu0 %v8265_v44 }
 0x2bc   : > { %1464 = vmatmul.mubr.bf16.gmra.mrb[104].mxu0 %v7287_v21 }
 0x2bd   : > { %1473 = vmatprep.mubr.bf16.mxu0 %v8265_v44 }
 0x2bf   : > { %v1205_v22 = vpop.f32.mrb[0].mxu0 }
 0x2c0   : > { %v1207_v23 = vpop.f32.mrb[1].mxu0 }
 0x2c1   : > { %v1209_v25 = vpop.f32.mrb[2].mxu0 }
 0x2c2   : > { %v8810_v26 = vpack.c.bf16 %v1209_v25, %v1205_v22  ;;  %v1211_v27 = vpop.f32.mrb[3].mxu0 }
 0x2c3   : > { %v8812_v28 = vpack.c.bf16 %v1211_v27, %v1207_v23 }
 0x2c4   : > { %1474 = vmatmul.mubr.bf16.gmra.mrb[108].mxu0 %v7288_v24 }
 0x2c5   : > { %13149 = vst [vmem:[#allocation24_spill] sm:$0xff] %v8812_v28  ;;  %1483 = vmatprep.mubr.bf16.mxu0 %v8265_v44 }
 0x2c7   : > { %v1215_v29 = vpop.f32.mrb[4].mxu0 }
 0x2c8   : > { %v1217_v30 = vpop.f32.mrb[5].mxu0 }
 0x2c9   : > { %v1219_v32 = vpop.f32.mrb[6].mxu0 }
 0x2ca   : > { %v8816_v33 = vpack.c.bf16 %v1219_v32, %v1215_v29  ;;  %v1221_v34 = vpop.f32.mrb[7].mxu0 }
 0x2cb   : > { %v8818_v35 = vpack.c.bf16 %v1221_v34, %v1217_v30 }
 0x2cc   : > { %1484 = vmatmul.mubr.bf16.gmra.mrb[112].mxu0 %v7289_v31 }
 0x2cd   : > { %13150 = vst [vmem:[#allocation25_spill] sm:$0xff] %v8818_v35  ;;  %1493 = vmatprep.mubr.bf16.mxu0 %v8265_v44 }
 0x2cf   : > { %v1225_v36 = vpop.f32.mrb[8].mxu0 }
 0x2d0   : > { %v1227_v38 = vpop.f32.mrb[9].mxu0 }
 0x2d1   : > { %v1229_v40 = vpop.f32.mrb[10].mxu0 }
 0x2d2   : > { %v8825_v41 = vpack.c.bf16 %v1229_v40, %v1225_v36  ;;  %v1231_v42 = vpop.f32.mrb[11].mxu0 }
 0x2d3   : > { %v8827_v43 = vpack.c.bf16 %v1231_v42, %v1227_v38 }
 0x2d4   : > { %1494 = vmatmul.mubr.bf16.gmra.mrb[116].mxu0 %v7290_v39 }
 0x2d5   : > { %13151 = vst [vmem:[#allocation26_spill] sm:$0xff] %v8827_v43  ;;  %1503 = vmatprep.mubr.bf16.mxu0 %v8265_v44 }
 0x2d7   : > { %v1235_v45 = vpop.f32.mrb[12].mxu0 }
 0x2d8   : > { %v1237_v46 = vpop.f32.mrb[13].mxu0 }
 0x2d9   : > { %v1239_v48 = vpop.f32.mrb[14].mxu0 }
 0x2da   : > { %v8831_v49 = vpack.c.bf16 %v1239_v48, %v1235_v45  ;;  %v1241_v50 = vpop.f32.mrb[15].mxu0 }
 0x2db   : > { %v8833_v51 = vpack.c.bf16 %v1241_v50, %v1237_v46 }
 0x2dc   : > { %1504 = vmatmul.mubr.bf16.gmra.mrb[120].mxu0 %v7291_v47 }
 0x2dd   : > { %13152 = vst [vmem:[#allocation27_spill] sm:$0xff] %v8833_v51  ;;  %1513 = vmatprep.mubr.bf16.mxu0 %v8265_v44 }
 0x2df   : > { %v1245_v52 = vpop.f32.mrb[16].mxu0 }
 0x2e0   : > { %v1247_v53 = vpop.f32.mrb[17].mxu0 }
 0x2e1   : > { %v1249_v55 = vpop.f32.mrb[18].mxu0 }
 0x2e2   : > { %v8837_v56 = vpack.c.bf16 %v1249_v55, %v1245_v52  ;;  %v1251_v57 = vpop.f32.mrb[19].mxu0 }
 0x2e3   : > { %v8839_v58 = vpack.c.bf16 %v1251_v57, %v1247_v53 }
 0x2e4   : > { %1514 = vmatmul.mubr.bf16.gmra.mrb[124].mxu0 %v7292_v54 }
 0x2e5   : > { %13153 = vst [vmem:[#allocation28_spill] sm:$0xff] %v8839_v58 }
 0x2e7   : > { %v1255_v59 = vpop.f32.mrb[20].mxu0 }
 0x2e8   : > { %v1257_v60 = vpop.f32.mrb[21].mxu0 }
 0x2e9   : > { %v1259_v61 = vpop.f32.mrb[22].mxu0 }
 0x2ea   : > { %v8841_v62 = vpack.c.bf16 %v1259_v61, %v1255_v59  ;;  %v1261_v63 = vpop.f32.mrb[23].mxu0 }
 0x2eb   : > { %v8843_v0 = vpack.c.bf16 %v1261_v63, %v1257_v60 }
 0x2ed   : > { %13154 = vst [vmem:[#allocation29_spill] sm:$0xff] %v8843_v0 }
 0x2ef   : > { %v1265_v1 = vpop.f32.mrb[24].mxu0 }
 0x2f0   : > { %v1267_v44 = vpop.f32.mrb[25].mxu0 }
 0x2f1   : > { %v1269_v2 = vpop.f32.mrb[26].mxu0 }
 0x2f2   : > { %v8845_v3 = vpack.c.bf16 %v1269_v2, %v1265_v1  ;;  %v1271_v4 = vpop.f32.mrb[27].mxu0 }
 0x2f3   : > { %v8847_v5 = vpack.c.bf16 %v1271_v4, %v1267_v44 }
 0x2f5   : > { %13155 = vst [vmem:[#allocation30_spill] sm:$0xff] %v8847_v5 }
 0x2f7   : > { %v1275_v6 = vpop.f32.mrb[28].mxu0 }
 0x2f8   : > { %v1277_v7 = vpop.f32.mrb[29].mxu0 }
 0x2f9   : > { %v1279_v8 = vpop.f32.mrb[30].mxu0 }
 0x2fa   : > { %v8849_v9 = vpack.c.bf16 %v1279_v8, %v1275_v6  ;;  %v1281_v10 = vpop.f32.mrb[31].mxu0 }
 0x2fb   : > { %v8851_v11 = vpack.c.bf16 %v1281_v10, %v1277_v7 }
 0x2fd   : > { %13156 = vst [vmem:[#allocation31_spill] sm:$0xff] %v8851_v11 }
 0x2ff   : > { %v1285_v12 = vpop.f32.mrb[32].mxu0 }
 0x300   : > { %v1287_v13 = vpop.f32.mrb[33].mxu0 }
 0x301   : > { %v1289_v14 = vpop.f32.mrb[34].mxu0 }
 0x302   : > { %v1532_v15 = vpack.c.bf16 %v1289_v14, %v1285_v12  ;;  %v1291_v16 = vpop.f32.mrb[35].mxu0  ;;  %v8894_v12 = vld [vmem:[#allocation2 + $0x18] sm:$0xff] }
 0x303   : > { %v8853_v17 = vpack.c.bf16 %v1291_v16, %v1287_v13 }
 0x304   : > { %6449 = vmatprep.subr.bf16.mxu0 %v1532_v15  ;;  %7057 = vmatprep.subr.bf16.mxu1 %v1532_v15 }
 0x305   : > { %13157 = vst [vmem:[#allocation32_spill] sm:$0xff] %v8853_v17  ;;  %6450 = vmatpush3.bf16.xpose.msra.mxu0 %v8810_v26  ;;  %7065 = vmatpush3.bf16.xpose.msra.mxu1 %v8810_v26 }
 0x307   : > { %v1295_v18 = vpop.f32.mrb[36].mxu0 }
 0x308   : > { %v1297_v19 = vpop.f32.mrb[37].mxu0 }
 0x309   : > { %v1299_v20 = vpop.f32.mrb[38].mxu0 }
 0x30a   : > { %v1533_v21 = vpack.c.bf16 %v1299_v20, %v1295_v18  ;;  %v1301_v22 = vpop.f32.mrb[39].mxu0  ;;  %v8910_v20 = vld [vmem:[#allocation2 + $0x20] sm:$0xff] }
 0x30b   : > { %v8857_v23 = vpack.c.bf16 %v1301_v22, %v1297_v19 }
 0x30c   : > { %6451 = vmatprep.subr.bf16.mxu0 %v1533_v21  ;;  %7058 = vmatprep.subr.bf16.mxu1 %v1533_v21 }
 0x30d   : > { %13158 = vst [vmem:[#allocation33_spill] sm:$0xff] %v8857_v23  ;;  %6452 = vmatpush3.bf16.xpose.msra.mxu0 %v8816_v33  ;;  %7066 = vmatpush3.bf16.xpose.msra.mxu1 %v8816_v33 }
 0x30f   : > { %v1305_v24 = vpop.f32.mrb[40].mxu0 }
 0x310   : > { %v1307_v25 = vpop.f32.mrb[41].mxu0 }
 0x311   : > { %v1309_v27 = vpop.f32.mrb[42].mxu0 }
 0x312   : > { %v1534_v29 = vpack.c.bf16 %v1309_v27, %v1305_v24  ;;  %v1311_v30 = vpop.f32.mrb[43].mxu0 }
 0x313   : > { %v8861_v31 = vpack.c.bf16 %v1311_v30, %v1307_v25  ;;  %v8923_v30 = vld [vmem:[#allocation2 + $0x28] sm:$0xff] }
 0x314   : > { %6453 = vmatprep.subr.bf16.mxu0 %v1534_v29  ;;  %7059 = vmatprep.subr.bf16.mxu1 %v1534_v29 }
 0x315   : > { %13159 = vst [vmem:[#allocation34_spill] sm:$0xff] %v8861_v31  ;;  %6454 = vmatpush3.bf16.xpose.msra.mxu0 %v8825_v41  ;;  %7067 = vmatpush3.bf16.xpose.msra.mxu1 %v8825_v41 }
 0x317   : > { %v1315_v26 = vpop.f32.mrb[44].mxu0 }
 0x318   : > { %v1317_v32 = vpop.f32.mrb[45].mxu0 }
 0x319   : > { %v1319_v34 = vpop.f32.mrb[46].mxu0 }
 0x31a   : > { %v1535_v36 = vpack.c.bf16 %v1319_v34, %v1315_v26  ;;  %v1321_v38 = vpop.f32.mrb[47].mxu0 }
 0x31b   : > { %v8865_v39 = vpack.c.bf16 %v1321_v38, %v1317_v32 }
 0x31c   : > { %6455 = vmatprep.subr.bf16.mxu0 %v1535_v36  ;;  %7060 = vmatprep.subr.bf16.mxu1 %v1535_v36 }
 0x31d   : > { %13160 = vst [vmem:[#allocation35_spill] sm:$0xff] %v8865_v39  ;;  %6456 = vmatpush3.bf16.xpose.msra.mxu0 %v8831_v49  ;;  %7068 = vmatpush3.bf16.xpose.msra.mxu1 %v8831_v49 }
 0x31f   : > { %v1325_v33 = vpop.f32.mrb[48].mxu0 }
 0x320   : > { %v1327_v40 = vpop.f32.mrb[49].mxu0 }
 0x321   : > { %v1329_v42 = vpop.f32.mrb[50].mxu0 }
 0x322   : > { %v1536_v45 = vpack.c.bf16 %v1329_v42, %v1325_v33  ;;  %v1331_v46 = vpop.f32.mrb[51].mxu0 }
 0x323   : > { %v8869_v47 = vpack.c.bf16 %v1331_v46, %v1327_v40  ;;  %v8935_v40 = vld [vmem:[#allocation2 + $0x30] sm:$0xff] }
 0x324   : > { %6457 = vmatprep.subr.bf16.mxu0 %v1536_v45  ;;  %7061 = vmatprep.subr.bf16.mxu1 %v1536_v45 }
 0x325   : > { %13161 = vst [vmem:[#allocation36_spill] sm:$0xff] %v8869_v47  ;;  %6458 = vmatpush3.bf16.xpose.msra.mxu0 %v8837_v56  ;;  %7069 = vmatpush3.bf16.xpose.msra.mxu1 %v8837_v56 }
 0x327   : > { %v1335_v41 = vpop.f32.mrb[52].mxu0 }
 0x328   : > { %v1337_v48 = vpop.f32.mrb[53].mxu0 }
 0x329   : > { %v1339_v50 = vpop.f32.mrb[54].mxu0 }
 0x32a   : > { %v1537_v52 = vpack.c.bf16 %v1339_v50, %v1335_v41  ;;  %v1341_v53 = vpop.f32.mrb[55].mxu0 }
 0x32b   : > { %v8873_v54 = vpack.c.bf16 %v1341_v53, %v1337_v48  ;;  %v8989_v48 = vld [vmem:[#allocation2 + $0x58] sm:$0xff] }
 0x32c   : > { %6459 = vmatprep.subr.bf16.mxu0 %v1537_v52  ;;  %7062 = vmatprep.subr.bf16.mxu1 %v1537_v52  ;;  %v8947_v52 = vld [vmem:[#allocation2 + $0x38] sm:$0xff] }
 0x32d   : > { %13162 = vst [vmem:[#allocation37_spill] sm:$0xff] %v8873_v54  ;;  %6460 = vmatpush3.bf16.xpose.msra.mxu0 %v8841_v62  ;;  %7070 = vmatpush3.bf16.xpose.msra.mxu1 %v8841_v62  ;;  %v8885_v62 = vld [vmem:[#allocation2] sm:$0xff] }
 0x32e   : > { %6465 = vmatprep.mubr.bf16.mxu0 %v8885_v62 }
 0x32f   : > { %v1345_v49 = vpop.f32.mrb[56].mxu0 }
 0x330   : > { %v1347_v55 = vpop.f32.mrb[57].mxu0 }
 0x331   : > { %v1349_v57 = vpop.f32.mrb[58].mxu0 }
 0x332   : > { %v1538_v59 = vpack.c.bf16 %v1349_v57, %v1345_v49  ;;  %v1351_v60 = vpop.f32.mrb[59].mxu0 }
 0x333   : > { %v8877_v61 = vpack.c.bf16 %v1351_v60, %v1347_v55 }
 0x334   : > { %6461 = vmatprep.subr.bf16.mxu0 %v1538_v59  ;;  %7063 = vmatprep.subr.bf16.mxu1 %v1538_v59 }
 0x335   : > { %13163 = vst [vmem:[#allocation38_spill] sm:$0xff] %v8877_v61  ;;  %6462 = vmatpush3.bf16.xpose.msra.mxu0 %v8845_v3  ;;  %7071 = vmatpush3.bf16.xpose.msra.mxu1 %v8845_v3 }
 0x337   : > { %v1355_v56 = vpop.f32.mrb[60].mxu0 }
 0x338   : > { %v1357_v63 = vpop.f32.mrb[61].mxu0 }
 0x339   : > { %v1359_v1 = vpop.f32.mrb[62].mxu0 }
 0x33a   : > { %v1539_v44 = vpack.c.bf16 %v1359_v1, %v1355_v56  ;;  %v1361_v2 = vpop.f32.mrb[63].mxu0  ;;  %v8959_v56 = vld [vmem:[#allocation2 + $0x40] sm:$0xff] }
 0x33b   : > { %v8881_v4 = vpack.c.bf16 %v1361_v2, %v1357_v63 }
 0x33c   : > { %6463 = vmatprep.subr.bf16.mxu0 %v1539_v44  ;;  %7064 = vmatprep.subr.bf16.mxu1 %v1539_v44 }
 0x33d   : > { %13164 = vst [vmem:[#allocation39_spill] sm:$0xff] %v8881_v4  ;;  %6464 = vmatpush3.bf16.xpose.msra.mxu0 %v8849_v9  ;;  %7072 = vmatpush3.bf16.xpose.msra.mxu1 %v8849_v9  ;;  %v8899_v9 = vld [vmem:[#allocation2 + $0x8] sm:$0xff] }
 0x33f   : > { %v8888_v6 = vpop.f32.mrb[64].mxu0 }
 0x340   : > { %v1367_v3 = vpop.f32.mrb[65].mxu0 }
 0x341   : > { %v8890_v7 = vpop.f32.mrb[66].mxu0 }
 0x342   : > { %v1540_v8 = vpack.c.bf16 %v8890_v7, %v8888_v6  ;;  %v1371_v10 = vpop.f32.mrb[67].mxu0 }
 0x343   : > { %v8896_v13 = vpack.c.bf16 %v1371_v10, %v1367_v3 }
 0x344   : > { %6470 = vmatmul.mubr.bf16.vlgmr.msra.gmra.mrb[0].mxu1 %v8821_v37  ;;  %6466 = vmatmul.mubr.bf16.vlgmr.msra.gmra.mrb[128].mxu0 %v8885_v62 }
 0x345   : > { %13165 = vst [vmem:[#allocation40_spill] sm:$0xff] %v8896_v13  ;;  %6471 = vmatprep.mubr.bf16.mxu1 %v8894_v12  ;;  %6467 = vmatprep.mubr.bf16.mxu0 %v8899_v9 }
 0x347   : > { %v8904_v14 = vpop.f32.mrb[68].mxu0 }
 0x348   : > { %v1377_v15 = vpop.f32.mrb[69].mxu0 }
 0x349   : > { %v8906_v16 = vpop.f32.mrb[70].mxu0 }
 0x34a   : > { %v1381_v19 = vpop.f32.mrb[71].mxu0 }
 0x34b   : > { %v8912_v21 = vpack.c.bf16 %v1381_v19, %v1377_v15  ;;  %v8971_v15 = vld [vmem:[#allocation2 + $0x48] sm:$0xff] }
 0x34c   : > { %6472 = vmatmul.mubr.bf16.gmra.mrb[4].mxu1 %v8894_v12  ;;  %6468 = vmatmul.mubr.bf16.gmra.mrb[132].mxu0 %v8899_v9 }
 0x34d   : > { %13166 = vst [vmem:[#allocation41_spill] sm:$0xff] %v8912_v21  ;;  %6473 = vmatprep.mubr.bf16.mxu1 %v8910_v20 }
 0x34f   : > { %v8917_v22 = vpop.f32.mrb[72].mxu0 }
 0x350   : > { %v1387_v24 = vpop.f32.mrb[73].mxu0 }
 0x351   : > { %v8919_v25 = vpop.f32.mrb[74].mxu0 }
 0x352   : > { %v1391_v29 = vpop.f32.mrb[75].mxu0 }
 0x353   : > { %v8925_v26 = vpack.c.bf16 %v1391_v29, %v1387_v24 }
 0x354   : > { %6474 = vmatmul.mubr.bf16.gmra.mrb[8].mxu1 %v8910_v20 }
 0x355   : > { %13167 = vst [vmem:[#allocation42_spill] sm:$0xff] %v8925_v26  ;;  %6475 = vmatprep.mubr.bf16.mxu1 %v8923_v30 }
 0x357   : > { %v8929_v32 = vpop.f32.mrb[76].mxu0 }
 0x358   : > { %v1397_v34 = vpop.f32.mrb[77].mxu0 }
 0x359   : > { %v8931_v36 = vpop.f32.mrb[78].mxu0 }
 0x35a   : > { %v1401_v33 = vpop.f32.mrb[79].mxu0 }
 0x35b   : > { %v8937_v42 = vpack.c.bf16 %v1401_v33, %v1397_v34 }
 0x35c   : > { %6476 = vmatmul.mubr.bf16.gmra.mrb[12].mxu1 %v8923_v30 }
 0x35d   : > { %13168 = vst [vmem:[#allocation43_spill] sm:$0xff] %v8937_v42  ;;  %6477 = vmatprep.mubr.bf16.mxu1 %v8935_v40 }
 0x35f   : > { %v8941_v45 = vpop.f32.mrb[80].mxu0 }
 0x360   : > { %v1407_v46 = vpop.f32.mrb[81].mxu0 }
 0x361   : > { %v8943_v41 = vpop.f32.mrb[82].mxu0 }
 0x362   : > { %v1411_v50 = vpop.f32.mrb[83].mxu0 }
 0x363   : > { %v8949_v53 = vpack.c.bf16 %v1411_v50, %v1407_v46  ;;  %v8983_v50 = vld [vmem:[#allocation2 + $0x50] sm:$0xff] }
 0x364   : > { %6478 = vmatmul.mubr.bf16.gmra.mrb[16].mxu1 %v8935_v40 }
 0x365   : > { %13169 = vst [vmem:[#allocation44_spill] sm:$0xff] %v8949_v53  ;;  %6479 = vmatprep.mubr.bf16.mxu1 %v8947_v52 }
 0x367   : > { %v8953_v49 = vpop.f32.mrb[84].mxu0 }
 0x368   : > { %v1417_v55 = vpop.f32.mrb[85].mxu0 }
 0x369   : > { %v8955_v57 = vpop.f32.mrb[86].mxu0 }
 0x36a   : > { %v1421_v60 = vpop.f32.mrb[87].mxu0 }
 0x36b   : > { %v8961_v63 = vpack.c.bf16 %v1421_v60, %v1417_v55 }
 0x36c   : > { %6480 = vmatmul.mubr.bf16.gmra.mrb[20].mxu1 %v8947_v52 }
 0x36d   : > { %13170 = vst [vmem:[#allocation45_spill] sm:$0xff] %v8961_v63  ;;  %6481 = vmatprep.mubr.bf16.mxu1 %v8959_v56 }
 0x36f   : > { %v8965_v1 = vpop.f32.mrb[88].mxu0 }
 0x370   : > { %v1427_v44 = vpop.f32.mrb[89].mxu0 }
 0x371   : > { %v8967_v2 = vpop.f32.mrb[90].mxu0 }
 0x372   : > { %v1431_v10 = vpop.f32.mrb[91].mxu0 }
 0x373   : > { %v8973_v19 = vpack.c.bf16 %v1431_v10, %v1427_v44 }
 0x374   : > { %6482 = vmatmul.mubr.bf16.gmra.mrb[24].mxu1 %v8959_v56 }
 0x375   : > { %13171 = vst [vmem:[#allocation46_spill] sm:$0xff] %v8973_v19  ;;  %6483 = vmatprep.mubr.bf16.mxu1 %v8971_v15 }
 0x377   : > { %v8977_v24 = vpop.f32.mrb[92].mxu0 }
 0x378   : > { %v1437_v29 = vpop.f32.mrb[93].mxu0 }
 0x379   : > { %v8979_v34 = vpop.f32.mrb[94].mxu0 }
 0x37a   : > { %v1441_v46 = vpop.f32.mrb[95].mxu0 }
 0x37b   : > { %v8985_v55 = vpack.c.bf16 %v1441_v46, %v1437_v29 }
 0x37c   : > { %6484 = vmatmul.mubr.bf16.gmra.mrb[28].mxu1 %v8971_v15 }
 0x37d   : > { %13172 = vst [vmem:[#allocation47_spill] sm:$0xff] %v8985_v55  ;;  %6485 = vmatprep.mubr.bf16.mxu1 %v8983_v50 }
 0x37f   : > { %v1445_v60 = vpop.f32.mrb[96].mxu0 }
 0x380   : > { %v1447_v44 = vpop.f32.mrb[97].mxu0 }
 0x381   : > { %v1449_v10 = vpop.f32.mrb[98].mxu0 }
 0x382   : > { %v1548_v3 = vpack.c.bf16 %v1449_v10, %v1445_v60  ;;  %v1451_v59 = vpop.f32.mrb[99].mxu0  ;;  %v8998_v60 = vld [vmem:[#allocation2 + $0x60] sm:$0xff] }
 0x383   : > { %v8991_v38 = vpack.c.bf16 %v1451_v59, %v1447_v44  ;;  %v13175_v59 = vpack.c.bf16 %v8906_v16, %v8904_v14 }
 0x384   : > { %6497 = vmatprep.subr.bf16.mxu1 %v1548_v3  ;;  %6486 = vmatmul.mubr.bf16.gmra.mrb[32].mxu1 %v8983_v50 }
 0x385   : > { %13173 = vst [vmem:[#allocation48_spill] sm:$0xff] %v8991_v38  ;;  %6498 = vmatpush3.bf16.xpose.msra.mxu1 %v1540_v8  ;;  %6487 = vmatprep.mubr.bf16.mxu1 %v8989_v48 }
 0x387   : > { %v1455_v29 = vpop.f32.mrb[100].mxu0 }
 0x388   : > { %v1457_v46 = vpop.f32.mrb[101].mxu0 }
 0x389   : > { %v1459_v33 = vpop.f32.mrb[102].mxu0 }
 0x38a   : > { %v1549_v27 = vpack.c.bf16 %v1459_v33, %v1455_v29  ;;  %v1461_v18 = vpop.f32.mrb[103].mxu0  ;;  %v9007_v33 = vld [vmem:[#allocation2 + $0x68] sm:$0xff] }
 0x38b   : > { %v9000_v10 = vpack.c.bf16 %v1461_v18, %v1457_v46  ;;  %v13177_v18 = vpack.c.bf16 %v8919_v25, %v8917_v22 }
 0x38c   : > { %6499 = vmatprep.subr.bf16.mxu1 %v1549_v27  ;;  %6488 = vmatmul.mubr.bf16.gmra.mrb[36].mxu1 %v8989_v48 }
 0x38d   : > { %13174 = vst [vmem:[#allocation49_spill] sm:$0xff] %v9000_v10  ;;  %6500 = vmatpush3.bf16.xpose.msra.mxu1 %v13175_v59  ;;  %6489 = vmatprep.mubr.bf16.mxu1 %v8998_v60 }
 0x38f   : > { %v1465_v6 = vpop.f32.mrb[104].mxu0 }
 0x390   : > { %v1467_v7 = vpop.f32.mrb[105].mxu0 }
 0x391   : > { %v1469_v8 = vpop.f32.mrb[106].mxu0 }
 0x392   : > { %v1550_v3 = vpack.c.bf16 %v1469_v8, %v1465_v6  ;;  %v1471_v44 = vpop.f32.mrb[107].mxu0  ;;  %v9016_v6 = vld [vmem:[#allocation2 + $0x70] sm:$0xff] }
 0x393   : > { %v9009_v29 = vpack.c.bf16 %v1471_v44, %v1467_v7  ;;  %v13179_v7 = vpack.c.bf16 %v8931_v36, %v8929_v32 }
 0x394   : > { %6501 = vmatprep.subr.bf16.mxu1 %v1550_v3  ;;  %6490 = vmatmul.mubr.bf16.gmra.mrb[40].mxu1 %v8998_v60 }
 0x395   : > { %13176 = vst [vmem:[#allocation50_spill] sm:$0xff] %v9009_v29  ;;  %6502 = vmatpush3.bf16.xpose.msra.mxu1 %v13177_v18  ;;  %6491 = vmatprep.mubr.bf16.mxu1 %v9007_v33 }
 0x397   : > { %v1475_v14 = vpop.f32.mrb[108].mxu0 }
 0x398   : > { %v1477_v16 = vpop.f32.mrb[109].mxu0 }
 0x399   : > { %v1479_v27 = vpop.f32.mrb[110].mxu0 }
 0x39a   : > { %v1551_v46 = vpack.c.bf16 %v1479_v27, %v1475_v14  ;;  %v1481_v59 = vpop.f32.mrb[111].mxu0  ;;  %v9025_v14 = vld [vmem:[#allocation2 + $0x78] sm:$0xff] }
 0x39b   : > { %v9018_v8 = vpack.c.bf16 %v1481_v59, %v1477_v16  ;;  %v13181_v16 = vpack.c.bf16 %v8943_v41, %v8941_v45 }
 0x39c   : > { %6503 = vmatprep.subr.bf16.mxu1 %v1551_v46  ;;  %6492 = vmatmul.mubr.bf16.gmra.mrb[44].mxu1 %v9007_v33 }
 0x39d   : > { %13178 = vst [vmem:[#allocation51_spill] sm:$0xff] %v9018_v8  ;;  %6504 = vmatpush3.bf16.xpose.msra.mxu1 %v13179_v7  ;;  %6493 = vmatprep.mubr.bf16.mxu1 %v9016_v6 }
 0x39f   : > { %v1485_v22 = vpop.f32.mrb[112].mxu0 }
 0x3a0   : > { %v1487_v25 = vpop.f32.mrb[113].mxu0 }
 0x3a1   : > { %v1489_v3 = vpop.f32.mrb[114].mxu0 }
 0x3a2   : > { %v1552_v44 = vpack.c.bf16 %v1489_v3, %v1485_v22  ;;  %v1491_v18 = vpop.f32.mrb[115].mxu0 }
 0x3a3   : > { %v9027_v27 = vpack.c.bf16 %v1491_v18, %v1487_v25  ;;  %v13183_v25 = vpack.c.bf16 %v8955_v57, %v8953_v49 }
 0x3a4   : > { %6505 = vmatprep.subr.bf16.mxu1 %v1552_v44  ;;  %6494 = vmatmul.mubr.bf16.gmra.mrb[48].mxu1 %v9016_v6 }
 0x3a5   : > { %13180 = vst [vmem:[#allocation52_spill] sm:$0xff] %v9027_v27  ;;  %6506 = vmatpush3.bf16.xpose.msra.mxu1 %v13181_v16  ;;  %6495 = vmatprep.mubr.bf16.mxu1 %v9025_v14 }
 0x3a7   : > { %v1495_v32 = vpop.f32.mrb[116].mxu0 }
 0x3a8   : > { %v1497_v36 = vpop.f32.mrb[117].mxu0 }
 0x3a9   : > { %v1499_v46 = vpop.f32.mrb[118].mxu0 }
 0x3aa   : > { %v1553_v59 = vpack.c.bf16 %v1499_v46, %v1495_v32  ;;  %v1501_v7 = vpop.f32.mrb[119].mxu0  ;;  %v13185_v32 = vpack.c.bf16 %v8967_v2, %v8965_v1 }
 0x3ab   : > { %v9034_v22 = vpack.c.bf16 %v1501_v7, %v1497_v36 }
 0x3ac   : > { %6507 = vmatprep.subr.bf16.mxu1 %v1553_v59  ;;  %6496 = vmatmul.mubr.bf16.gmra.mrb[52].mxu1 %v9025_v14 }
 0x3ad   : > { %13182 = vst [vmem:[#allocation53_spill] sm:$0xff] %v9034_v22  ;;  %6508 = vmatpush3.bf16.xpose.msra.mxu1 %v13183_v25  ;;  %6513 = vmatprep.mubr.bf16.mxu1 %v8885_v62  ;;  %v13187_v25 = vpack.c.bf16 %v8979_v34, %v8977_v24 }
 0x3af   : > { %v1505_v45 = vpop.f32.mrb[120].mxu0 }
 0x3b0   : > { %v1507_v41 = vpop.f32.mrb[121].mxu0 }
 0x3b1   : > { %v1509_v3 = vpop.f32.mrb[122].mxu0 }
 0x3b2   : > { %v1554_v44 = vpack.c.bf16 %v1509_v3, %v1505_v45  ;;  %v1511_v18 = vpop.f32.mrb[123].mxu0 }
 0x3b3   : > { %v9041_v16 = vpack.c.bf16 %v1511_v18, %v1507_v41 }
 0x3b4   : > { %6509 = vmatprep.subr.bf16.mxu1 %v1554_v44 }
 0x3b5   : > { %13184 = vst [vmem:[#allocation54_spill] sm:$0xff] %v9041_v16  ;;  %6510 = vmatpush3.bf16.xpose.msra.mxu1 %v13185_v32 }
 0x3b7   : > { %v1515_v36 = vpop.f32.mrb[124].mxu0 }
 0x3b8   : > { %v1517_v46 = vpop.f32.mrb[125].mxu0 }
 0x3b9   : > { %v1519_v59 = vpop.f32.mrb[126].mxu0 }
 0x3ba   : > { %v1555_v7 = vpack.c.bf16 %v1519_v59, %v1515_v36  ;;  %v1521_v49 = vpop.f32.mrb[127].mxu0 }
 0x3bb   : > { %v9046_v57 = vpack.c.bf16 %v1521_v49, %v1517_v46 }
 0x3bc   : > { %6511 = vmatprep.subr.bf16.mxu1 %v1555_v7 }
 0x3bd   : > { %13186 = vst [vmem:[#allocation55_spill] sm:$0xff] %v9046_v57  ;;  %6512 = vmatpush3.bf16.xpose.msra.mxu1 %v13187_v25 }
 0x3c4   : > { %6514 = vmatmul.mubr.bf16.vlgmr.msra.gmra.mrb[56].mxu1 %v8885_v62 }
 0x3c5   : > { %6515 = vmatprep.mubr.bf16.mxu1 %v8899_v9 }
 0x3cc   : > { %6516 = vmatmul.mubr.bf16.gmra.mrb[60].mxu1 %v8899_v9 }
 0x3cd   : > { %6517 = vmatprep.mubr.bf16.mxu1 %v8821_v37 }
 0x3d4   : > { %6518 = vmatmul.mubr.bf16.gmra.mrb[64].mxu1 %v8821_v37 }
 0x3d5   : > { %6519 = vmatprep.mubr.bf16.mxu1 %v8894_v12 }
 0x3dc   : > { %6520 = vmatmul.mubr.bf16.gmra.mrb[68].mxu1 %v8894_v12 }
 0x3dd   : > { %6521 = vmatprep.mubr.bf16.mxu1 %v8910_v20 }
 0x3e4   : > { %6522 = vmatmul.mubr.bf16.gmra.mrb[72].mxu1 %v8910_v20 }
 0x3e5   : > { %6523 = vmatprep.mubr.bf16.mxu1 %v8923_v30 }
 0x3ec   : > { %6524 = vmatmul.mubr.bf16.gmra.mrb[76].mxu1 %v8923_v30 }
 0x3ed   : > { %6525 = vmatprep.mubr.bf16.mxu1 %v8935_v40 }
 0x3f4   : > { %6526 = vmatmul.mubr.bf16.gmra.mrb[80].mxu1 %v8935_v40 }
 0x3f5   : > { %6527 = vmatprep.mubr.bf16.mxu1 %v8947_v52 }
 0x3fc   : > { %6528 = vmatmul.mubr.bf16.gmra.mrb[84].mxu1 %v8947_v52 }
 0x3fd   : > { %6529 = vmatprep.mubr.bf16.mxu1 %v8959_v56 }
 0x404   : > { %6530 = vmatmul.mubr.bf16.gmra.mrb[88].mxu1 %v8959_v56 }
 0x405   : > { %6531 = vmatprep.mubr.bf16.mxu1 %v8971_v15 }
 0x40c   : > { %6532 = vmatmul.mubr.bf16.gmra.mrb[92].mxu1 %v8971_v15 }
 0x40d   : > { %6533 = vmatprep.mubr.bf16.mxu1 %v8983_v50 }
 0x414   : > { %6534 = vmatmul.mubr.bf16.gmra.mrb[96].mxu1 %v8983_v50 }
 0x415   : > { %6535 = vmatprep.mubr.bf16.mxu1 %v8989_v48 }
 0x417   : > { %v9073_v37 = vpop.f32.mrb[0].mxu1 }
 0x418   : > { %13188 = vst [vmem:[#allocation56_spill] sm:$0xff] %v9073_v37  ;;  %v9075_v62 = vpop.f32.mrb[1].mxu1 }
 0x419   : > { %13189 = vst [vmem:[#allocation57_spill] sm:$0xff] %v9075_v62  ;;  %v9077_v12 = vpop.f32.mrb[2].mxu1 }
 0x41a   : > { %13190 = vst [vmem:[#allocation58_spill] sm:$0xff] %v9077_v12  ;;  %v9079_v9 = vpop.f32.mrb[3].mxu1 }
 0x41b   : > { %13191 = vst [vmem:[#allocation59_spill] sm:$0xff] %v9079_v9 }
 0x41c   : > { %6536 = vmatmul.mubr.bf16.gmra.mrb[100].mxu1 %v8989_v48 }
 0x41d   : > { %6537 = vmatprep.mubr.bf16.mxu1 %v8998_v60 }
 0x41f   : > { %v9083_v20 = vpop.f32.mrb[4].mxu1 }
 0x420   : > { %13192 = vst [vmem:[#allocation60_spill] sm:$0xff] %v9083_v20  ;;  %v9085_v30 = vpop.f32.mrb[5].mxu1 }
 0x421   : > { %13193 = vst [vmem:[#allocation61_spill] sm:$0xff] %v9085_v30  ;;  %v9087_v40 = vpop.f32.mrb[6].mxu1 }
 0x422   : > { %13194 = vst [vmem:[#allocation62_spill] sm:$0xff] %v9087_v40  ;;  %v9089_v52 = vpop.f32.mrb[7].mxu1 }
 0x423   : > { %13195 = vst [vmem:[#allocation63_spill] sm:$0xff] %v9089_v52 }
 0x424   : > { %6538 = vmatmul.mubr.bf16.gmra.mrb[104].mxu1 %v8998_v60 }
 0x425   : > { %6539 = vmatprep.mubr.bf16.mxu1 %v9007_v33 }
 0x427   : > { %v9093_v56 = vpop.f32.mrb[8].mxu1 }
 0x428   : > { %13196 = vst [vmem:[#allocation64_spill] sm:$0xff] %v9093_v56  ;;  %v9095_v1 = vpop.f32.mrb[9].mxu1 }
 0x429   : > { %13197 = vst [vmem:[#allocation65_spill] sm:$0xff] %v9095_v1  ;;  %v9097_v2 = vpop.f32.mrb[10].mxu1 }
 0x42a   : > { %13198 = vst [vmem:[#allocation66_spill] sm:$0xff] %v9097_v2  ;;  %v9099_v48 = vpop.f32.mrb[11].mxu1 }
 0x42b   : > { %13199 = vst [vmem:[#allocation67_spill] sm:$0xff] %v9099_v48 }
 0x42c   : > { %6540 = vmatmul.mubr.bf16.gmra.mrb[108].mxu1 %v9007_v33 }
 0x42d   : > { %6541 = vmatprep.mubr.bf16.mxu1 %v9016_v6 }
 0x42f   : > { %v9103_v15 = vpop.f32.mrb[12].mxu1 }
 0x430   : > { %13200 = vst [vmem:[#allocation68_spill] sm:$0xff] %v9103_v15  ;;  %v9105_v24 = vpop.f32.mrb[13].mxu1 }
 0x431   : > { %13201 = vst [vmem:[#allocation69_spill] sm:$0xff] %v9105_v24  ;;  %v9107_v34 = vpop.f32.mrb[14].mxu1 }
 0x432   : > { %13202 = vst [vmem:[#allocation70_spill] sm:$0xff] %v9107_v34  ;;  %v9109_v50 = vpop.f32.mrb[15].mxu1 }
 0x433   : > { %13203 = vst [vmem:[#allocation71_spill] sm:$0xff] %v9109_v50 }
 0x434   : > { %6542 = vmatmul.mubr.bf16.gmra.mrb[112].mxu1 %v9016_v6 }
 0x435   : > { %6543 = vmatprep.mubr.bf16.mxu1 %v9025_v14 }
 0x437   : > { %v9113_v60 = vpop.f32.mrb[16].mxu1 }
 0x438   : > { %13204 = vst [vmem:[#allocation72_spill] sm:$0xff] %v9113_v60  ;;  %v9115_v45 = vpop.f32.mrb[17].mxu1 }
 0x439   : > { %13205 = vst [vmem:[#allocation73_spill] sm:$0xff] %v9115_v45  ;;  %v9117_v41 = vpop.f32.mrb[18].mxu1 }
 0x43a   : > { %13206 = vst [vmem:[#allocation74_spill] sm:$0xff] %v9117_v41  ;;  %v9119_v33 = vpop.f32.mrb[19].mxu1 }
 0x43b   : > { %13207 = vst [vmem:[#allocation75_spill] sm:$0xff] %v9119_v33 }
 0x43c   : > { %6544 = vmatmul.mubr.bf16.gmra.mrb[116].mxu1 %v9025_v14 }
 0x43f   : > { %v9122_v3 = vpop.f32.mrb[20].mxu1 }
 0x440   : > { %13208 = vst [vmem:[#allocation76_spill] sm:$0xff] %v9122_v3  ;;  %v9124_v44 = vpop.f32.mrb[21].mxu1 }
 0x441   : > { %13209 = vst [vmem:[#allocation77_spill] sm:$0xff] %v9124_v44  ;;  %v9126_v18 = vpop.f32.mrb[22].mxu1 }
 0x442   : > { %13210 = vst [vmem:[#allocation78_spill] sm:$0xff] %v9126_v18  ;;  %v9128_v32 = vpop.f32.mrb[23].mxu1 }
 0x443   : > { %13211 = vst [vmem:[#allocation79_spill] sm:$0xff] %v9128_v32 }
 0x447   : > { %v9130_v6 = vpop.f32.mrb[24].mxu1 }
 0x448   : > { %13212 = vst [vmem:[#allocation80_spill] sm:$0xff] %v9130_v6  ;;  %v9132_v36 = vpop.f32.mrb[25].mxu1 }
 0x449   : > { %13213 = vst [vmem:[#allocation81_spill] sm:$0xff] %v9132_v36  ;;  %v9134_v46 = vpop.f32.mrb[26].mxu1 }
 0x44a   : > { %13214 = vst [vmem:[#allocation82_spill] sm:$0xff] %v9134_v46  ;;  %v9136_v59 = vpop.f32.mrb[27].mxu1 }
 0x44b   : > { %13215 = vst [vmem:[#allocation83_spill] sm:$0xff] %v9136_v59 }
 0x44f   : > { %v9138_v7 = vpop.f32.mrb[28].mxu1 }
 0x450   : > { %13216 = vst [vmem:[#allocation84_spill] sm:$0xff] %v9138_v7  ;;  %v9140_v49 = vpop.f32.mrb[29].mxu1 }
 0x451   : > { %13217 = vst [vmem:[#allocation85_spill] sm:$0xff] %v9140_v49  ;;  %v9142_v14 = vpop.f32.mrb[30].mxu1 }
 0x452   : > { %13218 = vst [vmem:[#allocation86_spill] sm:$0xff] %v9142_v14  ;;  %v9144_v25 = vpop.f32.mrb[31].mxu1 }
 0x453   : > { %13219 = vst [vmem:[#allocation87_spill] sm:$0xff] %v9144_v25 }
 0x457   : > { %v9146_v44 = vpop.f32.mrb[32].mxu1 }
 0x458   : > { %13220 = vst [vmem:[#allocation88_spill] sm:$0xff] %v9146_v44  ;;  %v9148_v3 = vpop.f32.mrb[33].mxu1 }
 0x459   : > { %13221 = vst [vmem:[#allocation89_spill] sm:$0xff] %v9148_v3  ;;  %v9150_v32 = vpop.f32.mrb[34].mxu1 }
 0x45a   : > { %13222 = vst [vmem:[#allocation90_spill] sm:$0xff] %v9150_v32  ;;  %v9152_v6 = vpop.f32.mrb[35].mxu1 }
 0x45b   : > { %13223 = vst [vmem:[#allocation91_spill] sm:$0xff] %v9152_v6 }
 0x45f   : > { %v9154_v36 = vpop.f32.mrb[36].mxu1 }
 0x460   : > { %13224 = vst [vmem:[#allocation92_spill] sm:$0xff] %v9154_v36  ;;  %v9156_v46 = vpop.f32.mrb[37].mxu1 }
 0x461   : > { %13225 = vst [vmem:[#allocation93_spill] sm:$0xff] %v9156_v46  ;;  %v9158_v59 = vpop.f32.mrb[38].mxu1 }
 0x462   : > { %13226 = vst [vmem:[#allocation94_spill] sm:$0xff] %v9158_v59  ;;  %v9160_v7 = vpop.f32.mrb[39].mxu1 }
 0x463   : > { %13227 = vst [vmem:[#allocation95_spill] sm:$0xff] %v9160_v7 }
 0x467   : > { %v9162_v49 = vpop.f32.mrb[40].mxu1 }
 0x468   : > { %13228 = vst [vmem:[#allocation96_spill] sm:$0xff] %v9162_v49  ;;  %v9164_v14 = vpop.f32.mrb[41].mxu1 }
 0x469   : > { %13229 = vst [vmem:[#allocation97_spill] sm:$0xff] %v9164_v14  ;;  %v9166_v25 = vpop.f32.mrb[42].mxu1 }
 0x46a   : > { %13230 = vst [vmem:[#allocation98_spill] sm:$0xff] %v9166_v25  ;;  %v9168_v44 = vpop.f32.mrb[43].mxu1 }
 0x46b   : > { %13231 = vst [vmem:[#allocation99_spill] sm:$0xff] %v9168_v44 }
 0x46f   : > { %v9170_v3 = vpop.f32.mrb[44].mxu1 }
 0x470   : > { %13232 = vst [vmem:[#allocation100_spill] sm:$0xff] %v9170_v3  ;;  %v9172_v32 = vpop.f32.mrb[45].mxu1 }
 0x471   : > { %13233 = vst [vmem:[#allocation101_spill] sm:$0xff] %v9172_v32  ;;  %v9174_v6 = vpop.f32.mrb[46].mxu1  ;;  %v9194_v32 = vpop.f32.mrb[128].mxu0 }
 0x472   : > { %13234 = vst [vmem:[#allocation102_spill] sm:$0xff] %v9174_v6  ;;  %v9176_v36 = vpop.f32.mrb[47].mxu1  ;;  %13244 = vst [vmem:[#allocation112_spill] sm:$0xff] %v9194_v32  ;;  %v9196_v6 = vpop.f32.mrb[129].mxu0 }
 0x473   : > { %13235 = vst [vmem:[#allocation103_spill] sm:$0xff] %v9176_v36  ;;  %13245 = vst [vmem:[#allocation113_spill] sm:$0xff] %v9196_v6  ;;  %v9198_v36 = vpop.f32.mrb[130].mxu0 }
 0x474   : > { %13246 = vst [vmem:[#allocation114_spill] sm:$0xff] %v9198_v36 }
 0x477   : > { %v9178_v46 = vpop.f32.mrb[48].mxu1 }
 0x478   : > { %13236 = vst [vmem:[#allocation104_spill] sm:$0xff] %v9178_v46  ;;  %v9180_v59 = vpop.f32.mrb[49].mxu1  ;;  %v9200_v46 = vpop.f32.mrb[131].mxu0 }
 0x479   : > { %13237 = vst [vmem:[#allocation105_spill] sm:$0xff] %v9180_v59  ;;  %v9182_v7 = vpop.f32.mrb[50].mxu1  ;;  %13247 = vst [vmem:[#allocation115_spill] sm:$0xff] %v9200_v46  ;;  %v9202_v59 = vpop.f32.mrb[132].mxu0 }
 0x47a   : > { %13238 = vst [vmem:[#allocation106_spill] sm:$0xff] %v9182_v7  ;;  %v9184_v49 = vpop.f32.mrb[51].mxu1  ;;  %13248 = vst [vmem:[#allocation116_spill] sm:$0xff] %v9202_v59  ;;  %v9204_v7 = vpop.f32.mrb[133].mxu0 }
 0x47b   : > { %13239 = vst [vmem:[#allocation107_spill] sm:$0xff] %v9184_v49  ;;  %13249 = vst [vmem:[#allocation117_spill] sm:$0xff] %v9204_v7  ;;  %v9206_v49 = vpop.f32.mrb[134].mxu0 }
 0x47c   : > { %13250 = vst [vmem:[#allocation118_spill] sm:$0xff] %v9206_v49 }
 0x47f   : > { %v9186_v14 = vpop.f32.mrb[52].mxu1 }
 0x480   : > { %13240 = vst [vmem:[#allocation108_spill] sm:$0xff] %v9186_v14  ;;  %v9188_v25 = vpop.f32.mrb[53].mxu1  ;;  %v9208_v14 = vpop.f32.mrb[135].mxu0 }
 0x481   : > { %13241 = vst [vmem:[#allocation109_spill] sm:$0xff] %v9188_v25  ;;  %v9190_v44 = vpop.f32.mrb[54].mxu1  ;;  %13251 = vst [vmem:[#allocation119_spill] sm:$0xff] %v9208_v14 }
 0x482   : > { %13242 = vst [vmem:[#allocation110_spill] sm:$0xff] %v9190_v44  ;;  %v9192_v3 = vpop.f32.mrb[55].mxu1 }
 0x483   : > { %13243 = vst [vmem:[#allocation111_spill] sm:$0xff] %v9192_v3 }
 0x497   : > { %v9210_v25 = vpop.f32.mrb[56].mxu1 }
 0x498   : > { %13252 = vst [vmem:[#allocation120_spill] sm:$0xff] %v9210_v25  ;;  %v9212_v44 = vpop.f32.mrb[57].mxu1 }
 0x499   : > { %13253 = vst [vmem:[#allocation121_spill] sm:$0xff] %v9212_v44  ;;  %v9214_v3 = vpop.f32.mrb[58].mxu1 }
 0x49a   : > { %13254 = vst [vmem:[#allocation122_spill] sm:$0xff] %v9214_v3  ;;  %v9216_v18 = vpop.f32.mrb[59].mxu1 }
 0x49b   : > { %13255 = vst [vmem:[#allocation123_spill] sm:$0xff] %v9216_v18 }
 0x49f   : > { %v9218_v45 = vpop.f32.mrb[60].mxu1 }
 0x4a0   : > { %13256 = vst [vmem:[#allocation124_spill] sm:$0xff] %v9218_v45  ;;  %v9220_v60 = vpop.f32.mrb[61].mxu1 }
 0x4a1   : > { %13257 = vst [vmem:[#allocation125_spill] sm:$0xff] %v9220_v60  ;;  %v9222_v55 = vpop.f32.mrb[62].mxu1 }
 0x4a2   : > { %13258 = vst [vmem:[#allocation126_spill] sm:$0xff] %v9222_v55  ;;  %v9224_v33 = vpop.f32.mrb[63].mxu1 }
 0x4a3   : > { %13259 = vst [vmem:[#allocation127_spill] sm:$0xff] %v9224_v33 }
 0x4a7   : > { %v9226_v41 = vpop.f32.mrb[64].mxu1 }
 0x4a8   : > { %13260 = vst [vmem:[#allocation128_spill] sm:$0xff] %v9226_v41  ;;  %v9228_v11 = vpop.f32.mrb[65].mxu1 }
 0x4a9   : > { %13261 = vst [vmem:[#allocation129_spill] sm:$0xff] %v9228_v11  ;;  %v9230_v50 = vpop.f32.mrb[66].mxu1 }
 0x4aa   : > { %13262 = vst [vmem:[#allocation130_spill] sm:$0xff] %v9230_v50  ;;  %v9232_v34 = vpop.f32.mrb[67].mxu1 }
 0x4ab   : > { %13263 = vst [vmem:[#allocation131_spill] sm:$0xff] %v9232_v34 }
 0x4af   : > { %v9234_v57 = vpop.f32.mrb[68].mxu1 }
 0x4b0   : > { %13264 = vst [vmem:[#allocation132_spill] sm:$0xff] %v9234_v57  ;;  %v9236_v4 = vpop.f32.mrb[69].mxu1 }
 0x4b1   : > { %13265 = vst [vmem:[#allocation133_spill] sm:$0xff] %v9236_v4  ;;  %v9238_v19 = vpop.f32.mrb[70].mxu1 }
 0x4b2   : > { %13266 = vst [vmem:[#allocation134_spill] sm:$0xff] %v9238_v19  ;;  %v9240_v24 = vpop.f32.mrb[71].mxu1 }
 0x4b3   : > { %13267 = vst [vmem:[#allocation135_spill] sm:$0xff] %v9240_v24 }
 0x4b7   : > { %v9242_v15 = vpop.f32.mrb[72].mxu1 }
 0x4b8   : > { %13268 = vst [vmem:[#allocation136_spill] sm:$0xff] %v9242_v15  ;;  %v9244_v5 = vpop.f32.mrb[73].mxu1 }
 0x4b9   : > { %13269 = vst [vmem:[#allocation137_spill] sm:$0xff] %v9244_v5  ;;  %v9246_v48 = vpop.f32.mrb[74].mxu1 }
 0x4ba   : > { %13270 = vst [vmem:[#allocation138_spill] sm:$0xff] %v9246_v48  ;;  %v9248_v2 = vpop.f32.mrb[75].mxu1 }
 0x4bb   : > { %13271 = vst [vmem:[#allocation139_spill] sm:$0xff] %v9248_v2 }
 0x4bf   : > { %v9250_v16 = vpop.f32.mrb[76].mxu1 }
 0x4c0   : > { %13272 = vst [vmem:[#allocation140_spill] sm:$0xff] %v9250_v16  ;;  %v9252_v61 = vpop.f32.mrb[77].mxu1 }
 0x4c1   : > { %13273 = vst [vmem:[#allocation141_spill] sm:$0xff] %v9252_v61  ;;  %v9254_v63 = vpop.f32.mrb[78].mxu1 }
 0x4c2   : > { %13274 = vst [vmem:[#allocation142_spill] sm:$0xff] %v9254_v63  ;;  %v9256_v1 = vpop.f32.mrb[79].mxu1 }
 0x4c3   : > { %13275 = vst [vmem:[#allocation143_spill] sm:$0xff] %v9256_v1 }
 0x4c7   : > { %v9258_v56 = vpop.f32.mrb[80].mxu1 }
 0x4c8   : > { %13276 = vst [vmem:[#allocation144_spill] sm:$0xff] %v9258_v56  ;;  %v9260_v0 = vpop.f32.mrb[81].mxu1 }
 0x4c9   : > { %13277 = vst [vmem:[#allocation145_spill] sm:$0xff] %v9260_v0  ;;  %v9262_v24 = vpop.f32.mrb[82].mxu1 }
 0x4ca   : > { %13278 = vst [vmem:[#allocation146_spill] sm:$0xff] %v9262_v24  ;;  %v9264_v15 = vpop.f32.mrb[83].mxu1 }
 0x4cb   : > { %13279 = vst [vmem:[#allocation147_spill] sm:$0xff] %v9264_v15 }
 0x4cf   : > { %v9266_v5 = vpop.f32.mrb[84].mxu1 }
 0x4d0   : > { %13280 = vst [vmem:[#allocation148_spill] sm:$0xff] %v9266_v5  ;;  %v9268_v48 = vpop.f32.mrb[85].mxu1 }
 0x4d1   : > { %13281 = vst [vmem:[#allocation149_spill] sm:$0xff] %v9268_v48  ;;  %v9270_v2 = vpop.f32.mrb[86].mxu1 }
 0x4d2   : > { %13282 = vst [vmem:[#allocation150_spill] sm:$0xff] %v9270_v2  ;;  %v9272_v16 = vpop.f32.mrb[87].mxu1 }
 0x4d3   : > { %13283 = vst [vmem:[#allocation151_spill] sm:$0xff] %v9272_v16 }
 0x4d7   : > { %v9274_v61 = vpop.f32.mrb[88].mxu1 }
 0x4d8   : > { %13284 = vst [vmem:[#allocation152_spill] sm:$0xff] %v9274_v61  ;;  %v9276_v63 = vpop.f32.mrb[89].mxu1 }
 0x4d9   : > { %13285 = vst [vmem:[#allocation153_spill] sm:$0xff] %v9276_v63  ;;  %v9278_v1 = vpop.f32.mrb[90].mxu1 }
 0x4da   : > { %13286 = vst [vmem:[#allocation154_spill] sm:$0xff] %v9278_v1  ;;  %v9280_v56 = vpop.f32.mrb[91].mxu1 }
 0x4db   : > { %13287 = vst [vmem:[#allocation155_spill] sm:$0xff] %v9280_v56 }
 0x4df   : > { %v9282_v0 = vpop.f32.mrb[92].mxu1 }
 0x4e0   : > { %13288 = vst [vmem:[#allocation156_spill] sm:$0xff] %v9282_v0  ;;  %v9284_v24 = vpop.f32.mrb[93].mxu1 }
 0x4e1   : > { %13289 = vst [vmem:[#allocation157_spill] sm:$0xff] %v9284_v24  ;;  %v9286_v15 = vpop.f32.mrb[94].mxu1 }
 0x4e2   : > { %13290 = vst [vmem:[#allocation158_spill] sm:$0xff] %v9286_v15  ;;  %v9288_v5 = vpop.f32.mrb[95].mxu1 }
 0x4e3   : > { %13291 = vst [vmem:[#allocation159_spill] sm:$0xff] %v9288_v5 }
 0x4e7   : > { %v9290_v48 = vpop.f32.mrb[96].mxu1 }
 0x4e8   : > { %13292 = vst [vmem:[#allocation160_spill] sm:$0xff] %v9290_v48  ;;  %v9292_v2 = vpop.f32.mrb[97].mxu1 }
 0x4e9   : > { %13293 = vst [vmem:[#allocation161_spill] sm:$0xff] %v9292_v2  ;;  %v9294_v16 = vpop.f32.mrb[98].mxu1 }
 0x4ea   : > { %13294 = vst [vmem:[#allocation162_spill] sm:$0xff] %v9294_v16  ;;  %v9296_v61 = vpop.f32.mrb[99].mxu1 }
 0x4eb   : > { %13295 = vst [vmem:[#allocation163_spill] sm:$0xff] %v9296_v61 }
 0x4ef   : > { %v9298_v63 = vpop.f32.mrb[100].mxu1 }
 0x4f0   : > { %13296 = vst [vmem:[#allocation164_spill] sm:$0xff] %v9298_v63  ;;  %v9300_v1 = vpop.f32.mrb[101].mxu1 }
 0x4f1   : > { %13297 = vst [vmem:[#allocation165_spill] sm:$0xff] %v9300_v1  ;;  %v9302_v56 = vpop.f32.mrb[102].mxu1 }
 0x4f2   : > { %13298 = vst [vmem:[#allocation166_spill] sm:$0xff] %v9302_v56  ;;  %v9304_v0 = vpop.f32.mrb[103].mxu1 }
 0x4f3   : > { %13299 = vst [vmem:[#allocation167_spill] sm:$0xff] %v9304_v0 }
 0x4f7   : > { %v9306_v24 = vpop.f32.mrb[104].mxu1 }
 0x4f8   : > { %13300 = vst [vmem:[#allocation168_spill] sm:$0xff] %v9306_v24  ;;  %v9308_v15 = vpop.f32.mrb[105].mxu1 }
 0x4f9   : > { %13301 = vst [vmem:[#allocation169_spill] sm:$0xff] %v9308_v15  ;;  %v9310_v5 = vpop.f32.mrb[106].mxu1 }
 0x4fa   : > { %13302 = vst [vmem:[#allocation170_spill] sm:$0xff] %v9310_v5  ;;  %v9312_v48 = vpop.f32.mrb[107].mxu1 }
 0x4fb   : > { %13303 = vst [vmem:[#allocation171_spill] sm:$0xff] %v9312_v48 }
 0x4ff   : > { %v9314_v2 = vpop.f32.mrb[108].mxu1 }
 0x500   : > { %13304 = vst [vmem:[#allocation172_spill] sm:$0xff] %v9314_v2  ;;  %v9316_v16 = vpop.f32.mrb[109].mxu1 }
 0x501   : > { %13305 = vst [vmem:[#allocation173_spill] sm:$0xff] %v9316_v16  ;;  %v9318_v61 = vpop.f32.mrb[110].mxu1 }
 0x502   : > { %13306 = vst [vmem:[#allocation174_spill] sm:$0xff] %v9318_v61  ;;  %v9320_v63 = vpop.f32.mrb[111].mxu1 }
 0x503   : > { %13307 = vst [vmem:[#allocation175_spill] sm:$0xff] %v9320_v63 }
 0x507   : > { %v9322_v1 = vpop.f32.mrb[112].mxu1 }
 0x508   : > { %13308 = vst [vmem:[#allocation176_spill] sm:$0xff] %v9322_v1  ;;  %v9324_v56 = vpop.f32.mrb[113].mxu1 }
 0x509   : > { %13309 = vst [vmem:[#allocation177_spill] sm:$0xff] %v9324_v56  ;;  %v9326_v0 = vpop.f32.mrb[114].mxu1 }
 0x50a   : > { %13310 = vst [vmem:[#allocation178_spill] sm:$0xff] %v9326_v0  ;;  %v9328_v24 = vpop.f32.mrb[115].mxu1 }
 0x50b   : > { %13311 = vst [vmem:[#allocation179_spill] sm:$0xff] %v9328_v24 }
 0x50d   : > { %1993 = sbr.rel (%p6413_p2) target bundleno = 2040 (0x7f8), region = 60 }
 0x50f   : > { %v9330_v15 = vpop.f32.mrb[116].mxu1 }
 0x510   : > { %13312 = vst [vmem:[#allocation180_spill] sm:$0xff] %v9330_v15  ;;  %v9332_v5 = vpop.f32.mrb[117].mxu1 }
 0x511   : > { %13313 = vst [vmem:[#allocation181_spill] sm:$0xff] %v9332_v5  ;;  %v9334_v48 = vpop.f32.mrb[118].mxu1 }
 0x512   : > { %13314 = vst [vmem:[#allocation182_spill] sm:$0xff] %v9334_v48  ;;  %v9336_v2 = vpop.f32.mrb[119].mxu1 }
 0x513   : > { %13315 = vst [vmem:[#allocation183_spill] sm:$0xff] %v9336_v2 }
 0x514   : > { %s6414_s26 = sshll.u32 %s8237_s21, 9  ;;  %v1995_v56 = vlaneseq  ;;  %6545 = vmatprep.subr.bf16.mxu0 %v8853_v17  ;;  %6657 = vmatprep.subr.bf16.mxu1 %v8991_v38  ;;  %vm3257_vm5 = vcmask 7168  }
 0x515   : > { %v2000_v1 = vstv %s6414_s26  ;;  %6546 = vmatpush3.bf16.msra.mxu0 %v8812_v28  ;;  %6658 = vmatpush3.bf16.msra.mxu1 %v8896_v13 }
 0x516   : > { %v1996_v5 = vand.u32 127, %v1995_v56  ;;  %6547 = vmatprep.subr.bf16.mxu0 %v8857_v23  ;;  %6659 = vmatprep.subr.bf16.mxu1 %v9000_v10 }
 0x518   : > { %v1997_v15 = vadd.s32 128, %v1996_v5  ;;  %v1998_v2 = vadd.s32 256, %v1996_v5  ;;  %v1999_v48 = vadd.s32 384, %v1996_v5  ;;  %v9348_v24 = vadd.s32 %v2000_v1, %v1996_v5 }
 0x519   : > { %6548 = vmatpush3.bf16.msra.mxu0 %v8818_v35  ;;  %6660 = vmatpush3.bf16.msra.mxu1 %v8912_v21 }
 0x51a   : > { %v9352_v38 = vadd.s32 %v2000_v1, %v1997_v15  ;;  %v9354_v17 = vadd.s32 %v2000_v1, %v1998_v2  ;;  %v9356_v28 = vadd.s32 %v2000_v1, %v1999_v48  ;;  %vm2005_vm1 = vcmp.lt.s32.totalorder %v9348_v24, 600  ;;  %6549 = vmatprep.subr.bf16.mxu0 %v8861_v31  ;;  %6661 = vmatprep.subr.bf16.mxu1 %v9009_v29 }
 0x51b   : > { %v9364_v5 = vsel %vm2005_vm1, %v9194_v32, -1e+30  ;;  %v9369_v56 = vsel %vm2005_vm1, %v9202_v59, -1e+30  ;;  %v9374_v1 = vsel %vm2005_vm1, %v9198_v36, -1e+30 }
 0x51c   : > { %vm2006_vm2 = vcmp.lt.s32.totalorder %v9352_v38, 600  ;;  %vm2007_vm3 = vcmp.lt.s32.totalorder %v9354_v17, 600  ;;  %vm2008_vm4 = vcmp.lt.s32.totalorder %v9356_v28, 600  ;;  %v9382_v2 = vsel %vm2005_vm1, %v9206_v49, -1e+30  ;;  %v13338_v36 = vld [vmem:[#allocation68_spill] sm:$0xff] }
 0x51d   : > { %v9387_v48 = vsel %vm2006_vm2, %v9196_v6, -1e+30  ;;  %v9392_v15 = vsel %vm2007_vm3, %v9210_v25, -1e+30  ;;  %v9397_v29 = vsel %vm2008_vm4, %v9212_v44, -1e+30  ;;  %6550 = vmatpush3.bf16.msra.mxu0 %v8827_v43  ;;  %6662 = vmatpush3.bf16.msra.mxu1 %v8925_v26 }
 0x51e   : > { %v2169_v31 = vmax.f32 %v9364_v5, %v9387_v48  ;;  %v9406_v21 = vsel %vm2006_vm2, %v9204_v7, -1e+30  ;;  %v9411_v35 = vsel %vm2007_vm3, %v9218_v45, -1e+30  ;;  %v9416_v10 = vsel %vm2008_vm4, %v9220_v60, -1e+30  ;;  %6551 = vmatprep.subr.bf16.mxu0 %v8865_v39  ;;  %6663 = vmatprep.subr.bf16.mxu1 %v9018_v8 }
 0x51f   : > { %v2179_v26 = vmax.f32 %v9369_v56, %v9406_v21  ;;  %v9425_v43 = vsel %vm2006_vm2, %v9200_v46, -1e+30  ;;  %v9430_v23 = vsel %vm2007_vm3, %v9214_v3, -1e+30  ;;  %v9435_v60 = vsel %vm2008_vm4, %v9216_v18, -1e+30 }
 0x520   : > { %v2170_v8 = vmax.f32 %v2169_v31, %v9392_v15  ;;  %v2174_v39 = vmax.f32 %v9374_v1, %v9425_v43  ;;  %v9443_v44 = vsel %vm2006_vm2, %v9208_v14, -1e+30  ;;  %v9448_v13 = vsel %vm2007_vm3, %v9222_v55, -1e+30  ;;  %v13344_v46 = vld [vmem:[#allocation46_spill] sm:$0xff]  ;;  %v13345_v59 = vld [vmem:[#allocation39_spill] sm:$0xff] }
 0x521   : > { %v2180_v3 = vmax.f32 %v2179_v26, %v9411_v35  ;;  %v9454_v18 = vsel %vm2008_vm4, %v9224_v33, -1e+30  ;;  %v2184_v31 = vmax.f32 %v9382_v2, %v9443_v44  ;;  %v9461_v45 = vsel %vm2005_vm1, %v9073_v37, -1e+30  ;;  %6552 = vmatpush3.bf16.msra.mxu0 %v8833_v51  ;;  %6664 = vmatpush3.bf16.msra.mxu1 %v8937_v42  ;;  %v13328_v37 = vld [vmem:[#allocation54_spill] sm:$0xff]  ;;  %v13346_v7 = vld [vmem:[#allocation141_spill] sm:$0xff] }
 0x522   : > { %v2171_v55 = vmax.f32 %v2170_v8, %v9397_v29  ;;  %v2175_v26 = vmax.f32 %v2174_v39, %v9430_v23  ;;  %v9470_v33 = vsel %vm2006_vm2, %v9075_v62, -1e+30  ;;  %v9475_v25 = vsel %vm2007_vm3, %v9226_v41, -1e+30  ;;  %6553 = vmatprep.subr.bf16.mxu0 %v8869_v47  ;;  %6665 = vmatprep.subr.bf16.mxu1 %v9027_v27  ;;  %v13329_v62 = vld [vmem:[#allocation66_spill] sm:$0xff]  ;;  %v13348_v32 = vld [vmem:[#allocation55_spill] sm:$0xff] }
 0x523   : > { %v2181_v42 = vmax.f32 %v2180_v3, %v9416_v10  ;;  %v2185_v8 = vmax.f32 %v2184_v31, %v9448_v13  ;;  %v9484_v39 = vsel %vm2008_vm4, %v9228_v11, -1e+30  ;;  %v2189_v51 = vmax.f32 %v9461_v45, %v9470_v33  ;;  %v13349_v6 = vld [vmem:[#allocation70_spill] sm:$0xff] }
 0x524   : > { %2172 = vmax.xlane.f32.xlu0 %v2171_v55  ;;  %v2176_v41 = vmax.f32 %v2175_v26, %v9435_v60  ;;  %v9492_v47 = vsel %vm2005_vm1, %v9077_v12, -1e+30  ;;  %v9497_v3 = vsel %vm2006_vm2, %v9079_v9, -1e+30  ;;  %v9502_v31 = vsel %vm2007_vm3, %v9230_v50, -1e+30 }
 0x525   : > { %2182 = vmax.xlane.f32.xlu1 %v2181_v42  ;;  %v2186_v55 = vmax.f32 %v2185_v8, %v9454_v18  ;;  %v2190_v26 = vmax.f32 %v2189_v51, %v9475_v25  ;;  %v9509_v27 = vsel %vm2008_vm4, %v9232_v34, -1e+30  ;;  %v2194_v11 = vmax.f32 %v9492_v47, %v9497_v3  ;;  %6554 = vmatpush3.bf16.msra.mxu0 %v8839_v58  ;;  %v13326_v12 = vld [vmem:[#allocation38_spill] sm:$0xff]  ;;  %v13327_v9 = vld [vmem:[#allocation137_spill] sm:$0xff] }
 0x526   : > { %v9517_v50 = vsel %vm2005_vm1, %v9083_v20, -1e+30  ;;  %v9522_v42 = vsel %vm2006_vm2, %v9085_v30, -1e+30  ;;  %v9527_v51 = vsel %vm2007_vm3, %v9234_v57, -1e+30  ;;  %6666 = vmatpush3.bf16.msra.mxu1 %v8949_v53  ;;  %6555 = vmatprep.subr.bf16.mxu0 %v8873_v54 }
 0x527   : > { %v2195_v8 = vmax.f32 %v2194_v11, %v9502_v31  ;;  %v9535_v58 = vsel %vm2008_vm4, %v9236_v4, -1e+30  ;;  %v2199_v34 = vmax.f32 %v9517_v50, %v9522_v42  ;;  %6667 = vmatprep.subr.bf16.mxu1 %v9034_v22  ;;  %v2191_v57 = vmax.f32 %v2190_v26, %v9484_v39  ;;  %v13319_v22 = vld [vmem:[#allocation135_spill] sm:$0xff]  ;;  %v13322_v20 = vld [vmem:[#allocation64_spill] sm:$0xff]  ;;  %v13325_v30 = vld [vmem:[#allocation45_spill] sm:$0xff] }
 0x528   : > { %2177 = vmax.xlane.f32.xlu0 %v2176_v41  ;;  %v9544_v53 = vsel %vm2005_vm1, %v9087_v40, -1e+30  ;;  %v9549_v11 = vsel %vm2006_vm2, %v9089_v52, -1e+30  ;;  %v9554_v54 = vsel %vm2007_vm3, %v9238_v19, -1e+30 }
 0x529   : > { %13316 = vst [vmem:[#allocation184_spill] sm:$0xff] %v9544_v53  ;;  %13317 = vst [vmem:[#allocation185_spill] sm:$0xff] %v9549_v11  ;;  %2187 = vmax.xlane.f32.xlu1 %v2186_v55  ;;  %v2196_v41 = vmax.f32 %v2195_v8, %v9509_v27  ;;  %v2200_v26 = vmax.f32 %v2199_v34, %v9527_v51  ;;  %v9561_v4 = vsel %vm2008_vm4, %v13319_v22, -1e+30  ;;  %v13321_v52 = vld [vmem:[#allocation29_spill] sm:$0xff]  ;;  %v13324_v34 = vld [vmem:[#allocation136_spill] sm:$0xff] }
 0x52a   : > { %13318 = vst [vmem:[#allocation186_spill] sm:$0xff] %v9554_v54  ;;  %13320 = vst [vmem:[#allocation187_spill] sm:$0xff] %v9561_v4  ;;  %v2204_v40 = vmax.f32 %v9544_v53, %v9549_v11  ;;  %6556 = vmatpush3.bf16.msra.mxu0 %v13321_v52  ;;  %v9569_v19 = vsel %vm2005_vm1, %v13322_v20, -1e+30  ;;  %v13323_v55 = vld [vmem:[#allocation65_spill] sm:$0xff]  ;;  %6668 = vmatpush3.bf16.msra.mxu1 %v13325_v30  ;;  %v10362_v11 = vld [vmem:[#allocation3 + $0xd8] sm:$0xff] }
 0x52b   : > { %v9574_v8 = vsel %vm2006_vm2, %v13323_v55, -1e+30  ;;  %v9579_v22 = vsel %vm2007_vm3, %v13324_v34, -1e+30  ;;  %6557 = vmatprep.subr.bf16.mxu0 %v13326_v12  ;;  %v9587_v20 = vsel %vm2008_vm4, %v13327_v9, -1e+30  ;;  %6669 = vmatprep.subr.bf16.mxu1 %v13328_v37  ;;  %v2201_v34 = vmax.f32 %v2200_v26, %v9535_v58 }
 0x52c   : > { %v2205_v52 = vmax.f32 %v2204_v40, %v9554_v54  ;;  %v2209_v55 = vmax.f32 %v9569_v19, %v9574_v8  ;;  %2192 = vmax.xlane.f32.xlu0 %v2191_v57  ;;  %v9596_v30 = vsel %vm2005_vm1, %v13329_v62, -1e+30  ;;  %v13331_v12 = vld [vmem:[#allocation67_spill] sm:$0xff]  ;;  %v13333_v9 = vld [vmem:[#allocation138_spill] sm:$0xff]  ;;  %v13550_v54 = vld [vmem:[#allocation177_spill] sm:$0xff]  ;;  %13557 = vst [vmem:[#allocation327_spill] sm:$0xff] %v10362_v11 }
 0x52d   : > { %13330 = vst [vmem:[#allocation188_spill] sm:$0xff] %v9596_v30  ;;  %v9601_v40 = vsel %vm2006_vm2, %v13331_v12, -1e+30  ;;  %v9606_v49 = vsel %vm2007_vm3, %v13333_v9, -1e+30  ;;  %2197 = vmax.xlane.f32.xlu1 %v2196_v41  ;;  %v13335_v26 = vld [vmem:[#allocation139_spill] sm:$0xff] }
 0x52e   : > { %13332 = vst [vmem:[#allocation189_spill] sm:$0xff] %v9601_v40  ;;  %13334 = vst [vmem:[#allocation190_spill] sm:$0xff] %v9606_v49  ;;  %v2206_v57 = vmax.f32 %v2205_v52, %v9561_v4  ;;  %v2210_v37 = vmax.f32 %v2209_v55, %v9579_v22  ;;  %v9613_v62 = vsel %vm2008_vm4, %v13335_v26, -1e+30  ;;  %v2214_v14 = vmax.f32 %v9596_v30, %v9601_v40  ;;  %v13337_v12 = vld [vmem:[#allocation30_spill] sm:$0xff]  ;;  %v13340_v41 = vld [vmem:[#allocation69_spill] sm:$0xff] }
 0x52f   : > { %13336 = vst [vmem:[#allocation191_spill] sm:$0xff] %v9613_v62  ;;  %6558 = vmatpush3.bf16.msra.mxu0 %v13337_v12  ;;  %v9621_v9 = vsel %vm2005_vm1, %v13338_v36, -1e+30  ;;  %v9626_v52 = vsel %vm2006_vm2, %v13340_v41, -1e+30  ;;  %v13342_v55 = vld [vmem:[#allocation140_spill] sm:$0xff]  ;;  %6670 = vmatpush3.bf16.msra.mxu1 %v13344_v46 }
 0x530   : > { %13339 = vst [vmem:[#allocation192_spill] sm:$0xff] %v9621_v9  ;;  %13341 = vst [vmem:[#allocation193_spill] sm:$0xff] %v9626_v52  ;;  %v9631_v26 = vsel %vm2007_vm3, %v13342_v55, -1e+30  ;;  %6559 = vmatprep.subr.bf16.mxu0 %v13345_v59  ;;  %v2215_v12 = vmax.f32 %v2214_v14, %v9606_v49  ;;  %v9639_v36 = vsel %vm2008_vm4, %v13346_v7, -1e+30  ;;  %v2219_v41 = vmax.f32 %v9621_v9, %v9626_v52 }
 0x531   : > { %13343 = vst [vmem:[#allocation194_spill] sm:$0xff] %v9631_v26  ;;  %13347 = vst [vmem:[#allocation195_spill] sm:$0xff] %v9639_v36  ;;  %6671 = vmatprep.subr.bf16.mxu1 %v13348_v32  ;;  %2202 = vmax.xlane.f32.xlu0 %v2201_v34  ;;  %v2211_v55 = vmax.f32 %v2210_v37, %v9587_v20  ;;  %v9648_v46 = vsel %vm2005_vm1, %v13349_v6, -1e+30  ;;  %v13351_v59 = vld [vmem:[#allocation71_spill] sm:$0xff]  ;;  %v13353_v7 = vld [vmem:[#allocation142_spill] sm:$0xff] }
 0x532   : > { %13350 = vst [vmem:[#allocation196_spill] sm:$0xff] %v9648_v46  ;;  %v9653_v14 = vsel %vm2006_vm2, %v13351_v59, -1e+30  ;;  %v9658_v49 = vsel %vm2007_vm3, %v13353_v7, -1e+30  ;;  %2207 = vmax.xlane.f32.xlu1 %v2206_v57  ;;  %v2216_v32 = vmax.f32 %v2215_v12, %v9613_v62  ;;  %v2220_v34 = vmax.f32 %v2219_v41, %v9631_v26  ;;  %v13355_v37 = vld [vmem:[#allocation143_spill] sm:$0xff] }
 0x533   : > { %13352 = vst [vmem:[#allocation197_spill] sm:$0xff] %v9653_v14  ;;  %13354 = vst [vmem:[#allocation198_spill] sm:$0xff] %v9658_v49  ;;  %v9665_v6 = vsel %vm2008_vm4, %v13355_v37, -1e+30  ;;  %v2224_v52 = vmax.f32 %v9648_v46, %v9653_v14  ;;  %v13357_v59 = vld [vmem:[#allocation31_spill] sm:$0xff]  ;;  %v13358_v9 = vld [vmem:[#allocation74_spill] sm:$0xff] }
 0x534   : > { %13356 = vst [vmem:[#allocation199_spill] sm:$0xff] %v9665_v6  ;;  %6560 = vmatpush3.bf16.msra.mxu0 %v13357_v59  ;;  %v9673_v7 = vsel %vm2005_vm1, %v13358_v9, -1e+30  ;;  %v13360_v57 = vld [vmem:[#allocation75_spill] sm:$0xff]  ;;  %v13362_v41 = vld [vmem:[#allocation146_spill] sm:$0xff]  ;;  %v13367_v62 = vld [vmem:[#allocation72_spill] sm:$0xff] }
 0x535   : > { %13359 = vst [vmem:[#allocation200_spill] sm:$0xff] %v9673_v7  ;;  %v9678_v12 = vsel %vm2006_vm2, %v13360_v57, -1e+30  ;;  %v9683_v37 = vsel %vm2007_vm3, %v13362_v41, -1e+30  ;;  %v13364_v26 = vld [vmem:[#allocation47_spill] sm:$0xff]  ;;  %v2225_v14 = vmax.f32 %v2224_v52, %v9658_v49  ;;  %2212 = vmax.xlane.f32.xlu0 %v2211_v55  ;;  %v2221_v57 = vmax.f32 %v2220_v34, %v9639_v36 }
 0x536   : > { %13361 = vst [vmem:[#allocation201_spill] sm:$0xff] %v9678_v12  ;;  %13363 = vst [vmem:[#allocation202_spill] sm:$0xff] %v9683_v37  ;;  %6672 = vmatpush3.bf16.msra.mxu1 %v13364_v26  ;;  %v13365_v59 = vld [vmem:[#allocation147_spill] sm:$0xff]  ;;  %v2234_v9 = vmax.f32 %v9673_v7, %v9678_v12  ;;  %v9698_v41 = vsel %vm2005_vm1, %v13367_v62, -1e+30  ;;  %v13369_v40 = vld [vmem:[#allocation73_spill] sm:$0xff]  ;;  %2217 = vmax.xlane.f32.xlu1 %v2216_v32 }
 0x537   : > { %v9690_v46 = vsel %vm2008_vm4, %v13365_v59, -1e+30  ;;  %13368 = vst [vmem:[#allocation204_spill] sm:$0xff] %v9698_v41  ;;  %v9703_v52 = vsel %vm2006_vm2, %v13369_v40, -1e+30  ;;  %v13371_v26 = vld [vmem:[#allocation144_spill] sm:$0xff]  ;;  %v2226_v55 = vmax.f32 %v2225_v14, %v9665_v6 }
 0x538   : > { %13366 = vst [vmem:[#allocation203_spill] sm:$0xff] %v9690_v46  ;;  %13370 = vst [vmem:[#allocation205_spill] sm:$0xff] %v9703_v52  ;;  %v9708_v59 = vsel %vm2007_vm3, %v13371_v26, -1e+30  ;;  %v2235_v34 = vmax.f32 %v2234_v9, %v9683_v37  ;;  %v13373_v12 = vld [vmem:[#allocation145_spill] sm:$0xff]  ;;  %v2229_v7 = vmax.f32 %v9698_v41, %v9703_v52  ;;  %v13375_v40 = vld [vmem:[#allocation78_spill] sm:$0xff] }
 0x539   : > { %13372 = vst [vmem:[#allocation206_spill] sm:$0xff] %v9708_v59  ;;  %v9715_v62 = vsel %vm2008_vm4, %v13373_v12, -1e+30  ;;  %v9722_v49 = vsel %vm2005_vm1, %v13375_v40, -1e+30  ;;  %v13377_v26 = vld [vmem:[#allocation79_spill] sm:$0xff]  ;;  %2222 = vmax.xlane.f32.xlu0 %v2221_v57 }
 0x53a   : > { %13374 = vst [vmem:[#allocation207_spill] sm:$0xff] %v9715_v62  ;;  %13376 = vst [vmem:[#allocation208_spill] sm:$0xff] %v9722_v49  ;;  %v9727_v32 = vsel %vm2006_vm2, %v13377_v26, -1e+30  ;;  %v13379_v14 = vld [vmem:[#allocation150_spill] sm:$0xff]  ;;  %v2230_v12 = vmax.f32 %v2229_v7, %v9708_v59  ;;  %v13381_v37 = vld [vmem:[#allocation151_spill] sm:$0xff]  ;;  %v2236_v41 = vmax.f32 %v2235_v34, %v9690_v46  ;;  %2227 = vmax.xlane.f32.xlu1 %v2226_v55 }
 0x53b   : > { %13378 = vst [vmem:[#allocation209_spill] sm:$0xff] %v9727_v32  ;;  %v9732_v9 = vsel %vm2007_vm3, %v13379_v14, -1e+30  ;;  %v9738_v52 = vsel %vm2008_vm4, %v13381_v37, -1e+30  ;;  %v2244_v40 = vmax.f32 %v9722_v49, %v9727_v32  ;;  %v13383_v26 = vld [vmem:[#allocation76_spill] sm:$0xff] }
 0x53c   : > { %13380 = vst [vmem:[#allocation210_spill] sm:$0xff] %v9732_v9  ;;  %13382 = vst [vmem:[#allocation211_spill] sm:$0xff] %v9738_v52  ;;  %v9746_v6 = vsel %vm2005_vm1, %v13383_v26, -1e+30  ;;  %v13385_v14 = vld [vmem:[#allocation77_spill] sm:$0xff]  ;;  %v13387_v59 = vld [vmem:[#allocation148_spill] sm:$0xff]  ;;  %v2231_v57 = vmax.f32 %v2230_v12, %v9715_v62 }
 0x53d   : > { %13384 = vst [vmem:[#allocation212_spill] sm:$0xff] %v9746_v6  ;;  %v9751_v7 = vsel %vm2006_vm2, %v13385_v14, -1e+30  ;;  %v9756_v37 = vsel %vm2007_vm3, %v13387_v59, -1e+30  ;;  %v2245_v34 = vmax.f32 %v2244_v40, %v9732_v9  ;;  %v13389_v32 = vld [vmem:[#allocation149_spill] sm:$0xff] }
 0x53e   : > { %13386 = vst [vmem:[#allocation213_spill] sm:$0xff] %v9751_v7  ;;  %13388 = vst [vmem:[#allocation214_spill] sm:$0xff] %v9756_v37  ;;  %v9763_v26 = vsel %vm2008_vm4, %v13389_v32, -1e+30  ;;  %v2239_v49 = vmax.f32 %v9746_v6, %v9751_v7  ;;  %v13391_v14 = vld [vmem:[#allocation82_spill] sm:$0xff]  ;;  %v13393_v59 = vld [vmem:[#allocation83_spill] sm:$0xff]  ;;  %2232 = vmax.xlane.f32.xlu0 %v2231_v57  ;;  %2237 = vmax.xlane.f32.xlu1 %v2236_v41 }
 0x53f   : > { %13390 = vst [vmem:[#allocation215_spill] sm:$0xff] %v9763_v26  ;;  %v9770_v46 = vsel %vm2005_vm1, %v13391_v14, -1e+30  ;;  %v9775_v55 = vsel %vm2006_vm2, %v13393_v59, -1e+30  ;;  %v13395_v12 = vld [vmem:[#allocation154_spill] sm:$0xff]  ;;  %v2246_v6 = vmax.f32 %v2245_v34, %v9738_v52 }
 0x540   : > { %13392 = vst [vmem:[#allocation216_spill] sm:$0xff] %v9770_v46  ;;  %13394 = vst [vmem:[#allocation217_spill] sm:$0xff] %v9775_v55  ;;  %v9780_v40 = vsel %vm2007_vm3, %v13395_v12, -1e+30  ;;  %v2240_v32 = vmax.f32 %v2239_v49, %v9756_v37  ;;  %v13397_v9 = vld [vmem:[#allocation155_spill] sm:$0xff]  ;;  %v2254_v14 = vmax.f32 %v9770_v46, %v9775_v55  ;;  %v13399_v59 = vld [vmem:[#allocation80_spill] sm:$0xff] }
 0x541   : > { %13396 = vst [vmem:[#allocation218_spill] sm:$0xff] %v9780_v40  ;;  %v9786_v7 = vsel %vm2008_vm4, %v13397_v9, -1e+30  ;;  %v9794_v62 = vsel %vm2005_vm1, %v13399_v59, -1e+30  ;;  %v13401_v12 = vld [vmem:[#allocation81_spill] sm:$0xff] }
 0x542   : > { %13398 = vst [vmem:[#allocation219_spill] sm:$0xff] %v9786_v7  ;;  %13400 = vst [vmem:[#allocation220_spill] sm:$0xff] %v9794_v62  ;;  %v9799_v49 = vsel %vm2006_vm2, %v13401_v12, -1e+30  ;;  %v13403_v37 = vld [vmem:[#allocation152_spill] sm:$0xff]  ;;  %v2241_v57 = vmax.f32 %v2240_v32, %v9763_v26  ;;  %v2255_v34 = vmax.f32 %v2254_v14, %v9780_v40  ;;  %v13405_v55 = vld [vmem:[#allocation153_spill] sm:$0xff]  ;;  %2247 = vmax.xlane.f32.xlu1 %v2246_v6 }
 0x543   : > { %13402 = vst [vmem:[#allocation221_spill] sm:$0xff] %v9799_v49  ;;  %v9804_v9 = vsel %vm2007_vm3, %v13403_v37, -1e+30  ;;  %v9811_v59 = vsel %vm2008_vm4, %v13405_v55, -1e+30  ;;  %v2249_v46 = vmax.f32 %v9794_v62, %v9799_v49  ;;  %v13407_v12 = vld [vmem:[#allocation86_spill] sm:$0xff] }
 0x544   : > { %13404 = vst [vmem:[#allocation222_spill] sm:$0xff] %v9804_v9  ;;  %13406 = vst [vmem:[#allocation223_spill] sm:$0xff] %v9811_v59  ;;  %v9818_v52 = vsel %vm2005_vm1, %v13407_v12, -1e+30  ;;  %v13409_v37 = vld [vmem:[#allocation87_spill] sm:$0xff]  ;;  %v13411_v32 = vld [vmem:[#allocation158_spill] sm:$0xff]  ;;  %2242 = vmax.xlane.f32.xlu0 %v2241_v57  ;;  %v2256_v49 = vmax.f32 %v2255_v34, %v9786_v7 }
 0x545   : > { %13408 = vst [vmem:[#allocation224_spill] sm:$0xff] %v9818_v52  ;;  %v9823_v41 = vsel %vm2006_vm2, %v13409_v37, -1e+30  ;;  %v9828_v14 = vsel %vm2007_vm3, %v13411_v32, -1e+30  ;;  %v2250_v55 = vmax.f32 %v2249_v46, %v9804_v9  ;;  %v13413_v40 = vld [vmem:[#allocation159_spill] sm:$0xff] }
 0x546   : > { %13410 = vst [vmem:[#allocation225_spill] sm:$0xff] %v9823_v41  ;;  %13412 = vst [vmem:[#allocation226_spill] sm:$0xff] %v9828_v14  ;;  %v9834_v26 = vsel %vm2008_vm4, %v13413_v40, -1e+30  ;;  %v2264_v12 = vmax.f32 %v9818_v52, %v9823_v41  ;;  %v13415_v37 = vld [vmem:[#allocation84_spill] sm:$0xff]  ;;  %v13417_v32 = vld [vmem:[#allocation85_spill] sm:$0xff]  ;;  %2257 = vmax.xlane.f32.xlu1 %v2256_v49 }
 0x547   : > { %13414 = vst [vmem:[#allocation227_spill] sm:$0xff] %v9834_v26  ;;  %v9842_v62 = vsel %vm2005_vm1, %v13415_v37, -1e+30  ;;  %v9847_v46 = vsel %vm2006_vm2, %v13417_v32, -1e+30  ;;  %v13419_v9 = vld [vmem:[#allocation156_spill] sm:$0xff]  ;;  %v2251_v57 = vmax.f32 %v2250_v55, %v9811_v59 }
 0x548   : > { %13416 = vst [vmem:[#allocation228_spill] sm:$0xff] %v9842_v62  ;;  %13418 = vst [vmem:[#allocation229_spill] sm:$0xff] %v9847_v46  ;;  %v9852_v40 = vsel %vm2007_vm3, %v13419_v9, -1e+30  ;;  %v2265_v34 = vmax.f32 %v2264_v12, %v9828_v14  ;;  %v13421_v41 = vld [vmem:[#allocation157_spill] sm:$0xff]  ;;  %v2259_v52 = vmax.f32 %v9842_v62, %v9847_v46  ;;  %v13423_v32 = vld [vmem:[#allocation88_spill] sm:$0xff] }
 0x549   : > { %13420 = vst [vmem:[#allocation230_spill] sm:$0xff] %v9852_v40  ;;  %v9859_v37 = vsel %vm2008_vm4, %v13421_v41, -1e+30  ;;  %v9866_v7 = vsel %vm2005_vm1, %v13423_v32, -1e+30  ;;  %v13425_v9 = vld [vmem:[#allocation89_spill] sm:$0xff]  ;;  %2252 = vmax.xlane.f32.xlu0 %v2251_v57 }
 0x54a   : > { %13422 = vst [vmem:[#allocation231_spill] sm:$0xff] %v9859_v37  ;;  %13424 = vst [vmem:[#allocation232_spill] sm:$0xff] %v9866_v7  ;;  %v9871_v6 = vsel %vm2006_vm2, %v13425_v9, -1e+30  ;;  %v13427_v55 = vld [vmem:[#allocation160_spill] sm:$0xff]  ;;  %v2260_v41 = vmax.f32 %v2259_v52, %v9852_v40  ;;  %v13429_v14 = vld [vmem:[#allocation161_spill] sm:$0xff]  ;;  %v2266_v62 = vmax.f32 %v2265_v34, %v9834_v26 }
 0x54b   : > { %13426 = vst [vmem:[#allocation233_spill] sm:$0xff] %v9871_v6  ;;  %v9876_v12 = vsel %vm2007_vm3, %v13427_v55, -1e+30  ;;  %v9882_v46 = vsel %vm2008_vm4, %v13429_v14, -1e+30  ;;  %v2269_v32 = vmax.f32 %v9866_v7, %v9871_v6  ;;  %v13431_v9 = vld [vmem:[#allocation90_spill] sm:$0xff] }
 0x54c   : > { %13428 = vst [vmem:[#allocation234_spill] sm:$0xff] %v9876_v12  ;;  %13430 = vst [vmem:[#allocation235_spill] sm:$0xff] %v9882_v46  ;;  %v9890_v59 = vsel %vm2005_vm1, %v13431_v9, -1e+30  ;;  %v13433_v55 = vld [vmem:[#allocation91_spill] sm:$0xff]  ;;  %v13435_v40 = vld [vmem:[#allocation162_spill] sm:$0xff]  ;;  %v2261_v57 = vmax.f32 %v2260_v41, %v9859_v37  ;;  %2267 = vmax.xlane.f32.xlu1 %v2266_v62 }
 0x54d   : > { %13432 = vst [vmem:[#allocation236_spill] sm:$0xff] %v9890_v59  ;;  %v9895_v52 = vsel %vm2006_vm2, %v13433_v55, -1e+30  ;;  %v9900_v14 = vsel %vm2007_vm3, %v13435_v40, -1e+30  ;;  %v2270_v34 = vmax.f32 %v2269_v32, %v9876_v12  ;;  %v13437_v6 = vld [vmem:[#allocation163_spill] sm:$0xff] }
 0x54e   : > { %13434 = vst [vmem:[#allocation237_spill] sm:$0xff] %v9895_v52  ;;  %13436 = vst [vmem:[#allocation238_spill] sm:$0xff] %v9900_v14  ;;  %v9907_v9 = vsel %vm2008_vm4, %v13437_v6, -1e+30  ;;  %v2274_v7 = vmax.f32 %v9890_v59, %v9895_v52  ;;  %v13439_v55 = vld [vmem:[#allocation92_spill] sm:$0xff]  ;;  %v13441_v40 = vld [vmem:[#allocation93_spill] sm:$0xff]  ;;  %2262 = vmax.xlane.f32.xlu0 %v2261_v57 }
 0x54f   : > { %13438 = vst [vmem:[#allocation239_spill] sm:$0xff] %v9907_v9  ;;  %v9914_v26 = vsel %vm2005_vm1, %v13439_v55, -1e+30  ;;  %v9919_v49 = vsel %vm2006_vm2, %v13441_v40, -1e+30  ;;  %v13443_v41 = vld [vmem:[#allocation164_spill] sm:$0xff]  ;;  %v2271_v52 = vmax.f32 %v2270_v34, %v9882_v46 }
 0x550   : > { %13440 = vst [vmem:[#allocation240_spill] sm:$0xff] %v9914_v26  ;;  %13442 = vst [vmem:[#allocation241_spill] sm:$0xff] %v9919_v49  ;;  %v9924_v32 = vsel %vm2007_vm3, %v13443_v41, -1e+30  ;;  %v2275_v6 = vmax.f32 %v2274_v7, %v9900_v14  ;;  %v13445_v12 = vld [vmem:[#allocation165_spill] sm:$0xff]  ;;  %v2279_v55 = vmax.f32 %v9914_v26, %v9919_v49  ;;  %v13447_v40 = vld [vmem:[#allocation94_spill] sm:$0xff] }
 0x551   : > { %13444 = vst [vmem:[#allocation242_spill] sm:$0xff] %v9924_v32  ;;  %v9930_v37 = vsel %vm2008_vm4, %v13445_v12, -1e+30  ;;  %v9938_v59 = vsel %vm2005_vm1, %v13447_v40, -1e+30  ;;  %v13449_v41 = vld [vmem:[#allocation95_spill] sm:$0xff]  ;;  %2272 = vmax.xlane.f32.xlu1 %v2271_v52 }
 0x552   : > { %13446 = vst [vmem:[#allocation243_spill] sm:$0xff] %v9930_v37  ;;  %13448 = vst [vmem:[#allocation244_spill] sm:$0xff] %v9938_v59  ;;  %v9943_v7 = vsel %vm2006_vm2, %v13449_v41, -1e+30  ;;  %v13451_v14 = vld [vmem:[#allocation166_spill] sm:$0xff]  ;;  %v2276_v57 = vmax.f32 %v2275_v6, %v9907_v9  ;;  %v2280_v34 = vmax.f32 %v2279_v55, %v9924_v32  ;;  %v13453_v49 = vld [vmem:[#allocation167_spill] sm:$0xff] }
 0x553   : > { %13450 = vst [vmem:[#allocation245_spill] sm:$0xff] %v9943_v7  ;;  %v9948_v12 = vsel %vm2007_vm3, %v13451_v14, -1e+30  ;;  %v9955_v40 = vsel %vm2008_vm4, %v13453_v49, -1e+30  ;;  %v2284_v26 = vmax.f32 %v9938_v59, %v9943_v7  ;;  %v13455_v41 = vld [vmem:[#allocation98_spill] sm:$0xff] }
 0x554   : > { %13452 = vst [vmem:[#allocation246_spill] sm:$0xff] %v9948_v12  ;;  %13454 = vst [vmem:[#allocation247_spill] sm:$0xff] %v9955_v40  ;;  %v9962_v46 = vsel %vm2005_vm1, %v13455_v41, -1e+30  ;;  %v13457_v14 = vld [vmem:[#allocation99_spill] sm:$0xff]  ;;  %v13459_v6 = vld [vmem:[#allocation170_spill] sm:$0xff]  ;;  %2277 = vmax.xlane.f32.xlu0 %v2276_v57  ;;  %v2281_v59 = vmax.f32 %v2280_v34, %v9930_v37 }
 0x555   : > { %13456 = vst [vmem:[#allocation248_spill] sm:$0xff] %v9962_v46  ;;  %v9967_v62 = vsel %vm2006_vm2, %v13457_v14, -1e+30  ;;  %v9972_v55 = vsel %vm2007_vm3, %v13459_v6, -1e+30  ;;  %v2285_v49 = vmax.f32 %v2284_v26, %v9948_v12  ;;  %v13461_v32 = vld [vmem:[#allocation171_spill] sm:$0xff] }
 0x556   : > { %13458 = vst [vmem:[#allocation249_spill] sm:$0xff] %v9967_v62  ;;  %13460 = vst [vmem:[#allocation250_spill] sm:$0xff] %v9972_v55  ;;  %v9978_v7 = vsel %vm2008_vm4, %v13461_v32, -1e+30  ;;  %v2294_v41 = vmax.f32 %v9962_v46, %v9967_v62  ;;  %v13463_v14 = vld [vmem:[#allocation96_spill] sm:$0xff]  ;;  %v13465_v6 = vld [vmem:[#allocation97_spill] sm:$0xff]  ;;  %2282 = vmax.xlane.f32.xlu1 %v2281_v59 }
 0x557   : > { %13462 = vst [vmem:[#allocation251_spill] sm:$0xff] %v9978_v7  ;;  %v9986_v9 = vsel %vm2005_vm1, %v13463_v14, -1e+30  ;;  %v9991_v26 = vsel %vm2006_vm2, %v13465_v6, -1e+30  ;;  %v13467_v12 = vld [vmem:[#allocation168_spill] sm:$0xff]  ;;  %v2286_v57 = vmax.f32 %v2285_v49, %v9955_v40 }
 0x558   : > { %13464 = vst [vmem:[#allocation252_spill] sm:$0xff] %v9986_v9  ;;  %13466 = vst [vmem:[#allocation253_spill] sm:$0xff] %v9991_v26  ;;  %v9996_v32 = vsel %vm2007_vm3, %v13467_v12, -1e+30  ;;  %v2295_v34 = vmax.f32 %v2294_v41, %v9972_v55  ;;  %v13469_v37 = vld [vmem:[#allocation169_spill] sm:$0xff]  ;;  %v2289_v62 = vmax.f32 %v9986_v9, %v9991_v26  ;;  %v13471_v6 = vld [vmem:[#allocation100_spill] sm:$0xff] }
 0x559   : > { %13468 = vst [vmem:[#allocation254_spill] sm:$0xff] %v9996_v32  ;;  %v10003_v14 = vsel %vm2008_vm4, %v13469_v37, -1e+30  ;;  %v10010_v46 = vsel %vm2005_vm1, %v13471_v6, -1e+30  ;;  %v13473_v12 = vld [vmem:[#allocation101_spill] sm:$0xff]  ;;  %2287 = vmax.xlane.f32.xlu0 %v2286_v57 }
 0x55a   : > { %13470 = vst [vmem:[#allocation255_spill] sm:$0xff] %v10003_v14  ;;  %13472 = vst [vmem:[#allocation256_spill] sm:$0xff] %v10010_v46  ;;  %v10015_v52 = vsel %vm2006_vm2, %v13473_v12, -1e+30  ;;  %v13475_v49 = vld [vmem:[#allocation172_spill] sm:$0xff]  ;;  %v2290_v37 = vmax.f32 %v2289_v62, %v9996_v32  ;;  %v2296_v9 = vmax.f32 %v2295_v34, %v9978_v7  ;;  %v13478_v12 = vld [vmem:[#allocation102_spill] sm:$0xff] }
 0x55b   : > { %13474 = vst [vmem:[#allocation257_spill] sm:$0xff] %v10015_v52  ;;  %v10020_v41 = vsel %vm2007_vm3, %v13475_v49, -1e+30  ;;  %v10026_v26 = vsel %vm2008_vm4, %v9316_v16, -1e+30  ;;  %v2299_v6 = vmax.f32 %v10010_v46, %v10015_v52  ;;  %v13480_v49 = vld [vmem:[#allocation103_spill] sm:$0xff] }
 0x55c   : > { %13476 = vst [vmem:[#allocation258_spill] sm:$0xff] %v10020_v41  ;;  %13477 = vst [vmem:[#allocation259_spill] sm:$0xff] %v10026_v26  ;;  %v10034_v55 = vsel %vm2005_vm1, %v13478_v12, -1e+30  ;;  %v10039_v62 = vsel %vm2006_vm2, %v13480_v49, -1e+30  ;;  %v2291_v57 = vmax.f32 %v2290_v37, %v10003_v14  ;;  %2297 = vmax.xlane.f32.xlu1 %v2296_v9 }
 0x55d   : > { %13479 = vst [vmem:[#allocation260_spill] sm:$0xff] %v10034_v55  ;;  %13481 = vst [vmem:[#allocation261_spill] sm:$0xff] %v10039_v62  ;;  %v10044_v16 = vsel %vm2007_vm3, %v9318_v61, -1e+30  ;;  %v2300_v34 = vmax.f32 %v2299_v6, %v10020_v41  ;;  %v10051_v12 = vsel %vm2008_vm4, %v9320_v63, -1e+30  ;;  %v2304_v52 = vmax.f32 %v10034_v55, %v10039_v62 }
 0x55e   : > { %13482 = vst [vmem:[#allocation262_spill] sm:$0xff] %v10044_v16  ;;  %13483 = vst [vmem:[#allocation263_spill] sm:$0xff] %v10051_v12  ;;  %v13484_v49 = vld [vmem:[#allocation106_spill] sm:$0xff]  ;;  %v13486_v61 = vld [vmem:[#allocation107_spill] sm:$0xff]  ;;  %v10068_v37 = vsel %vm2007_vm3, %v9326_v0, -1e+30  ;;  %2292 = vmax.xlane.f32.xlu0 %v2291_v57 }
 0x55f   : > { %v10058_v46 = vsel %vm2005_vm1, %v13484_v49, -1e+30  ;;  %v10063_v59 = vsel %vm2006_vm2, %v13486_v61, -1e+30  ;;  %13488 = vst [vmem:[#allocation266_spill] sm:$0xff] %v10068_v37  ;;  %v2305_v6 = vmax.f32 %v2304_v52, %v10044_v16  ;;  %v2301_v49 = vmax.f32 %v2300_v34, %v10026_v26  ;;  %v13489_v32 = vld [vmem:[#allocation179_spill] sm:$0xff] }
 0x560   : > { %13485 = vst [vmem:[#allocation264_spill] sm:$0xff] %v10058_v46  ;;  %13487 = vst [vmem:[#allocation265_spill] sm:$0xff] %v10063_v59  ;;  %v2314_v63 = vmax.f32 %v10058_v46, %v10063_v59  ;;  %v8266_v61 = vmov 0   ;;  %v10079_v0 = vsel %vm2008_vm4, %v13489_v32, -1e+30  ;;  %v10082_v9 = vld [vmem:[#allocation3] sm:$0xff] }
 0x561   : > { %v2306_v41 = vmax.f32 %v2305_v6, %v10051_v12  ;;  %7293 = vset.pattern.permute.xlu0 %v8266_v61  ;;  %13490 = vst [vmem:[#allocation267_spill] sm:$0xff] %v10079_v0  ;;  %7294 = vset.pattern.permute.xlu1 %v8266_v61  ;;  %13491 = vst [vmem:[#allocation268_spill] sm:$0xff] %v10082_v9  ;;  %v10084_v57 = vld [vmem:[#allocation3 + $0x10] sm:$0xff]  ;;  %v10092_v32 = vld [vmem:[#allocation3 + $0x8] sm:$0xff] }
 0x562   : > { %v2315_v14 = vmax.f32 %v2314_v63, %v10068_v37  ;;  %2302 = vmax.xlane.f32.xlu1 %v2301_v49  ;;  %13492 = vst [vmem:[#allocation269_spill] sm:$0xff] %v10084_v57  ;;  %13495 = vst [vmem:[#allocation272_spill] sm:$0xff] %v10092_v32  ;;  %v10118_v49 = vld [vmem:[#allocation3 + $0x28] sm:$0xff]  ;;  %v10332_v4 = vld [vmem:[#allocation3 + $0xc0] sm:$0xff] }
 0x563   : > { %2307 = vmax.xlane.f32.xlu0 %v2306_v41  ;;  %v10111_v41 = vld [vmem:[#allocation3 + $0x20] sm:$0xff]  ;;  %13500 = vst [vmem:[#allocation277_spill] sm:$0xff] %v10118_v49  ;;  %v13534_v16 = vld [vmem:[#allocation105_spill] sm:$0xff]  ;;  %13549 = vst [vmem:[#allocation321_spill] sm:$0xff] %v10332_v4 }
 0x564   : > { %v2316_v52 = vmax.f32 %v2315_v14, %v10079_v0  ;;  %v10099_v14 = vld [vmem:[#allocation3 + $0x18] sm:$0xff]  ;;  %13499 = vst [vmem:[#allocation276_spill] sm:$0xff] %v10111_v41  ;;  %v10150_v0 = vld [vmem:[#allocation3 + $0x40] sm:$0xff] }
 0x565   : > { %13496 = vst [vmem:[#allocation273_spill] sm:$0xff] %v10099_v14  ;;  %13507 = vst [vmem:[#allocation284_spill] sm:$0xff] %v10150_v0  ;;  %v13558_v53 = vld [vmem:[#allocation183_spill] sm:$0xff] }
 0x566   : > { %2317 = vmax.xlane.f32.xlu1 %v2316_v52 }
 0x5b1   : > { %v2173_v34 = vpop.xlane.xlu0 %2172 }
 0x5b2   : > { %v10087_v63 = vmax.f32 %v10082_v9, %v2173_v34  ;;  %v2183_v6 = vpop.xlane.xlu1 %2182 }
 0x5b3   : > { %v10090_v26 = vmax.f32 %v10084_v57, %v2183_v6 }
 0x5b4   : > { %13493 = vst [vmem:[#allocation270_spill] sm:$0xff] %v10087_v63  ;;  %3964 = vst.msk [vmem:[#allocation3] sm:$0xff] %vm3257_vm5, %v10087_v63  ;;  %2459 = vperm.xlu0 %7293, %v10087_v63  }
 0x5b5   : > { %13494 = vst [vmem:[#allocation271_spill] sm:$0xff] %v10090_v26  ;;  %3966 = vst.msk [vmem:[#allocation3 + $0x10] sm:$0xff] %vm3257_vm5, %v10090_v26  ;;  %v2178_v61 = vpop.xlane.xlu0 %2177 }
 0x5b6   : > { %v10106_v52 = vmax.f32 %v10092_v32, %v2178_v61  ;;  %v2188_v34 = vpop.xlane.xlu1 %2187  ;;  %v10130_v32 = vld [vmem:[#allocation3 + $0x30] sm:$0xff]  ;;  %v10138_v61 = vld [vmem:[#allocation3 + $0x38] sm:$0xff] }
 0x5b7   : > { %v10109_v6 = vmax.f32 %v10099_v14, %v2188_v34  ;;  %13503 = vst [vmem:[#allocation280_spill] sm:$0xff] %v10130_v32  ;;  %13504 = vst [vmem:[#allocation281_spill] sm:$0xff] %v10138_v61 }
 0x5b8   : > { %13497 = vst [vmem:[#allocation274_spill] sm:$0xff] %v10106_v52  ;;  %3965 = vst.msk [vmem:[#allocation3 + $0x8] sm:$0xff] %vm3257_vm5, %v10106_v52  ;;  %2464 = vperm.xlu1 %7294, %v10106_v52  }
 0x5b9   : > { %13498 = vst [vmem:[#allocation275_spill] sm:$0xff] %v10109_v6  ;;  %3967 = vst.msk [vmem:[#allocation3 + $0x18] sm:$0xff] %vm3257_vm5, %v10109_v6  ;;  %v2193_v34 = vpop.xlane.xlu0 %2192 }
 0x5ba   : > { %v10125_v57 = vmax.f32 %v10111_v41, %v2193_v34  ;;  %v2198_v9 = vpop.xlane.xlu1 %2197  ;;  %v10158_v34 = vld [vmem:[#allocation3 + $0x48] sm:$0xff] }
 0x5bb   : > { %v10128_v63 = vmax.f32 %v10118_v49, %v2198_v9  ;;  %13508 = vst [vmem:[#allocation285_spill] sm:$0xff] %v10158_v34 }
 0x5bc   : > { %13501 = vst [vmem:[#allocation278_spill] sm:$0xff] %v10125_v57  ;;  %3968 = vst.msk [vmem:[#allocation3 + $0x20] sm:$0xff] %vm3257_vm5, %v10125_v57  ;;  %2469 = vperm.xlu1 %7294, %v10090_v26   ;;  %2479 = vperm.xlu0 %7293, %v10125_v57   ;;  %v10170_v57 = vld [vmem:[#allocation3 + $0x50] sm:$0xff] }
 0x5bd   : > { %13502 = vst [vmem:[#allocation279_spill] sm:$0xff] %v10128_v63  ;;  %3969 = vst.msk [vmem:[#allocation3 + $0x28] sm:$0xff] %vm3257_vm5, %v10128_v63 }
 0x5be   : > { %v2203_v9 = vpop.xlane.xlu0 %2202  ;;  %13511 = vst [vmem:[#allocation288_spill] sm:$0xff] %v10170_v57 }
 0x5bf   : > { %v10145_v14 = vmax.f32 %v10130_v32, %v2203_v9  ;;  %v2208_v52 = vpop.xlane.xlu1 %2207  ;;  %v10178_v9 = vld [vmem:[#allocation3 + $0x58] sm:$0xff] }
 0x5c0   : > { %v10148_v41 = vmax.f32 %v10138_v61, %v2208_v52  ;;  %2474 = vperm.xlu1 %7294, %v10109_v6   ;;  %2484 = vperm.xlu0 %7293, %v10128_v63   ;;  %13512 = vst [vmem:[#allocation289_spill] sm:$0xff] %v10178_v9  ;;  %v10190_v6 = vld [vmem:[#allocation3 + $0x60] sm:$0xff] }
 0x5c1   : > { %13505 = vst [vmem:[#allocation282_spill] sm:$0xff] %v10145_v14  ;;  %3970 = vst.msk [vmem:[#allocation3 + $0x30] sm:$0xff] %vm3257_vm5, %v10145_v14 }
 0x5c2   : > { %13506 = vst [vmem:[#allocation283_spill] sm:$0xff] %v10148_v41  ;;  %3971 = vst.msk [vmem:[#allocation3 + $0x38] sm:$0xff] %vm3257_vm5, %v10148_v41  ;;  %v2213_v52 = vpop.xlane.xlu0 %2212 }
 0x5c3   : > { %v10165_v49 = vmax.f32 %v10150_v0, %v2213_v52  ;;  %v2218_v26 = vpop.xlane.xlu1 %2217  ;;  %13515 = vst [vmem:[#allocation292_spill] sm:$0xff] %v10190_v6  ;;  %v10210_v52 = vld [vmem:[#allocation3 + $0x70] sm:$0xff] }
 0x5c4   : > { %v10168_v32 = vmax.f32 %v10158_v34, %v2218_v26  ;;  %2489 = vperm.xlu1 %7294, %v10145_v14   ;;  %v10198_v34 = vld [vmem:[#allocation3 + $0x68] sm:$0xff]  ;;  %13519 = vst [vmem:[#allocation296_spill] sm:$0xff] %v10210_v52 }
 0x5c5   : > { %13509 = vst [vmem:[#allocation286_spill] sm:$0xff] %v10165_v49  ;;  %3972 = vst.msk [vmem:[#allocation3 + $0x40] sm:$0xff] %vm3257_vm5, %v10165_v49  ;;  %2499 = vperm.xlu0 %7293, %v10165_v49  }
 0x5c6   : > { %13510 = vst [vmem:[#allocation287_spill] sm:$0xff] %v10168_v32  ;;  %3973 = vst.msk [vmem:[#allocation3 + $0x48] sm:$0xff] %vm3257_vm5, %v10168_v32  ;;  %v2223_v26 = vpop.xlane.xlu0 %2222 }
 0x5c7   : > { %v10185_v61 = vmax.f32 %v10170_v57, %v2223_v26  ;;  %v2228_v63 = vpop.xlane.xlu1 %2227  ;;  %13516 = vst [vmem:[#allocation293_spill] sm:$0xff] %v10198_v34  ;;  %v10217_v26 = vld [vmem:[#allocation3 + $0x78] sm:$0xff]  ;;  %v10229_v57 = vld [vmem:[#allocation3 + $0x80] sm:$0xff] }
 0x5c8   : > { %v10188_v0 = vmax.f32 %v10178_v9, %v2228_v63  ;;  %2494 = vperm.xlu1 %7294, %v10148_v41   ;;  %13520 = vst [vmem:[#allocation297_spill] sm:$0xff] %v10217_v26  ;;  %13523 = vst [vmem:[#allocation300_spill] sm:$0xff] %v10229_v57  ;;  %v10236_v9 = vld [vmem:[#allocation3 + $0x88] sm:$0xff] }
 0x5c9   : > { %13513 = vst [vmem:[#allocation290_spill] sm:$0xff] %v10185_v61  ;;  %2504 = vperm.xlu0 %7293, %v10168_v32   ;;  %3974 = vst.msk [vmem:[#allocation3 + $0x50] sm:$0xff] %vm3257_vm5, %v10185_v61 }
 0x5ca   : > { %13514 = vst [vmem:[#allocation291_spill] sm:$0xff] %v10188_v0  ;;  %3975 = vst.msk [vmem:[#allocation3 + $0x58] sm:$0xff] %vm3257_vm5, %v10188_v0 }
 0x5cb   : > { %v2233_v63 = vpop.xlane.xlu0 %2232  ;;  %v2238_v49 = vpop.xlane.xlu1 %2237  ;;  %13524 = vst [vmem:[#allocation301_spill] sm:$0xff] %v10236_v9 }
 0x5cc   : > { %v10205_v41 = vmax.f32 %v10190_v6, %v2233_v63  ;;  %v10208_v32 = vmax.f32 %v10198_v34, %v2238_v49  ;;  %2509 = vperm.xlu1 %7294, %v10185_v61   ;;  %v10248_v6 = vld [vmem:[#allocation3 + $0x90] sm:$0xff]  ;;  %v10254_v34 = vld [vmem:[#allocation3 + $0x98] sm:$0xff] }
 0x5cd   : > { %13527 = vst [vmem:[#allocation304_spill] sm:$0xff] %v10248_v6  ;;  %13528 = vst [vmem:[#allocation305_spill] sm:$0xff] %v10254_v34 }
 0x5ce   : > { %13517 = vst [vmem:[#allocation294_spill] sm:$0xff] %v10205_v41  ;;  %13518 = vst [vmem:[#allocation295_spill] sm:$0xff] %v10208_v32 }
 0x5cf   : > { %3976 = vst.msk [vmem:[#allocation3 + $0x60] sm:$0xff] %vm3257_vm5, %v10205_v41  ;;  %3977 = vst.msk [vmem:[#allocation3 + $0x68] sm:$0xff] %vm3257_vm5, %v10208_v32  ;;  %v2248_v63 = vpop.xlane.xlu1 %2247 }
 0x5d0   : > { %v10227_v61 = vmax.f32 %v10217_v26, %v2248_v63  ;;  %2514 = vperm.xlu1 %7294, %v10188_v0   ;;  %v10276_v26 = vsel %vm2006_vm2, %v13534_v16, -1e+30  ;;  %v13538_v16 = vld [vmem:[#allocation176_spill] sm:$0xff] }
 0x5d1   : > { %v2243_v49 = vpop.xlane.xlu0 %2242  ;;  %13535 = vst [vmem:[#allocation310_spill] sm:$0xff] %v10276_v26 }
 0x5d2   : > { %v10224_v14 = vmax.f32 %v10210_v52, %v2243_v49  ;;  %13522 = vst [vmem:[#allocation299_spill] sm:$0xff] %v10227_v61  ;;  %3979 = vst.msk [vmem:[#allocation3 + $0x78] sm:$0xff] %vm3257_vm5, %v10227_v61  ;;  %v10266_v52 = vld [vmem:[#allocation3 + $0xa8] sm:$0xff] }
 0x5d3   : > { %v2258_v63 = vpop.xlane.xlu1 %2257  ;;  %13531 = vst [vmem:[#allocation308_spill] sm:$0xff] %v10266_v52 }
 0x5d4   : > { %13521 = vst [vmem:[#allocation298_spill] sm:$0xff] %v10224_v14  ;;  %3978 = vst.msk [vmem:[#allocation3 + $0x70] sm:$0xff] %vm3257_vm5, %v10224_v14  ;;  %v10246_v0 = vmax.f32 %v10236_v9, %v2258_v63  ;;  %v10294_v9 = vsel %vm2007_vm3, %v13538_v16, -1e+30 }
 0x5d5   : > { %13539 = vst [vmem:[#allocation313_spill] sm:$0xff] %v10294_v9 }
 0x5d6   : > { %v2253_v49 = vpop.xlane.xlu0 %2252  ;;  %13526 = vst [vmem:[#allocation303_spill] sm:$0xff] %v10246_v0  ;;  %3981 = vst.msk [vmem:[#allocation3 + $0x88] sm:$0xff] %vm3257_vm5, %v10246_v0 }
 0x5d7   : > { %v10243_v37 = vmax.f32 %v10229_v57, %v2253_v49  ;;  %v13532_v57 = vld [vmem:[#allocation104_spill] sm:$0xff] }
 0x5d8   : > { %v10271_v12 = vsel %vm2005_vm1, %v13532_v57, -1e+30 }
 0x5d9   : > { %13525 = vst [vmem:[#allocation302_spill] sm:$0xff] %v10243_v37  ;;  %3980 = vst.msk [vmem:[#allocation3 + $0x80] sm:$0xff] %vm3257_vm5, %v10243_v37  ;;  %v2268_v59 = vpop.xlane.xlu1 %2267 }
 0x5da   : > { %v10264_v46 = vmax.f32 %v10254_v34, %v2268_v59  ;;  %13533 = vst [vmem:[#allocation309_spill] sm:$0xff] %v10271_v12  ;;  %v10282_v59 = vld [vmem:[#allocation3 + $0xa0] sm:$0xff]  ;;  %v13542_v34 = vld [vmem:[#allocation110_spill] sm:$0xff] }
 0x5db   : > { %v2263_v49 = vpop.xlane.xlu0 %2262  ;;  %13536 = vst [vmem:[#allocation311_spill] sm:$0xff] %v10282_v59  ;;  %v10306_v40 = vsel %vm2005_vm1, %v13542_v34, -1e+30 }
 0x5dc   : > { %v10261_v63 = vmax.f32 %v10248_v6, %v2263_v49  ;;  %13530 = vst [vmem:[#allocation307_spill] sm:$0xff] %v10264_v46  ;;  %3983 = vst.msk [vmem:[#allocation3 + $0x98] sm:$0xff] %vm3257_vm5, %v10264_v46  ;;  %v2309_v6 = vmax.f32 %v10271_v12, %v10276_v26  ;;  %v10301_v49 = vld [vmem:[#allocation3 + $0xb8] sm:$0xff]  ;;  %v10337_v26 = vsel %vm2008_vm4, %v13550_v54, -1e+30 }
 0x5dd   : > { %13541 = vst [vmem:[#allocation315_spill] sm:$0xff] %v10301_v49  ;;  %13543 = vst [vmem:[#allocation316_spill] sm:$0xff] %v10306_v40 }
 0x5de   : > { %13529 = vst [vmem:[#allocation306_spill] sm:$0xff] %v10261_v63  ;;  %3982 = vst.msk [vmem:[#allocation3 + $0x90] sm:$0xff] %vm3257_vm5, %v10261_v63  ;;  %v2273_v62 = vpop.xlane.xlu1 %2272 }
 0x5df   : > { %v10299_v7 = vmax.f32 %v10282_v59, %v2273_v62  ;;  %v10317_v62 = vld [vmem:[#allocation3 + $0xb0] sm:$0xff]  ;;  %13551 = vst [vmem:[#allocation322_spill] sm:$0xff] %v10337_v26 }
 0x5e0   : > { %13546 = vst [vmem:[#allocation318_spill] sm:$0xff] %v10317_v62  ;;  %v13552_v59 = vld [vmem:[#allocation182_spill] sm:$0xff] }
 0x5e1   : > { %v2278_v57 = vpop.xlane.xlu0 %2277  ;;  %13540 = vst [vmem:[#allocation314_spill] sm:$0xff] %v10299_v7  ;;  %3984 = vst.msk [vmem:[#allocation3 + $0xa0] sm:$0xff] %vm3257_vm5, %v10299_v7 }
 0x5e2   : > { %v10289_v55 = vmax.f32 %v10266_v52, %v2278_v57  ;;  %v13544_v57 = vld [vmem:[#allocation111_spill] sm:$0xff] }
 0x5e3   : > { %v10311_v36 = vsel %vm2006_vm2, %v13544_v57, -1e+30  ;;  %v2283_v12 = vpop.xlane.xlu1 %2282  ;;  %v2310_v57 = vmax.f32 %v2309_v6, %v10294_v9 }
 0x5e4   : > { %13537 = vst [vmem:[#allocation312_spill] sm:$0xff] %v10289_v55  ;;  %13545 = vst [vmem:[#allocation317_spill] sm:$0xff] %v10311_v36  ;;  %v2324_v16 = vmax.f32 %v10306_v40, %v10311_v36  ;;  %v10330_v52 = vmax.f32 %v10317_v62, %v2283_v12  ;;  %v10348_v12 = vld [vmem:[#allocation3 + $0xc8] sm:$0xff]  ;;  %v10367_v36 = vsel %vm2008_vm4, %v13558_v53, -1e+30  ;;  %v10371_v62 = vld [vmem:[#allocation3 + $0xd0] sm:$0xff] }
 0x5e5   : > { %3985 = vst.msk [vmem:[#allocation3 + $0xa8] sm:$0xff] %vm3257_vm5, %v10289_v55  ;;  %13554 = vst [vmem:[#allocation324_spill] sm:$0xff] %v10348_v12 }
 0x5e6   : > { %v2288_v34 = vpop.xlane.xlu0 %2287  ;;  %13548 = vst [vmem:[#allocation320_spill] sm:$0xff] %v10330_v52  ;;  %3986 = vst.msk [vmem:[#allocation3 + $0xb0] sm:$0xff] %vm3257_vm5, %v10330_v52 }
 0x5e7   : > { %v10324_v30 = vmax.f32 %v10301_v49, %v2288_v34  ;;  %v10342_v34 = vsel %vm2007_vm3, %v13552_v59, -1e+30  ;;  %v2311_v59 = vmax.f32 %v2310_v57, %v10337_v26  ;;  %13559 = vst [vmem:[#allocation328_spill] sm:$0xff] %v10371_v62 }
 0x5e8   : > { %13553 = vst [vmem:[#allocation323_spill] sm:$0xff] %v10342_v34  ;;  %v2325_v6 = vmax.f32 %v2324_v16, %v10342_v34  ;;  %v13561_v16 = vld [vmem:[#allocation109_spill] sm:$0xff] }
 0x5e9   : > { %13547 = vst [vmem:[#allocation319_spill] sm:$0xff] %v10324_v30  ;;  %3987 = vst.msk [vmem:[#allocation3 + $0xb8] sm:$0xff] %vm3257_vm5, %v10324_v30  ;;  %v2298_v40 = vpop.xlane.xlu1 %2297  ;;  %2312 = vmax.xlane.f32.xlu0 %v2311_v59 }
 0x5ea   : > { %v10360_v49 = vmax.f32 %v10348_v12, %v2298_v40  ;;  %v10381_v40 = vsel %vm2006_vm2, %v13561_v16, -1e+30  ;;  %v2326_v24 = vmax.f32 %v2325_v6, %v10367_v36  ;;  %v13566_v12 = vld [vmem:[#allocation180_spill] sm:$0xff] }
 0x5eb   : > { %v2293_v54 = vpop.xlane.xlu0 %2292  ;;  %13562 = vst [vmem:[#allocation329_spill] sm:$0xff] %v10381_v40  ;;  %v10405_v59 = vsel %vm2007_vm3, %v13566_v12, -1e+30 }
 0x5ec   : > { %v10355_v9 = vmax.f32 %v10332_v4, %v2293_v54  ;;  %13556 = vst [vmem:[#allocation326_spill] sm:$0xff] %v10360_v49  ;;  %v13560_v54 = vld [vmem:[#allocation108_spill] sm:$0xff]  ;;  %3989 = vst.msk [vmem:[#allocation3 + $0xc8] sm:$0xff] %vm3257_vm5, %v10360_v49  ;;  %v10400_v4 = vld [vmem:[#allocation3 + $0xe8] sm:$0xff] }
 0x5ed   : > { %v10376_v57 = vsel %vm2005_vm1, %v13560_v54, -1e+30  ;;  %13565 = vst [vmem:[#allocation332_spill] sm:$0xff] %v10400_v4  ;;  %13567 = vst [vmem:[#allocation333_spill] sm:$0xff] %v10405_v59  ;;  %2327 = vmax.xlane.f32.xlu0 %v2326_v24 }
 0x5ee   : > { %13555 = vst [vmem:[#allocation325_spill] sm:$0xff] %v10355_v9  ;;  %3988 = vst.msk [vmem:[#allocation3 + $0xc0] sm:$0xff] %vm3257_vm5, %v10355_v9  ;;  %v2319_v38 = vmax.f32 %v10376_v57, %v10381_v40 }
 0x5ef   : > { %v2303_v34 = vpop.xlane.xlu1 %2302 }
 0x5f0   : > { %v2308_v53 = vpop.xlane.xlu0 %2307  ;;  %v10392_v54 = vmax.f32 %v10371_v62, %v2303_v34  ;;  %v2320_v16 = vmax.f32 %v2319_v38, %v10405_v59 }
 0x5f1   : > { %v10388_v26 = vmax.f32 %v10362_v11, %v2308_v53  ;;  %v13569_v11 = vld [vmem:[#allocation181_spill] sm:$0xff] }
 0x5f2   : > { %13564 = vst [vmem:[#allocation331_spill] sm:$0xff] %v10392_v54  ;;  %3990 = vst.msk [vmem:[#allocation3 + $0xd0] sm:$0xff] %vm3257_vm5, %v10392_v54  ;;  %v10418_v40 = vsel %vm2008_vm4, %v13569_v11, -1e+30 }
 0x5f3   : > { %13563 = vst [vmem:[#allocation330_spill] sm:$0xff] %v10388_v26  ;;  %3991 = vst.msk [vmem:[#allocation3 + $0xd8] sm:$0xff] %vm3257_vm5, %v10388_v26  ;;  %v2318_v6 = vpop.xlane.xlu1 %2317  ;;  %v2321_v12 = vmax.f32 %v2320_v16, %v10418_v40 }
 0x5f4   : > { %v10412_v53 = vmax.f32 %v10400_v4, %v2318_v6  ;;  %13570 = vst [vmem:[#allocation335_spill] sm:$0xff] %v10418_v40 }
 0x5f5   : > { %2322 = vmax.xlane.f32.xlu1 %v2321_v12 }
 0x5f6   : > { %13568 = vst [vmem:[#allocation334_spill] sm:$0xff] %v10412_v53  ;;  %3993 = vst.msk [vmem:[#allocation3 + $0xe8] sm:$0xff] %vm3257_vm5, %v10412_v53 }
 0x603   : > { %2519 = vperm.xlu0 %7293, %v10205_v41  }
 0x606   : > { %2539 = vperm.xlu1 %7294, %v10243_v37  }
 0x607   : > { %2524 = vperm.xlu0 %7293, %v10208_v32   ;;  %v13639_v32 = vld [vmem:[#allocation263_spill] sm:$0xff] }
 0x60a   : > { %2564 = vperm.xlu1 %7294, %v10289_v55  }
 0x60b   : > { %2529 = vperm.xlu0 %7293, %v10224_v14  }
 0x60e   : > { %2574 = vperm.xlu1 %7294, %v10324_v30  }
 0x60f   : > { %2534 = vperm.xlu0 %7293, %v10227_v61   ;;  %v13637_v61 = vld [vmem:[#allocation226_spill] sm:$0xff] }
 0x612   : > { %2584 = vperm.xlu1 %7294, %v10360_v49  }
 0x613   : > { %2544 = vperm.xlu0 %7293, %v10246_v0  }
 0x616   : > { %2594 = vperm.xlu1 %7294, %v10388_v26  }
 0x617   : > { %2549 = vperm.xlu0 %7293, %v10261_v63   ;;  %v13645_v63 = vld [vmem:[#allocation234_spill] sm:$0xff] }
 0x61a   : > { %2604 = vperm.xlu1 %7294, %v10412_v53  }
 0x61b   : > { %2554 = vperm.xlu0 %7293, %v10264_v46  }
 0x61f   : > { %2559 = vperm.xlu0 %7293, %v10299_v7  }
 0x623   : > { %2569 = vperm.xlu0 %7293, %v10330_v52   ;;  %v13632_v52 = vld [vmem:[#allocation231_spill] sm:$0xff] }
 0x627   : > { %2579 = vperm.xlu0 %7293, %v10355_v9  }
 0x62b   : > { %2589 = vperm.xlu0 %7293, %v10392_v54  }
 0x633   : > { %v2460_v28 = vpop.permute.xlu0 %2459 }
 0x634   : > { %v2617_v11 = vsub.f32 %v9364_v5, %v2460_v28  ;;  %v2618_v24 = vsub.f32 %v9387_v48, %v2460_v28  ;;  %v2619_v38 = vsub.f32 %v9392_v15, %v2460_v28  ;;  %v2620_v16 = vsub.f32 %v9397_v29, %v2460_v28 }
 0x636   : > { %v2745_v6 = vmul.f32 1.442695, %v2617_v11  ;;  %v2747_v12 = vmul.f32 1.442695, %v2618_v24  ;;  %v2749_v17 = vmul.f32 1.442695, %v2619_v38 }
 0x637   : > { %v2751_v34 = vmul.f32 1.442695, %v2620_v16  ;;  %v2465_v53 = vpop.permute.xlu1 %2464 }
 0x638   : > { %7295 = vpow2.f32 %v2745_v6  ;;  %v2621_v4 = vsub.f32 %v9374_v1, %v2465_v53  ;;  %v2622_v26 = vsub.f32 %v9425_v43, %v2465_v53  ;;  %v2623_v49 = vsub.f32 %v9430_v23, %v2465_v53 }
 0x639   : > { %7297 = vpow2.f32 %v2747_v12  ;;  %v2624_v5 = vsub.f32 %v9435_v60, %v2465_v53 }
 0x63a   : > { %7299 = vpow2.f32 %v2749_v17  ;;  %v2753_v48 = vmul.f32 1.442695, %v2621_v4  ;;  %v2755_v15 = vmul.f32 1.442695, %v2622_v26  ;;  %v2757_v30 = vmul.f32 1.442695, %v2623_v49 }
 0x63b   : > { %7301 = vpow2.f32 %v2751_v34  ;;  %v2759_v29 = vmul.f32 1.442695, %v2624_v5  ;;  %v2470_v28 = vpop.permute.xlu1 %2469  ;;  %v2480_v11 = vpop.permute.xlu0 %2479 }
 0x63c   : > { %7303 = vpow2.f32 %v2753_v48  ;;  %v2625_v24 = vsub.f32 %v9369_v56, %v2470_v28  ;;  %v2626_v1 = vsub.f32 %v9406_v21, %v2470_v28  ;;  %v2627_v43 = vsub.f32 %v9411_v35, %v2470_v28 }
 0x63d   : > { %7305 = vpow2.f32 %v2755_v15  ;;  %v2628_v23 = vsub.f32 %v9416_v10, %v2470_v28  ;;  %v2633_v60 = vsub.f32 %v9461_v45, %v2480_v11  ;;  %v2634_v4 = vsub.f32 %v9470_v33, %v2480_v11 }
 0x63e   : > { %7307 = vpow2.f32 %v2757_v30  ;;  %v2761_v26 = vmul.f32 1.442695, %v2625_v24  ;;  %v2763_v49 = vmul.f32 1.442695, %v2626_v1  ;;  %v2765_v34 = vmul.f32 1.442695, %v2627_v43 }
 0x63f   : > { %7309 = vpow2.f32 %v2759_v29  ;;  %v2767_v53 = vmul.f32 1.442695, %v2628_v23  ;;  %v2635_v17 = vsub.f32 %v9475_v25, %v2480_v11  ;;  %v2636_v56 = vsub.f32 %v9484_v39, %v2480_v11  ;;  %v2475_v21 = vpop.permute.xlu1 %2474  ;;  %v2485_v10 = vpop.permute.xlu0 %2484 }
 0x640   : > { %7311 = vpow2.f32 %v2761_v26  ;;  %v2777_v35 = vmul.f32 1.442695, %v2633_v60  ;;  %v2629_v38 = vsub.f32 %v9382_v2, %v2475_v21  ;;  %v2779_v45 = vmul.f32 1.442695, %v2634_v4 }
 0x641   : > { %7313 = vpow2.f32 %v2763_v49  ;;  %v2630_v33 = vsub.f32 %v9443_v44, %v2475_v21  ;;  %v2781_v16 = vmul.f32 1.442695, %v2635_v17  ;;  %v2631_v6 = vsub.f32 %v9448_v13, %v2475_v21 }
 0x642   : > { %v10460_v30 = vpop.eup %7295  ;;  %7315 = vpow2.f32 %v2765_v34  ;;  %v2632_v25 = vsub.f32 %v9454_v18, %v2475_v21  ;;  %v2783_v39 = vmul.f32 1.442695, %v2636_v56  ;;  %v2637_v5 = vsub.f32 %v9492_v47, %v2485_v10 }
 0x643   : > { %v10464_v12 = vpop.eup %7297  ;;  %7317 = vpow2.f32 %v2767_v53  ;;  %v2638_v2 = vsub.f32 %v9497_v3, %v2485_v10  ;;  %v2490_v48 = vpop.permute.xlu1 %2489  ;;  %v2769_v44 = vmul.f32 1.442695, %v2629_v38  ;;  %v2639_v29 = vsub.f32 %v9502_v31, %v2485_v10 }
 0x644   : > { %v10468_v15 = vpop.eup %7299  ;;  %7319 = vpow2.f32 %v2777_v35  ;;  %v2771_v13 = vmul.f32 1.442695, %v2630_v33  ;;  %v2773_v11 = vmul.f32 1.442695, %v2631_v6  ;;  %v2775_v24 = vmul.f32 1.442695, %v2632_v25  ;;  %v2500_v1 = vpop.permute.xlu0 %2499 }
 0x645   : > { %v10471_v28 = vpop.eup %7301  ;;  %7321 = vpow2.f32 %v2779_v45  ;;  %v2640_v47 = vsub.f32 %v9509_v27, %v2485_v10  ;;  %v2785_v43 = vmul.f32 1.442695, %v2637_v5  ;;  %v2787_v23 = vmul.f32 1.442695, %v2638_v2  ;;  %v13571_v10 = vld [vmem:[#allocation184_spill] sm:$0xff]  ;;  %v13572_v33 = vld [vmem:[#allocation185_spill] sm:$0xff] }
 0x646   : > { %v10473_v18 = vpop.eup %7303  ;;  %7323 = vpow2.f32 %v2781_v16  ;;  %v2641_v60 = vsub.f32 %v9517_v50, %v2490_v48  ;;  %v2789_v26 = vmul.f32 1.442695, %v2639_v29  ;;  %v2642_v49 = vsub.f32 %v9522_v42, %v2490_v48  ;;  %v13573_v6 = vld [vmem:[#allocation186_spill] sm:$0xff] }
 0x647   : > { %v10476_v3 = vpop.eup %7305  ;;  %7325 = vpow2.f32 %v2783_v39  ;;  %v2495_v31 = vpop.permute.xlu1 %2494  ;;  %v2643_v34 = vsub.f32 %v9527_v51, %v2490_v48  ;;  %v2644_v27 = vsub.f32 %v9535_v58, %v2490_v48  ;;  %v2649_v17 = vsub.f32 %v9569_v19, %v2500_v1 }
 0x648   : > { %v10479_v4 = vpop.eup %7307  ;;  %7327 = vpow2.f32 %v2769_v44  ;;  %v2650_v56 = vsub.f32 %v9574_v8, %v2500_v1  ;;  %v2791_v50 = vmul.f32 1.442695, %v2640_v47  ;;  %v2651_v35 = vsub.f32 %v9579_v22, %v2500_v1  ;;  %v2505_v48 = vpop.permute.xlu0 %2504 }
 0x649   : > { %v10483_v53 = vpop.eup %7309  ;;  %7329 = vpow2.f32 %v2771_v13  ;;  %v2652_v38 = vsub.f32 %v9587_v20, %v2500_v1  ;;  %v2793_v51 = vmul.f32 1.442695, %v2641_v60  ;;  %v2645_v45 = vsub.f32 %v13571_v10, %v2495_v31 }
 0x64a   : > { %v10488_v21 = vpop.eup %7311  ;;  %7331 = vpow2.f32 %v2773_v11  ;;  %v2646_v58 = vsub.f32 %v13572_v33, %v2495_v31  ;;  %v2795_v19 = vmul.f32 1.442695, %v2642_v49  ;;  %v2797_v8 = vmul.f32 1.442695, %v2643_v34  ;;  %v13574_v11 = vld [vmem:[#allocation187_spill] sm:$0xff] }
 0x64b   : > { %v10492_v42 = vpop.eup %7313  ;;  %7333 = vpow2.f32 %v2775_v24  ;;  %v2647_v25 = vsub.f32 %v13573_v6, %v2495_v31  ;;  %v10499_v39 = vpop.permute.xlu1 %2509  ;;  %v2799_v20 = vmul.f32 1.442695, %v2644_v27  ;;  %v2809_v5 = vmul.f32 1.442695, %v2649_v17  ;;  %v13576_v27 = vld [vmem:[#allocation189_spill] sm:$0xff] }
 0x64c   : > { %v10496_v16 = vpop.eup %7315  ;;  %7335 = vpow2.f32 %v2785_v43  ;;  %v2811_v2 = vmul.f32 1.442695, %v2650_v56  ;;  %v2813_v29 = vmul.f32 1.442695, %v2651_v35  ;;  %v2815_v13 = vmul.f32 1.442695, %v2652_v38 }
 0x64d   : > { %v10501_v22 = vpop.eup %7317  ;;  %7337 = vpow2.f32 %v2787_v23  ;;  %v2648_v24 = vsub.f32 %v13574_v11, %v2495_v31  ;;  %v2801_v1 = vmul.f32 1.442695, %v2645_v45  ;;  %v2803_v43 = vmul.f32 1.442695, %v2646_v58  ;;  %v13575_v23 = vld [vmem:[#allocation188_spill] sm:$0xff]  ;;  %v13577_v31 = vld [vmem:[#allocation190_spill] sm:$0xff] }
 0x64e   : > { %v10503_v44 = vpop.eup %7319  ;;  %7339 = vpow2.f32 %v2789_v26  ;;  %v2805_v60 = vmul.f32 1.442695, %v2647_v25  ;;  %v2653_v34 = vsub.f32 %v13575_v23, %v2505_v48  ;;  %v2654_v17 = vsub.f32 %v13576_v27, %v2505_v48  ;;  %v13578_v38 = vld [vmem:[#allocation191_spill] sm:$0xff]  ;;  %v13579_v58 = vld [vmem:[#allocation192_spill] sm:$0xff]  ;;  %v13580_v11 = vld [vmem:[#allocation193_spill] sm:$0xff] }
 0x64f   : > { %v10506_v47 = vpop.eup %7321  ;;  %7341 = vpow2.f32 %v2791_v50  ;;  %v3515_v26 = vpack.c.bf16 %v10476_v3, %v10464_v12  ;;  %v2655_v35 = vsub.f32 %v13577_v31, %v2505_v48  ;;  %v2656_v50 = vsub.f32 %v13578_v38, %v2505_v48  ;;  %v10528_v6 = vpop.permute.xlu1 %2514 }
 0x650   : > { %v10508_v49 = vpop.eup %7323  ;;  %7343 = vpow2.f32 %v2793_v51  ;;  %v3517_v10 = vpack.c.bf16 %v10483_v53, %v10471_v28  ;;  %v3514_v51 = vpack.c.bf16 %v10473_v18, %v10460_v30  ;;  %v3516_v33 = vpack.c.bf16 %v10479_v4, %v10468_v15 }
 0x651   : > { %v10514_v56 = vpop.eup %7325  ;;  %7345 = vpow2.f32 %v2795_v19  ;;  %3610 = vmatprep.mubr.bf16.mxu0 %v3515_v26  ;;  %v2657_v19 = vsub.f32 %v13579_v58, %v10499_v39  ;;  %v2807_v48 = vmul.f32 1.442695, %v2648_v24  ;;  %v2658_v23 = vsub.f32 %v13580_v11, %v10499_v39  ;;  %v13582_v58 = vld [vmem:[#allocation195_spill] sm:$0xff] }
 0x652   : > { %v10520_v45 = vpop.eup %7327  ;;  %7347 = vpow2.f32 %v2797_v8  ;;  %3771 = vmatprep.mubr.bf16.mxu1 %v3517_v10  ;;  %v13581_v8 = vld [vmem:[#allocation194_spill] sm:$0xff]  ;;  %v2817_v31 = vmul.f32 1.442695, %v2653_v34  ;;  %v2819_v38 = vmul.f32 1.442695, %v2654_v17  ;;  %3611 = vmatmul.mubr.bf16.vlgmr.msra.gmra.mrb[0].mxu0 %v3514_v51  ;;  %v2660_v54 = vsub.f32 %v13582_v58, %v10499_v39  ;;  %v13583_v10 = vld [vmem:[#allocation196_spill] sm:$0xff] }
 0x653   : > { %v7330_v25 = vpop.eup %7329  ;;  %7349 = vpow2.f32 %v2799_v20  ;;  %v2659_v27 = vsub.f32 %v13581_v8, %v10499_v39  ;;  %3772 = vmatmul.mubr.bf16.vlgmr.msra.gmra.mrb[0].mxu1 %v3516_v33  ;;  %v2821_v20 = vmul.f32 1.442695, %v2655_v35  ;;  %v2823_v24 = vmul.f32 1.442695, %v2656_v50  ;;  %v13584_v34 = vld [vmem:[#allocation197_spill] sm:$0xff]  ;;  %v13585_v58 = vld [vmem:[#allocation198_spill] sm:$0xff] }
 0x654   : > { %v7332_v26 = vpop.eup %7331  ;;  %7351 = vpow2.f32 %v2809_v5  ;;  %v2661_v11 = vsub.f32 %v13583_v10, %v10528_v6  ;;  %v2825_v8 = vmul.f32 1.442695, %v2657_v19  ;;  %v2827_v5 = vmul.f32 1.442695, %v2658_v23 }
 0x655   : > { %v10536_v62 = vpop.eup %7333  ;;  %7353 = vpow2.f32 %v2811_v2  ;;  %v2662_v17 = vsub.f32 %v13584_v34, %v10528_v6  ;;  %v2829_v33 = vmul.f32 1.442695, %v2659_v27  ;;  %v3519_v39 = vpack.c.bf16 %v7330_v25, %v10492_v42 }
 0x656   : > { %v10540_v55 = vpop.eup %7335  ;;  %7355 = vpow2.f32 %v2813_v29  ;;  %v3521_v2 = vpack.c.bf16 %v10536_v62, %v10501_v22  ;;  %v2831_v50 = vmul.f32 1.442695, %v2660_v54  ;;  %v2663_v29 = vsub.f32 %v13585_v58, %v10528_v6 }
 0x657   : > { %v7338_v51 = vpop.eup %7337  ;;  %7357 = vpow2.f32 %v2815_v13  ;;  %v3518_v19 = vpack.c.bf16 %v10520_v45, %v10488_v21  ;;  %v13586_v13 = vld [vmem:[#allocation199_spill] sm:$0xff]  ;;  %v2833_v10 = vmul.f32 1.442695, %v2661_v11  ;;  %3618 = vmatprep.mubr.bf16.mxu0 %v3519_v39  ;;  %v3520_v34 = vpack.c.bf16 %v7332_v26, %v10496_v16 }
 0x658   : > { %v10547_v35 = vpop.eup %7339  ;;  %7359 = vpow2.f32 %v2801_v1  ;;  %v2664_v27 = vsub.f32 %v13586_v13, %v10528_v6  ;;  %3779 = vmatprep.mubr.bf16.mxu1 %v3521_v2  ;;  %v3523_v54 = vpack.c.bf16 %v7338_v51, %v10506_v47  ;;  %v3070_v58 = vadd.f32 %v10476_v3, %v10473_v18 }
 0x659   : > { %v10553_v23 = vpop.eup %7341  ;;  %7361 = vpow2.f32 %v2803_v43  ;;  %v3065_v6 = vadd.f32 %v10464_v12, %v10460_v30  ;;  %v3085_v11 = vadd.f32 %v10506_v47, %v10503_v44  ;;  %v3075_v39 = vadd.f32 %v10492_v42, %v10488_v21 }
 0x65a   : > { %v10558_v46 = vpop.eup %7343  ;;  %7363 = vpow2.f32 %v2805_v60  ;;  %v3525_v1 = vpack.c.bf16 %v10553_v23, %v10514_v56  ;;  %3619 = vmatmul.mubr.bf16.gmra.mrb[4].mxu0 %v3518_v19  ;;  %v3071_v2 = vadd.f32 %v10479_v4, %v3070_v58  ;;  %v3080_v3 = vadd.f32 %v7330_v25, %v10520_v45 }
 0x65b   : > { %v7346_v43 = vpop.eup %7345  ;;  %7365 = vpow2.f32 %v2807_v48  ;;  %3780 = vmatmul.mubr.bf16.gmra.mrb[4].mxu1 %v3520_v34  ;;  %3626 = vmatprep.mubr.bf16.mxu0 %v3523_v54  ;;  %v3066_v30 = vadd.f32 %v10468_v15, %v3065_v6  ;;  %v3086_v12 = vadd.f32 %v10508_v49, %v3085_v11  ;;  %v3076_v21 = vadd.f32 %v10496_v16, %v3075_v39 }
 0x65c   : > { %v10571_v60 = vpop.eup %7347  ;;  %7367 = vpow2.f32 %v2817_v31  ;;  %v3095_v18 = vadd.f32 %v7346_v43, %v10558_v46  ;;  %3787 = vmatprep.mubr.bf16.mxu1 %v3525_v1  ;;  %v10582_v47 = vadd.f32 %v10483_v53, %v3071_v2  ;;  %v3081_v31 = vadd.f32 %v7332_v26, %v3080_v3 }
 0x65d   : > { %v7350_v48 = vpop.eup %7349  ;;  %7369 = vpow2.f32 %v2819_v38  ;;  %v10586_v25 = vadd.f32 %v10471_v28, %v3066_v30  ;;  %v10589_v15 = vadd.f32 %v10514_v56, %v3086_v12  ;;  %v10592_v38 = vadd.f32 %v10501_v22, %v3076_v21 }
 0x65e   : > { %v10579_v42 = vpop.eup %7351  ;;  %7371 = vpow2.f32 %v2821_v20  ;;  %v3096_v4 = vadd.f32 %v10571_v60, %v3095_v18  ;;  %v10599_v53 = vadd.f32 %v10536_v62, %v3081_v31  ;;  %v2835_v28 = vmul.f32 1.442695, %v2662_v17 }
 0x65f   : > { %v7354_v45 = vpop.eup %7353  ;;  %7373 = vpow2.f32 %v2823_v24  ;;  %v2837_v19 = vmul.f32 1.442695, %v2663_v29  ;;  %v3090_v56 = vadd.f32 %v7338_v51, %v10540_v55  ;;  %v3522_v22 = vpack.c.bf16 %v10540_v55, %v10503_v44 }
 0x660   : > { %v10594_v16 = vpop.eup %7355  ;;  %7375 = vpow2.f32 %v2825_v8  ;;  %v10596_v20 = vadd.f32 %v7350_v48, %v3096_v4  ;;  %v3105_v26 = vadd.f32 %v7354_v45, %v10579_v42  ;;  %v3524_v8 = vpack.c.bf16 %v10547_v35, %v10508_v49 }
 0x661   : > { %v7358_v24 = vpop.eup %7357  ;;  %7377 = vpow2.f32 %v2827_v5  ;;  %v2839_v54 = vmul.f32 1.442695, %v2664_v27  ;;  %v3091_v1 = vadd.f32 %v10547_v35, %v3090_v56  ;;  %v10624_v56 = vld [vmem:[#allocation3 + $0xe0] sm:$0xff] }
 0x662   : > { %v7360_v13 = vpop.eup %7359  ;;  %7379 = vpow2.f32 %v2829_v33  ;;  %v3106_v34 = vadd.f32 %v10594_v16, %v3105_v26  ;;  %3627 = vmatmul.mubr.bf16.gmra.mrb[8].mxu0 %v3522_v22  ;;  %13587 = vst [vmem:[#allocation184_spill] sm:$0xff] %v10624_v56 }
 0x663   : > { %v7362_v62 = vpop.eup %7361  ;;  %7381 = vpow2.f32 %v2831_v50  ;;  %3788 = vmatmul.mubr.bf16.gmra.mrb[8].mxu1 %v3524_v8  ;;  %v10612_v55 = vadd.f32 %v10553_v23, %v3091_v1  ;;  %v3526_v11 = vpack.c.bf16 %v7360_v13, %v10558_v46  ;;  %v10631_v1 = vld [vmem:[#allocation3 + $0xf8] sm:$0xff] }
 0x664   : > { %v7364_v5 = vpop.eup %7363  ;;  %7383 = vpow2.f32 %v2833_v10  ;;  %v3527_v17 = vpack.c.bf16 %v7362_v62, %v7346_v43  ;;  %v10609_v51 = vadd.f32 %v7358_v24, %v3106_v34  ;;  %v3100_v33 = vadd.f32 %v7362_v62, %v7360_v13  ;;  %13589 = vst [vmem:[#allocation186_spill] sm:$0xff] %v10631_v1 }
 0x665   : > { %v7366_v29 = vpop.eup %7365  ;;  %7385 = vpow2.f32 %v2835_v28  ;;  %v3528_v39 = vpack.c.bf16 %v7364_v5, %v10571_v60 }
 0x666   : > { %v7368_v44 = vpop.eup %7367  ;;  %7387 = vpow2.f32 %v2837_v19  ;;  %3634 = vmatprep.mubr.bf16.mxu0 %v3527_v17  ;;  %v3529_v49 = vpack.c.bf16 %v7366_v29, %v7350_v48  ;;  %v3101_v50 = vadd.f32 %v7364_v5, %v3100_v33 }
 0x667   : > { %v7370_v27 = vpop.eup %7369  ;;  %7389 = vpow2.f32 %v2839_v54 }
 0x668   : > { %v7372_v35 = vpop.eup %7371  ;;  %3795 = vmatprep.mubr.bf16.mxu1 %v3529_v49  ;;  %v10614_v10 = vadd.f32 %v7366_v29, %v3101_v50  ;;  %v3110_v58 = vadd.f32 %v7370_v27, %v7368_v44  ;;  %v3531_v18 = vpack.c.bf16 %v7370_v27, %v7354_v45  ;;  %v3530_v45 = vpack.c.bf16 %v7368_v44, %v10579_v42  ;;  %v10646_v44 = vld [vmem:[#allocation3 + $0xf0] sm:$0xff]  ;;  %v13592_v27 = vld [vmem:[#allocation204_spill] sm:$0xff] }
 0x669   : > { %v7374_v43 = vpop.eup %7373  ;;  %13591 = vst [vmem:[#allocation188_spill] sm:$0xff] %v10646_v44 }
 0x66a   : > { %v7376_v6 = vpop.eup %7375  ;;  %v3111_v23 = vadd.f32 %v7372_v35, %v3110_v58  ;;  %v3533_v3 = vpack.c.bf16 %v7374_v43, %v7358_v24  ;;  %3635 = vmatmul.mubr.bf16.gmra.mrb[12].mxu0 %v3526_v11  ;;  %v3532_v24 = vpack.c.bf16 %v7372_v35, %v10594_v16  ;;  %v13595_v11 = vld [vmem:[#allocation206_spill] sm:$0xff] }
 0x66b   : > { %v7378_v2 = vpop.eup %7377  ;;  %3796 = vmatmul.mubr.bf16.gmra.mrb[12].mxu1 %v3528_v39  ;;  %3642 = vmatprep.mubr.bf16.mxu0 %v3531_v18  ;;  %v13596_v18 = vld [vmem:[#allocation207_spill] sm:$0xff] }
 0x66c   : > { %v7380_v30 = vpop.eup %7379  ;;  %v3115_v48 = vadd.f32 %v7378_v2, %v7376_v6  ;;  %v10618_v12 = vadd.f32 %v7374_v43, %v3111_v23  ;;  %3803 = vmatprep.mubr.bf16.mxu1 %v3533_v3  ;;  %v13594_v43 = vld [vmem:[#allocation205_spill] sm:$0xff] }
 0x66d   : > { %v7382_v21 = vpop.eup %7381 }
 0x66e   : > { %v7384_v4 = vpop.eup %7383  ;;  %v3116_v31 = vadd.f32 %v7380_v30, %v3115_v48  ;;  %v13597_v48 = vld [vmem:[#allocation200_spill] sm:$0xff] }
 0x66f   : > { %v7386_v26 = vpop.eup %7385  ;;  %v3534_v17 = vpack.c.bf16 %v7384_v4, %v7376_v6 }
 0x670   : > { %v7388_v28 = vpop.eup %7387  ;;  %v10620_v46 = vadd.f32 %v7382_v21, %v3116_v31  ;;  %v3120_v60 = vadd.f32 %v7386_v26, %v7384_v4  ;;  %v3535_v22 = vpack.c.bf16 %v7386_v26, %v7378_v2  ;;  %v13598_v31 = vld [vmem:[#allocation201_spill] sm:$0xff] }
 0x671   : > { %v7390_v19 = vpop.eup %7389  ;;  %v3536_v33 = vpack.c.bf16 %v7388_v28, %v7380_v30 }
 0x672   : > { %v3121_v13 = vadd.f32 %v7388_v28, %v3120_v60  ;;  %v3537_v8 = vpack.c.bf16 %v7390_v19, %v7382_v21  ;;  %3643 = vmatmul.mubr.bf16.gmra.mrb[16].mxu0 %v3530_v45 }
 0x673   : > { %3804 = vmatmul.mubr.bf16.gmra.mrb[16].mxu1 %v3532_v24  ;;  %3650 = vmatprep.mubr.bf16.mxu0 %v3535_v22 }
 0x674   : > { %v10626_v62 = vadd.f32 %v7390_v19, %v3121_v13  ;;  %3811 = vmatprep.mubr.bf16.mxu1 %v3537_v8  ;;  %v13599_v19 = vld [vmem:[#allocation202_spill] sm:$0xff]  ;;  %v13600_v13 = vld [vmem:[#allocation203_spill] sm:$0xff] }
 0x676   : > { %v2313_v34 = vpop.xlane.xlu0 %2312 }
 0x677   : > { %v10629_v54 = vmax.f32 %v10624_v56, %v2313_v34 }
 0x679   : > { %13588 = vst [vmem:[#allocation185_spill] sm:$0xff] %v10629_v54  ;;  %3992 = vst.msk [vmem:[#allocation3 + $0xe0] sm:$0xff] %vm3257_vm5, %v10629_v54  ;;  %2599 = vperm.xlu0 %7293, %v10629_v54   ;;  %v13628_v54 = vld [vmem:[#allocation251_spill] sm:$0xff] }
 0x67a   : > { %v2328_v16 = vpop.xlane.xlu0 %2327  ;;  %3651 = vmatmul.mubr.bf16.gmra.mrb[20].mxu0 %v3534_v17 }
 0x67b   : > { %v10639_v5 = vmax.f32 %v10631_v1, %v2328_v16  ;;  %3812 = vmatmul.mubr.bf16.gmra.mrb[20].mxu1 %v3536_v33  ;;  %v13601_v16 = vld [vmem:[#allocation220_spill] sm:$0xff] }
 0x67d   : > { %13590 = vst [vmem:[#allocation187_spill] sm:$0xff] %v10639_v5  ;;  %3995 = vst.msk [vmem:[#allocation3 + $0xf8] sm:$0xff] %vm3257_vm5, %v10639_v5  ;;  %2614 = vperm.xlu1 %7294, %v10639_v5  }
 0x682   : > { %v2520_v49 = vpop.permute.xlu0 %2519  ;;  %v2323_v50 = vpop.xlane.xlu1 %2322 }
 0x683   : > { %v2665_v35 = vsub.f32 %v13592_v27, %v2520_v49  ;;  %v10650_v58 = vmax.f32 %v10646_v44, %v2323_v50  ;;  %v2666_v6 = vsub.f32 %v13594_v43, %v2520_v49  ;;  %v2667_v39 = vsub.f32 %v13595_v11, %v2520_v49  ;;  %v13604_v11 = vld [vmem:[#allocation223_spill] sm:$0xff] }
 0x684   : > { %v2668_v3 = vsub.f32 %v13596_v18, %v2520_v49  ;;  %v13602_v49 = vld [vmem:[#allocation221_spill] sm:$0xff] }
 0x685   : > { %13593 = vst [vmem:[#allocation189_spill] sm:$0xff] %v10650_v58  ;;  %3994 = vst.msk [vmem:[#allocation3 + $0xf0] sm:$0xff] %vm3257_vm5, %v10650_v58  ;;  %2609 = vperm.xlu0 %7293, %v10650_v58   ;;  %v2841_v30 = vmul.f32 1.442695, %v2665_v35  ;;  %v2843_v4 = vmul.f32 1.442695, %v2666_v6 }
 0x686   : > { %v2525_v2 = vpop.permute.xlu0 %2524  ;;  %v2540_v28 = vpop.permute.xlu1 %2539  ;;  %v2845_v60 = vmul.f32 1.442695, %v2667_v39  ;;  %v2847_v24 = vmul.f32 1.442695, %v2668_v3  ;;  %v13603_v35 = vld [vmem:[#allocation222_spill] sm:$0xff] }
 0x687   : > { %v2669_v21 = vsub.f32 %v13597_v48, %v2525_v2  ;;  %v2670_v26 = vsub.f32 %v13598_v31, %v2525_v2  ;;  %v2671_v45 = vsub.f32 %v13599_v19, %v2525_v2  ;;  %v2672_v22 = vsub.f32 %v13600_v13, %v2525_v2  ;;  %v13605_v2 = vld [vmem:[#allocation212_spill] sm:$0xff]  ;;  %v13606_v48 = vld [vmem:[#allocation213_spill] sm:$0xff] }
 0x688   : > { %7391 = vpow2.f32 %v2841_v30  ;;  %v2681_v17 = vsub.f32 %v13601_v16, %v2540_v28  ;;  %v2682_v50 = vsub.f32 %v13602_v49, %v2540_v28  ;;  %v2683_v43 = vsub.f32 %v13603_v35, %v2540_v28 }
 0x689   : > { %v2849_v34 = vmul.f32 1.442695, %v2669_v21  ;;  %7393 = vpow2.f32 %v2843_v4  ;;  %v2851_v33 = vmul.f32 1.442695, %v2670_v26  ;;  %v2853_v27 = vmul.f32 1.442695, %v2671_v45 }
 0x68a   : > { %v2530_v8 = vpop.permute.xlu0 %2529  ;;  %7395 = vpow2.f32 %v2845_v60  ;;  %v2855_v6 = vmul.f32 1.442695, %v2672_v22  ;;  %v2684_v39 = vsub.f32 %v13604_v11, %v2540_v28  ;;  %v2873_v18 = vmul.f32 1.442695, %v2681_v17  ;;  %v13607_v26 = vld [vmem:[#allocation214_spill] sm:$0xff]  ;;  %v13608_v45 = vld [vmem:[#allocation215_spill] sm:$0xff]  ;;  %v2565_v28 = vpop.permute.xlu1 %2564 }
 0x68b   : > { %7397 = vpow2.f32 %v2847_v24  ;;  %v2673_v3 = vsub.f32 %v13605_v2, %v2530_v8  ;;  %v2875_v30 = vmul.f32 1.442695, %v2682_v50  ;;  %v2674_v21 = vsub.f32 %v13606_v48, %v2530_v8  ;;  %v13609_v22 = vld [vmem:[#allocation208_spill] sm:$0xff]  ;;  %v13610_v17 = vld [vmem:[#allocation209_spill] sm:$0xff] }
 0x68c   : > { %7399 = vpow2.f32 %v2849_v34  ;;  %v2877_v31 = vmul.f32 1.442695, %v2683_v43  ;;  %v2675_v60 = vsub.f32 %v13607_v26, %v2530_v8  ;;  %v2879_v19 = vmul.f32 1.442695, %v2684_v39 }
 0x68d   : > { %7401 = vpow2.f32 %v2851_v33  ;;  %v2676_v24 = vsub.f32 %v13608_v45, %v2530_v8  ;;  %v2857_v13 = vmul.f32 1.442695, %v2673_v3  ;;  %v2859_v16 = vmul.f32 1.442695, %v2674_v21  ;;  %v13612_v8 = vld [vmem:[#allocation211_spill] sm:$0xff]  ;;  %v13614_v21 = vld [vmem:[#allocation237_spill] sm:$0xff] }
 0x68e   : > { %v2535_v4 = vpop.permute.xlu0 %2534  ;;  %7403 = vpow2.f32 %v2853_v27  ;;  %v2861_v50 = vmul.f32 1.442695, %v2675_v60  ;;  %v13611_v27 = vld [vmem:[#allocation210_spill] sm:$0xff] }
 0x68f   : > { %7405 = vpow2.f32 %v2855_v6  ;;  %v2677_v34 = vsub.f32 %v13609_v22, %v2535_v4  ;;  %v2678_v33 = vsub.f32 %v13610_v17, %v2535_v4  ;;  %v2679_v35 = vsub.f32 %v13611_v27, %v2535_v4 }
 0x690   : > { %7407 = vpow2.f32 %v2873_v18  ;;  %v2863_v6 = vmul.f32 1.442695, %v2676_v24  ;;  %v2680_v11 = vsub.f32 %v13612_v8, %v2535_v4  ;;  %v13613_v18 = vld [vmem:[#allocation236_spill] sm:$0xff]  ;;  %v10689_v4 = vpop.permute.xlu1 %2574 }
 0x691   : > { %7409 = vpow2.f32 %v2875_v30  ;;  %v2701_v2 = vsub.f32 %v13613_v18, %v2565_v28  ;;  %v2865_v3 = vmul.f32 1.442695, %v2677_v34  ;;  %v2867_v26 = vmul.f32 1.442695, %v2678_v33  ;;  %v13617_v8 = vld [vmem:[#allocation216_spill] sm:$0xff] }
 0x692   : > { %v10674_v49 = vpop.eup %7391  ;;  %7411 = vpow2.f32 %v2877_v31  ;;  %v2545_v30 = vpop.permute.xlu0 %2544  ;;  %v2702_v31 = vsub.f32 %v13614_v21, %v2565_v28  ;;  %v2869_v24 = vmul.f32 1.442695, %v2679_v35  ;;  %v2871_v17 = vmul.f32 1.442695, %v2680_v11  ;;  %v13618_v21 = vld [vmem:[#allocation217_spill] sm:$0xff]  ;;  %v13620_v11 = vld [vmem:[#allocation218_spill] sm:$0xff] }
 0x693   : > { %v10677_v43 = vpop.eup %7393  ;;  %7413 = vpow2.f32 %v2879_v19  ;;  %v13615_v19 = vld [vmem:[#allocation238_spill] sm:$0xff]  ;;  %v2685_v33 = vsub.f32 %v13617_v8, %v2545_v30  ;;  %v2686_v35 = vsub.f32 %v13618_v21, %v2545_v30  ;;  %v13622_v8 = vld [vmem:[#allocation219_spill] sm:$0xff] }
 0x694   : > { %v10680_v39 = vpop.eup %7395  ;;  %7415 = vpow2.f32 %v2857_v13  ;;  %v2703_v45 = vsub.f32 %v13615_v19, %v2565_v28  ;;  %v13616_v13 = vld [vmem:[#allocation239_spill] sm:$0xff]  ;;  %v2688_v21 = vsub.f32 %v13622_v8, %v2545_v30  ;;  %v2585_v1 = vpop.permute.xlu1 %2584 }
 0x695   : > { %v10683_v48 = vpop.eup %7397  ;;  %7417 = vpow2.f32 %v2859_v16  ;;  %v2704_v34 = vsub.f32 %v13616_v13, %v2565_v28  ;;  %v2913_v16 = vmul.f32 1.442695, %v2701_v2  ;;  %v2687_v13 = vsub.f32 %v13620_v11, %v2545_v30 }
 0x696   : > { %v10686_v60 = vpop.eup %7399  ;;  %7419 = vpow2.f32 %v2861_v50  ;;  %v2915_v50 = vmul.f32 1.442695, %v2702_v31  ;;  %v2917_v29 = vmul.f32 1.442695, %v2703_v45  ;;  %v10705_v23 = vpop.permute.xlu0 %2549  ;;  %v13621_v31 = vld [vmem:[#allocation245_spill] sm:$0xff]  ;;  %v13623_v45 = vld [vmem:[#allocation246_spill] sm:$0xff]  ;;  %v2720_v56 = vsub.f32 %v13628_v54, %v2585_v1 }
 0x697   : > { %v10691_v22 = vpop.eup %7401  ;;  %7421 = vpow2.f32 %v2863_v6  ;;  %v13619_v6 = vld [vmem:[#allocation244_spill] sm:$0xff]  ;;  %v2881_v5 = vmul.f32 1.442695, %v2685_v33  ;;  %v2885_v8 = vmul.f32 1.442695, %v2687_v13  ;;  %v13627_v13 = vld [vmem:[#allocation250_spill] sm:$0xff] }
 0x698   : > { %v10694_v27 = vpop.eup %7403  ;;  %7423 = vpow2.f32 %v2865_v3  ;;  %v2709_v28 = vsub.f32 %v13619_v6, %v10689_v4  ;;  %v2919_v3 = vmul.f32 1.442695, %v2704_v34  ;;  %v13624_v6 = vld [vmem:[#allocation247_spill] sm:$0xff]  ;;  %v2883_v34 = vmul.f32 1.442695, %v2686_v35  ;;  %v13625_v35 = vld [vmem:[#allocation248_spill] sm:$0xff] }
 0x699   : > { %v10697_v18 = vpop.eup %7405  ;;  %7425 = vpow2.f32 %v2867_v26  ;;  %v2710_v26 = vsub.f32 %v13621_v31, %v10689_v4  ;;  %v2712_v11 = vsub.f32 %v13624_v6, %v10689_v4  ;;  %v3540_v6 = vpack.c.bf16 %v10694_v27, %v10680_v39 }
 0x69a   : > { %v10700_v19 = vpop.eup %7407  ;;  %7427 = vpow2.f32 %v2869_v24  ;;  %v2711_v24 = vsub.f32 %v13623_v45, %v10689_v4  ;;  %v3541_v30 = vpack.c.bf16 %v10697_v18, %v10683_v48  ;;  %v2929_v31 = vmul.f32 1.442695, %v2709_v28  ;;  %v10739_v9 = vpop.permute.xlu0 %2554 }
 0x69b   : > { %v10707_v2 = vpop.eup %7409  ;;  %7429 = vpow2.f32 %v2871_v17  ;;  %v3539_v17 = vpack.c.bf16 %v10691_v22, %v10677_v43  ;;  %v3538_v4 = vpack.c.bf16 %v10686_v60, %v10674_v49  ;;  %v2717_v45 = vsub.f32 %v13625_v35, %v2585_v1 }
 0x69c   : > { %v10712_v42 = vpop.eup %7411  ;;  %7431 = vpow2.f32 %v2913_v16  ;;  %3819 = vmatprep.mubr.bf16.mxu1 %v3541_v30  ;;  %v2719_v44 = vsub.f32 %v13627_v13, %v2585_v1  ;;  %v2933_v35 = vmul.f32 1.442695, %v2711_v24 }
 0x69d   : > { %v10718_v58 = vpop.eup %7413  ;;  %7433 = vpow2.f32 %v2915_v50  ;;  %v2887_v50 = vmul.f32 1.442695, %v2688_v21  ;;  %3658 = vmatprep.mubr.bf16.mxu0 %v3539_v17  ;;  %v2931_v21 = vmul.f32 1.442695, %v2710_v26  ;;  %v13629_v17 = vld [vmem:[#allocation228_spill] sm:$0xff]  ;;  %3820 = vmatmul.mubr.bf16.gmra.mrb[24].mxu1 %v3540_v6 }
 0x69e   : > { %v10725_v16 = vpop.eup %7415  ;;  %7435 = vpow2.f32 %v2917_v29  ;;  %v13626_v29 = vld [vmem:[#allocation249_spill] sm:$0xff]  ;;  %3659 = vmatmul.mubr.bf16.gmra.mrb[24].mxu0 %v3538_v4  ;;  %v2689_v30 = vsub.f32 %v13629_v17, %v10705_v23  ;;  %v2935_v26 = vmul.f32 1.442695, %v2712_v11  ;;  %v2949_v6 = vmul.f32 1.442695, %v2719_v44 }
 0x69f   : > { %v10729_v33 = vpop.eup %7417  ;;  %7437 = vpow2.f32 %v2919_v3  ;;  %v2718_v28 = vsub.f32 %v13626_v29, %v2585_v1  ;;  %v13630_v29 = vld [vmem:[#allocation229_spill] sm:$0xff]  ;;  %v10750_v1 = vpop.permute.xlu1 %2594  ;;  %v2951_v17 = vmul.f32 1.442695, %v2720_v56 }
 0x6a0   : > { %7439 = vpow2.f32 %v2881_v5  ;;  %v2690_v54 = vsub.f32 %v13630_v29, %v10705_v23  ;;  %v2889_v0 = vmul.f32 1.442695, %v2689_v30  ;;  %v10768_v56 = vpop.permute.xlu0 %2559 }
 0x6a1   : > { %3073 = vadd.xlane.f32.xlu1 %v10582_v47  ;;  %v10734_v47 = vpop.eup %7419  ;;  %7441 = vpow2.f32 %v2883_v34  ;;  %v2945_v34 = vmul.f32 1.442695, %v2717_v45  ;;  %v2699_v41 = vsub.f32 %v13645_v63, %v10768_v56 }
 0x6a2   : > { %v10741_v3 = vpop.eup %7421  ;;  %7443 = vpow2.f32 %v2885_v8  ;;  %v13631_v8 = vld [vmem:[#allocation230_spill] sm:$0xff] }
 0x6a3   : > { %v10746_v5 = vpop.eup %7423  ;;  %7445 = vpow2.f32 %v2887_v50  ;;  %v2691_v29 = vsub.f32 %v13631_v8, %v10705_v23  ;;  %v2891_v50 = vmul.f32 1.442695, %v2690_v54  ;;  %v13636_v54 = vld [vmem:[#allocation225_spill] sm:$0xff] }
 0x6a4   : > { %3068 = vadd.xlane.f32.xlu0 %v10586_v25  ;;  %v10753_v4 = vpop.eup %7425  ;;  %7447 = vpow2.f32 %v2929_v31  ;;  %v2947_v25 = vmul.f32 1.442695, %v2718_v28  ;;  %v13633_v31 = vld [vmem:[#allocation260_spill] sm:$0xff]  ;;  %v2694_v8 = vsub.f32 %v13636_v54, %v10739_v9 }
 0x6a5   : > { %3088 = vadd.xlane.f32.xlu1 %v10589_v15  ;;  %v10755_v13 = vpop.eup %7427  ;;  %7449 = vpow2.f32 %v2931_v21  ;;  %v2692_v15 = vsub.f32 %v13632_v52, %v10705_v23  ;;  %v2725_v44 = vsub.f32 %v13633_v31, %v10750_v1  ;;  %v3543_v45 = vpack.c.bf16 %v10753_v4, %v10729_v33  ;;  %v13634_v52 = vld [vmem:[#allocation261_spill] sm:$0xff]  ;;  %v13635_v23 = vld [vmem:[#allocation224_spill] sm:$0xff]  ;;  %v10785_v31 = vpop.permute.xlu1 %2604 }
 0x6a6   : > { %v10757_v24 = vpop.eup %7429  ;;  %7451 = vpow2.f32 %v2933_v35  ;;  %v2693_v21 = vsub.f32 %v13635_v23, %v10739_v9  ;;  %v2893_v23 = vmul.f32 1.442695, %v2691_v29  ;;  %v2899_v37 = vmul.f32 1.442695, %v2694_v8 }
 0x6a7   : > { %v10764_v11 = vpop.eup %7431  ;;  %7453 = vpow2.f32 %v2935_v26  ;;  %v3545_v30 = vpack.c.bf16 %v10757_v24, %v10741_v3  ;;  %3666 = vmatprep.mubr.bf16.mxu0 %v3543_v45  ;;  %v3544_v26 = vpack.c.bf16 %v10755_v13, %v10734_v47  ;;  %v2895_v7 = vmul.f32 1.442695, %v2692_v15  ;;  %v13638_v45 = vld [vmem:[#allocation262_spill] sm:$0xff] }
 0x6a8   : > { %3078 = vadd.xlane.f32.xlu0 %v10592_v38  ;;  %v10773_v28 = vpop.eup %7433  ;;  %v2726_v38 = vsub.f32 %v13634_v52, %v10750_v1  ;;  %7455 = vpow2.f32 %v2945_v34  ;;  %v2695_v34 = vsub.f32 %v13637_v61, %v10739_v9  ;;  %v10802_v14 = vmul.f32 1.442695, %v2725_v44 }
 0x6a9   : > { %3098 = vadd.xlane.f32.xlu1 %v10596_v20  ;;  %v10781_v35 = vpop.eup %7435  ;;  %v3542_v20 = vpack.c.bf16 %v10746_v5, %v10725_v16  ;;  %7457 = vpow2.f32 %v2947_v25  ;;  %3827 = vmatprep.mubr.bf16.mxu1 %v3545_v30  ;;  %v2897_v44 = vmul.f32 1.442695, %v2693_v21  ;;  %v13644_v21 = vld [vmem:[#allocation233_spill] sm:$0xff] }
 0x6aa   : > { %v10791_v52 = vpop.eup %7437  ;;  %7459 = vpow2.f32 %v2889_v0  ;;  %3828 = vmatmul.mubr.bf16.gmra.mrb[28].mxu1 %v3544_v26  ;;  %v10806_v61 = vmul.f32 1.442695, %v2726_v38  ;;  %v13641_v0 = vld [vmem:[#allocation264_spill] sm:$0xff]  ;;  %v2901_v26 = vmul.f32 1.442695, %v2695_v34  ;;  %v2698_v8 = vsub.f32 %v13644_v21, %v10768_v56 }
 0x6ab   : > { %v10796_v54 = vpop.eup %7439  ;;  %3667 = vmatmul.mubr.bf16.gmra.mrb[28].mxu0 %v3542_v20  ;;  %7461 = vpow2.f32 %v2891_v50  ;;  %v2733_v15 = vsub.f32 %v13641_v0, %v10785_v31  ;;  %v10815_v20 = vpop.permute.xlu0 %2569  ;;  %v13643_v0 = vld [vmem:[#allocation232_spill] sm:$0xff] }
 0x6ac   : > { %3083 = vadd.xlane.f32.xlu0 %v10599_v53  ;;  %v10804_v25 = vpop.eup %7441  ;;  %v13640_v53 = vld [vmem:[#allocation227_spill] sm:$0xff]  ;;  %7463 = vpow2.f32 %v2949_v6  ;;  %v3546_v63 = vpack.c.bf16 %v10796_v54, %v10700_v19 }
 0x6ad   : > { %v2696_v29 = vsub.f32 %v13640_v53, %v10739_v9  ;;  %3108 = vadd.xlane.f32.xlu1 %v10609_v51  ;;  %v10813_v30 = vpop.eup %7443  ;;  %v3547_v50 = vpack.c.bf16 %v10804_v25, %v10707_v2  ;;  %7465 = vpow2.f32 %v2951_v17  ;;  %v13642_v9 = vld [vmem:[#allocation265_spill] sm:$0xff]  ;;  %v2697_v51 = vsub.f32 %v13643_v0, %v10768_v56 }
 0x6ae   : > { %v10819_v38 = vpop.eup %7445  ;;  %7467 = vpow2.f32 %v2893_v23  ;;  %v2977_v0 = vmul.f32 1.442695, %v2733_v15 }
 0x6af   : > { %v10826_v6 = vpop.eup %7447  ;;  %3674 = vmatprep.mubr.bf16.mxu0 %v3547_v50  ;;  %v3549_v17 = vpack.c.bf16 %v10819_v38, %v10718_v58  ;;  %7469 = vpow2.f32 %v2895_v7  ;;  %v2903_v53 = vmul.f32 1.442695, %v2696_v29  ;;  %v3548_v50 = vpack.c.bf16 %v10813_v30, %v10712_v42  ;;  %v2580_v59 = vpop.permute.xlu0 %2579 }
 0x6b0   : > { %3093 = vadd.xlane.f32.xlu0 %v10612_v55  ;;  %v10834_v34 = vpop.eup %7449  ;;  %v13646_v55 = vld [vmem:[#allocation235_spill] sm:$0xff]  ;;  %7471 = vpow2.f32 %v2897_v44  ;;  %v3125_v7 = vadd.f32 %v10677_v43, %v10674_v49  ;;  %v2905_v15 = vmul.f32 1.442695, %v2697_v51  ;;  %v3135_v44 = vadd.f32 %v10729_v33, %v10725_v16  ;;  %v13648_v43 = vld [vmem:[#allocation241_spill] sm:$0xff] }
 0x6b1   : > { %v2700_v40 = vsub.f32 %v13646_v55, %v10768_v56  ;;  %3118 = vadd.xlane.f32.xlu1 %v10620_v46  ;;  %v10839_v23 = vpop.eup %7451  ;;  %3835 = vmatprep.mubr.bf16.mxu1 %v3549_v17  ;;  %7473 = vpow2.f32 %v2899_v37  ;;  %v13647_v56 = vld [vmem:[#allocation240_spill] sm:$0xff]  ;;  %v2907_v17 = vmul.f32 1.442695, %v2698_v8  ;;  %v2909_v55 = vmul.f32 1.442695, %v2699_v41 }
 0x6b2   : > { %v10847_v29 = vpop.eup %7453  ;;  %v2705_v46 = vsub.f32 %v13647_v56, %v10815_v20  ;;  %7475 = vpow2.f32 %v2901_v26  ;;  %3836 = vmatmul.mubr.bf16.gmra.mrb[32].mxu1 %v3548_v50  ;;  %v3126_v49 = vadd.f32 %v10680_v39, %v3125_v7  ;;  %v2706_v51 = vsub.f32 %v13648_v43, %v10815_v20  ;;  %v13651_v43 = vld [vmem:[#allocation252_spill] sm:$0xff] }
 0x6b3   : > { %v10854_v21 = vpop.eup %7455  ;;  %3675 = vmatmul.mubr.bf16.gmra.mrb[32].mxu0 %v3546_v63  ;;  %7477 = vpow2.f32 %v2903_v53  ;;  %v3130_v16 = vadd.f32 %v10691_v22, %v10686_v60  ;;  %v2911_v41 = vmul.f32 1.442695, %v2700_v40  ;;  %v3136_v8 = vadd.f32 %v10734_v47, %v3135_v44  ;;  %v13650_v63 = vld [vmem:[#allocation243_spill] sm:$0xff]  ;;  %v13652_v40 = vld [vmem:[#allocation253_spill] sm:$0xff]  ;;  %v13653_v22 = vld [vmem:[#allocation254_spill] sm:$0xff]  ;;  %v10886_v44 = vpop.permute.xlu0 %2589 }
 0x6b4   : > { %3103 = vadd.xlane.f32.xlu0 %v10614_v10  ;;  %v10857_v37 = vpop.eup %7457  ;;  %v13649_v10 = vld [vmem:[#allocation242_spill] sm:$0xff]  ;;  %v3127_v26 = vadd.f32 %v10683_v48, %v3126_v49  ;;  %v3145_v39 = vadd.f32 %v10707_v2, %v10700_v19  ;;  %7479 = vpow2.f32 %v10802_v14  ;;  %v2708_v50 = vsub.f32 %v13650_v63, %v10815_v20 }
 0x6b5   : > { %v2707_v56 = vsub.f32 %v13649_v10, %v10815_v20  ;;  %v10865_v33 = vpop.eup %7459  ;;  %v2921_v7 = vmul.f32 1.442695, %v2705_v46  ;;  %v2713_v10 = vsub.f32 %v13651_v43, %v2580_v59  ;;  %7481 = vpow2.f32 %v10806_v61 }
 0x6b6   : > { %v7462_v53 = vpop.eup %7461  ;;  %v2714_v48 = vsub.f32 %v13652_v40, %v2580_v59  ;;  %v2715_v47 = vsub.f32 %v13653_v22, %v2580_v59  ;;  %3128 = vadd.xlane.f32.xlu1 %v3127_v26  ;;  %v3140_v14 = vadd.f32 %v10753_v4, %v10746_v5  ;;  %7483 = vpow2.f32 %v2977_v0  ;;  %v13654_v4 = vld [vmem:[#allocation255_spill] sm:$0xff] }
 0x6b7   : > { %v10876_v60 = vpop.eup %7463  ;;  %v2923_v2 = vmul.f32 1.442695, %v2706_v51  ;;  %v2925_v20 = vmul.f32 1.442695, %v2707_v56  ;;  %v3131_v46 = vadd.f32 %v10694_v27, %v3130_v16  ;;  %7485 = vpow2.f32 %v2905_v15 }
 0x6b8   : > { %3113 = vadd.xlane.f32.xlu0 %v10618_v12  ;;  %v10883_v19 = vpop.eup %7465  ;;  %v3137_v61 = vadd.f32 %v10741_v3, %v3136_v8  ;;  %v3146_v49 = vadd.f32 %v10712_v42, %v3145_v39  ;;  %v3155_v26 = vadd.f32 %v7462_v53, %v10865_v33  ;;  %7487 = vpow2.f32 %v2907_v17  ;;  %v13655_v42 = vld [vmem:[#allocation256_spill] sm:$0xff] }
 0x6b9   : > { %v7468_v12 = vpop.eup %7467  ;;  %v2927_v5 = vmul.f32 1.442695, %v2708_v50  ;;  %v2716_v43 = vsub.f32 %v13654_v4, %v2580_v59  ;;  %v2937_v0 = vmul.f32 1.442695, %v2713_v10  ;;  %7489 = vpow2.f32 %v2909_v55 }
 0x6ba   : > { %v7470_v63 = vpop.eup %7469  ;;  %v2939_v27 = vmul.f32 1.442695, %v2714_v48  ;;  %v2941_v15 = vmul.f32 1.442695, %v2715_v47  ;;  %3138 = vadd.xlane.f32.xlu1 %v3137_v61  ;;  %v3141_v56 = vadd.f32 %v10755_v13, %v3140_v14  ;;  %7491 = vpow2.f32 %v2911_v41  ;;  %v13656_v41 = vld [vmem:[#allocation257_spill] sm:$0xff] }
 0x6bb   : > { %v7472_v51 = vpop.eup %7471  ;;  %v2721_v16 = vsub.f32 %v13655_v42, %v10886_v44  ;;  %v3132_v17 = vadd.f32 %v10697_v18, %v3131_v46  ;;  %v3150_v59 = vadd.f32 %v10804_v25, %v10796_v54  ;;  %7493 = vpow2.f32 %v2921_v7  ;;  %v13657_v18 = vld [vmem:[#allocation258_spill] sm:$0xff] }
 0x6bc   : > { %3123 = vadd.xlane.f32.xlu0 %v10626_v62  ;;  %v7474_v3 = vpop.eup %7473  ;;  %v3147_v55 = vadd.f32 %v10718_v58, %v3146_v49  ;;  %v3156_v39 = vadd.f32 %v7468_v12, %v3155_v26  ;;  %7495 = vpow2.f32 %v2923_v2  ;;  %v2943_v13 = vmul.f32 1.442695, %v2716_v43 }
 0x6bd   : > { %v7476_v8 = vpop.eup %7475  ;;  %v3551_v62 = vpack.c.bf16 %v7474_v3, %v7462_v53  ;;  %v2722_v10 = vsub.f32 %v13656_v41, %v10886_v44  ;;  %v3550_v40 = vpack.c.bf16 %v7472_v51, %v10865_v33  ;;  %7497 = vpow2.f32 %v2925_v20 }
 0x6be   : > { %v10900_v50 = vpop.eup %7477  ;;  %v2723_v54 = vsub.f32 %v13657_v18, %v10886_v44  ;;  %3148 = vadd.xlane.f32.xlu1 %v3147_v55  ;;  %v3142_v58 = vadd.f32 %v10757_v24, %v3141_v56  ;;  %7499 = vpow2.f32 %v2927_v5  ;;  %v3552_v7 = vpack.c.bf16 %v7476_v8, %v7468_v12  ;;  %v13659_v24 = vld [vmem:[#allocation266_spill] sm:$0xff]  ;;  %v13660_v12 = vld [vmem:[#allocation259_spill] sm:$0xff] }
 0x6bf   : > { %3682 = vmatprep.mubr.bf16.mxu0 %v3551_v62  ;;  %v3553_v25 = vpack.c.bf16 %v10900_v50, %v7470_v63  ;;  %v10909_v53 = vpop.eup %7479  ;;  %v3151_v48 = vadd.f32 %v10813_v30, %v3150_v59  ;;  %v3160_v22 = vadd.f32 %v7474_v3, %v7472_v51  ;;  %v13658_v47 = vsub.f32 %v13638_v45, %v10750_v1  ;;  %v13663_v3 = vld [vmem:[#allocation267_spill] sm:$0xff] }
 0x6c0   : > { %3133 = vadd.xlane.f32.xlu0 %v3132_v17  ;;  %3683 = vmatmul.mubr.bf16.gmra.mrb[36].mxu0 %v3550_v40  ;;  %v10912_v33 = vpop.eup %7481  ;;  %7501 = vpow2.f32 %v2937_v0  ;;  %v2953_v2 = vmul.f32 1.442695, %v2721_v16  ;;  %v3157_v20 = vadd.f32 %v7470_v63, %v3156_v39  ;;  %v2735_v61 = vsub.f32 %v13659_v24, %v10785_v31 }
 0x6c1   : > { %v2965_v14 = vmul.f32 1.442695, %v13658_v47  ;;  %3843 = vmatprep.mubr.bf16.mxu1 %v3553_v25  ;;  %v10917_v46 = vpop.eup %7483  ;;  %7503 = vpow2.f32 %v2939_v27  ;;  %v2724_v30 = vsub.f32 %v13660_v12, %v10886_v44  ;;  %v2955_v49 = vmul.f32 1.442695, %v2722_v10 }
 0x6c2   : > { %3844 = vmatmul.mubr.bf16.gmra.mrb[36].mxu1 %v3552_v7  ;;  %v7486_v26 = vpop.eup %7485  ;;  %v13661_v45 = vsub.f32 %v13639_v32, %v10750_v1  ;;  %v13662_v63 = vsub.f32 %v13642_v9, %v10785_v31  ;;  %7505 = vpow2.f32 %v2941_v15  ;;  %3158 = vadd.xlane.f32.xlu1 %v3157_v20  ;;  %v3170_v43 = vadd.f32 %v10773_v28, %v10764_v11 }
 0x6c3   : > { %v7488_v0 = vpop.eup %7487  ;;  %7507 = vpow2.f32 %v2943_v13  ;;  %v2957_v44 = vmul.f32 1.442695, %v2723_v54  ;;  %v3152_v51 = vadd.f32 %v10819_v38, %v3151_v48  ;;  %v3161_v27 = vadd.f32 %v7476_v8, %v3160_v22 }
 0x6c4   : > { %3143 = vadd.xlane.f32.xlu0 %v3142_v58  ;;  %v2967_v5 = vmul.f32 1.442695, %v13661_v45  ;;  %v2979_v4 = vmul.f32 1.442695, %v13662_v63  ;;  %v7490_v56 = vpop.eup %7489  ;;  %v2736_v32 = vsub.f32 %v13663_v3, %v10785_v31  ;;  %7509 = vpow2.f32 %v2953_v2 }
 0x6c5   : > { %v3555_v1 = vpack.c.bf16 %v10773_v28, %v7488_v0  ;;  %v3165_v9 = vadd.f32 %v7488_v0, %v7486_v26  ;;  %v7492_v42 = vpop.eup %7491  ;;  %v2981_v15 = vmul.f32 1.442695, %v2735_v61  ;;  %7511 = vpow2.f32 %v2955_v49 }
 0x6c6   : > { %v2959_v16 = vmul.f32 1.442695, %v2724_v30  ;;  %v3554_v17 = vpack.c.bf16 %v10764_v11, %v7486_v26  ;;  %v7494_v59 = vpop.eup %7493  ;;  %7513 = vpow2.f32 %v2979_v4  ;;  %v3557_v38 = vpack.c.bf16 %v10791_v52, %v7492_v42 }
 0x6c7   : > { %3690 = vmatprep.mubr.bf16.mxu0 %v3555_v1  ;;  %v3166_v8 = vadd.f32 %v7490_v56, %v3165_v9  ;;  %v3171_v62 = vadd.f32 %v10781_v35, %v3170_v43  ;;  %v7496_v31 = vpop.eup %7495  ;;  %7515 = vpow2.f32 %v2957_v44  ;;  %v3556_v28 = vpack.c.bf16 %v10781_v35, %v7490_v56 }
 0x6c8   : > { %3153 = vadd.xlane.f32.xlu0 %v3152_v51  ;;  %3691 = vmatmul.mubr.bf16.gmra.mrb[40].mxu0 %v3554_v17  ;;  %v3162_v55 = vadd.f32 %v10900_v50, %v3161_v27  ;;  %v3180_v39 = vadd.f32 %v10834_v34, %v10826_v6  ;;  %v7498_v11 = vpop.eup %7497  ;;  %7517 = vpow2.f32 %v2965_v14  ;;  %v3559_v13 = vpack.c.bf16 %v10834_v34, %v7496_v31 }
 0x6c9   : > { %3851 = vmatprep.mubr.bf16.mxu1 %v3557_v38  ;;  %v3167_v41 = vadd.f32 %v7492_v42, %v3166_v8  ;;  %v3175_v10 = vadd.f32 %v7496_v31, %v7494_v59  ;;  %v7500_v40 = vpop.eup %7499  ;;  %7519 = vpow2.f32 %v2959_v16  ;;  %v3172_v25 = vadd.f32 %v10791_v52, %v3171_v62  ;;  %v13666_v62 = vld [vmem:[#allocation313_spill] sm:$0xff] }
 0x6ca   : > { %3852 = vmatmul.mubr.bf16.gmra.mrb[40].mxu1 %v3556_v28  ;;  %v7502_v18 = vpop.eup %7501  ;;  %3698 = vmatprep.mubr.bf16.mxu0 %v3559_v13  ;;  %v3561_v35 = vpack.c.bf16 %v10847_v29, %v7500_v40  ;;  %7521 = vpow2.f32 %v2967_v5  ;;  %v3181_v58 = vadd.f32 %v10839_v23, %v3180_v39  ;;  %v3190_v34 = vadd.f32 %v10857_v37, %v10854_v21  ;;  %v13667_v28 = vld [vmem:[#allocation322_spill] sm:$0xff] }
 0x6cb   : > { %3168 = vadd.xlane.f32.xlu1 %v3167_v41  ;;  %v3176_v50 = vadd.f32 %v7498_v11, %v3175_v10  ;;  %v7504_v54 = vpop.eup %7503  ;;  %7523 = vpow2.f32 %v2981_v15  ;;  %v2983_v48 = vmul.f32 1.442695, %v2736_v32  ;;  %v3558_v2 = vpack.c.bf16 %v10826_v6, %v7494_v59  ;;  %v13664_v59 = vld [vmem:[#allocation309_spill] sm:$0xff] }
 0x6cc   : > { %3163 = vadd.xlane.f32.xlu0 %v3162_v55  ;;  %v7506_v7 = vpop.eup %7505  ;;  %3859 = vmatprep.mubr.bf16.mxu1 %v3561_v35  ;;  %v3185_v47 = vadd.f32 %v7504_v54, %v7502_v18  ;;  %v3563_v24 = vpack.c.bf16 %v10857_v37, %v7504_v54  ;;  %v3560_v12 = vpack.c.bf16 %v10839_v23, %v7498_v11 }
 0x6cd   : > { %v3177_v22 = vadd.f32 %v7500_v40, %v3176_v50  ;;  %v7508_v14 = vpop.eup %7507  ;;  %v3182_v30 = vadd.f32 %v10847_v29, %v3181_v58  ;;  %v3191_v49 = vadd.f32 %v10876_v60, %v3190_v34  ;;  %v3200_v26 = vadd.f32 %v10912_v33, %v10909_v53  ;;  %v13670_v50 = vld [vmem:[#allocation323_spill] sm:$0xff] }
 0x6ce   : > { %v7510_v20 = vpop.eup %7509  ;;  %v3186_v52 = vadd.f32 %v7506_v7, %v3185_v47  ;;  %7525 = vpow2.f32 %v2983_v48  ;;  %v3565_v6 = vpack.c.bf16 %v10883_v19, %v7508_v14  ;;  %v3562_v56 = vpack.c.bf16 %v10854_v21, %v7502_v18  ;;  %v13669_v18 = vld [vmem:[#allocation317_spill] sm:$0xff] }
 0x6cf   : > { %3178 = vadd.xlane.f32.xlu1 %v3177_v22  ;;  %v7512_v61 = vpop.eup %7511  ;;  %v3192_v43 = vadd.f32 %v10883_v19, %v3191_v49  ;;  %v3564_v1 = vpack.c.bf16 %v10876_v60, %v7506_v7  ;;  %v3566_v21 = vpack.c.bf16 %v10909_v53, %v7510_v20  ;;  %v13665_v60 = vld [vmem:[#allocation310_spill] sm:$0xff]  ;;  %v13668_v53 = vld [vmem:[#allocation316_spill] sm:$0xff] }
 0x6d0   : > { %3173 = vadd.xlane.f32.xlu0 %v3172_v25  ;;  %3699 = vmatmul.mubr.bf16.gmra.mrb[44].mxu0 %v3558_v2  ;;  %v10955_v45 = vpop.eup %7513  ;;  %v3187_v37 = vadd.f32 %v7508_v14, %v3186_v52  ;;  %v3195_v5 = vadd.f32 %v7512_v61, %v7510_v20  ;;  %v3567_v32 = vpack.c.bf16 %v10912_v33, %v7512_v61  ;;  %v13671_v14 = vld [vmem:[#allocation329_spill] sm:$0xff]  ;;  %v13673_v52 = vld [vmem:[#allocation335_spill] sm:$0xff] }
 0x6d1   : > { %3706 = vmatprep.mubr.bf16.mxu0 %v3563_v24  ;;  %v7516_v63 = vpop.eup %7515  ;;  %v3210_v44 = vadd.f32 %v10955_v45, %v10917_v46  ;;  %v13672_v20 = vld [vmem:[#allocation333_spill] sm:$0xff] }
 0x6d2   : > { %3860 = vmatmul.mubr.bf16.gmra.mrb[44].mxu1 %v3560_v12  ;;  %v7518_v4 = vpop.eup %7517  ;;  %v3196_v23 = vadd.f32 %v7516_v63, %v3195_v5 }
 0x6d3   : > { %3867 = vmatprep.mubr.bf16.mxu1 %v3565_v6  ;;  %3188 = vadd.xlane.f32.xlu1 %v3187_v37  ;;  %v7520_v29 = vpop.eup %7519  ;;  %v3201_v0 = vadd.f32 %v7518_v4, %v3200_v26  ;;  %v3568_v17 = vpack.c.bf16 %v7518_v4, %v7516_v63 }
 0x6d4   : > { %3183 = vadd.xlane.f32.xlu0 %v3182_v30  ;;  %v3197_v51 = vadd.f32 %v7520_v29, %v3196_v23  ;;  %v7522_v27 = vpop.eup %7521 }
 0x6d5   : > { %v10962_v3 = vpop.eup %7523  ;;  %v3202_v9 = vadd.f32 %v7522_v27, %v3201_v0  ;;  %v3569_v42 = vpack.c.bf16 %v7522_v27, %v7520_v29 }
 0x6d6   : > { %v3211_v19 = vadd.f32 %v10962_v3, %v3210_v44 }
 0x6d7   : > { %3198 = vadd.xlane.f32.xlu1 %v3197_v51 }
 0x6d8   : > { %3193 = vadd.xlane.f32.xlu0 %v3192_v43  ;;  %3707 = vmatmul.mubr.bf16.gmra.mrb[48].mxu0 %v3562_v56  ;;  %v7526_v15 = vpop.eup %7525 }
 0x6d9   : > { %3714 = vmatprep.mubr.bf16.mxu0 %v3567_v32  ;;  %v3212_v16 = vadd.f32 %v7526_v15, %v3211_v19 }
 0x6da   : > { %3868 = vmatmul.mubr.bf16.gmra.mrb[48].mxu1 %v3564_v1 }
 0x6db   : > { %3875 = vmatprep.mubr.bf16.mxu1 %v3569_v42 }
 0x6dc   : > { %3203 = vadd.xlane.f32.xlu0 %v3202_v9 }
 0x6e0   : > { %3213 = vadd.xlane.f32.xlu0 %v3212_v16  ;;  %3715 = vmatmul.mubr.bf16.gmra.mrb[52].mxu0 %v3566_v21 }
 0x6e2   : > { %3876 = vmatmul.mubr.bf16.gmra.mrb[52].mxu1 %v3568_v17 }
 0x6f8   : > { %v2600_v33 = vpop.permute.xlu0 %2599 }
 0x6f9   : > { %v2729_v38 = vsub.f32 %v13664_v59, %v2600_v33  ;;  %v2730_v8 = vsub.f32 %v13665_v60, %v2600_v33  ;;  %v2731_v31 = vsub.f32 %v13666_v62, %v2600_v33  ;;  %v2732_v55 = vsub.f32 %v13667_v28, %v2600_v33  ;;  %v13674_v59 = vld [vmem:[#allocation272_spill] sm:$0xff]  ;;  %v13678_v28 = vld [vmem:[#allocation270_spill] sm:$0xff] }
 0x6fb   : > { %v2969_v39 = vmul.f32 1.442695, %v2729_v38  ;;  %v2971_v11 = vmul.f32 1.442695, %v2730_v8  ;;  %v2973_v13 = vmul.f32 1.442695, %v2731_v31 }
 0x6fc   : > { %v2975_v41 = vmul.f32 1.442695, %v2732_v55  ;;  %v2615_v10 = vpop.permute.xlu1 %2614  ;;  %v13675_v38 = vld [vmem:[#allocation274_spill] sm:$0xff]  ;;  %v13677_v31 = vld [vmem:[#allocation268_spill] sm:$0xff] }
 0x6fd   : > { %7527 = vpow2.f32 %v2969_v39  ;;  %v2741_v40 = vsub.f32 %v13668_v53, %v2615_v10  ;;  %v2742_v35 = vsub.f32 %v13669_v18, %v2615_v10  ;;  %v2743_v54 = vsub.f32 %v13670_v50, %v2615_v10  ;;  %v13683_v53 = vld [vmem:[#allocation269_spill] sm:$0xff]  ;;  %v13686_v50 = vld [vmem:[#allocation280_spill] sm:$0xff] }
 0x6fe   : > { %7529 = vpow2.f32 %v2971_v11  ;;  %v2744_v25 = vsub.f32 %v10367_v36, %v2615_v10  ;;  %v13676_v60 = vsub.f32 %v13674_v59, %v13675_v38  ;;  %v13679_v55 = vsub.f32 %v13677_v31, %v13678_v28  ;;  %v13680_v11 = vld [vmem:[#allocation276_spill] sm:$0xff]  ;;  %v13708_v31 = vld [vmem:[#allocation287_spill] sm:$0xff] }
 0x6ff   : > { %7531 = vpow2.f32 %v2973_v13  ;;  %v2993_v58 = vmul.f32 1.442695, %v2741_v40  ;;  %v2995_v34 = vmul.f32 1.442695, %v2742_v35  ;;  %v2997_v7 = vmul.f32 1.442695, %v2743_v54 }
 0x700   : > { %7533 = vpow2.f32 %v2975_v41  ;;  %v2999_v48 = vmul.f32 1.442695, %v2744_v25  ;;  %v2395_v8 = vmul.f32 1.442695, %v13676_v60  ;;  %v2393_v39 = vmul.f32 1.442695, %v13679_v55 }
 0x701   : > { %7535 = vpow2.f32 %v2993_v58  ;;  %v13681_v13 = vld [vmem:[#allocation278_spill] sm:$0xff]  ;;  %v13684_v40 = vld [vmem:[#allocation271_spill] sm:$0xff] }
 0x702   : > { %7537 = vpow2.f32 %v2995_v34  ;;  %v13682_v41 = vsub.f32 %v13680_v11, %v13681_v13  ;;  %v13685_v18 = vsub.f32 %v13683_v53, %v13684_v40  ;;  %v13687_v54 = vld [vmem:[#allocation282_spill] sm:$0xff]  ;;  %v13689_v34 = vld [vmem:[#allocation273_spill] sm:$0xff]  ;;  %v3005_v13 = vld [vmem:[#allocation4 + $0x20] sm:$0xff] }
 0x703   : > { %7539 = vpow2.f32 %v2997_v7  ;;  %v13688_v25 = vsub.f32 %v13686_v50, %v13687_v54  ;;  %v13690_v7 = vld [vmem:[#allocation275_spill] sm:$0xff]  ;;  %v13711_v53 = vld [vmem:[#allocation298_spill] sm:$0xff] }
 0x704   : > { %7541 = vpow2.f32 %v2999_v48  ;;  %v2610_v22 = vpop.permute.xlu0 %2609  ;;  %v2401_v10 = vmul.f32 1.442695, %v13682_v41  ;;  %v2397_v35 = vmul.f32 1.442695, %v13685_v18  ;;  %v13691_v48 = vsub.f32 %v13689_v34, %v13690_v7  ;;  %v3001_v41 = vld [vmem:[#allocation4] sm:$0xff] }
 0x705   : > { %v2737_v47 = vsub.f32 %v10376_v57, %v2610_v22  ;;  %v2738_v2 = vsub.f32 %v13671_v14, %v2610_v22  ;;  %v2739_v24 = vsub.f32 %v13672_v20, %v2610_v22  ;;  %v2740_v61 = vsub.f32 %v13673_v52, %v2610_v22  ;;  %v13693_v14 = vld [vmem:[#allocation286_spill] sm:$0xff]  ;;  %v13695_v52 = vld [vmem:[#allocation277_spill] sm:$0xff] }
 0x706   : > { %v2405_v58 = vmul.f32 1.442695, %v13688_v25  ;;  %v2399_v22 = vmul.f32 1.442695, %v13691_v48 }
 0x707   : > { %v7528_v36 = vpop.eup %7527  ;;  %v2985_v30 = vmul.f32 1.442695, %v2737_v47  ;;  %v2987_v49 = vmul.f32 1.442695, %v2738_v2  ;;  %v2989_v26 = vmul.f32 1.442695, %v2739_v24 }
 0x708   : > { %v7530_v12 = vpop.eup %7529  ;;  %v3570_v6 = vpack.c.bf16 %v10917_v46, %v7528_v36  ;;  %v2991_v5 = vmul.f32 1.442695, %v2740_v61  ;;  %v13692_v47 = vld [vmem:[#allocation284_spill] sm:$0xff]  ;;  %v13696_v61 = vld [vmem:[#allocation279_spill] sm:$0xff] }
 0x709   : > { %v7532_v37 = vpop.eup %7531  ;;  %v3571_v63 = vpack.c.bf16 %v10955_v45, %v7530_v12  ;;  %v3205_v4 = vadd.f32 %v7530_v12, %v7528_v36  ;;  %7543 = vpow2.f32 %v2985_v30  ;;  %v13694_v2 = vsub.f32 %v13692_v47, %v13693_v14 }
 0x70a   : > { %v7534_v23 = vpop.eup %7533  ;;  %v3572_v57 = vpack.c.bf16 %v10962_v3, %v7532_v37  ;;  %7545 = vpow2.f32 %v2987_v49  ;;  %v13697_v36 = vsub.f32 %v13695_v52, %v13696_v61 }
 0x70b   : > { %v7536_v29 = vpop.eup %7535  ;;  %3722 = vmatprep.mubr.bf16.mxu0 %v3571_v63  ;;  %v3573_v43 = vpack.c.bf16 %v7526_v15, %v7534_v23  ;;  %v3206_v0 = vadd.f32 %v7532_v37, %v3205_v4  ;;  %7547 = vpow2.f32 %v2989_v26  ;;  %v2409_v20 = vmul.f32 1.442695, %v13694_v2  ;;  %v3002_v26 = vld [vmem:[#allocation4 + $0x8] sm:$0xff]  ;;  %v13699_v37 = vld [vmem:[#allocation290_spill] sm:$0xff] }
 0x70c   : > { %v7538_v44 = vpop.eup %7537  ;;  %3723 = vmatmul.mubr.bf16.gmra.mrb[56].mxu0 %v3570_v6  ;;  %7549 = vpow2.f32 %v2991_v5  ;;  %v2403_v12 = vmul.f32 1.442695, %v13697_v36  ;;  %v13698_v6 = vld [vmem:[#allocation288_spill] sm:$0xff] }
 0x70d   : > { %3883 = vmatprep.mubr.bf16.mxu1 %v3573_v43  ;;  %v3207_v46 = vadd.f32 %v7534_v23, %v3206_v0  ;;  %v3220_v51 = vadd.f32 %v7538_v44, %v7536_v29  ;;  %v7540_v27 = vpop.eup %7539  ;;  %7551 = vpow2.f32 %v2395_v8  ;;  %v13700_v5 = vsub.f32 %v13698_v6, %v13699_v37  ;;  %v13716_v37 = vld [vmem:[#allocation300_spill] sm:$0xff] }
 0x70e   : > { %3884 = vmatmul.mubr.bf16.gmra.mrb[56].mxu1 %v3572_v57  ;;  %v7542_v45 = vpop.eup %7541  ;;  %7553 = vpow2.f32 %v2393_v39 }
 0x70f   : > { %3208 = vadd.xlane.f32.xlu1 %v3207_v46  ;;  %v3221_v56 = vadd.f32 %v7540_v27, %v3220_v51  ;;  %7555 = vpow2.f32 %v2401_v10  ;;  %v2413_v63 = vmul.f32 1.442695, %v13700_v5  ;;  %v13710_v10 = vld [vmem:[#allocation296_spill] sm:$0xff]  ;;  %v13717_v5 = vld [vmem:[#allocation302_spill] sm:$0xff] }
 0x710   : > { %7557 = vpow2.f32 %v2397_v35  ;;  %v13712_v40 = vsub.f32 %v13710_v10, %v13711_v53 }
 0x711   : > { %v3222_v32 = vadd.f32 %v7542_v45, %v3221_v56  ;;  %7559 = vpow2.f32 %v2405_v58  ;;  %v13701_v56 = vld [vmem:[#allocation281_spill] sm:$0xff] }
 0x712   : > { %7561 = vpow2.f32 %v2399_v22  ;;  %v2421_v18 = vmul.f32 1.442695, %v13712_v40 }
 0x713   : > { %3223 = vadd.xlane.f32.xlu0 %v3222_v32  ;;  %v7544_v3 = vpop.eup %7543  ;;  %7563 = vpow2.f32 %v2409_v20  ;;  %v13702_v32 = vld [vmem:[#allocation283_spill] sm:$0xff]  ;;  %v13713_v20 = vld [vmem:[#allocation289_spill] sm:$0xff] }
 0x714   : > { %v7546_v1 = vpop.eup %7545  ;;  %v3574_v9 = vpack.c.bf16 %v7536_v29, %v7544_v3  ;;  %7565 = vpow2.f32 %v2403_v12 }
 0x715   : > { %v7548_v19 = vpop.eup %7547  ;;  %v3575_v42 = vpack.c.bf16 %v7538_v44, %v7546_v1  ;;  %v3215_v15 = vadd.f32 %v7546_v1, %v7544_v3  ;;  %v13703_v3 = vsub.f32 %v13701_v56, %v13702_v32  ;;  %7567 = vpow2.f32 %v2413_v63  ;;  %v3007_v56 = vld [vmem:[#allocation4 + $0x30] sm:$0xff] }
 0x716   : > { %v7550_v16 = vpop.eup %7549  ;;  %v3576_v21 = vpack.c.bf16 %v7540_v27, %v7548_v19  ;;  %v13718_v63 = vsub.f32 %v13716_v37, %v13717_v5  ;;  %v3003_v32 = vld [vmem:[#allocation4 + $0x10] sm:$0xff]  ;;  %v13735_v5 = vld [vmem:[#allocation320_spill] sm:$0xff] }
 0x717   : > { %3730 = vmatprep.mubr.bf16.mxu0 %v3575_v42  ;;  %v3577_v17 = vpack.c.bf16 %v7542_v45, %v7550_v16  ;;  %v3216_v33 = vadd.f32 %v7548_v19, %v3215_v15  ;;  %v7552_v24 = vpop.eup %7551  ;;  %v2407_v1 = vmul.f32 1.442695, %v13703_v3  ;;  %v13704_v15 = vld [vmem:[#allocation292_spill] sm:$0xff]  ;;  %v13734_v37 = vld [vmem:[#allocation318_spill] sm:$0xff] }
 0x718   : > { %3731 = vmatmul.mubr.bf16.gmra.mrb[60].mxu0 %v3574_v9  ;;  %v7554_v57 = vpop.eup %7553  ;;  %v3034_v45 = vmul.f32 %v7552_v24, %v3002_v26  ;;  %v13722_v3 = vld [vmem:[#allocation304_spill] sm:$0xff] }
 0x719   : > { %3891 = vmatprep.mubr.bf16.mxu1 %v3577_v17  ;;  %v3217_v62 = vadd.f32 %v7550_v16, %v3216_v33  ;;  %v7556_v46 = vpop.eup %7555  ;;  %v13705_v16 = vld [vmem:[#allocation294_spill] sm:$0xff]  ;;  %7569 = vpow2.f32 %v2407_v1  ;;  %v3033_v2 = vmul.f32 %v7554_v57, %v3001_v41  ;;  %v13726_v41 = vld [vmem:[#allocation299_spill] sm:$0xff] }
 0x71a   : > { %3892 = vmatmul.mubr.bf16.gmra.mrb[60].mxu1 %v3576_v21  ;;  %v13706_v21 = vsub.f32 %v13704_v15, %v13705_v16  ;;  %v11018_v59 = vpop.eup %7557  ;;  %v3037_v14 = vmul.f32 %v7556_v46, %v3005_v13  ;;  %v13723_v1 = vld [vmem:[#allocation306_spill] sm:$0xff]  ;;  %v13725_v13 = vld [vmem:[#allocation297_spill] sm:$0xff] }
 0x71b   : > { %3218 = vadd.xlane.f32.xlu1 %v3217_v62  ;;  %v11022_v8 = vpop.eup %7559  ;;  %v13707_v62 = vld [vmem:[#allocation285_spill] sm:$0xff]  ;;  %v13727_v10 = vsub.f32 %v13725_v13, %v13726_v41  ;;  %v3011_v13 = vld [vmem:[#allocation4 + $0x50] sm:$0xff] }
 0x71c   : > { %v2417_v17 = vmul.f32 1.442695, %v13706_v21  ;;  %v13709_v28 = vsub.f32 %v13707_v62, %v13708_v31  ;;  %v11033_v54 = vpop.eup %7561  ;;  %v3006_v41 = vld [vmem:[#allocation4 + $0x28] sm:$0xff] }
 0x71d   : > { %v11035_v48 = vpop.eup %7563  ;;  %v2423_v53 = vmul.f32 1.442695, %v13727_v10 }
 0x71e   : > { %v2411_v55 = vmul.f32 1.442695, %v13709_v28  ;;  %7571 = vpow2.f32 %v2417_v17  ;;  %v11044_v6 = vpop.eup %7565 }
 0x720   : > { %7573 = vpow2.f32 %v2411_v55 }
 0x721   : > { %7575 = vpow2.f32 %v2421_v18 }
 0x725   : > { %v6561_v30 = vpop.f32.mrb[0].mxu0 }
 0x726   : > { %v6673_v49 = vpop.f32.mrb[0].mxu1  ;;  %v6562_v4 = vpop.f32.mrb[1].mxu0 }
 0x727   : > { %v6674_v23 = vpop.f32.mrb[1].mxu1  ;;  %v6563_v29 = vadd.f32 %v6562_v4, %v6561_v30  ;;  %v6564_v0 = vpop.f32.mrb[2].mxu0  ;;  %v2425_v4 = vmul.f32 1.442695, %v13718_v63  ;;  %v13736_v63 = vsub.f32 %v13734_v37, %v13735_v5  ;;  %v3013_v37 = vld [vmem:[#allocation4 + $0x60] sm:$0xff] }
 0x728   : > { %v6675_v43 = vadd.f32 %v6674_v23, %v6673_v49  ;;  %v6676_v44 = vpop.f32.mrb[2].mxu1  ;;  %v6565_v51 = vpop.f32.mrb[3].mxu0 }
 0x729   : > { %3329 = vperm.xlu0 %7293, %v7552_v24   ;;  %v6677_v27 = vpop.f32.mrb[3].mxu1  ;;  %v6566_v19 = vadd.f32 %v6565_v51, %v6564_v0  ;;  %v13714_v24 = vld [vmem:[#allocation291_spill] sm:$0xff]  ;;  %v13719_v0 = vld [vmem:[#allocation293_spill] sm:$0xff] }
 0x72a   : > { %v11013_v9 = vadd.f32 %v6675_v43, %v6563_v29  ;;  %v6678_v42 = vadd.f32 %v6677_v27, %v6676_v44  ;;  %v13715_v52 = vsub.f32 %v13713_v20, %v13714_v24  ;;  %v11051_v43 = vpop.eup %7567  ;;  %v13720_v44 = vld [vmem:[#allocation295_spill] sm:$0xff]  ;;  %v13731_v20 = vld [vmem:[#allocation301_spill] sm:$0xff] }
 0x72b   : > { %v11063_v21 = vpop.eup %7569  ;;  %v13732_v24 = vld [vmem:[#allocation303_spill] sm:$0xff] }
 0x72c   : > { %3324 = vperm.xlu1 %7294, %v7554_v57   ;;  %v11020_v38 = vadd.f32 %v6678_v42, %v6566_v19  ;;  %v2415_v61 = vmul.f32 1.442695, %v13715_v52  ;;  %v13724_v19 = vsub.f32 %v13722_v3, %v13723_v1  ;;  %v11065_v31 = vpop.eup %7571  ;;  %v13733_v52 = vsub.f32 %v13731_v20, %v13732_v24 }
 0x72d   : > { %3344 = vperm.xlu0 %7293, %v7556_v46   ;;  %v6567_v39 = vpop.f32.mrb[4].mxu0  ;;  %v13721_v46 = vsub.f32 %v13719_v0, %v13720_v44 }
 0x72e   : > { %v3074_v33 = vpop.xlane.xlu1 %3073  ;;  %v6679_v11 = vpop.f32.mrb[4].mxu1  ;;  %7577 = vpow2.f32 %v2415_v61  ;;  %v2429_v42 = vmul.f32 1.442695, %v13724_v19  ;;  %v2427_v61 = vmul.f32 1.442695, %v13733_v52 }
 0x72f   : > { %v3226_v60 = vadd.f32 %v3074_v33, %v3034_v45  ;;  %v6568_v35 = vpop.f32.mrb[5].mxu0  ;;  %v6680_v50 = vpop.f32.mrb[5].mxu1  ;;  %v2419_v51 = vmul.f32 1.442695, %v13721_v46  ;;  %7579 = vpow2.f32 %v2425_v4  ;;  %v2437_v4 = vmul.f32 1.442695, %v13736_v63 }
 0x730   : > { %3334 = vperm.xlu1 %7294, %v11018_v59   ;;  %v6569_v25 = vadd.f32 %v6568_v35, %v6567_v39  ;;  %v6681_v58 = vadd.f32 %v6680_v50, %v6679_v11  ;;  %v6570_v34 = vpop.f32.mrb[6].mxu0  ;;  %v6682_v7 = vpop.f32.mrb[6].mxu1  ;;  %v3039_v39 = vmul.f32 %v11022_v8, %v3007_v56  ;;  %v3035_v11 = vmul.f32 %v11018_v59, %v3003_v32 }
 0x731   : > { %3259 = vst.msk [vmem:[#allocation4 + $0x8] sm:$0xff] %vm3257_vm5, %v3226_v60  ;;  %3354 = vperm.xlu0 %7293, %v11022_v8   ;;  %v6571_v22 = vpop.f32.mrb[7].mxu0  ;;  %v6683_v47 = vpop.f32.mrb[7].mxu1  ;;  %7581 = vpow2.f32 %v2419_v51  ;;  %v13728_v8 = vld [vmem:[#allocation311_spill] sm:$0xff] }
 0x732   : > { %v11040_v36 = vadd.f32 %v6681_v58, %v6569_v25  ;;  %v6572_v12 = vadd.f32 %v6571_v22, %v6570_v34  ;;  %v6684_v30 = vadd.f32 %v6683_v47, %v6682_v7  ;;  %v3089_v49 = vpop.xlane.xlu1 %3088  ;;  %v3069_v26 = vpop.xlane.xlu0 %3068  ;;  %7583 = vpow2.f32 %v2429_v42  ;;  %v13729_v34 = vld [vmem:[#allocation314_spill] sm:$0xff] }
 0x733   : > { %v3229_v23 = vadd.f32 %v3089_v49, %v3037_v14  ;;  %v3225_v57 = vadd.f32 %v3069_v26, %v3033_v2  ;;  %v11076_v58 = vpop.eup %7573  ;;  %v13730_v59 = vsub.f32 %v13728_v8, %v13729_v34  ;;  %7585 = vpow2.f32 %v2423_v53  ;;  %v3009_v49 = vld [vmem:[#allocation4 + $0x40] sm:$0xff]  ;;  %v3004_v26 = vld [vmem:[#allocation4 + $0x18] sm:$0xff] }
 0x734   : > { %3339 = vperm.xlu1 %7294, %v11033_v54   ;;  %v11049_v29 = vadd.f32 %v6684_v30, %v6572_v12  ;;  %v11083_v2 = vpop.eup %7575  ;;  %v3041_v42 = vmul.f32 %v11035_v48, %v3009_v49 }
 0x735   : > { %3364 = vperm.xlu0 %7293, %v11035_v48   ;;  %3262 = vst.msk [vmem:[#allocation4 + $0x20] sm:$0xff] %vm3257_vm5, %v3229_v23  ;;  %3258 = vst.msk [vmem:[#allocation4] sm:$0xff] %vm3257_vm5, %v3225_v57  ;;  %v6573_v27 = vpop.f32.mrb[8].mxu0  ;;  %v2433_v7 = vmul.f32 1.442695, %v13730_v59  ;;  %v13737_v23 = vld [vmem:[#allocation325_spill] sm:$0xff]  ;;  %v3043_v59 = vmul.f32 %v11051_v43, %v3011_v13 }
 0x736   : > { %v6685_v45 = vpop.f32.mrb[8].mxu1  ;;  %v6574_v15 = vpop.f32.mrb[9].mxu0  ;;  %v13738_v57 = vld [vmem:[#allocation321_spill] sm:$0xff] }
 0x737   : > { %v6686_v16 = vpop.f32.mrb[9].mxu1  ;;  %v6575_v17 = vadd.f32 %v6574_v15, %v6573_v27  ;;  %v6576_v60 = vpop.f32.mrb[10].mxu0  ;;  %7587 = vpow2.f32 %v2433_v7  ;;  %v2385_v0 = vsub.f32 %v13738_v57, %v13737_v23  ;;  %v3036_v15 = vmul.f32 %v11033_v54, %v3004_v26 }
 0x738   : > { %3349 = vperm.xlu1 %7294, %v11044_v6   ;;  %v6687_v33 = vadd.f32 %v6686_v16, %v6685_v45  ;;  %v6688_v62 = vpop.f32.mrb[10].mxu1  ;;  %v6577_v28 = vpop.f32.mrb[11].mxu0  ;;  %7589 = vpow2.f32 %v2427_v61  ;;  %v13739_v16 = vld [vmem:[#allocation305_spill] sm:$0xff]  ;;  %v3038_v7 = vmul.f32 %v11044_v6, %v3006_v41  ;;  %v3015_v41 = vld [vmem:[#allocation4 + $0x70] sm:$0xff] }
 0x739   : > { %3374 = vperm.xlu0 %7293, %v11051_v43   ;;  %v6689_v55 = vpop.f32.mrb[11].mxu1  ;;  %v6578_v18 = vadd.f32 %v6577_v28, %v6576_v60  ;;  %v3099_v50 = vpop.xlane.xlu1 %3098  ;;  %7591 = vpow2.f32 %v2437_v4  ;;  %v2441_v54 = vmul.f32 1.442695, %v2385_v0  ;;  %v3008_v43 = vld [vmem:[#allocation4 + $0x38] sm:$0xff] }
 0x73a   : > { %v11072_v40 = vadd.f32 %v6687_v33, %v6575_v17  ;;  %v6690_v35 = vadd.f32 %v6689_v55, %v6688_v62  ;;  %v3079_v25 = vpop.xlane.xlu0 %3078  ;;  %v3231_v22 = vadd.f32 %v3099_v50, %v3039_v39  ;;  %v11097_v51 = vpop.eup %7577  ;;  %v13740_v17 = vld [vmem:[#allocation307_spill] sm:$0xff]  ;;  %v13742_v50 = vld [vmem:[#allocation308_spill] sm:$0xff] }
 0x73b   : > { %v3227_v47 = vadd.f32 %v3079_v25, %v3035_v11  ;;  %v11099_v3 = vpop.eup %7579  ;;  %v13741_v33 = vsub.f32 %v13739_v16, %v13740_v17  ;;  %v13743_v25 = vld [vmem:[#allocation312_spill] sm:$0xff]  ;;  %v13752_v17 = vld [vmem:[#allocation185_spill] sm:$0xff] }
 0x73c   : > { %3359 = vperm.xlu1 %7294, %v11063_v21   ;;  %v11081_v14 = vadd.f32 %v6690_v35, %v6578_v18  ;;  %3264 = vst.msk [vmem:[#allocation4 + $0x30] sm:$0xff] %vm3257_vm5, %v3231_v22  ;;  %v11110_v10 = vpop.eup %7581  ;;  %v13744_v8 = vsub.f32 %v13742_v50, %v13743_v25  ;;  %v13745_v22 = vld [vmem:[#allocation328_spill] sm:$0xff]  ;;  %v13755_v25 = vld [vmem:[#allocation326_spill] sm:$0xff] }
 0x73d   : > { %3384 = vperm.xlu0 %7293, %v11065_v31   ;;  %3260 = vst.msk [vmem:[#allocation4 + $0x10] sm:$0xff] %vm3257_vm5, %v3227_v47  ;;  %v6579_v12 = vpop.f32.mrb[12].mxu0  ;;  %v2431_v60 = vmul.f32 1.442695, %v13741_v33  ;;  %v3109_v39 = vpop.xlane.xlu1 %3108  ;;  %v13746_v47 = vld [vmem:[#allocation331_spill] sm:$0xff]  ;;  %v13751_v16 = vld [vmem:[#allocation184_spill] sm:$0xff] }
 0x73e   : > { %v6691_v30 = vpop.f32.mrb[12].mxu1  ;;  %v6580_v44 = vpop.f32.mrb[13].mxu0  ;;  %v3233_v48 = vadd.f32 %v3109_v39, %v3041_v42  ;;  %v2435_v34 = vmul.f32 1.442695, %v13744_v8  ;;  %v13747_v20 = vsub.f32 %v13745_v22, %v13746_v47  ;;  %v3040_v42 = vmul.f32 %v11063_v21, %v3008_v43  ;;  %v13754_v50 = vld [vmem:[#allocation324_spill] sm:$0xff] }
 0x73f   : > { %v6692_v46 = vpop.f32.mrb[13].mxu1  ;;  %v6581_v27 = vadd.f32 %v6580_v44, %v6579_v12  ;;  %v6582_v56 = vpop.f32.mrb[14].mxu0  ;;  %7593 = vpow2.f32 %v2431_v60  ;;  %v13753_v33 = vsub.f32 %v13751_v16, %v13752_v17  ;;  %v13756_v8 = vsub.f32 %v13754_v50, %v13755_v25  ;;  %v13763_v50 = vld [vmem:[#allocation332_spill] sm:$0xff]  ;;  %v13764_v25 = vld [vmem:[#allocation334_spill] sm:$0xff] }
 0x740   : > { %3369 = vperm.xlu1 %7294, %v11076_v58   ;;  %v6693_v45 = vadd.f32 %v6692_v46, %v6691_v30  ;;  %v6694_v32 = vpop.f32.mrb[14].mxu1  ;;  %v6583_v1 = vpop.f32.mrb[15].mxu0  ;;  %3266 = vst.msk [vmem:[#allocation4 + $0x40] sm:$0xff] %vm3257_vm5, %v3233_v48  ;;  %v2445_v24 = vmul.f32 1.442695, %v13747_v20  ;;  %7595 = vpow2.f32 %v2441_v54  ;;  %v13748_v46 = vld [vmem:[#allocation315_spill] sm:$0xff] }
 0x741   : > { %3394 = vperm.xlu0 %7293, %v11083_v2   ;;  %v6695_v19 = vpop.f32.mrb[15].mxu1  ;;  %v6584_v28 = vadd.f32 %v6583_v1, %v6582_v56  ;;  %v3084_v11 = vpop.xlane.xlu0 %3083  ;;  %7597 = vpow2.f32 %v2435_v34  ;;  %v2449_v60 = vmul.f32 1.442695, %v13753_v33  ;;  %v2443_v34 = vmul.f32 1.442695, %v13756_v8  ;;  %v13757_v20 = vld [vmem:[#allocation188_spill] sm:$0xff] }
 0x742   : > { %v11106_v62 = vadd.f32 %v6693_v45, %v6581_v27  ;;  %v6696_v55 = vadd.f32 %v6695_v19, %v6694_v32  ;;  %v3228_v53 = vadd.f32 %v3084_v11, %v3036_v15  ;;  %v11114_v35 = vpop.eup %7583  ;;  %v3119_v52 = vpop.xlane.xlu1 %3118  ;;  %v13749_v27 = vld [vmem:[#allocation319_spill] sm:$0xff]  ;;  %7599 = vpow2.f32 %v2445_v24  ;;  %v13758_v24 = vld [vmem:[#allocation189_spill] sm:$0xff] }
 0x743   : > { %v3235_v12 = vadd.f32 %v3119_v52, %v3043_v59  ;;  %v11128_v5 = vpop.eup %7585  ;;  %v13750_v45 = vsub.f32 %v13748_v46, %v13749_v27  ;;  %v3045_v19 = vmul.f32 %v11065_v31, %v3013_v37  ;;  %v3010_v31 = vld [vmem:[#allocation4 + $0x48] sm:$0xff]  ;;  %v3047_v59 = vmul.f32 %v11083_v2, %v3015_v41  ;;  %v13760_v46 = vld [vmem:[#allocation327_spill] sm:$0xff]  ;;  %v13761_v27 = vld [vmem:[#allocation330_spill] sm:$0xff] }
 0x744   : > { %3379 = vperm.xlu1 %7294, %v11097_v51   ;;  %v11112_v18 = vadd.f32 %v6696_v55, %v6584_v28  ;;  %3261 = vst.msk [vmem:[#allocation4 + $0x18] sm:$0xff] %vm3257_vm5, %v3228_v53  ;;  %v11130_v4 = vpop.eup %7587  ;;  %v13759_v52 = vsub.f32 %v13757_v20, %v13758_v24  ;;  %v13765_v8 = vsub.f32 %v13763_v50, %v13764_v25 }
 0x745   : > { %3404 = vperm.xlu0 %7293, %v11099_v3   ;;  %v3094_v61 = vpop.xlane.xlu0 %3093  ;;  %v6585_v49 = vpop.f32.mrb[16].mxu0  ;;  %3268 = vst.msk [vmem:[#allocation4 + $0x50] sm:$0xff] %vm3257_vm5, %v3235_v12  ;;  %v2439_v56 = vmul.f32 1.442695, %v13750_v45  ;;  %v13762_v45 = vsub.f32 %v13760_v46, %v13761_v27 }
 0x746   : > { %v3230_v30 = vadd.f32 %v3094_v61, %v3038_v7  ;;  %v6697_v26 = vpop.f32.mrb[16].mxu1  ;;  %v6586_v6 = vpop.f32.mrb[17].mxu0  ;;  %v3042_v7 = vmul.f32 %v11076_v58, %v3010_v31  ;;  %v2453_v61 = vmul.f32 1.442695, %v13759_v52 }
 0x747   : > { %v6698_v63 = vpop.f32.mrb[17].mxu1  ;;  %v6587_v23 = vadd.f32 %v6586_v6, %v6585_v49  ;;  %v6588_v0 = vpop.f32.mrb[18].mxu0  ;;  %7601 = vpow2.f32 %v2439_v56  ;;  %v3017_v49 = vld [vmem:[#allocation4 + $0x80] sm:$0xff]  ;;  %v2447_v56 = vmul.f32 1.442695, %v13762_v45 }
 0x748   : > { %3389 = vperm.xlu1 %7294, %v11110_v10   ;;  %3263 = vst.msk [vmem:[#allocation4 + $0x28] sm:$0xff] %vm3257_vm5, %v3230_v30  ;;  %v6699_v57 = vadd.f32 %v6698_v63, %v6697_v26  ;;  %v6700_v44 = vpop.f32.mrb[18].mxu1  ;;  %v6589_v32 = vpop.f32.mrb[19].mxu0  ;;  %7603 = vpow2.f32 %v2449_v60  ;;  %v3012_v26 = vld [vmem:[#allocation4 + $0x58] sm:$0xff]  ;;  %v3025_v45 = vld [vmem:[#allocation4 + $0xc0] sm:$0xff] }
 0x749   : > { %3414 = vperm.xlu0 %7293, %v11114_v35   ;;  %v6701_v1 = vpop.f32.mrb[19].mxu1  ;;  %v11141_v15 = vpop.eup %7589  ;;  %v6590_v55 = vadd.f32 %v6589_v32, %v6588_v0  ;;  %7605 = vpow2.f32 %v2443_v34  ;;  %v2451_v34 = vmul.f32 1.442695, %v13765_v8 }
 0x74a   : > { %v11146_v28 = vadd.f32 %v6699_v57, %v6587_v23  ;;  %v6702_v39 = vadd.f32 %v6701_v1, %v6700_v44  ;;  %v3129_v11 = vpop.xlane.xlu1 %3128  ;;  %v3104_v13 = vpop.xlane.xlu0 %3103  ;;  %7607 = vpow2.f32 %v2453_v61 }
 0x74b   : > { %v3237_v54 = vadd.f32 %v3129_v11, %v3045_v19  ;;  %v3232_v21 = vadd.f32 %v3104_v13, %v3040_v42  ;;  %v11148_v48 = vpop.eup %7591  ;;  %v3049_v19 = vmul.f32 %v11099_v3, %v3017_v49  ;;  %v3044_v42 = vmul.f32 %v11097_v51, %v3012_v26  ;;  %v3019_v11 = vld [vmem:[#allocation4 + $0x90] sm:$0xff]  ;;  %v3014_v13 = vld [vmem:[#allocation4 + $0x68] sm:$0xff] }
 0x74c   : > { %3399 = vperm.xlu1 %7294, %v11128_v5   ;;  %v11150_v53 = vadd.f32 %v6702_v39, %v6590_v55  ;;  %v11164_v37 = vpop.eup %7593  ;;  %7609 = vpow2.f32 %v2447_v56  ;;  %v3020_v56 = vld [vmem:[#allocation4 + $0x98] sm:$0xff] }
 0x74d   : > { %3424 = vperm.xlu0 %7293, %v11130_v4   ;;  %3270 = vst.msk [vmem:[#allocation4 + $0x60] sm:$0xff] %vm3257_vm5, %v3237_v54  ;;  %3265 = vst.msk [vmem:[#allocation4 + $0x38] sm:$0xff] %vm3257_vm5, %v3232_v21  ;;  %v6591_v22 = vpop.f32.mrb[20].mxu0  ;;  %v11166_v63 = vpop.eup %7595  ;;  %v3051_v54 = vmul.f32 %v11114_v35, %v3019_v11  ;;  %v3046_v21 = vmul.f32 %v11110_v10, %v3014_v13  ;;  %7611 = vpow2.f32 %v2451_v34 }
 0x74e   : > { %v6703_v47 = vpop.f32.mrb[20].mxu1  ;;  %v3139_v12 = vpop.xlane.xlu1 %3138 }
 0x74f   : > { %v3114_v30 = vpop.xlane.xlu0 %3113  ;;  %v3239_v2 = vadd.f32 %v3139_v12, %v3047_v59  ;;  %v6592_v58 = vpop.f32.mrb[21].mxu0  ;;  %v13766_v12 = vld [vmem:[#allocation186_spill] sm:$0xff] }
 0x750   : > { %3409 = vperm.xlu1 %7294, %v11141_v15   ;;  %v3234_v43 = vadd.f32 %v3114_v30, %v3042_v7  ;;  %v6704_v6 = vpop.f32.mrb[21].mxu1  ;;  %v6593_v23 = vadd.f32 %v6592_v58, %v6591_v22  ;;  %v6594_v0 = vpop.f32.mrb[22].mxu0  ;;  %v3021_v22 = vld [vmem:[#allocation4 + $0xa0] sm:$0xff]  ;;  %v13767_v30 = vld [vmem:[#allocation187_spill] sm:$0xff]  ;;  %v3023_v58 = vld [vmem:[#allocation4 + $0xb0] sm:$0xff] }
 0x751   : > { %3434 = vperm.xlu0 %7293, %v11148_v48   ;;  %v6705_v57 = vadd.f32 %v6704_v6, %v6703_v47  ;;  %v6706_v44 = vpop.f32.mrb[22].mxu1  ;;  %3272 = vst.msk [vmem:[#allocation4 + $0x70] sm:$0xff] %vm3257_vm5, %v3239_v2  ;;  %v6595_v32 = vpop.f32.mrb[23].mxu0  ;;  %v3016_v47 = vld [vmem:[#allocation4 + $0x78] sm:$0xff]  ;;  %v3053_v10 = vmul.f32 %v11130_v4, %v3021_v22  ;;  %v13768_v49 = vsub.f32 %v13766_v12, %v13767_v30  ;;  %v3018_v6 = vld [vmem:[#allocation4 + $0x88] sm:$0xff] }
 0x752   : > { %3267 = vst.msk [vmem:[#allocation4 + $0x48] sm:$0xff] %vm3257_vm5, %v3234_v43  ;;  %v6707_v1 = vpop.f32.mrb[23].mxu1  ;;  %v11177_v16 = vpop.eup %7597  ;;  %v6596_v33 = vadd.f32 %v6595_v32, %v6594_v0  ;;  %v3048_v35 = vmul.f32 %v11128_v5, %v3016_v47  ;;  %v3055_v5 = vmul.f32 %v11148_v48, %v3023_v58  ;;  %v3050_v4 = vmul.f32 %v11141_v15, %v3018_v6  ;;  %v3028_v22 = vld [vmem:[#allocation4 + $0xd8] sm:$0xff] }
 0x753   : > { %v11179_v17 = vadd.f32 %v6705_v57, %v6593_v23  ;;  %v6708_v60 = vadd.f32 %v6707_v1, %v6706_v44  ;;  %v3149_v55 = vpop.xlane.xlu1 %3148  ;;  %v3124_v39 = vpop.xlane.xlu0 %3123  ;;  %v2455_v26 = vmul.f32 1.442695, %v13768_v49  ;;  %v3052_v48 = vmul.f32 %v11164_v37, %v3020_v56 }
 0x754   : > { %3419 = vperm.xlu1 %7294, %v11164_v37   ;;  %v11181_v41 = vpop.eup %7599  ;;  %v3241_v3 = vadd.f32 %v3149_v55, %v3049_v19  ;;  %v3236_v31 = vadd.f32 %v3124_v39, %v3044_v42  ;;  %v3057_v42 = vmul.f32 %v11166_v63, %v3025_v45  ;;  %v3022_v55 = vld [vmem:[#allocation4 + $0xa8] sm:$0xff]  ;;  %v3024_v37 = vld [vmem:[#allocation4 + $0xb8] sm:$0xff] }
 0x755   : > { %3444 = vperm.xlu0 %7293, %v11166_v63   ;;  %v11183_v51 = vadd.f32 %v6708_v60, %v6596_v33  ;;  %v7602_v20 = vpop.eup %7601  ;;  %7613 = vpow2.f32 %v2455_v26  ;;  %v3027_v60 = vld [vmem:[#allocation4 + $0xd0] sm:$0xff] }
 0x756   : > { %3274 = vst.msk [vmem:[#allocation4 + $0x80] sm:$0xff] %vm3257_vm5, %v3241_v3  ;;  %3269 = vst.msk [vmem:[#allocation4 + $0x58] sm:$0xff] %vm3257_vm5, %v3236_v31  ;;  %v11194_v61 = vpop.eup %7603  ;;  %v3059_v3 = vmul.f32 %v11181_v41, %v3027_v60  ;;  %v3054_v31 = vmul.f32 %v11177_v16, %v3022_v55  ;;  %v3056_v8 = vmul.f32 %v7602_v20, %v3024_v37 }
 0x757   : > { %v3159_v59 = vpop.xlane.xlu1 %3158  ;;  %v3134_v7 = vpop.xlane.xlu0 %3133 }
 0x758   : > { %3429 = vperm.xlu1 %7294, %v11177_v16   ;;  %v3243_v24 = vadd.f32 %v3159_v59, %v3051_v54  ;;  %v3238_v52 = vadd.f32 %v3134_v7, %v3046_v21  ;;  %v7606_v23 = vpop.eup %7605  ;;  %v3026_v59 = vld [vmem:[#allocation4 + $0xc8] sm:$0xff] }
 0x759   : > { %3454 = vperm.xlu0 %7293, %v11181_v41   ;;  %v11204_v44 = vpop.eup %7607  ;;  %v3058_v16 = vmul.f32 %v7606_v23, %v3026_v59 }
 0x75a   : > { %3276 = vst.msk [vmem:[#allocation4 + $0x90] sm:$0xff] %vm3257_vm5, %v3243_v24  ;;  %3271 = vst.msk [vmem:[#allocation4 + $0x68] sm:$0xff] %vm3257_vm5, %v3238_v52  ;;  %v7610_v19 = vpop.eup %7609 }
 0x75b   : > { %v3169_v2 = vpop.xlane.xlu1 %3168  ;;  %v3144_v43 = vpop.xlane.xlu0 %3143  ;;  %v3060_v24 = vmul.f32 %v7610_v19, %v3028_v22 }
 0x75c   : > { %3439 = vperm.xlu1 %7294, %v7602_v20   ;;  %v3245_v57 = vadd.f32 %v3169_v2, %v3053_v10  ;;  %v3240_v0 = vadd.f32 %v3144_v43, %v3048_v35  ;;  %v7612_v13 = vpop.eup %7611  ;;  %v3030_v10 = vld [vmem:[#allocation4 + $0xe8] sm:$0xff] }
 0x75d   : > { %3464 = vperm.xlu0 %7293, %v11194_v61   ;;  %v3062_v43 = vmul.f32 %v7612_v13, %v3030_v10 }
 0x75e   : > { %3278 = vst.msk [vmem:[#allocation4 + $0xa0] sm:$0xff] %vm3257_vm5, %v3245_v57  ;;  %3273 = vst.msk [vmem:[#allocation4 + $0x78] sm:$0xff] %vm3257_vm5, %v3240_v0 }
 0x75f   : > { %v3179_v46 = vpop.xlane.xlu1 %3178  ;;  %v3154_v27 = vpop.xlane.xlu0 %3153 }
 0x760   : > { %3449 = vperm.xlu1 %7294, %v7606_v23   ;;  %v3247_v32 = vadd.f32 %v3179_v46, %v3055_v5  ;;  %v3242_v1 = vadd.f32 %v3154_v27, %v3050_v4  ;;  %v11219_v25 = vpop.eup %7613 }
 0x761   : > { %3474 = vperm.xlu0 %7293, %v11204_v44  }
 0x762   : > { %3280 = vst.msk [vmem:[#allocation4 + $0xb0] sm:$0xff] %vm3257_vm5, %v3247_v32  ;;  %3275 = vst.msk [vmem:[#allocation4 + $0x88] sm:$0xff] %vm3257_vm5, %v3242_v1 }
 0x763   : > { %v3189_v15 = vpop.xlane.xlu1 %3188  ;;  %v3164_v33 = vpop.xlane.xlu0 %3163 }
 0x764   : > { %3459 = vperm.xlu1 %7294, %v7610_v19   ;;  %v3249_v39 = vadd.f32 %v3189_v15, %v3057_v42  ;;  %v3244_v11 = vadd.f32 %v3164_v33, %v3052_v48 }
 0x766   : > { %3282 = vst.msk [vmem:[#allocation4 + $0xc0] sm:$0xff] %vm3257_vm5, %v3249_v39  ;;  %3277 = vst.msk [vmem:[#allocation4 + $0x98] sm:$0xff] %vm3257_vm5, %v3244_v11 }
 0x767   : > { %v3199_v63 = vpop.xlane.xlu1 %3198  ;;  %v3174_v54 = vpop.xlane.xlu0 %3173 }
 0x768   : > { %3469 = vperm.xlu1 %7294, %v7612_v13   ;;  %v3251_v21 = vadd.f32 %v3199_v63, %v3059_v3  ;;  %v3246_v50 = vadd.f32 %v3174_v54, %v3054_v31 }
 0x76a   : > { %3284 = vst.msk [vmem:[#allocation4 + $0xd0] sm:$0xff] %vm3257_vm5, %v3251_v21  ;;  %3279 = vst.msk [vmem:[#allocation4 + $0xa8] sm:$0xff] %vm3257_vm5, %v3246_v50 }
 0x76b   : > { %v3184_v34 = vpop.xlane.xlu0 %3183 }
 0x76c   : > { %3479 = vperm.xlu1 %7294, %v11219_v25   ;;  %v3248_v41 = vadd.f32 %v3184_v34, %v3056_v8 }
 0x76e   : > { %3281 = vst.msk [vmem:[#allocation4 + $0xb8] sm:$0xff] %vm3257_vm5, %v3248_v41 }
 0x76f   : > { %v3194_v7 = vpop.xlane.xlu0 %3193 }
 0x770   : > { %v3250_v47 = vadd.f32 %v3194_v7, %v3058_v16  ;;  %v6709_v30 = vpop.f32.mrb[24].mxu1 }
 0x771   : > { %v6597_v12 = vpop.f32.mrb[24].mxu0  ;;  %v6710_v26 = vpop.f32.mrb[25].mxu1 }
 0x772   : > { %3283 = vst.msk [vmem:[#allocation4 + $0xc8] sm:$0xff] %vm3257_vm5, %v3250_v47  ;;  %v6598_v20 = vpop.f32.mrb[25].mxu0  ;;  %v6711_v58 = vadd.f32 %v6710_v26, %v6709_v30  ;;  %v6712_v6 = vpop.f32.mrb[26].mxu1  ;;  %v3029_v30 = vld [vmem:[#allocation4 + $0xe0] sm:$0xff] }
 0x773   : > { %v3204_v52 = vpop.xlane.xlu0 %3203  ;;  %v6599_v49 = vadd.f32 %v6598_v20, %v6597_v12  ;;  %v6600_v2 = vpop.f32.mrb[26].mxu0 }
 0x774   : > { %v3252_v35 = vadd.f32 %v3204_v52, %v3060_v24  ;;  %v6601_v0 = vpop.f32.mrb[27].mxu0  ;;  %v6713_v5 = vpop.f32.mrb[27].mxu1 }
 0x775   : > { %v11227_v4 = vadd.f32 %v6711_v58, %v6599_v49  ;;  %v6602_v46 = vadd.f32 %v6601_v0, %v6600_v2  ;;  %v6714_v27 = vadd.f32 %v6713_v5, %v6712_v6  ;;  %v3061_v6 = vmul.f32 %v11194_v61, %v3029_v30 }
 0x776   : > { %3285 = vst.msk [vmem:[#allocation4 + $0xd8] sm:$0xff] %vm3257_vm5, %v3252_v35 }
 0x777   : > { %v3214_v23 = vpop.xlane.xlu0 %3213  ;;  %v11230_v45 = vadd.f32 %v6714_v27, %v6602_v46 }
 0x778   : > { %v3254_v57 = vadd.f32 %v3214_v23, %v3062_v43 }
 0x77a   : > { %3287 = vst.msk [vmem:[#allocation4 + $0xe8] sm:$0xff] %vm3257_vm5, %v3254_v57 }
 0x77d   : > { %v6715_v32 = vpop.f32.mrb[28].mxu1 }
 0x77e   : > { %v6603_v56 = vpop.f32.mrb[28].mxu0  ;;  %v6716_v19 = vpop.f32.mrb[29].mxu1 }
 0x77f   : > { %v6604_v1 = vpop.f32.mrb[29].mxu0  ;;  %v6717_v48 = vadd.f32 %v6716_v19, %v6715_v32  ;;  %v6718_v33 = vpop.f32.mrb[30].mxu1 }
 0x780   : > { %v6605_v42 = vadd.f32 %v6604_v1, %v6603_v56  ;;  %v6606_v15 = vpop.f32.mrb[30].mxu0  ;;  %v6719_v55 = vpop.f32.mrb[31].mxu1  ;;  %v3032_v56 = vld [vmem:[#allocation4 + $0xf8] sm:$0xff] }
 0x781   : > { %v6607_v60 = vpop.f32.mrb[31].mxu0  ;;  %v6720_v13 = vadd.f32 %v6719_v55, %v6718_v33  ;;  %v3064_v33 = vmul.f32 %v11219_v25, %v3032_v56  ;;  %v3291_v25 = vld [vmem:[#allocation5 + $0x8] sm:$0xff] }
 0x782   : > { %v11232_v39 = vadd.f32 %v6717_v48, %v6605_v42  ;;  %v6608_v11 = vadd.f32 %v6607_v60, %v6606_v15 }
 0x784   : > { %v11234_v3 = vadd.f32 %v6720_v13, %v6608_v11 }
 0x785   : > { %v6721_v63 = vpop.f32.mrb[32].mxu1 }
 0x786   : > { %v6609_v31 = vpop.f32.mrb[32].mxu0  ;;  %v6722_v37 = vpop.f32.mrb[33].mxu1 }
 0x787   : > { %v6610_v54 = vpop.f32.mrb[33].mxu0  ;;  %v6723_v50 = vadd.f32 %v6722_v37, %v6721_v63  ;;  %v6724_v34 = vpop.f32.mrb[34].mxu1 }
 0x788   : > { %v6611_v21 = vadd.f32 %v6610_v54, %v6609_v31  ;;  %v6612_v8 = vpop.f32.mrb[34].mxu0  ;;  %v6725_v41 = vpop.f32.mrb[35].mxu1 }
 0x789   : > { %v6613_v59 = vpop.f32.mrb[35].mxu0  ;;  %v6726_v22 = vadd.f32 %v6725_v41, %v6724_v34 }
 0x78a   : > { %v11236_v16 = vadd.f32 %v6723_v50, %v6611_v21  ;;  %v6614_v7 = vadd.f32 %v6613_v59, %v6612_v8  ;;  %v3031_v8 = vld [vmem:[#allocation4 + $0xf0] sm:$0xff] }
 0x78c   : > { %v11238_v47 = vadd.f32 %v6726_v22, %v6614_v7 }
 0x793   : > { %v6615_v24 = vpop.f32.mrb[36].mxu0 }
 0x794   : > { %v6616_v52 = vpop.f32.mrb[37].mxu0 }
 0x795   : > { %v6727_v10 = vpop.f32.mrb[36].mxu1  ;;  %v6617_v35 = vadd.f32 %v6616_v52, %v6615_v24  ;;  %v6618_v12 = vpop.f32.mrb[38].mxu0 }
 0x796   : > { %v6728_v20 = vpop.f32.mrb[37].mxu1  ;;  %v6619_v49 = vpop.f32.mrb[39].mxu0 }
 0x797   : > { %v6729_v26 = vadd.f32 %v6728_v20, %v6727_v10  ;;  %v6730_v2 = vpop.f32.mrb[38].mxu1  ;;  %v6620_v43 = vadd.f32 %v6619_v49, %v6618_v12  ;;  %v3063_v12 = vmul.f32 %v11204_v44, %v3031_v8 }
 0x798   : > { %v6731_v58 = vpop.f32.mrb[39].mxu1 }
 0x799   : > { %v11241_v23 = vadd.f32 %v6729_v26, %v6617_v35  ;;  %v6732_v57 = vadd.f32 %v6731_v58, %v6730_v2  ;;  %v3294_v58 = vld [vmem:[#allocation5 + $0x20] sm:$0xff] }
 0x79b   : > { %v11243_v46 = vadd.f32 %v6732_v57, %v6620_v43  ;;  %v6621_v27 = vpop.f32.mrb[40].mxu0  ;;  %v3290_v57 = vld [vmem:[#allocation5] sm:$0xff] }
 0x79c   : > { %v3209_v0 = vpop.xlane.xlu1 %3208  ;;  %v6622_v32 = vpop.f32.mrb[41].mxu0 }
 0x79d   : > { %v3253_v5 = vadd.f32 %v3209_v0, %v3061_v6  ;;  %v6733_v1 = vpop.f32.mrb[40].mxu1  ;;  %v6623_v19 = vadd.f32 %v6622_v32, %v6621_v27  ;;  %v6624_v42 = vpop.f32.mrb[42].mxu0 }
 0x79e   : > { %v6734_v48 = vpop.f32.mrb[41].mxu1  ;;  %v6625_v15 = vpop.f32.mrb[43].mxu0 }
 0x79f   : > { %3286 = vst.msk [vmem:[#allocation4 + $0xe0] sm:$0xff] %vm3257_vm5, %v3253_v5  ;;  %v6735_v61 = vadd.f32 %v6734_v48, %v6733_v1  ;;  %v6736_v60 = vpop.f32.mrb[42].mxu1  ;;  %v6626_v55 = vadd.f32 %v6625_v15, %v6624_v42  ;;  %v3296_v15 = vld [vmem:[#allocation5 + $0x30] sm:$0xff] }
 0x7a0   : > { %v3224_v11 = vpop.xlane.xlu0 %3223  ;;  %v6737_v13 = vpop.f32.mrb[43].mxu1 }
 0x7a1   : > { %v3256_v31 = vadd.f32 %v3224_v11, %v3064_v33  ;;  %v11247_v63 = vadd.f32 %v6735_v61, %v6623_v19  ;;  %v6738_v54 = vadd.f32 %v6737_v13, %v6736_v60  ;;  %v3292_v60 = vld [vmem:[#allocation5 + $0x10] sm:$0xff] }
 0x7a3   : > { %3289 = vst.msk [vmem:[#allocation4 + $0xf8] sm:$0xff] %vm3257_vm5, %v3256_v31  ;;  %v11250_v37 = vadd.f32 %v6738_v54, %v6626_v55  ;;  %v6627_v21 = vpop.f32.mrb[44].mxu0 }
 0x7a4   : > { %v6628_v50 = vpop.f32.mrb[45].mxu0 }
 0x7a5   : > { %v6739_v34 = vpop.f32.mrb[44].mxu1  ;;  %v6629_v59 = vadd.f32 %v6628_v50, %v6627_v21  ;;  %v6630_v41 = vpop.f32.mrb[46].mxu0 }
 0x7a6   : > { %v6740_v7 = vpop.f32.mrb[45].mxu1  ;;  %v6631_v22 = vpop.f32.mrb[47].mxu0 }
 0x7a7   : > { %v6741_v24 = vadd.f32 %v6740_v7, %v6739_v34  ;;  %v6742_v52 = vpop.f32.mrb[46].mxu1  ;;  %v6632_v10 = vadd.f32 %v6631_v22, %v6630_v41 }
 0x7a8   : > { %v3330_v35 = vpop.permute.xlu0 %3329  ;;  %v6743_v30 = vpop.f32.mrb[47].mxu1 }
 0x7a9   : > { %v3483_v20 = vmul.f32 %v3330_v35, %v3291_v25  ;;  %v3219_v49 = vpop.xlane.xlu1 %3218  ;;  %v11253_v26 = vadd.f32 %v6741_v24, %v6629_v59  ;;  %v6744_v2 = vadd.f32 %v6743_v30, %v6742_v52  ;;  %v3298_v25 = vld [vmem:[#allocation5 + $0x40] sm:$0xff] }
 0x7aa   : > { %v3255_v43 = vadd.f32 %v3219_v49, %v3063_v12 }
 0x7ab   : > { %v3901_v6 = vadd.f32 %v11020_v38, %v3483_v20  ;;  %v11256_v0 = vadd.f32 %v6744_v2, %v6632_v10  ;;  %v6633_v5 = vpop.f32.mrb[48].mxu0 }
 0x7ac   : > { %3288 = vst.msk [vmem:[#allocation4 + $0xf0] sm:$0xff] %vm3257_vm5, %v3255_v43  ;;  %v3345_v27 = vpop.permute.xlu0 %3344  ;;  %v6634_v56 = vpop.f32.mrb[49].mxu0  ;;  %v3300_v43 = vld [vmem:[#allocation5 + $0x50] sm:$0xff] }
 0x7ad   : > { %3933 = vst [vmem:[#allocation5 + $0x8] sm:$0xff] %v3901_v6  ;;  %v3486_v44 = vmul.f32 %v3345_v27, %v3294_v58  ;;  %v3325_v32 = vpop.permute.xlu1 %3324  ;;  %v6745_v1 = vpop.f32.mrb[48].mxu1  ;;  %v6635_v19 = vadd.f32 %v6634_v56, %v6633_v5 }
 0x7ae   : > { %v6636_v42 = vpop.f32.mrb[50].mxu0  ;;  %v3482_v48 = vmul.f32 %v3325_v32, %v3290_v57  ;;  %v6746_v33 = vpop.f32.mrb[49].mxu1  ;;  %v3295_v57 = vld [vmem:[#allocation5 + $0x28] sm:$0xff] }
 0x7af   : > { %v6637_v61 = vpop.f32.mrb[51].mxu0  ;;  %v3904_v38 = vadd.f32 %v11072_v40, %v3486_v44  ;;  %v6747_v55 = vadd.f32 %v6746_v33, %v6745_v1  ;;  %v6748_v11 = vpop.f32.mrb[50].mxu1  ;;  %v3293_v40 = vld [vmem:[#allocation5 + $0x18] sm:$0xff]  ;;  %v3302_v33 = vld [vmem:[#allocation5 + $0x60] sm:$0xff] }
 0x7b0   : > { %v6638_v13 = vadd.f32 %v6637_v61, %v6636_v42  ;;  %v3900_v31 = vadd.f32 %v11013_v9, %v3482_v48  ;;  %v3355_v54 = vpop.permute.xlu0 %3354  ;;  %v6749_v21 = vpop.f32.mrb[51].mxu1 }
 0x7b1   : > { %3936 = vst [vmem:[#allocation5 + $0x20] sm:$0xff] %v3904_v38  ;;  %v3488_v50 = vmul.f32 %v3355_v54, %v3296_v15  ;;  %v3335_v8 = vpop.permute.xlu1 %3334  ;;  %v11261_v34 = vadd.f32 %v6747_v55, %v6635_v19  ;;  %v6750_v59 = vadd.f32 %v6749_v21, %v6748_v11  ;;  %v3299_v21 = vld [vmem:[#allocation5 + $0x48] sm:$0xff] }
 0x7b2   : > { %3932 = vst [vmem:[#allocation5] sm:$0xff] %v3900_v31  ;;  %v3484_v41 = vmul.f32 %v3335_v8, %v3292_v60  ;;  %v3304_v31 = vld [vmem:[#allocation5 + $0x70] sm:$0xff] }
 0x7b3   : > { %v3906_v7 = vadd.f32 %v11106_v62, %v3488_v50  ;;  %v11264_v22 = vadd.f32 %v6750_v59, %v6638_v13  ;;  %v6639_v24 = vpop.f32.mrb[52].mxu0 }
 0x7b4   : > { %v3902_v52 = vadd.f32 %v11040_v36, %v3484_v41  ;;  %v3365_v9 = vpop.permute.xlu0 %3364  ;;  %v6640_v10 = vpop.f32.mrb[53].mxu0 }
 0x7b5   : > { %3938 = vst [vmem:[#allocation5 + $0x30] sm:$0xff] %v3906_v7  ;;  %v3490_v35 = vmul.f32 %v3365_v9, %v3298_v25  ;;  %v3340_v12 = vpop.permute.xlu1 %3339  ;;  %v6751_v30 = vpop.f32.mrb[52].mxu1  ;;  %v6641_v20 = vadd.f32 %v6640_v10, %v6639_v24  ;;  %v3306_v25 = vld [vmem:[#allocation5 + $0x80] sm:$0xff]  ;;  %v3301_v7 = vld [vmem:[#allocation5 + $0x58] sm:$0xff]  ;;  %v3308_v10 = vld [vmem:[#allocation5 + $0x90] sm:$0xff] }
 0x7b6   : > { %v6642_v49 = vpop.f32.mrb[54].mxu0  ;;  %3934 = vst [vmem:[#allocation5 + $0x10] sm:$0xff] %v3902_v52  ;;  %v3485_v2 = vmul.f32 %v3340_v12, %v3293_v40  ;;  %v6752_v58 = vpop.f32.mrb[53].mxu1 }
 0x7b7   : > { %v6643_v6 = vpop.f32.mrb[55].mxu0  ;;  %v3908_v62 = vadd.f32 %v11146_v28, %v3490_v35  ;;  %v6753_v5 = vadd.f32 %v6752_v58, %v6751_v30  ;;  %v6754_v27 = vpop.f32.mrb[54].mxu1  ;;  %v3297_v28 = vld [vmem:[#allocation5 + $0x38] sm:$0xff]  ;;  %v3303_v35 = vld [vmem:[#allocation5 + $0x68] sm:$0xff] }
 0x7b8   : > { %v6644_v56 = vadd.f32 %v6643_v6, %v6642_v49  ;;  %v3903_v36 = vadd.f32 %v11049_v29, %v3485_v2  ;;  %v3375_v44 = vpop.permute.xlu0 %3374  ;;  %v6755_v32 = vpop.f32.mrb[55].mxu1  ;;  %v3310_v2 = vld [vmem:[#allocation5 + $0xa0] sm:$0xff] }
 0x7b9   : > { %3940 = vst [vmem:[#allocation5 + $0x40] sm:$0xff] %v3908_v62  ;;  %v3492_v1 = vmul.f32 %v3375_v44, %v3300_v43  ;;  %v3350_v19 = vpop.permute.xlu1 %3349  ;;  %v11269_v42 = vadd.f32 %v6753_v5, %v6641_v20  ;;  %v6756_v48 = vadd.f32 %v6755_v32, %v6754_v27  ;;  %v3305_v43 = vld [vmem:[#allocation5 + $0x78] sm:$0xff]  ;;  %v3312_v5 = vld [vmem:[#allocation5 + $0xb0] sm:$0xff]  ;;  %v3307_v27 = vld [vmem:[#allocation5 + $0x88] sm:$0xff] }
 0x7ba   : > { %3935 = vst [vmem:[#allocation5 + $0x18] sm:$0xff] %v3903_v36  ;;  %v3487_v15 = vmul.f32 %v3350_v19, %v3295_v57  ;;  %v3309_v19 = vld [vmem:[#allocation5 + $0x98] sm:$0xff] }
 0x7bb   : > { %v3910_v61 = vadd.f32 %v11179_v17, %v3492_v1  ;;  %v11272_v38 = vadd.f32 %v6756_v48, %v6644_v56  ;;  %v3314_v1 = vld [vmem:[#allocation5 + $0xc0] sm:$0xff] }
 0x7bc   : > { %v3905_v60 = vadd.f32 %v11081_v14, %v3487_v15  ;;  %v3385_v55 = vpop.permute.xlu0 %3384 }
 0x7bd   : > { %3942 = vst [vmem:[#allocation5 + $0x50] sm:$0xff] %v3910_v61  ;;  %v3494_v29 = vmul.f32 %v3385_v55, %v3302_v33  ;;  %v3360_v11 = vpop.permute.xlu1 %3359 }
 0x7be   : > { %3937 = vst [vmem:[#allocation5 + $0x28] sm:$0xff] %v3905_v60  ;;  %v3489_v13 = vmul.f32 %v3360_v11, %v3297_v28  ;;  %v3316_v28 = vld [vmem:[#allocation5 + $0xd0] sm:$0xff]  ;;  %v3311_v60 = vld [vmem:[#allocation5 + $0xa8] sm:$0xff] }
 0x7bf   : > { %v3912_v54 = vadd.f32 %v11227_v4, %v3494_v29 }
 0x7c0   : > { %v3907_v50 = vadd.f32 %v11112_v18, %v3489_v13  ;;  %v3395_v8 = vpop.permute.xlu0 %3394 }
 0x7c1   : > { %3944 = vst [vmem:[#allocation5 + $0x60] sm:$0xff] %v3912_v54  ;;  %v3496_v17 = vmul.f32 %v3395_v8, %v3304_v31  ;;  %v3370_v59 = vpop.permute.xlu1 %3369  ;;  %v3313_v31 = vld [vmem:[#allocation5 + $0xb8] sm:$0xff] }
 0x7c2   : > { %3939 = vst [vmem:[#allocation5 + $0x38] sm:$0xff] %v3907_v50  ;;  %v3491_v41 = vmul.f32 %v3370_v59, %v3299_v21 }
 0x7c3   : > { %v3914_v14 = vadd.f32 %v11232_v39, %v3496_v17 }
 0x7c4   : > { %v3909_v40 = vadd.f32 %v11150_v53, %v3491_v41  ;;  %v3405_v24 = vpop.permute.xlu0 %3404  ;;  %v3315_v41 = vld [vmem:[#allocation5 + $0xc8] sm:$0xff] }
 0x7c5   : > { %3946 = vst [vmem:[#allocation5 + $0x70] sm:$0xff] %v3914_v14  ;;  %v3498_v52 = vmul.f32 %v3405_v24, %v3306_v25  ;;  %v3380_v9 = vpop.permute.xlu1 %3379  ;;  %v3318_v25 = vld [vmem:[#allocation5 + $0xe0] sm:$0xff] }
 0x7c6   : > { %3941 = vst [vmem:[#allocation5 + $0x48] sm:$0xff] %v3909_v40  ;;  %v3493_v4 = vmul.f32 %v3380_v9, %v3301_v7 }
 0x7c7   : > { %v3916_v18 = vadd.f32 %v11236_v16, %v3498_v52 }
 0x7c8   : > { %v3911_v12 = vadd.f32 %v11183_v51, %v3493_v4  ;;  %v3415_v30 = vpop.permute.xlu0 %3414 }
 0x7c9   : > { %3948 = vst [vmem:[#allocation5 + $0x80] sm:$0xff] %v3916_v18  ;;  %v3500_v20 = vmul.f32 %v3415_v30, %v3308_v10  ;;  %v3390_v49 = vpop.permute.xlu1 %3389  ;;  %v3317_v30 = vld [vmem:[#allocation5 + $0xd8] sm:$0xff] }
 0x7ca   : > { %3943 = vst [vmem:[#allocation5 + $0x58] sm:$0xff] %v3911_v12  ;;  %v3495_v39 = vmul.f32 %v3390_v49, %v3303_v35 }
 0x7cb   : > { %v3918_v53 = vadd.f32 %v11241_v23, %v3500_v20 }
 0x7cc   : > { %v3913_v58 = vadd.f32 %v11230_v45, %v3495_v39  ;;  %v3425_v6 = vpop.permute.xlu0 %3424 }
 0x7cd   : > { %3950 = vst [vmem:[#allocation5 + $0x90] sm:$0xff] %v3918_v53  ;;  %v3502_v62 = vmul.f32 %v3425_v6, %v3310_v2  ;;  %v3400_v57 = vpop.permute.xlu1 %3399  ;;  %v3319_v53 = vld [vmem:[#allocation5 + $0xe8] sm:$0xff] }
 0x7ce   : > { %3945 = vst [vmem:[#allocation5 + $0x68] sm:$0xff] %v3913_v58  ;;  %v3497_v16 = vmul.f32 %v3400_v57, %v3305_v43 }
 0x7cf   : > { %v3920_v51 = vadd.f32 %v11247_v63, %v3502_v62 }
 0x7d0   : > { %v3915_v56 = vadd.f32 %v11234_v3, %v3497_v16  ;;  %v3435_v36 = vpop.permute.xlu0 %3434 }
 0x7d1   : > { %3952 = vst [vmem:[#allocation5 + $0xa0] sm:$0xff] %v3920_v51  ;;  %v3504_v44 = vmul.f32 %v3435_v36, %v3312_v5  ;;  %v3410_v32 = vpop.permute.xlu1 %3409 }
 0x7d2   : > { %3947 = vst [vmem:[#allocation5 + $0x78] sm:$0xff] %v3915_v56  ;;  %v3499_v23 = vmul.f32 %v3410_v32, %v3307_v27  ;;  %v3320_v56 = vld [vmem:[#allocation5 + $0xf0] sm:$0xff] }
 0x7d3   : > { %v3922_v45 = vadd.f32 %v11253_v26, %v3504_v44 }
 0x7d4   : > { %v3917_v48 = vadd.f32 %v11238_v47, %v3499_v23  ;;  %v3445_v15 = vpop.permute.xlu0 %3444 }
 0x7d5   : > { %3954 = vst [vmem:[#allocation5 + $0xb0] sm:$0xff] %v3922_v45  ;;  %v3506_v33 = vmul.f32 %v3445_v15, %v3314_v1  ;;  %v3420_v61 = vpop.permute.xlu1 %3419  ;;  %v3321_v1 = vld [vmem:[#allocation5 + $0xf8] sm:$0xff] }
 0x7d6   : > { %3949 = vst [vmem:[#allocation5 + $0x88] sm:$0xff] %v3917_v48  ;;  %v3501_v63 = vmul.f32 %v3420_v61, %v3309_v19 }
 0x7d7   : > { %v3924_v3 = vadd.f32 %v11261_v34, %v3506_v33 }
 0x7d8   : > { %v3919_v55 = vadd.f32 %v11243_v46, %v3501_v63  ;;  %v3455_v29 = vpop.permute.xlu0 %3454 }
 0x7d9   : > { %3956 = vst [vmem:[#allocation5 + $0xc0] sm:$0xff] %v3924_v3  ;;  %v3508_v11 = vmul.f32 %v3455_v29, %v3316_v28  ;;  %v3430_v13 = vpop.permute.xlu1 %3429 }
 0x7da   : > { %3951 = vst [vmem:[#allocation5 + $0x98] sm:$0xff] %v3919_v55  ;;  %v3503_v26 = vmul.f32 %v3430_v13, %v3311_v60 }
 0x7db   : > { %v3926_v47 = vadd.f32 %v11269_v42, %v3508_v11 }
 0x7dc   : > { %v3921_v54 = vadd.f32 %v11250_v37, %v3503_v26  ;;  %v3465_v14 = vpop.permute.xlu0 %3464 }
 0x7dd   : > { %3958 = vst [vmem:[#allocation5 + $0xd0] sm:$0xff] %v3926_v47  ;;  %v3440_v21 = vpop.permute.xlu1 %3439  ;;  %v3510_v10 = vmul.f32 %v3465_v14, %v3318_v25 }
 0x7de   : > { %3953 = vst [vmem:[#allocation5 + $0xa8] sm:$0xff] %v3921_v54  ;;  %v3505_v8 = vmul.f32 %v3440_v21, %v3313_v31 }
 0x7df   : > { %v6645_v50 = vpop.f32.mrb[56].mxu0 }
 0x7e0   : > { %v6646_v34 = vpop.f32.mrb[57].mxu0  ;;  %v3923_v7 = vadd.f32 %v11256_v0, %v3505_v8 }
 0x7e1   : > { %v6757_v17 = vpop.f32.mrb[56].mxu1  ;;  %v6647_v59 = vadd.f32 %v6646_v34, %v6645_v50  ;;  %v6648_v46 = vpop.f32.mrb[58].mxu0 }
 0x7e2   : > { %v6758_v40 = vpop.f32.mrb[57].mxu1  ;;  %v3450_v52 = vpop.permute.xlu1 %3449  ;;  %3955 = vst [vmem:[#allocation5 + $0xb8] sm:$0xff] %v3923_v7 }
 0x7e3   : > { %v6759_v24 = vadd.f32 %v6758_v40, %v6757_v17  ;;  %v6760_v42 = vpop.f32.mrb[58].mxu1  ;;  %v3507_v37 = vmul.f32 %v3450_v52, %v3315_v41  ;;  %v6649_v9 = vpop.f32.mrb[59].mxu0 }
 0x7e4   : > { %v6761_v4 = vpop.f32.mrb[59].mxu1  ;;  %v6650_v35 = vadd.f32 %v6649_v9, %v6648_v46 }
 0x7e5   : > { %v3886_v18 = vadd.f32 %v6759_v24, %v6647_v59  ;;  %v6762_v12 = vadd.f32 %v6761_v4, %v6760_v42  ;;  %v3925_v20 = vadd.f32 %v11264_v22, %v3507_v37  ;;  %v3475_v22 = vpop.permute.xlu0 %3474 }
 0x7e6   : > { %v3460_v2 = vpop.permute.xlu1 %3459  ;;  %v3512_v48 = vmul.f32 %v3475_v22, %v3320_v56 }
 0x7e7   : > { %v3928_v49 = vadd.f32 %v3886_v18, %v3510_v10  ;;  %v3889_v39 = vadd.f32 %v6762_v12, %v6650_v35  ;;  %3957 = vst [vmem:[#allocation5 + $0xc8] sm:$0xff] %v3925_v20  ;;  %v3509_v0 = vmul.f32 %v3460_v2, %v3317_v30 }
 0x7e9   : > { %3960 = vst [vmem:[#allocation5 + $0xe0] sm:$0xff] %v3928_v49  ;;  %v3927_v43 = vadd.f32 %v11272_v38, %v3509_v0 }
 0x7ea   : > { %v3470_v58 = vpop.permute.xlu1 %3469 }
 0x7eb   : > { %3959 = vst [vmem:[#allocation5 + $0xd8] sm:$0xff] %v3927_v43  ;;  %v3511_v6 = vmul.f32 %v3470_v58, %v3319_v53  ;;  %v6651_v62 = vpop.f32.mrb[60].mxu0 }
 0x7ec   : > { %v6652_v57 = vpop.f32.mrb[61].mxu0 }
 0x7ed   : > { %v3929_v16 = vadd.f32 %v3889_v39, %v3511_v6  ;;  %v6763_v5 = vpop.f32.mrb[60].mxu1  ;;  %v6653_v51 = vadd.f32 %v6652_v57, %v6651_v62  ;;  %v6654_v27 = vpop.f32.mrb[62].mxu0 }
 0x7ee   : > { %v6764_v36 = vpop.f32.mrb[61].mxu1  ;;  %v6655_v23 = vpop.f32.mrb[63].mxu0 }
 0x7ef   : > { %3961 = vst [vmem:[#allocation5 + $0xe8] sm:$0xff] %v3929_v16  ;;  %v6765_v44 = vadd.f32 %v6764_v36, %v6763_v5  ;;  %v6766_v32 = vpop.f32.mrb[62].mxu1  ;;  %v3480_v45 = vpop.permute.xlu1 %3479  ;;  %v6656_v19 = vadd.f32 %v6655_v23, %v6654_v27 }
 0x7f0   : > { %v6767_v38 = vpop.f32.mrb[63].mxu1  ;;  %v3513_v63 = vmul.f32 %v3480_v45, %v3321_v1 }
 0x7f1   : > { %v3894_v15 = vadd.f32 %v6765_v44, %v6653_v51  ;;  %v6768_v33 = vadd.f32 %v6767_v38, %v6766_v32 }
 0x7f3   : > { %v3930_v61 = vadd.f32 %v3894_v15, %v3512_v48  ;;  %v3897_v28 = vadd.f32 %v6768_v33, %v6656_v19 }
 0x7f5   : > { %3962 = vst [vmem:[#allocation5 + $0xf0] sm:$0xff] %v3930_v61  ;;  %v3931_v3 = vadd.f32 %v3897_v28, %v3513_v63 }
 0x7f7   : > { %3963 = vst [vmem:[#allocation5 + $0xf8] sm:$0xff] %v3931_v3 }
 0x7f8 PF: > { %p6415_p9 = scmp.eq.s32.totalorder %s8237_s21, 1 }
 0x7fa   : > { %3999 = sbr.rel (%p6415_p9) target bundleno = 2782 (0xade), region = 64 }
 0x801   : > { %v13769_v60 = vld [vmem:[#allocation113_spill] sm:$0xff]  ;;  %v13770_v55 = vld [vmem:[#allocation112_spill] sm:$0xff]  ;;  %v13773_v47 = vld [vmem:[#allocation115_spill] sm:$0xff]  ;;  %vm5120_vm6 = vcmask 7168  }
 0x802   : > { %v4032_v29 = vmax.f32 %v13770_v55, %v13769_v60  ;;  %v13771_v11 = vld [vmem:[#allocation117_spill] sm:$0xff]  ;;  %v13772_v13 = vld [vmem:[#allocation116_spill] sm:$0xff]  ;;  %v13774_v31 = vld [vmem:[#allocation114_spill] sm:$0xff] }
 0x803   : > { %v4042_v26 = vmax.f32 %v13772_v13, %v13771_v11  ;;  %v4037_v54 = vmax.f32 %v13774_v31, %v13773_v47  ;;  %v13775_v21 = vld [vmem:[#allocation119_spill] sm:$0xff]  ;;  %v13776_v50 = vld [vmem:[#allocation118_spill] sm:$0xff]  ;;  %v13777_v34 = vld [vmem:[#allocation32_spill] sm:$0xff] }
 0x804   : > { %v4047_v8 = vmax.f32 %v13776_v50, %v13775_v21  ;;  %6769 = vmatprep.subr.bf16.mxu0 %v13777_v34  ;;  %v13778_v17 = vld [vmem:[#allocation57_spill] sm:$0xff]  ;;  %v13779_v59 = vld [vmem:[#allocation56_spill] sm:$0xff]  ;;  %v13780_v41 = vld [vmem:[#allocation59_spill] sm:$0xff] }
 0x805   : > { %v4052_v46 = vmax.f32 %v13779_v59, %v13778_v17  ;;  %v13781_v25 = vld [vmem:[#allocation58_spill] sm:$0xff]  ;;  %v13782_v7 = vld [vmem:[#allocation48_spill] sm:$0xff]  ;;  %v13789_v12 = vld [vmem:[#allocation121_spill] sm:$0xff] }
 0x806   : > { %v4057_v14 = vmax.f32 %v13781_v25, %v13780_v41  ;;  %6881 = vmatprep.subr.bf16.mxu1 %v13782_v7  ;;  %v13783_v40 = vld [vmem:[#allocation120_spill] sm:$0xff]  ;;  %v13785_v37 = vld [vmem:[#allocation122_spill] sm:$0xff]  ;;  %v13790_v20 = vld [vmem:[#allocation125_spill] sm:$0xff] }
 0x807   : > { %v4033_v24 = vmax.f32 %v4032_v29, %v13783_v40  ;;  %v13784_v42 = vld [vmem:[#allocation124_spill] sm:$0xff]  ;;  %v4038_v9 = vmax.f32 %v4037_v54, %v13785_v37  ;;  %v13786_v4 = vld [vmem:[#allocation126_spill] sm:$0xff]  ;;  %v13791_v39 = vld [vmem:[#allocation33_spill] sm:$0xff] }
 0x808   : > { %v4043_v52 = vmax.f32 %v4042_v26, %v13784_v42  ;;  %v4048_v10 = vmax.f32 %v4047_v8, %v13786_v4  ;;  %v13787_v18 = vld [vmem:[#allocation24_spill] sm:$0xff]  ;;  %v13793_v53 = vld [vmem:[#allocation61_spill] sm:$0xff]  ;;  %v13795_v6 = vld [vmem:[#allocation63_spill] sm:$0xff] }
 0x809   : > { %6770 = vmatpush3.bf16.msra.mxu0 %v13787_v18  ;;  %v13788_v35 = vld [vmem:[#allocation40_spill] sm:$0xff]  ;;  %v4034_v30 = vmax.f32 %v4033_v24, %v13789_v12  ;;  %v13796_v62 = vld [vmem:[#allocation62_spill] sm:$0xff]  ;;  %v13797_v16 = vld [vmem:[#allocation49_spill] sm:$0xff] }
 0x80a   : > { %6882 = vmatpush3.bf16.msra.mxu1 %v13788_v35  ;;  %v4044_v49 = vmax.f32 %v4043_v52, %v13790_v20  ;;  %6771 = vmatprep.subr.bf16.mxu0 %v13791_v39  ;;  %v13792_v2 = vld [vmem:[#allocation128_spill] sm:$0xff]  ;;  %v4067_v57 = vmax.f32 %v13796_v62, %v13795_v6  ;;  %v13798_v5 = vld [vmem:[#allocation123_spill] sm:$0xff]  ;;  %v13800_v22 = vld [vmem:[#allocation130_spill] sm:$0xff] }
 0x80b   : > { %v4053_v0 = vmax.f32 %v4052_v46, %v13792_v2  ;;  %v13794_v43 = vld [vmem:[#allocation60_spill] sm:$0xff]  ;;  %6883 = vmatprep.subr.bf16.mxu1 %v13797_v16  ;;  %4035 = vmax.xlane.f32.xlu0 %v4034_v30  ;;  %v4039_v51 = vmax.f32 %v4038_v9, %v13798_v5  ;;  %v13799_v27 = vld [vmem:[#allocation127_spill] sm:$0xff]  ;;  %v4058_v36 = vmax.f32 %v4057_v14, %v13800_v22  ;;  %v13801_v44 = vld [vmem:[#allocation25_spill] sm:$0xff] }
 0x80c   : > { %v4062_v58 = vmax.f32 %v13794_v43, %v13793_v53  ;;  %4045 = vmax.xlane.f32.xlu1 %v4044_v49  ;;  %v4049_v56 = vmax.f32 %v4048_v10, %v13799_v27  ;;  %v13802_v32 = vld [vmem:[#allocation41_spill] sm:$0xff]  ;;  %v13804_v45 = vld [vmem:[#allocation132_spill] sm:$0xff]  ;;  %v13805_v38 = vld [vmem:[#allocation134_spill] sm:$0xff] }
 0x80d   : > { %6772 = vmatpush3.bf16.msra.mxu0 %v13801_v44  ;;  %v13803_v23 = vld [vmem:[#allocation129_spill] sm:$0xff]  ;;  %v4068_v48 = vmax.f32 %v4067_v57, %v13805_v38  ;;  %v13806_v15 = vld [vmem:[#allocation34_spill] sm:$0xff]  ;;  %v13807_v33 = vld [vmem:[#allocation131_spill] sm:$0xff] }
 0x80e   : > { %6884 = vmatpush3.bf16.msra.mxu1 %v13802_v32  ;;  %v4054_v1 = vmax.f32 %v4053_v0, %v13803_v23  ;;  %v4063_v19 = vmax.f32 %v4062_v58, %v13804_v45  ;;  %6773 = vmatprep.subr.bf16.mxu0 %v13806_v15  ;;  %v4059_v61 = vmax.f32 %v4058_v36, %v13807_v33  ;;  %v13808_v63 = vld [vmem:[#allocation65_spill] sm:$0xff]  ;;  %v13809_v28 = vld [vmem:[#allocation64_spill] sm:$0xff]  ;;  %v13810_v29 = vld [vmem:[#allocation67_spill] sm:$0xff] }
 0x80f   : > { %4040 = vmax.xlane.f32.xlu0 %v4039_v51  ;;  %v4072_v3 = vmax.f32 %v13809_v28, %v13808_v63  ;;  %v13811_v26 = vld [vmem:[#allocation66_spill] sm:$0xff]  ;;  %v13814_v46 = vld [vmem:[#allocation133_spill] sm:$0xff]  ;;  %v13815_v7 = vld [vmem:[#allocation135_spill] sm:$0xff] }
 0x810   : > { %4050 = vmax.xlane.f32.xlu1 %v4049_v56  ;;  %v4077_v54 = vmax.f32 %v13811_v26, %v13810_v29  ;;  %v13812_v8 = vld [vmem:[#allocation50_spill] sm:$0xff]  ;;  %v4064_v14 = vmax.f32 %v4063_v19, %v13814_v46  ;;  %v4069_v24 = vmax.f32 %v4068_v48, %v13815_v7  ;;  %v13816_v52 = vld [vmem:[#allocation69_spill] sm:$0xff]  ;;  %v13817_v9 = vld [vmem:[#allocation68_spill] sm:$0xff] }
 0x811   : > { %6885 = vmatprep.subr.bf16.mxu1 %v13812_v8  ;;  %v13813_v34 = vld [vmem:[#allocation26_spill] sm:$0xff]  ;;  %v4082_v10 = vmax.f32 %v13817_v9, %v13816_v52  ;;  %v13819_v35 = vld [vmem:[#allocation136_spill] sm:$0xff]  ;;  %v13821_v0 = vld [vmem:[#allocation71_spill] sm:$0xff] }
 0x812   : > { %6774 = vmatpush3.bf16.msra.mxu0 %v13813_v34  ;;  %v13818_v18 = vld [vmem:[#allocation42_spill] sm:$0xff]  ;;  %v4073_v30 = vmax.f32 %v4072_v3, %v13819_v35  ;;  %v13823_v16 = vld [vmem:[#allocation35_spill] sm:$0xff]  ;;  %v13825_v56 = vld [vmem:[#allocation140_spill] sm:$0xff] }
 0x813   : > { %6886 = vmatpush3.bf16.msra.mxu1 %v13818_v18  ;;  %4055 = vmax.xlane.f32.xlu0 %v4054_v1  ;;  %v13820_v49 = vld [vmem:[#allocation138_spill] sm:$0xff]  ;;  %v13824_v51 = vld [vmem:[#allocation51_spill] sm:$0xff]  ;;  %v4083_v36 = vmax.f32 %v4082_v10, %v13825_v56  ;;  %v13828_v48 = vld [vmem:[#allocation73_spill] sm:$0xff] }
 0x814   : > { %4060 = vmax.xlane.f32.xlu1 %v4059_v61  ;;  %v4078_v39 = vmax.f32 %v4077_v54, %v13820_v49  ;;  %v13822_v58 = vld [vmem:[#allocation70_spill] sm:$0xff]  ;;  %6775 = vmatprep.subr.bf16.mxu0 %v13823_v16  ;;  %v13826_v44 = vld [vmem:[#allocation75_spill] sm:$0xff]  ;;  %v13829_v15 = vld [vmem:[#allocation72_spill] sm:$0xff] }
 0x815   : > { %v4087_v57 = vmax.f32 %v13822_v58, %v13821_v0  ;;  %6887 = vmatprep.subr.bf16.mxu1 %v13824_v51  ;;  %v13827_v32 = vld [vmem:[#allocation74_spill] sm:$0xff]  ;;  %v4092_v1 = vmax.f32 %v13829_v15, %v13828_v48  ;;  %v13830_v61 = vld [vmem:[#allocation27_spill] sm:$0xff]  ;;  %v13831_v3 = vld [vmem:[#allocation137_spill] sm:$0xff] }
 0x816   : > { %v4097_v19 = vmax.f32 %v13827_v32, %v13826_v44  ;;  %6776 = vmatpush3.bf16.msra.mxu0 %v13830_v61  ;;  %v4074_v54 = vmax.f32 %v4073_v30, %v13831_v3  ;;  %v13832_v8 = vld [vmem:[#allocation139_spill] sm:$0xff]  ;;  %v13833_v18 = vld [vmem:[#allocation142_spill] sm:$0xff]  ;;  %v13835_v51 = vld [vmem:[#allocation36_spill] sm:$0xff] }
 0x817   : > { %4065 = vmax.xlane.f32.xlu0 %v4064_v14  ;;  %v4079_v34 = vmax.f32 %v4078_v39, %v13832_v8  ;;  %v4088_v16 = vmax.f32 %v4087_v57, %v13833_v18  ;;  %v13834_v0 = vld [vmem:[#allocation43_spill] sm:$0xff]  ;;  %6777 = vmatprep.subr.bf16.mxu0 %v13835_v51  ;;  %v13836_v10 = vld [vmem:[#allocation52_spill] sm:$0xff]  ;;  %v13837_v44 = vld [vmem:[#allocation146_spill] sm:$0xff] }
 0x818   : > { %4070 = vmax.xlane.f32.xlu1 %v4069_v24  ;;  %6888 = vmatpush3.bf16.msra.mxu1 %v13834_v0  ;;  %v4098_v32 = vmax.f32 %v4097_v19, %v13837_v44  ;;  %v13838_v58 = vld [vmem:[#allocation144_spill] sm:$0xff]  ;;  %v13839_v15 = vld [vmem:[#allocation79_spill] sm:$0xff]  ;;  %v13840_v61 = vld [vmem:[#allocation78_spill] sm:$0xff]  ;;  %v8267_v24 = vmov 0  }
 0x819   : > { %6889 = vmatprep.subr.bf16.mxu1 %v13836_v10  ;;  %v4093_v48 = vmax.f32 %v4092_v1, %v13838_v58  ;;  %v4107_v14 = vmax.f32 %v13840_v61, %v13839_v15  ;;  %7615 = vset.pattern.permute.xlu0 %v8267_v24  ;;  %v13841_v30 = vld [vmem:[#allocation141_spill] sm:$0xff]  ;;  %v13842_v57 = vld [vmem:[#allocation143_spill] sm:$0xff]  ;;  %v13844_v56 = vld [vmem:[#allocation76_spill] sm:$0xff] }
 0x81a   : > { %v4084_v39 = vmax.f32 %v4083_v36, %v13841_v30  ;;  %v4089_v18 = vmax.f32 %v4088_v16, %v13842_v57  ;;  %v13843_v0 = vld [vmem:[#allocation77_spill] sm:$0xff]  ;;  %7616 = vset.pattern.permute.xlu1 %v8267_v24  ;;  %v13845_v10 = vld [vmem:[#allocation28_spill] sm:$0xff]  ;;  %v13847_v1 = vld [vmem:[#allocation147_spill] sm:$0xff] }
 0x81b   : > { %4075 = vmax.xlane.f32.xlu0 %v4074_v54  ;;  %v4102_v51 = vmax.f32 %v13844_v56, %v13843_v0  ;;  %6778 = vmatpush3.bf16.msra.mxu0 %v13845_v10  ;;  %v13846_v19 = vld [vmem:[#allocation44_spill] sm:$0xff]  ;;  %v4099_v44 = vmax.f32 %v4098_v32, %v13847_v1  ;;  %v13848_v58 = vld [vmem:[#allocation145_spill] sm:$0xff]  ;;  %v13849_v61 = vld [vmem:[#allocation150_spill] sm:$0xff] }
 0x81c   : > { %4080 = vmax.xlane.f32.xlu1 %v4079_v34  ;;  %6890 = vmatpush3.bf16.msra.mxu1 %v13846_v19  ;;  %v4094_v15 = vmax.f32 %v4093_v48, %v13848_v58  ;;  %v4108_v52 = vmax.f32 %v4107_v14, %v13849_v61  ;;  %v13850_v54 = vld [vmem:[#allocation37_spill] sm:$0xff]  ;;  %v13852_v36 = vld [vmem:[#allocation148_spill] sm:$0xff]  ;;  %v13853_v0 = vld [vmem:[#allocation83_spill] sm:$0xff] }
 0x81d   : > { %6779 = vmatprep.subr.bf16.mxu0 %v13850_v54  ;;  %v13851_v34 = vld [vmem:[#allocation53_spill] sm:$0xff]  ;;  %v4103_v16 = vmax.f32 %v4102_v51, %v13852_v36  ;;  %v13854_v24 = vld [vmem:[#allocation82_spill] sm:$0xff]  ;;  %v13856_v57 = vld [vmem:[#allocation80_spill] sm:$0xff] }
 0x81e   : > { %6891 = vmatprep.subr.bf16.mxu1 %v13851_v34  ;;  %v4117_v56 = vmax.f32 %v13854_v24, %v13853_v0  ;;  %v13855_v10 = vld [vmem:[#allocation81_spill] sm:$0xff]  ;;  %v13859_v48 = vld [vmem:[#allocation151_spill] sm:$0xff]  ;;  %v13861_v54 = vld [vmem:[#allocation86_spill] sm:$0xff] }
 0x81f   : > { %4085 = vmax.xlane.f32.xlu0 %v4084_v39  ;;  %v4112_v19 = vmax.f32 %v13856_v57, %v13855_v10  ;;  %v13857_v30 = vld [vmem:[#allocation29_spill] sm:$0xff]  ;;  %v4109_v14 = vmax.f32 %v4108_v52, %v13859_v48  ;;  %v13860_v61 = vld [vmem:[#allocation87_spill] sm:$0xff]  ;;  %v13863_v39 = vld [vmem:[#allocation84_spill] sm:$0xff] }
 0x820   : > { %4090 = vmax.xlane.f32.xlu1 %v4089_v18  ;;  %6780 = vmatpush3.bf16.msra.mxu0 %v13857_v30  ;;  %v13858_v32 = vld [vmem:[#allocation45_spill] sm:$0xff]  ;;  %v4127_v1 = vmax.f32 %v13861_v54, %v13860_v61  ;;  %v13864_v58 = vld [vmem:[#allocation38_spill] sm:$0xff]  ;;  %v13868_v10 = vld [vmem:[#allocation152_spill] sm:$0xff] }
 0x821   : > { %6892 = vmatpush3.bf16.msra.mxu1 %v13858_v32  ;;  %v13862_v34 = vld [vmem:[#allocation85_spill] sm:$0xff]  ;;  %6781 = vmatprep.subr.bf16.mxu0 %v13864_v58  ;;  %v13865_v51 = vld [vmem:[#allocation54_spill] sm:$0xff]  ;;  %v4113_v32 = vmax.f32 %v4112_v19, %v13868_v10  ;;  %v13874_v58 = vld [vmem:[#allocation91_spill] sm:$0xff] }
 0x822   : > { %v4122_v18 = vmax.f32 %v13863_v39, %v13862_v34  ;;  %6893 = vmatprep.subr.bf16.mxu1 %v13865_v51  ;;  %v13866_v0 = vld [vmem:[#allocation149_spill] sm:$0xff]  ;;  %v13867_v36 = vld [vmem:[#allocation154_spill] sm:$0xff]  ;;  %v13873_v34 = vld [vmem:[#allocation88_spill] sm:$0xff] }
 0x823   : > { %4095 = vmax.xlane.f32.xlu0 %v4094_v15  ;;  %v4104_v24 = vmax.f32 %v4103_v16, %v13866_v0  ;;  %v4118_v30 = vmax.f32 %v4117_v56, %v13867_v36  ;;  %v13869_v57 = vld [vmem:[#allocation30_spill] sm:$0xff]  ;;  %v13872_v48 = vld [vmem:[#allocation89_spill] sm:$0xff]  ;;  %v13877_v15 = vld [vmem:[#allocation55_spill] sm:$0xff] }
 0x824   : > { %4100 = vmax.xlane.f32.xlu1 %v4099_v44  ;;  %6782 = vmatpush3.bf16.msra.mxu0 %v13869_v57  ;;  %v13870_v52 = vld [vmem:[#allocation46_spill] sm:$0xff]  ;;  %v4132_v39 = vmax.f32 %v13873_v34, %v13872_v48  ;;  %v13876_v44 = vld [vmem:[#allocation39_spill] sm:$0xff]  ;;  %v13879_v19 = vld [vmem:[#allocation153_spill] sm:$0xff] }
 0x825   : > { %6894 = vmatpush3.bf16.msra.mxu1 %v13870_v52  ;;  %v13871_v61 = vld [vmem:[#allocation158_spill] sm:$0xff]  ;;  %6783 = vmatprep.subr.bf16.mxu0 %v13876_v44  ;;  %v13878_v56 = vld [vmem:[#allocation155_spill] sm:$0xff]  ;;  %v4114_v57 = vmax.f32 %v4113_v32, %v13879_v19  ;;  %v13880_v36 = vld [vmem:[#allocation156_spill] sm:$0xff] }
 0x826   : > { %v4128_v54 = vmax.f32 %v4127_v1, %v13871_v61  ;;  %v13875_v9 = vld [vmem:[#allocation90_spill] sm:$0xff]  ;;  %6895 = vmatprep.subr.bf16.mxu1 %v13877_v15  ;;  %v4119_v16 = vmax.f32 %v4118_v30, %v13878_v56  ;;  %v4123_v52 = vmax.f32 %v4122_v18, %v13880_v36  ;;  %v13881_v0 = vld [vmem:[#allocation31_spill] sm:$0xff]  ;;  %v13883_v48 = vld [vmem:[#allocation160_spill] sm:$0xff] }
 0x827   : > { %v4137_v51 = vmax.f32 %v13875_v9, %v13874_v58  ;;  %4105 = vmax.xlane.f32.xlu0 %v4104_v24  ;;  %v13882_v1 = vld [vmem:[#allocation47_spill] sm:$0xff]  ;;  %v4133_v34 = vmax.f32 %v4132_v39, %v13883_v48  ;;  %v13884_v61 = vld [vmem:[#allocation162_spill] sm:$0xff]  ;;  %v13885_v9 = vld [vmem:[#allocation93_spill] sm:$0xff] }
 0x828   : > { %4110 = vmax.xlane.f32.xlu1 %v4109_v14  ;;  %6784 = vmatpush3.bf16.msra.mxu0 %v13881_v0  ;;  %v13886_v44 = vld [vmem:[#allocation92_spill] sm:$0xff]  ;;  %v13887_v24 = vld [vmem:[#allocation159_spill] sm:$0xff]  ;;  %v13888_v30 = vld [vmem:[#allocation157_spill] sm:$0xff] }
 0x829   : > { %6896 = vmatpush3.bf16.msra.mxu1 %v13882_v1  ;;  %v4138_v58 = vmax.f32 %v4137_v51, %v13884_v61  ;;  %v4142_v10 = vmax.f32 %v13886_v44, %v13885_v9  ;;  %v4129_v14 = vmax.f32 %v4128_v54, %v13887_v24  ;;  %v4124_v15 = vmax.f32 %v4123_v52, %v13888_v30  ;;  %v13889_v32 = vld [vmem:[#allocation95_spill] sm:$0xff]  ;;  %v13890_v56 = vld [vmem:[#allocation94_spill] sm:$0xff]  ;;  %v13891_v36 = vld [vmem:[#allocation161_spill] sm:$0xff] }
 0x82a   : > { %v4147_v18 = vmax.f32 %v13890_v56, %v13889_v32  ;;  %v4134_v0 = vmax.f32 %v4133_v34, %v13891_v36  ;;  %v13892_v19 = vld [vmem:[#allocation163_spill] sm:$0xff]  ;;  %v13893_v8 = vld [vmem:[#allocation164_spill] sm:$0xff]  ;;  %v13894_v51 = vld [vmem:[#allocation166_spill] sm:$0xff] }
 0x82b   : > { %4115 = vmax.xlane.f32.xlu0 %v4114_v57  ;;  %v4139_v1 = vmax.f32 %v4138_v58, %v13892_v19  ;;  %v4143_v39 = vmax.f32 %v4142_v10, %v13893_v8  ;;  %v13895_v9 = vld [vmem:[#allocation99_spill] sm:$0xff]  ;;  %v13897_v44 = vld [vmem:[#allocation97_spill] sm:$0xff]  ;;  %v13898_v54 = vld [vmem:[#allocation96_spill] sm:$0xff] }
 0x82c   : > { %4120 = vmax.xlane.f32.xlu1 %v4119_v16  ;;  %v4148_v48 = vmax.f32 %v4147_v18, %v13894_v51  ;;  %v13896_v16 = vld [vmem:[#allocation98_spill] sm:$0xff]  ;;  %v4152_v24 = vmax.f32 %v13898_v54, %v13897_v44  ;;  %v13899_v52 = vld [vmem:[#allocation165_spill] sm:$0xff]  ;;  %v13901_v32 = vld [vmem:[#allocation100_spill] sm:$0xff] }
 0x82d   : > { %v4157_v57 = vmax.f32 %v13896_v16, %v13895_v9  ;;  %v4144_v30 = vmax.f32 %v4143_v39, %v13899_v52  ;;  %v13900_v61 = vld [vmem:[#allocation101_spill] sm:$0xff]  ;;  %v13902_v34 = vld [vmem:[#allocation103_spill] sm:$0xff]  ;;  %v13903_v36 = vld [vmem:[#allocation102_spill] sm:$0xff] }
 0x82e   : > { %v4162_v56 = vmax.f32 %v13901_v32, %v13900_v61  ;;  %v4167_v58 = vmax.f32 %v13903_v36, %v13902_v34  ;;  %v13904_v10 = vld [vmem:[#allocation167_spill] sm:$0xff]  ;;  %v13906_v8 = vld [vmem:[#allocation168_spill] sm:$0xff]  ;;  %v13909_v44 = vld [vmem:[#allocation106_spill] sm:$0xff] }
 0x82f   : > { %4125 = vmax.xlane.f32.xlu0 %v4124_v15  ;;  %v13905_v15 = vld [vmem:[#allocation170_spill] sm:$0xff]  ;;  %v4153_v51 = vmax.f32 %v4152_v24, %v13906_v8  ;;  %v13907_v9 = vld [vmem:[#allocation172_spill] sm:$0xff]  ;;  %v13908_v19 = vld [vmem:[#allocation107_spill] sm:$0xff] }
 0x830   : > { %4130 = vmax.xlane.f32.xlu1 %v4129_v14  ;;  %v4149_v14 = vmax.f32 %v4148_v48, %v13904_v10  ;;  %v4158_v18 = vmax.f32 %v4157_v57, %v13905_v15  ;;  %v4163_v16 = vmax.f32 %v4162_v56, %v13907_v9  ;;  %v4177_v54 = vmax.f32 %v13909_v44, %v13908_v19  ;;  %v13910_v39 = vld [vmem:[#allocation171_spill] sm:$0xff]  ;;  %v13911_v32 = vld [vmem:[#allocation169_spill] sm:$0xff]  ;;  %v13912_v34 = vld [vmem:[#allocation174_spill] sm:$0xff] }
 0x831   : > { %v4154_v52 = vmax.f32 %v4153_v51, %v13911_v32  ;;  %v13913_v48 = vld [vmem:[#allocation173_spill] sm:$0xff]  ;;  %v13914_v57 = vld [vmem:[#allocation175_spill] sm:$0xff]  ;;  %v13915_v24 = vld [vmem:[#allocation178_spill] sm:$0xff] }
 0x832   : > { %v4159_v61 = vmax.f32 %v4158_v18, %v13910_v39  ;;  %v4178_v8 = vmax.f32 %v4177_v54, %v13915_v24  ;;  %v13916_v56 = vld [vmem:[#allocation179_spill] sm:$0xff]  ;;  %v11627_v24 = vld [vmem:[#allocation3 + $0xa0] sm:$0xff]  ;;  %v11645_v44 = vld [vmem:[#allocation3 + $0xb0] sm:$0xff] }
 0x833   : > { %4140 = vmax.xlane.f32.xlu0 %v4139_v1  ;;  %v4164_v1 = vmax.f32 %v4163_v16, %v13913_v48  ;;  %v11455_v54 = vld [vmem:[#allocation3 + $0x18] sm:$0xff]  ;;  %13957 = vst [vmem:[#allocation376_spill] sm:$0xff] %v11627_v24  ;;  %v13962_v32 = vld [vmem:[#allocation104_spill] sm:$0xff]  ;;  %13963 = vst [vmem:[#allocation380_spill] sm:$0xff] %v11645_v44 }
 0x834   : > { %4135 = vmax.xlane.f32.xlu1 %v4134_v0  ;;  %v4168_v0 = vmax.f32 %v4167_v58, %v13912_v34  ;;  %v4179_v9 = vmax.f32 %v4178_v8, %v13916_v56  ;;  %13922 = vst [vmem:[#allocation341_spill] sm:$0xff] %v11455_v54  ;;  %v13968_v34 = vld [vmem:[#allocation111_spill] sm:$0xff]  ;;  %v13969_v39 = vld [vmem:[#allocation110_spill] sm:$0xff]  ;;  %v11664_v10 = vld [vmem:[#allocation3 + $0xc8] sm:$0xff] }
 0x835   : > { %v4187_v15 = vmax.f32 %v13969_v39, %v13968_v34  ;;  %13970 = vst [vmem:[#allocation384_spill] sm:$0xff] %v11664_v10  ;;  %v11666_v49 = vld [vmem:[#allocation3 + $0xc0] sm:$0xff]  ;;  %v13975_v39 = vld [vmem:[#allocation182_spill] sm:$0xff]  ;;  %v11684_v26 = vld [vmem:[#allocation3 + $0xd8] sm:$0xff] }
 0x836   : > { %v4169_v36 = vmax.f32 %v4168_v0, %v13914_v57  ;;  %v11647_v57 = vld [vmem:[#allocation3 + $0xb8] sm:$0xff]  ;;  %13971 = vst [vmem:[#allocation385_spill] sm:$0xff] %v11666_v49  ;;  %v11682_v29 = vld [vmem:[#allocation3 + $0xd0] sm:$0xff]  ;;  %13977 = vst [vmem:[#allocation389_spill] sm:$0xff] %v11684_v26 }
 0x837   : > { %4150 = vmax.xlane.f32.xlu0 %v4149_v14  ;;  %v11445_v14 = vld [vmem:[#allocation3 + $0x10] sm:$0xff]  ;;  %13964 = vst [vmem:[#allocation381_spill] sm:$0xff] %v11647_v57  ;;  %13976 = vst [vmem:[#allocation388_spill] sm:$0xff] %v11682_v29 }
 0x838   : > { %4145 = vmax.xlane.f32.xlu1 %v4144_v30  ;;  %v11443_v30 = vld [vmem:[#allocation3] sm:$0xff]  ;;  %13918 = vst [vmem:[#allocation337_spill] sm:$0xff] %v11445_v14 }
 0x839   : > { %13917 = vst [vmem:[#allocation336_spill] sm:$0xff] %v11443_v30 }
 0x83b   : > { %4155 = vmax.xlane.f32.xlu0 %v4154_v52  ;;  %v11453_v52 = vld [vmem:[#allocation3 + $0x8] sm:$0xff] }
 0x83c   : > { %4160 = vmax.xlane.f32.xlu1 %v4159_v61  ;;  %13921 = vst [vmem:[#allocation340_spill] sm:$0xff] %v11453_v52 }
 0x83f   : > { %4170 = vmax.xlane.f32.xlu0 %v4169_v36 }
 0x840   : > { %4165 = vmax.xlane.f32.xlu1 %v4164_v1 }
 0x844   : > { %4180 = vmax.xlane.f32.xlu1 %v4179_v9  ;;  %v11491_v9 = vld [vmem:[#allocation3 + $0x30] sm:$0xff] }
 0x845   : > { %13929 = vst [vmem:[#allocation348_spill] sm:$0xff] %v11491_v9 }
 0x898   : > { %v4036_v51 = vpop.xlane.xlu0 %4035 }
 0x899   : > { %v4046_v58 = vpop.xlane.xlu1 %4045  ;;  %v11448_v61 = vmax.f32 %v11443_v30, %v4036_v51  ;;  %v11472_v51 = vld [vmem:[#allocation3 + $0x20] sm:$0xff]  ;;  %v11493_v30 = vld [vmem:[#allocation3 + $0x38] sm:$0xff] }
 0x89a   : > { %v11451_v16 = vmax.f32 %v11445_v14, %v4046_v58  ;;  %13925 = vst [vmem:[#allocation344_spill] sm:$0xff] %v11472_v51  ;;  %v11474_v58 = vld [vmem:[#allocation3 + $0x28] sm:$0xff]  ;;  %13930 = vst [vmem:[#allocation349_spill] sm:$0xff] %v11493_v30 }
 0x89b   : > { %13919 = vst [vmem:[#allocation338_spill] sm:$0xff] %v11448_v61  ;;  %5827 = vst.msk [vmem:[#allocation3] sm:$0xff] %vm5120_vm6, %v11448_v61  ;;  %4322 = vperm.xlu0 %7615, %v11448_v61  }
 0x89c   : > { %13920 = vst [vmem:[#allocation339_spill] sm:$0xff] %v11451_v16  ;;  %5829 = vst.msk [vmem:[#allocation3 + $0x10] sm:$0xff] %vm5120_vm6, %v11451_v16  ;;  %v4041_v36 = vpop.xlane.xlu0 %4040 }
 0x89d   : > { %v4051_v18 = vpop.xlane.xlu1 %4050  ;;  %v11467_v0 = vmax.f32 %v11453_v52, %v4041_v36  ;;  %13926 = vst [vmem:[#allocation345_spill] sm:$0xff] %v11474_v58  ;;  %v11513_v52 = vld [vmem:[#allocation3 + $0x48] sm:$0xff] }
 0x89e   : > { %v11470_v1 = vmax.f32 %v11455_v54, %v4051_v18  ;;  %13934 = vst [vmem:[#allocation353_spill] sm:$0xff] %v11513_v52 }
 0x89f   : > { %13923 = vst [vmem:[#allocation342_spill] sm:$0xff] %v11467_v0  ;;  %5828 = vst.msk [vmem:[#allocation3 + $0x8] sm:$0xff] %vm5120_vm6, %v11467_v0  ;;  %4327 = vperm.xlu1 %7616, %v11467_v0  }
 0x8a0   : > { %13924 = vst [vmem:[#allocation343_spill] sm:$0xff] %v11470_v1  ;;  %5830 = vst.msk [vmem:[#allocation3 + $0x18] sm:$0xff] %vm5120_vm6, %v11470_v1  ;;  %v4056_v36 = vpop.xlane.xlu0 %4055 }
 0x8a1   : > { %v4061_v18 = vpop.xlane.xlu1 %4060  ;;  %v11486_v14 = vmax.f32 %v11472_v51, %v4056_v36  ;;  %v11511_v51 = vld [vmem:[#allocation3 + $0x40] sm:$0xff] }
 0x8a2   : > { %v11489_v61 = vmax.f32 %v11474_v58, %v4061_v18  ;;  %13933 = vst [vmem:[#allocation352_spill] sm:$0xff] %v11511_v51 }
 0x8a3   : > { %13927 = vst [vmem:[#allocation346_spill] sm:$0xff] %v11486_v14  ;;  %5831 = vst.msk [vmem:[#allocation3 + $0x20] sm:$0xff] %vm5120_vm6, %v11486_v14  ;;  %4332 = vperm.xlu1 %7616, %v11451_v16   ;;  %4342 = vperm.xlu0 %7615, %v11486_v14   ;;  %v11533_v14 = vld [vmem:[#allocation3 + $0x58] sm:$0xff] }
 0x8a4   : > { %13928 = vst [vmem:[#allocation347_spill] sm:$0xff] %v11489_v61  ;;  %5832 = vst.msk [vmem:[#allocation3 + $0x28] sm:$0xff] %vm5120_vm6, %v11489_v61  ;;  %v4066_v18 = vpop.xlane.xlu0 %4065 }
 0x8a5   : > { %v4071_v8 = vpop.xlane.xlu1 %4070  ;;  %v11506_v54 = vmax.f32 %v11491_v9, %v4066_v18  ;;  %v11531_v9 = vld [vmem:[#allocation3 + $0x50] sm:$0xff]  ;;  %13938 = vst [vmem:[#allocation357_spill] sm:$0xff] %v11533_v14 }
 0x8a6   : > { %v11509_v0 = vmax.f32 %v11493_v30, %v4071_v8  ;;  %13937 = vst [vmem:[#allocation356_spill] sm:$0xff] %v11531_v9 }
 0x8a7   : > { %13931 = vst [vmem:[#allocation350_spill] sm:$0xff] %v11506_v54  ;;  %5833 = vst.msk [vmem:[#allocation3 + $0x30] sm:$0xff] %vm5120_vm6, %v11506_v54  ;;  %4337 = vperm.xlu1 %7616, %v11470_v1   ;;  %4347 = vperm.xlu0 %7615, %v11489_v61   ;;  %v11553_v1 = vld [vmem:[#allocation3 + $0x60] sm:$0xff] }
 0x8a8   : > { %13932 = vst [vmem:[#allocation351_spill] sm:$0xff] %v11509_v0  ;;  %5834 = vst.msk [vmem:[#allocation3 + $0x38] sm:$0xff] %vm5120_vm6, %v11509_v0  ;;  %v4076_v8 = vpop.xlane.xlu0 %4075 }
 0x8a9   : > { %v4081_v36 = vpop.xlane.xlu1 %4080  ;;  %v11526_v58 = vmax.f32 %v11511_v51, %v4076_v8  ;;  %v11551_v51 = vld [vmem:[#allocation3 + $0x68] sm:$0xff]  ;;  %13942 = vst [vmem:[#allocation361_spill] sm:$0xff] %v11553_v1  ;;  %v11573_v8 = vld [vmem:[#allocation3 + $0x70] sm:$0xff] }
 0x8aa   : > { %v11529_v16 = vmax.f32 %v11513_v52, %v4081_v36  ;;  %13941 = vst [vmem:[#allocation360_spill] sm:$0xff] %v11551_v51  ;;  %13946 = vst [vmem:[#allocation365_spill] sm:$0xff] %v11573_v8 }
 0x8ab   : > { %13935 = vst [vmem:[#allocation354_spill] sm:$0xff] %v11526_v58  ;;  %5835 = vst.msk [vmem:[#allocation3 + $0x40] sm:$0xff] %vm5120_vm6, %v11526_v58  ;;  %4352 = vperm.xlu1 %7616, %v11506_v54   ;;  %4362 = vperm.xlu0 %7615, %v11526_v58  }
 0x8ac   : > { %13936 = vst [vmem:[#allocation355_spill] sm:$0xff] %v11529_v16  ;;  %5836 = vst.msk [vmem:[#allocation3 + $0x48] sm:$0xff] %vm5120_vm6, %v11529_v16  ;;  %v4086_v36 = vpop.xlane.xlu0 %4085 }
 0x8ad   : > { %v4091_v18 = vpop.xlane.xlu1 %4090  ;;  %v11546_v30 = vmax.f32 %v11531_v9, %v4086_v36  ;;  %v11592_v36 = vld [vmem:[#allocation3 + $0x80] sm:$0xff] }
 0x8ae   : > { %v11549_v61 = vmax.f32 %v11533_v14, %v4091_v18  ;;  %13950 = vst [vmem:[#allocation369_spill] sm:$0xff] %v11592_v36  ;;  %v11611_v14 = vld [vmem:[#allocation3 + $0x90] sm:$0xff] }
 0x8af   : > { %13939 = vst [vmem:[#allocation358_spill] sm:$0xff] %v11546_v30  ;;  %4357 = vperm.xlu1 %7616, %v11509_v0   ;;  %4367 = vperm.xlu0 %7615, %v11529_v16   ;;  %5837 = vst.msk [vmem:[#allocation3 + $0x50] sm:$0xff] %vm5120_vm6, %v11546_v30  ;;  %v11571_v16 = vld [vmem:[#allocation3 + $0x78] sm:$0xff] }
 0x8b0   : > { %13940 = vst [vmem:[#allocation359_spill] sm:$0xff] %v11549_v61  ;;  %5838 = vst.msk [vmem:[#allocation3 + $0x58] sm:$0xff] %vm5120_vm6, %v11549_v61  ;;  %v4096_v52 = vpop.xlane.xlu0 %4095 }
 0x8b1   : > { %v4101_v18 = vpop.xlane.xlu1 %4100  ;;  %v11569_v0 = vmax.f32 %v11553_v1, %v4096_v52  ;;  %13945 = vst [vmem:[#allocation364_spill] sm:$0xff] %v11571_v16  ;;  %13954 = vst [vmem:[#allocation373_spill] sm:$0xff] %v11611_v14 }
 0x8b2   : > { %v11566_v58 = vmax.f32 %v11551_v51, %v4101_v18  ;;  %v13982_v51 = vld [vmem:[#allocation109_spill] sm:$0xff] }
 0x8b3   : > { %13944 = vst [vmem:[#allocation363_spill] sm:$0xff] %v11569_v0  ;;  %4372 = vperm.xlu1 %7616, %v11546_v30   ;;  %5839 = vst.msk [vmem:[#allocation3 + $0x60] sm:$0xff] %vm5120_vm6, %v11569_v0  ;;  %v11590_v30 = vld [vmem:[#allocation3 + $0x88] sm:$0xff] }
 0x8b4   : > { %13943 = vst [vmem:[#allocation362_spill] sm:$0xff] %v11566_v58  ;;  %5840 = vst.msk [vmem:[#allocation3 + $0x68] sm:$0xff] %vm5120_vm6, %v11566_v58  ;;  %v4106_v18 = vpop.xlane.xlu0 %4105 }
 0x8b5   : > { %v4111_v52 = vpop.xlane.xlu1 %4110  ;;  %v11588_v54 = vmax.f32 %v11573_v8, %v4106_v18  ;;  %13949 = vst [vmem:[#allocation368_spill] sm:$0xff] %v11590_v30 }
 0x8b6   : > { %v11585_v9 = vmax.f32 %v11571_v16, %v4111_v52  ;;  %v11629_v16 = vld [vmem:[#allocation3 + $0xa8] sm:$0xff] }
 0x8b7   : > { %13948 = vst [vmem:[#allocation367_spill] sm:$0xff] %v11588_v54  ;;  %4377 = vperm.xlu1 %7616, %v11549_v61   ;;  %5841 = vst.msk [vmem:[#allocation3 + $0x70] sm:$0xff] %vm5120_vm6, %v11588_v54  ;;  %v11609_v61 = vld [vmem:[#allocation3 + $0x98] sm:$0xff] }
 0x8b8   : > { %13947 = vst [vmem:[#allocation366_spill] sm:$0xff] %v11585_v9  ;;  %5842 = vst.msk [vmem:[#allocation3 + $0x78] sm:$0xff] %vm5120_vm6, %v11585_v9  ;;  %v4116_v18 = vpop.xlane.xlu0 %4115 }
 0x8b9   : > { %v4121_v52 = vpop.xlane.xlu1 %4120  ;;  %v11607_v56 = vmax.f32 %v11592_v36, %v4116_v18  ;;  %13953 = vst [vmem:[#allocation372_spill] sm:$0xff] %v11609_v61  ;;  %13958 = vst [vmem:[#allocation377_spill] sm:$0xff] %v11629_v16 }
 0x8ba   : > { %v11604_v1 = vmax.f32 %v11590_v30, %v4121_v52 }
 0x8bb   : > { %13952 = vst [vmem:[#allocation371_spill] sm:$0xff] %v11607_v56  ;;  %5843 = vst.msk [vmem:[#allocation3 + $0x80] sm:$0xff] %vm5120_vm6, %v11607_v56 }
 0x8bc   : > { %13951 = vst [vmem:[#allocation370_spill] sm:$0xff] %v11604_v1  ;;  %5844 = vst.msk [vmem:[#allocation3 + $0x88] sm:$0xff] %vm5120_vm6, %v11604_v1  ;;  %v4126_v8 = vpop.xlane.xlu0 %4125 }
 0x8bd   : > { %v4131_v52 = vpop.xlane.xlu1 %4130  ;;  %v11625_v48 = vmax.f32 %v11611_v14, %v4126_v8 }
 0x8be   : > { %v11622_v18 = vmax.f32 %v11609_v61, %v4131_v52  ;;  %v13961_v61 = vld [vmem:[#allocation105_spill] sm:$0xff] }
 0x8bf   : > { %13956 = vst [vmem:[#allocation375_spill] sm:$0xff] %v11625_v48  ;;  %5845 = vst.msk [vmem:[#allocation3 + $0x90] sm:$0xff] %vm5120_vm6, %v11625_v48  ;;  %v4172_v19 = vmax.f32 %v13962_v32, %v13961_v61  ;;  %v13967_v61 = vld [vmem:[#allocation176_spill] sm:$0xff] }
 0x8c0   : > { %13955 = vst [vmem:[#allocation374_spill] sm:$0xff] %v11622_v18  ;;  %5846 = vst.msk [vmem:[#allocation3 + $0x98] sm:$0xff] %vm5120_vm6, %v11622_v18  ;;  %v4141_v36 = vpop.xlane.xlu0 %4140 }
 0x8c1   : > { %v4136_v30 = vpop.xlane.xlu1 %4135  ;;  %v11641_v8 = vmax.f32 %v11629_v16, %v4141_v36  ;;  %v4173_v32 = vmax.f32 %v4172_v19, %v13967_v61  ;;  %v4188_v61 = vmax.f32 %v4187_v15, %v13975_v39  ;;  %v13980_v15 = vld [vmem:[#allocation183_spill] sm:$0xff]  ;;  %v11699_v39 = vld [vmem:[#allocation3 + $0xe8] sm:$0xff] }
 0x8c2   : > { %v11638_v52 = vmax.f32 %v11627_v24, %v4136_v30  ;;  %13981 = vst [vmem:[#allocation392_spill] sm:$0xff] %v11699_v39 }
 0x8c3   : > { %13960 = vst [vmem:[#allocation379_spill] sm:$0xff] %v11641_v8  ;;  %5848 = vst.msk [vmem:[#allocation3 + $0xa8] sm:$0xff] %vm5120_vm6, %v11641_v8 }
 0x8c4   : > { %13959 = vst [vmem:[#allocation378_spill] sm:$0xff] %v11638_v52  ;;  %5847 = vst.msk [vmem:[#allocation3 + $0xa0] sm:$0xff] %vm5120_vm6, %v11638_v52  ;;  %v4151_v24 = vpop.xlane.xlu0 %4150 }
 0x8c5   : > { %v4146_v30 = vpop.xlane.xlu1 %4145  ;;  %v11659_v14 = vmax.f32 %v11647_v57, %v4151_v24 }
 0x8c6   : > { %v11656_v36 = vmax.f32 %v11645_v44, %v4146_v30  ;;  %v13974_v44 = vld [vmem:[#allocation177_spill] sm:$0xff] }
 0x8c7   : > { %13966 = vst [vmem:[#allocation383_spill] sm:$0xff] %v11659_v14  ;;  %5850 = vst.msk [vmem:[#allocation3 + $0xb8] sm:$0xff] %vm5120_vm6, %v11659_v14  ;;  %v4174_v34 = vmax.f32 %v4173_v32, %v13974_v44 }
 0x8c8   : > { %13965 = vst [vmem:[#allocation382_spill] sm:$0xff] %v11656_v36  ;;  %5849 = vst.msk [vmem:[#allocation3 + $0xb0] sm:$0xff] %vm5120_vm6, %v11656_v36  ;;  %v4156_v30 = vpop.xlane.xlu0 %4155 }
 0x8c9   : > { %v4161_v24 = vpop.xlane.xlu1 %4160  ;;  %v11678_v16 = vmax.f32 %v11666_v49, %v4156_v30  ;;  %v4189_v49 = vmax.f32 %v4188_v61, %v13980_v15 }
 0x8ca   : > { %v11675_v19 = vmax.f32 %v11664_v10, %v4161_v24  ;;  %v13983_v10 = vld [vmem:[#allocation108_spill] sm:$0xff] }
 0x8cb   : > { %13973 = vst [vmem:[#allocation387_spill] sm:$0xff] %v11678_v16  ;;  %5851 = vst.msk [vmem:[#allocation3 + $0xc0] sm:$0xff] %vm5120_vm6, %v11678_v16  ;;  %v4182_v44 = vmax.f32 %v13983_v10, %v13982_v51  ;;  %v13986_v51 = vld [vmem:[#allocation181_spill] sm:$0xff] }
 0x8cc   : > { %13972 = vst [vmem:[#allocation386_spill] sm:$0xff] %v11675_v19  ;;  %5852 = vst.msk [vmem:[#allocation3 + $0xc8] sm:$0xff] %vm5120_vm6, %v11675_v19  ;;  %v4171_v30 = vpop.xlane.xlu0 %4170 }
 0x8cd   : > { %v4166_v24 = vpop.xlane.xlu1 %4165  ;;  %v11696_v32 = vmax.f32 %v11684_v26, %v4171_v30 }
 0x8ce   : > { %v11693_v57 = vmax.f32 %v11682_v29, %v4166_v24  ;;  %4175 = vmax.xlane.f32.xlu0 %v4174_v34  ;;  %v13985_v34 = vld [vmem:[#allocation180_spill] sm:$0xff] }
 0x8cf   : > { %13979 = vst [vmem:[#allocation391_spill] sm:$0xff] %v11696_v32  ;;  %5854 = vst.msk [vmem:[#allocation3 + $0xd8] sm:$0xff] %vm5120_vm6, %v11696_v32  ;;  %v4183_v61 = vmax.f32 %v4182_v44, %v13985_v34 }
 0x8d0   : > { %13978 = vst [vmem:[#allocation390_spill] sm:$0xff] %v11693_v57  ;;  %5853 = vst.msk [vmem:[#allocation3 + $0xd0] sm:$0xff] %vm5120_vm6, %v11693_v57 }
 0x8d1   : > { %v4181_v24 = vpop.xlane.xlu1 %4180  ;;  %v4184_v10 = vmax.f32 %v4183_v61, %v13986_v51 }
 0x8d2   : > { %v11710_v30 = vmax.f32 %v11699_v39, %v4181_v24  ;;  %4190 = vmax.xlane.f32.xlu0 %v4189_v49 }
 0x8d4   : > { %13984 = vst [vmem:[#allocation393_spill] sm:$0xff] %v11710_v30  ;;  %5856 = vst.msk [vmem:[#allocation3 + $0xe8] sm:$0xff] %vm5120_vm6, %v11710_v30 }
 0x8db   : > { %4185 = vmax.xlane.f32.xlu1 %v4184_v10 }
 0x8e8   : > { %4382 = vperm.xlu0 %7615, %v11569_v0  }
 0x8ec   : > { %4402 = vperm.xlu1 %7616, %v11607_v56   ;;  %4387 = vperm.xlu0 %7615, %v11566_v58  }
 0x8f0   : > { %4427 = vperm.xlu1 %7616, %v11641_v8   ;;  %4392 = vperm.xlu0 %7615, %v11588_v54  }
 0x8f4   : > { %4437 = vperm.xlu1 %7616, %v11659_v14   ;;  %4397 = vperm.xlu0 %7615, %v11585_v9   ;;  %v14050_v9 = vld [vmem:[#allocation158_spill] sm:$0xff] }
 0x8f8   : > { %4447 = vperm.xlu1 %7616, %v11675_v19   ;;  %4407 = vperm.xlu0 %7615, %v11604_v1  }
 0x8fc   : > { %4457 = vperm.xlu1 %7616, %v11696_v32   ;;  %4412 = vperm.xlu0 %7615, %v11625_v48   ;;  %v14052_v48 = vld [vmem:[#allocation175_spill] sm:$0xff] }
 0x900   : > { %4467 = vperm.xlu1 %7616, %v11710_v30   ;;  %4417 = vperm.xlu0 %7615, %v11622_v18   ;;  %v14045_v18 = vld [vmem:[#allocation157_spill] sm:$0xff] }
 0x904   : > { %4422 = vperm.xlu0 %7615, %v11638_v52   ;;  %v14058_v52 = vld [vmem:[#allocation160_spill] sm:$0xff] }
 0x908   : > { %4432 = vperm.xlu0 %7615, %v11656_v36  }
 0x90c   : > { %4442 = vperm.xlu0 %7615, %v11678_v16  }
 0x910   : > { %4452 = vperm.xlu0 %7615, %v11693_v57  }
 0x91a   : > { %v4323_v49 = vpop.permute.xlu0 %4322 }
 0x91b   : > { %v4480_v44 = vsub.f32 %v13770_v55, %v4323_v49  ;;  %v4481_v10 = vsub.f32 %v13769_v60, %v4323_v49  ;;  %v4482_v24 = vsub.f32 %v13783_v40, %v4323_v49  ;;  %v4483_v61 = vsub.f32 %v13789_v12, %v4323_v49 }
 0x91d   : > { %v4608_v29 = vmul.f32 1.442695, %v4480_v44  ;;  %v4610_v7 = vmul.f32 1.442695, %v4481_v10  ;;  %v4612_v30 = vmul.f32 1.442695, %v4482_v24 }
 0x91e   : > { %v4614_v39 = vmul.f32 1.442695, %v4483_v61  ;;  %v4328_v32 = vpop.permute.xlu1 %4327 }
 0x91f   : > { %7617 = vpow2.f32 %v4608_v29  ;;  %v4484_v26 = vsub.f32 %v13774_v31, %v4328_v32  ;;  %v4485_v19 = vsub.f32 %v13773_v47, %v4328_v32  ;;  %v4486_v14 = vsub.f32 %v13785_v37, %v4328_v32 }
 0x920   : > { %7619 = vpow2.f32 %v4610_v7  ;;  %v4487_v55 = vsub.f32 %v13798_v5, %v4328_v32 }
 0x921   : > { %7621 = vpow2.f32 %v4612_v30  ;;  %v4616_v60 = vmul.f32 1.442695, %v4484_v26  ;;  %v4618_v40 = vmul.f32 1.442695, %v4485_v19  ;;  %v4620_v8 = vmul.f32 1.442695, %v4486_v14 }
 0x922   : > { %7623 = vpow2.f32 %v4614_v39  ;;  %v4622_v12 = vmul.f32 1.442695, %v4487_v55  ;;  %v4333_v49 = vpop.permute.xlu1 %4332  ;;  %v4343_v44 = vpop.permute.xlu0 %4342 }
 0x923   : > { %7625 = vpow2.f32 %v4616_v60  ;;  %v4488_v29 = vsub.f32 %v13772_v13, %v4333_v49  ;;  %v4489_v31 = vsub.f32 %v13771_v11, %v4333_v49  ;;  %v4490_v47 = vsub.f32 %v13784_v42, %v4333_v49 }
 0x924   : > { %7627 = vpow2.f32 %v4618_v40  ;;  %v4491_v37 = vsub.f32 %v13790_v20, %v4333_v49  ;;  %v4496_v5 = vsub.f32 %v13779_v59, %v4343_v44  ;;  %v4497_v26 = vsub.f32 %v13778_v17, %v4343_v44 }
 0x925   : > { %7629 = vpow2.f32 %v4620_v8  ;;  %v4624_v7 = vmul.f32 1.442695, %v4488_v29  ;;  %v4626_v39 = vmul.f32 1.442695, %v4489_v31  ;;  %v4628_v14 = vmul.f32 1.442695, %v4490_v47 }
 0x926   : > { %7631 = vpow2.f32 %v4622_v12  ;;  %v4630_v19 = vmul.f32 1.442695, %v4491_v37  ;;  %v4498_v32 = vsub.f32 %v13792_v2, %v4343_v44  ;;  %v4499_v13 = vsub.f32 %v13803_v23, %v4343_v44  ;;  %v4338_v11 = vpop.permute.xlu1 %4337  ;;  %v4348_v20 = vpop.permute.xlu0 %4347 }
 0x927   : > { %7633 = vpow2.f32 %v4624_v7  ;;  %v4640_v42 = vmul.f32 1.442695, %v4496_v5  ;;  %v4492_v30 = vsub.f32 %v13776_v50, %v4338_v11  ;;  %v4642_v59 = vmul.f32 1.442695, %v4497_v26 }
 0x928   : > { %7635 = vpow2.f32 %v4626_v39  ;;  %v4493_v17 = vsub.f32 %v13775_v21, %v4338_v11  ;;  %v4644_v10 = vmul.f32 1.442695, %v4498_v32  ;;  %v4494_v24 = vsub.f32 %v13786_v4, %v4338_v11 }
 0x929   : > { %v11753_v8 = vpop.eup %7617  ;;  %7637 = vpow2.f32 %v4628_v14  ;;  %v4495_v2 = vsub.f32 %v13799_v27, %v4338_v11  ;;  %v4646_v23 = vmul.f32 1.442695, %v4499_v13  ;;  %v4500_v55 = vsub.f32 %v13781_v25, %v4348_v20 }
 0x92a   : > { %v11757_v61 = vpop.eup %7619  ;;  %7639 = vpow2.f32 %v4630_v19  ;;  %v4501_v50 = vsub.f32 %v13780_v41, %v4348_v20  ;;  %v4353_v60 = vpop.permute.xlu1 %4352  ;;  %v4632_v21 = vmul.f32 1.442695, %v4492_v30  ;;  %v4502_v12 = vsub.f32 %v13800_v22, %v4348_v20 }
 0x92b   : > { %v11761_v40 = vpop.eup %7621  ;;  %7641 = vpow2.f32 %v4640_v42  ;;  %v4634_v4 = vmul.f32 1.442695, %v4493_v17  ;;  %v4636_v44 = vmul.f32 1.442695, %v4494_v24  ;;  %v4638_v29 = vmul.f32 1.442695, %v4495_v2  ;;  %v4363_v31 = vpop.permute.xlu0 %4362 }
 0x92c   : > { %v11764_v49 = vpop.eup %7623  ;;  %7643 = vpow2.f32 %v4642_v59  ;;  %v4503_v25 = vsub.f32 %v13807_v33, %v4348_v20  ;;  %v4648_v47 = vmul.f32 1.442695, %v4500_v55  ;;  %v4650_v37 = vmul.f32 1.442695, %v4501_v50  ;;  %v13987_v50 = vld [vmem:[#allocation135_spill] sm:$0xff] }
 0x92d   : > { %v11766_v27 = vpop.eup %7625  ;;  %7645 = vpow2.f32 %v4644_v10  ;;  %v4504_v5 = vsub.f32 %v13794_v43, %v4353_v60  ;;  %v4652_v7 = vmul.f32 1.442695, %v4502_v12  ;;  %v4505_v39 = vsub.f32 %v13793_v53, %v4353_v60 }
 0x92e   : > { %v11769_v41 = vpop.eup %7627  ;;  %7647 = vpow2.f32 %v4646_v23  ;;  %v4358_v22 = vpop.permute.xlu1 %4357  ;;  %v4506_v14 = vsub.f32 %v13804_v45, %v4353_v60  ;;  %v4507_v33 = vsub.f32 %v13814_v46, %v4353_v60  ;;  %v4512_v32 = vsub.f32 %v13809_v28, %v4363_v31 }
 0x92f   : > { %v11772_v26 = vpop.eup %7629  ;;  %7649 = vpow2.f32 %v4632_v21  ;;  %v4513_v13 = vsub.f32 %v13808_v63, %v4363_v31  ;;  %v4654_v43 = vmul.f32 1.442695, %v4503_v25  ;;  %v4514_v42 = vsub.f32 %v13819_v35, %v4363_v31  ;;  %v4368_v23 = vpop.permute.xlu0 %4367 }
 0x930   : > { %v11776_v19 = vpop.eup %7631  ;;  %7651 = vpow2.f32 %v4634_v4  ;;  %v4515_v30 = vsub.f32 %v13831_v3, %v4363_v31  ;;  %v4656_v45 = vmul.f32 1.442695, %v4504_v5  ;;  %v4508_v20 = vsub.f32 %v13796_v62, %v4358_v22  ;;  %v13989_v31 = vld [vmem:[#allocation67_spill] sm:$0xff] }
 0x931   : > { %v11781_v11 = vpop.eup %7633  ;;  %7653 = vpow2.f32 %v4636_v44  ;;  %v4509_v46 = vsub.f32 %v13795_v6, %v4358_v22  ;;  %v4658_v63 = vmul.f32 1.442695, %v4505_v39  ;;  %v4660_v28 = vmul.f32 1.442695, %v4506_v14  ;;  %v13991_v39 = vld [vmem:[#allocation139_spill] sm:$0xff] }
 0x932   : > { %v11785_v53 = vpop.eup %7635  ;;  %7655 = vpow2.f32 %v4638_v29  ;;  %v4510_v17 = vsub.f32 %v13805_v38, %v4358_v22  ;;  %v11792_v10 = vpop.permute.xlu1 %4372  ;;  %v4662_v3 = vmul.f32 1.442695, %v4507_v33  ;;  %v4672_v24 = vmul.f32 1.442695, %v4512_v32  ;;  %v13988_v29 = vld [vmem:[#allocation66_spill] sm:$0xff] }
 0x933   : > { %v11789_v59 = vpop.eup %7637  ;;  %7657 = vpow2.f32 %v4648_v47  ;;  %v4674_v2 = vmul.f32 1.442695, %v4513_v13  ;;  %v4676_v6 = vmul.f32 1.442695, %v4514_v42  ;;  %v4678_v62 = vmul.f32 1.442695, %v4515_v30 }
 0x934   : > { %v11794_v35 = vpop.eup %7639  ;;  %7659 = vpow2.f32 %v4650_v37  ;;  %v4511_v60 = vsub.f32 %v13987_v50, %v4358_v22  ;;  %v4664_v38 = vmul.f32 1.442695, %v4508_v20  ;;  %v4666_v12 = vmul.f32 1.442695, %v4509_v46  ;;  %v13990_v22 = vld [vmem:[#allocation138_spill] sm:$0xff]  ;;  %v13992_v42 = vld [vmem:[#allocation68_spill] sm:$0xff] }
 0x935   : > { %v11796_v55 = vpop.eup %7641  ;;  %7661 = vpow2.f32 %v4652_v7  ;;  %v4668_v4 = vmul.f32 1.442695, %v4510_v17  ;;  %v4516_v25 = vsub.f32 %v13988_v29, %v4368_v23  ;;  %v4517_v47 = vsub.f32 %v13989_v31, %v4368_v23 }
 0x936   : > { %v11799_v21 = vpop.eup %7643  ;;  %7663 = vpow2.f32 %v4654_v43  ;;  %v5378_v37 = vpack.c.bf16 %v11769_v41, %v11757_v61  ;;  %v4518_v7 = vsub.f32 %v13990_v22, %v4368_v23  ;;  %v4519_v14 = vsub.f32 %v13991_v39, %v4368_v23 }
 0x937   : > { %v11801_v44 = vpop.eup %7645  ;;  %7665 = vpow2.f32 %v4656_v45  ;;  %v5380_v33 = vpack.c.bf16 %v11776_v19, %v11764_v49  ;;  %v5377_v13 = vpack.c.bf16 %v11766_v27, %v11753_v8  ;;  %v5379_v43 = vpack.c.bf16 %v11772_v26, %v11761_v40  ;;  %v11821_v45 = vpop.permute.xlu1 %4377 }
 0x938   : > { %v11807_v5 = vpop.eup %7647  ;;  %7667 = vpow2.f32 %v4658_v63  ;;  %5473 = vmatprep.mubr.bf16.mxu0 %v5378_v37  ;;  %v4520_v30 = vsub.f32 %v13992_v42, %v11792_v10  ;;  %v4670_v46 = vmul.f32 1.442695, %v4511_v60  ;;  %v13993_v63 = vld [vmem:[#allocation69_spill] sm:$0xff]  ;;  %v4680_v29 = vmul.f32 1.442695, %v4516_v25  ;;  %v13997_v25 = vld [vmem:[#allocation71_spill] sm:$0xff] }
 0x939   : > { %v11813_v32 = vpop.eup %7649  ;;  %7669 = vpow2.f32 %v4660_v28  ;;  %5634 = vmatprep.mubr.bf16.mxu1 %v5380_v33  ;;  %v4521_v17 = vsub.f32 %v13993_v63, %v11792_v10  ;;  %v13994_v28 = vld [vmem:[#allocation140_spill] sm:$0xff]  ;;  %v4682_v31 = vmul.f32 1.442695, %v4517_v47  ;;  %5474 = vmatmul.mubr.bf16.vlgmr.msra.gmra.mrb[0].mxu0 %v5377_v13  ;;  %v13995_v37 = vld [vmem:[#allocation141_spill] sm:$0xff]  ;;  %v4686_v60 = vmul.f32 1.442695, %v4519_v14 }
 0x93a   : > { %v7652_v20 = vpop.eup %7651  ;;  %7671 = vpow2.f32 %v4662_v3  ;;  %v4522_v23 = vsub.f32 %v13994_v28, %v11792_v10  ;;  %5635 = vmatmul.mubr.bf16.vlgmr.msra.gmra.mrb[0].mxu1 %v5379_v43  ;;  %v4523_v22 = vsub.f32 %v13995_v37, %v11792_v10  ;;  %v4684_v3 = vmul.f32 1.442695, %v4518_v7  ;;  %v13996_v33 = vld [vmem:[#allocation70_spill] sm:$0xff] }
 0x93b   : > { %v7654_v50 = vpop.eup %7653  ;;  %7673 = vpow2.f32 %v4672_v24  ;;  %v4524_v42 = vsub.f32 %v13996_v33, %v11821_v45  ;;  %v4688_v28 = vmul.f32 1.442695, %v4520_v30  ;;  %v4690_v24 = vmul.f32 1.442695, %v4521_v17  ;;  %v13998_v37 = vld [vmem:[#allocation142_spill] sm:$0xff] }
 0x93c   : > { %v11829_v39 = vpop.eup %7655  ;;  %7675 = vpow2.f32 %v4674_v2  ;;  %v4525_v47 = vsub.f32 %v13997_v25, %v11821_v45  ;;  %v4692_v43 = vmul.f32 1.442695, %v4522_v23  ;;  %v5382_v10 = vpack.c.bf16 %v7652_v20, %v11785_v53 }
 0x93d   : > { %v11833_v63 = vpop.eup %7657  ;;  %7677 = vpow2.f32 %v4676_v6  ;;  %v5384_v2 = vpack.c.bf16 %v11829_v39, %v11794_v35  ;;  %v4694_v14 = vmul.f32 1.442695, %v4523_v22  ;;  %v4526_v6 = vsub.f32 %v13998_v37, %v11821_v45 }
 0x93e   : > { %v7660_v13 = vpop.eup %7659  ;;  %7679 = vpow2.f32 %v4678_v62  ;;  %v5381_v30 = vpack.c.bf16 %v11813_v32, %v11781_v11  ;;  %v13999_v62 = vld [vmem:[#allocation143_spill] sm:$0xff]  ;;  %v4696_v33 = vmul.f32 1.442695, %v4524_v42  ;;  %5481 = vmatprep.mubr.bf16.mxu0 %v5382_v10  ;;  %v5383_v25 = vpack.c.bf16 %v7654_v50, %v11789_v59 }
 0x93f   : > { %v11840_v7 = vpop.eup %7661  ;;  %7681 = vpow2.f32 %v4664_v38  ;;  %v4527_v23 = vsub.f32 %v13999_v62, %v11821_v45  ;;  %5642 = vmatprep.mubr.bf16.mxu1 %v5384_v2  ;;  %v5386_v38 = vpack.c.bf16 %v7660_v13, %v11799_v21  ;;  %v4933_v37 = vadd.f32 %v11769_v41, %v11766_v27 }
 0x940   : > { %v11846_v17 = vpop.eup %7663  ;;  %7683 = vpow2.f32 %v4666_v12  ;;  %v4928_v45 = vadd.f32 %v11757_v61, %v11753_v8  ;;  %v4948_v42 = vadd.f32 %v11799_v21, %v11796_v55  ;;  %v4938_v10 = vadd.f32 %v11785_v53, %v11781_v11 }
 0x941   : > { %v11851_v57 = vpop.eup %7665  ;;  %7685 = vpow2.f32 %v4668_v4  ;;  %v5388_v22 = vpack.c.bf16 %v11846_v17, %v11807_v5  ;;  %5482 = vmatmul.mubr.bf16.gmra.mrb[4].mxu0 %v5381_v30  ;;  %v4934_v2 = vadd.f32 %v11772_v26, %v4933_v37  ;;  %v4943_v41 = vadd.f32 %v7652_v20, %v11813_v32 }
 0x942   : > { %v7668_v12 = vpop.eup %7667  ;;  %7687 = vpow2.f32 %v4670_v46  ;;  %5643 = vmatmul.mubr.bf16.gmra.mrb[4].mxu1 %v5383_v25  ;;  %5489 = vmatprep.mubr.bf16.mxu0 %v5386_v38  ;;  %v4929_v8 = vadd.f32 %v11761_v40, %v4928_v45  ;;  %v4949_v61 = vadd.f32 %v11801_v44, %v4948_v42  ;;  %v4939_v11 = vadd.f32 %v11789_v59, %v4938_v10 }
 0x943   : > { %v11864_v4 = vpop.eup %7669  ;;  %7689 = vpow2.f32 %v4680_v29  ;;  %v4958_v27 = vadd.f32 %v7668_v12, %v11851_v57  ;;  %5650 = vmatprep.mubr.bf16.mxu1 %v5388_v22  ;;  %v11875_v21 = vadd.f32 %v11776_v19, %v4934_v2  ;;  %v4944_v29 = vadd.f32 %v7654_v50, %v4943_v41 }
 0x944   : > { %v7672_v46 = vpop.eup %7671  ;;  %7691 = vpow2.f32 %v4682_v31  ;;  %v11879_v20 = vadd.f32 %v11764_v49, %v4929_v8  ;;  %v11882_v40 = vadd.f32 %v11807_v5, %v4949_v61  ;;  %v11885_v31 = vadd.f32 %v11794_v35, %v4939_v11 }
 0x945   : > { %v11872_v53 = vpop.eup %7673  ;;  %7693 = vpow2.f32 %v4684_v3  ;;  %v4959_v26 = vadd.f32 %v11864_v4, %v4958_v27  ;;  %v11892_v19 = vadd.f32 %v11829_v39, %v4944_v29  ;;  %v4698_v49 = vmul.f32 1.442695, %v4525_v47 }
 0x946   : > { %v7676_v32 = vpop.eup %7675  ;;  %7695 = vpow2.f32 %v4686_v60  ;;  %v4700_v30 = vmul.f32 1.442695, %v4526_v6  ;;  %v4953_v5 = vadd.f32 %v7660_v13, %v11833_v63  ;;  %v5385_v35 = vpack.c.bf16 %v11833_v63, %v11796_v55 }
 0x947   : > { %v11887_v59 = vpop.eup %7677  ;;  %7697 = vpow2.f32 %v4688_v28  ;;  %v11889_v3 = vadd.f32 %v7672_v46, %v4959_v26  ;;  %v4968_v50 = vadd.f32 %v7676_v32, %v11872_v53  ;;  %v5387_v28 = vpack.c.bf16 %v11840_v7, %v11801_v44 }
 0x948   : > { %v7680_v60 = vpop.eup %7679  ;;  %7699 = vpow2.f32 %v4690_v24  ;;  %v4702_v38 = vmul.f32 1.442695, %v4527_v23  ;;  %v4954_v22 = vadd.f32 %v11840_v7, %v4953_v5  ;;  %v11917_v5 = vld [vmem:[#allocation3 + $0xe0] sm:$0xff] }
 0x949   : > { %v7682_v62 = vpop.eup %7681  ;;  %7701 = vpow2.f32 %v4692_v43  ;;  %v4969_v25 = vadd.f32 %v11887_v59, %v4968_v50  ;;  %5490 = vmatmul.mubr.bf16.gmra.mrb[8].mxu0 %v5385_v35  ;;  %14000 = vst [vmem:[#allocation394_spill] sm:$0xff] %v11917_v5 }
 0x94a   : > { %v7684_v39 = vpop.eup %7683  ;;  %7703 = vpow2.f32 %v4694_v14  ;;  %5651 = vmatmul.mubr.bf16.gmra.mrb[8].mxu1 %v5387_v28  ;;  %v11905_v55 = vadd.f32 %v11846_v17, %v4954_v22  ;;  %v5389_v42 = vpack.c.bf16 %v7682_v62, %v11851_v57  ;;  %v11924_v22 = vld [vmem:[#allocation3 + $0xf8] sm:$0xff] }
 0x94b   : > { %v7686_v24 = vpop.eup %7685  ;;  %7705 = vpow2.f32 %v4696_v33  ;;  %v5390_v47 = vpack.c.bf16 %v7684_v39, %v7668_v12  ;;  %v11902_v13 = vadd.f32 %v7680_v60, %v4969_v25  ;;  %v4963_v43 = vadd.f32 %v7684_v39, %v7682_v62  ;;  %14002 = vst [vmem:[#allocation396_spill] sm:$0xff] %v11924_v22 }
 0x94c   : > { %v7688_v6 = vpop.eup %7687  ;;  %7707 = vpow2.f32 %v4698_v49  ;;  %v5391_v10 = vpack.c.bf16 %v7686_v24, %v11864_v4 }
 0x94d   : > { %v7690_v44 = vpop.eup %7689  ;;  %7709 = vpow2.f32 %v4700_v30  ;;  %5497 = vmatprep.mubr.bf16.mxu0 %v5390_v47  ;;  %v5392_v63 = vpack.c.bf16 %v7688_v6, %v7672_v46  ;;  %v4964_v14 = vadd.f32 %v7686_v24, %v4963_v43 }
 0x94e   : > { %v7692_v23 = vpop.eup %7691  ;;  %7711 = vpow2.f32 %v4702_v38 }
 0x94f   : > { %v7694_v7 = vpop.eup %7693  ;;  %5658 = vmatprep.mubr.bf16.mxu1 %v5392_v63  ;;  %v11907_v33 = vadd.f32 %v7688_v6, %v4964_v14  ;;  %v4973_v37 = vadd.f32 %v7692_v23, %v7690_v44  ;;  %v5394_v27 = vpack.c.bf16 %v7692_v23, %v7676_v32  ;;  %v5393_v32 = vpack.c.bf16 %v7690_v44, %v11872_v53  ;;  %v11939_v44 = vld [vmem:[#allocation3 + $0xf0] sm:$0xff]  ;;  %v14005_v23 = vld [vmem:[#allocation72_spill] sm:$0xff] }
 0x950   : > { %v7696_v12 = vpop.eup %7695  ;;  %14004 = vst [vmem:[#allocation398_spill] sm:$0xff] %v11939_v44 }
 0x951   : > { %v7698_v45 = vpop.eup %7697  ;;  %v4974_v17 = vadd.f32 %v7694_v7, %v4973_v37  ;;  %v5396_v41 = vpack.c.bf16 %v7696_v12, %v7680_v60  ;;  %5498 = vmatmul.mubr.bf16.gmra.mrb[12].mxu0 %v5389_v42  ;;  %v5395_v60 = vpack.c.bf16 %v7694_v7, %v11887_v59  ;;  %v14008_v42 = vld [vmem:[#allocation144_spill] sm:$0xff] }
 0x952   : > { %v7700_v2 = vpop.eup %7699  ;;  %5659 = vmatmul.mubr.bf16.gmra.mrb[12].mxu1 %v5391_v10  ;;  %5505 = vmatprep.mubr.bf16.mxu0 %v5394_v27  ;;  %v14009_v27 = vld [vmem:[#allocation145_spill] sm:$0xff] }
 0x953   : > { %v7702_v8 = vpop.eup %7701  ;;  %v4978_v46 = vadd.f32 %v7700_v2, %v7698_v45  ;;  %v11911_v61 = vadd.f32 %v7696_v12, %v4974_v17  ;;  %5666 = vmatprep.mubr.bf16.mxu1 %v5396_v41  ;;  %v14007_v12 = vld [vmem:[#allocation73_spill] sm:$0xff] }
 0x954   : > { %v7704_v11 = vpop.eup %7703 }
 0x955   : > { %v7706_v26 = vpop.eup %7705  ;;  %v4979_v29 = vadd.f32 %v7702_v8, %v4978_v46  ;;  %v14010_v46 = vld [vmem:[#allocation74_spill] sm:$0xff] }
 0x956   : > { %v7708_v50 = vpop.eup %7707  ;;  %v5397_v47 = vpack.c.bf16 %v7706_v26, %v7698_v45 }
 0x957   : > { %v7710_v49 = vpop.eup %7709  ;;  %v11913_v57 = vadd.f32 %v7704_v11, %v4979_v29  ;;  %v4983_v4 = vadd.f32 %v7708_v50, %v7706_v26  ;;  %v5398_v35 = vpack.c.bf16 %v7708_v50, %v7700_v2  ;;  %v14011_v29 = vld [vmem:[#allocation75_spill] sm:$0xff] }
 0x958   : > { %v7712_v30 = vpop.eup %7711  ;;  %v5399_v43 = vpack.c.bf16 %v7710_v49, %v7702_v8 }
 0x959   : > { %v4984_v62 = vadd.f32 %v7710_v49, %v4983_v4  ;;  %v5400_v28 = vpack.c.bf16 %v7712_v30, %v7704_v11  ;;  %5506 = vmatmul.mubr.bf16.gmra.mrb[16].mxu0 %v5393_v32 }
 0x95a   : > { %5667 = vmatmul.mubr.bf16.gmra.mrb[16].mxu1 %v5395_v60  ;;  %5513 = vmatprep.mubr.bf16.mxu0 %v5398_v35 }
 0x95b   : > { %v4176_v25 = vpop.xlane.xlu0 %4175  ;;  %v11919_v39 = vadd.f32 %v7712_v30, %v4984_v62  ;;  %5674 = vmatprep.mubr.bf16.mxu1 %v5400_v28  ;;  %v14012_v30 = vld [vmem:[#allocation146_spill] sm:$0xff]  ;;  %v14013_v62 = vld [vmem:[#allocation147_spill] sm:$0xff] }
 0x95c   : > { %v11922_v38 = vmax.f32 %v11917_v5, %v4176_v25 }
 0x95e   : > { %14001 = vst [vmem:[#allocation395_spill] sm:$0xff] %v11922_v38  ;;  %5855 = vst.msk [vmem:[#allocation3 + $0xe0] sm:$0xff] %vm5120_vm6, %v11922_v38  ;;  %4462 = vperm.xlu0 %7615, %v11922_v38   ;;  %v14041_v38 = vld [vmem:[#allocation171_spill] sm:$0xff] }
 0x95f   : > { %v4191_v59 = vpop.xlane.xlu0 %4190 }
 0x960   : > { %v11932_v24 = vmax.f32 %v11924_v22, %v4191_v59  ;;  %v14014_v59 = vld [vmem:[#allocation80_spill] sm:$0xff] }
 0x961   : > { %5514 = vmatmul.mubr.bf16.gmra.mrb[20].mxu0 %v5397_v47 }
 0x962   : > { %14003 = vst [vmem:[#allocation397_spill] sm:$0xff] %v11932_v24  ;;  %5858 = vst.msk [vmem:[#allocation3 + $0xf8] sm:$0xff] %vm5120_vm6, %v11932_v24  ;;  %4477 = vperm.xlu1 %7616, %v11932_v24   ;;  %5675 = vmatmul.mubr.bf16.gmra.mrb[20].mxu1 %v5399_v43 }
 0x967   : > { %v4383_v63 = vpop.permute.xlu0 %4382 }
 0x968   : > { %v4186_v14 = vpop.xlane.xlu1 %4185  ;;  %v4528_v7 = vsub.f32 %v14005_v23, %v4383_v63  ;;  %v4529_v45 = vsub.f32 %v14007_v12, %v4383_v63  ;;  %v4530_v10 = vsub.f32 %v14008_v42, %v4383_v63  ;;  %v4531_v41 = vsub.f32 %v14009_v27, %v4383_v63  ;;  %v14015_v63 = vld [vmem:[#allocation81_spill] sm:$0xff] }
 0x969   : > { %v11943_v37 = vmax.f32 %v11939_v44, %v4186_v14  ;;  %v14017_v42 = vld [vmem:[#allocation153_spill] sm:$0xff] }
 0x96a   : > { %v4704_v8 = vmul.f32 1.442695, %v4528_v7  ;;  %v4706_v26 = vmul.f32 1.442695, %v4529_v45  ;;  %v4708_v4 = vmul.f32 1.442695, %v4530_v10 }
 0x96b   : > { %14006 = vst [vmem:[#allocation399_spill] sm:$0xff] %v11943_v37  ;;  %5857 = vst.msk [vmem:[#allocation3 + $0xf0] sm:$0xff] %vm5120_vm6, %v11943_v37  ;;  %4472 = vperm.xlu0 %7615, %v11943_v37   ;;  %v4388_v2 = vpop.permute.xlu0 %4387  ;;  %v4710_v60 = vmul.f32 1.442695, %v4531_v41  ;;  %v14016_v7 = vld [vmem:[#allocation152_spill] sm:$0xff] }
 0x96c   : > { %v4532_v11 = vsub.f32 %v14010_v46, %v4388_v2  ;;  %v4533_v50 = vsub.f32 %v14011_v29, %v4388_v2  ;;  %v4403_v49 = vpop.permute.xlu1 %4402  ;;  %v4534_v32 = vsub.f32 %v14012_v30, %v4388_v2  ;;  %v4535_v35 = vsub.f32 %v14013_v62, %v4388_v2  ;;  %v14018_v2 = vld [vmem:[#allocation76_spill] sm:$0xff]  ;;  %v14019_v46 = vld [vmem:[#allocation77_spill] sm:$0xff] }
 0x96d   : > { %7713 = vpow2.f32 %v4704_v8  ;;  %v4544_v47 = vsub.f32 %v14014_v59, %v4403_v49  ;;  %v4545_v14 = vsub.f32 %v14015_v63, %v4403_v49  ;;  %v4546_v12 = vsub.f32 %v14016_v7, %v4403_v49 }
 0x96e   : > { %v4712_v25 = vmul.f32 1.442695, %v4532_v11  ;;  %7715 = vpow2.f32 %v4706_v26  ;;  %v4714_v43 = vmul.f32 1.442695, %v4533_v50  ;;  %v4716_v23 = vmul.f32 1.442695, %v4534_v32 }
 0x96f   : > { %v4393_v28 = vpop.permute.xlu0 %4392  ;;  %7717 = vpow2.f32 %v4708_v4  ;;  %v4718_v45 = vmul.f32 1.442695, %v4535_v35  ;;  %v4547_v10 = vsub.f32 %v14017_v42, %v4403_v49  ;;  %v4736_v27 = vmul.f32 1.442695, %v4544_v47  ;;  %v14020_v50 = vld [vmem:[#allocation148_spill] sm:$0xff]  ;;  %v14021_v32 = vld [vmem:[#allocation149_spill] sm:$0xff] }
 0x970   : > { %7719 = vpow2.f32 %v4710_v60  ;;  %v4536_v41 = vsub.f32 %v14018_v2, %v4393_v28  ;;  %v4738_v8 = vmul.f32 1.442695, %v4545_v14  ;;  %v4537_v11 = vsub.f32 %v14019_v46, %v4393_v28  ;;  %v4428_v49 = vpop.permute.xlu1 %4427  ;;  %v14022_v35 = vld [vmem:[#allocation78_spill] sm:$0xff]  ;;  %v14023_v47 = vld [vmem:[#allocation79_spill] sm:$0xff] }
 0x971   : > { %7721 = vpow2.f32 %v4712_v25  ;;  %v4740_v29 = vmul.f32 1.442695, %v4546_v12  ;;  %v4538_v4 = vsub.f32 %v14020_v50, %v4393_v28  ;;  %v4742_v30 = vmul.f32 1.442695, %v4547_v10 }
 0x972   : > { %7723 = vpow2.f32 %v4714_v43  ;;  %v4539_v60 = vsub.f32 %v14021_v32, %v4393_v28  ;;  %v4720_v62 = vmul.f32 1.442695, %v4536_v41  ;;  %v4722_v59 = vmul.f32 1.442695, %v4537_v11  ;;  %v14025_v28 = vld [vmem:[#allocation151_spill] sm:$0xff] }
 0x973   : > { %v4398_v26 = vpop.permute.xlu0 %4397  ;;  %7725 = vpow2.f32 %v4716_v23  ;;  %v4724_v14 = vmul.f32 1.442695, %v4538_v4  ;;  %v14024_v23 = vld [vmem:[#allocation150_spill] sm:$0xff]  ;;  %v14027_v11 = vld [vmem:[#allocation91_spill] sm:$0xff] }
 0x974   : > { %7727 = vpow2.f32 %v4718_v45  ;;  %v4540_v25 = vsub.f32 %v14022_v35, %v4398_v26  ;;  %v4541_v43 = vsub.f32 %v14023_v47, %v4398_v26  ;;  %v4542_v7 = vsub.f32 %v14024_v23, %v4398_v26 }
 0x975   : > { %7729 = vpow2.f32 %v4736_v27  ;;  %v4726_v45 = vmul.f32 1.442695, %v4539_v60  ;;  %v4543_v42 = vsub.f32 %v14025_v28, %v4398_v26  ;;  %v14026_v27 = vld [vmem:[#allocation90_spill] sm:$0xff]  ;;  %v11982_v26 = vpop.permute.xlu1 %4437 }
 0x976   : > { %7731 = vpow2.f32 %v4738_v8  ;;  %v4564_v2 = vsub.f32 %v14026_v27, %v4428_v49  ;;  %v4728_v41 = vmul.f32 1.442695, %v4540_v25  ;;  %v4730_v50 = vmul.f32 1.442695, %v4541_v43  ;;  %v14030_v28 = vld [vmem:[#allocation82_spill] sm:$0xff] }
 0x977   : > { %v11967_v63 = vpop.eup %7713  ;;  %7733 = vpow2.f32 %v4740_v29  ;;  %v4408_v8 = vpop.permute.xlu0 %4407  ;;  %v4565_v29 = vsub.f32 %v14027_v11, %v4428_v49  ;;  %v4732_v60 = vmul.f32 1.442695, %v4542_v7  ;;  %v4734_v47 = vmul.f32 1.442695, %v4543_v42  ;;  %v14031_v11 = vld [vmem:[#allocation83_spill] sm:$0xff]  ;;  %v14033_v42 = vld [vmem:[#allocation154_spill] sm:$0xff] }
 0x978   : > { %v11970_v12 = vpop.eup %7715  ;;  %7735 = vpow2.f32 %v4742_v30  ;;  %v14028_v30 = vld [vmem:[#allocation162_spill] sm:$0xff]  ;;  %v4548_v43 = vsub.f32 %v14030_v28, %v4408_v8  ;;  %v4549_v7 = vsub.f32 %v14031_v11, %v4408_v8  ;;  %v14035_v28 = vld [vmem:[#allocation155_spill] sm:$0xff] }
 0x979   : > { %v11973_v10 = vpop.eup %7717  ;;  %7737 = vpow2.f32 %v4720_v62  ;;  %v4566_v32 = vsub.f32 %v14028_v30, %v4428_v49  ;;  %v14029_v62 = vld [vmem:[#allocation163_spill] sm:$0xff]  ;;  %v4551_v11 = vsub.f32 %v14035_v28, %v4408_v8  ;;  %v4448_v22 = vpop.permute.xlu1 %4447 }
 0x97a   : > { %v11976_v46 = vpop.eup %7719  ;;  %7739 = vpow2.f32 %v4722_v59  ;;  %v4567_v25 = vsub.f32 %v14029_v62, %v4428_v49  ;;  %v4776_v59 = vmul.f32 1.442695, %v4564_v2  ;;  %v4550_v62 = vsub.f32 %v14033_v42, %v4408_v8 }
 0x97b   : > { %v11979_v4 = vpop.eup %7721  ;;  %7741 = vpow2.f32 %v4724_v14  ;;  %v4778_v14 = vmul.f32 1.442695, %v4565_v29  ;;  %v4780_v6 = vmul.f32 1.442695, %v4566_v32  ;;  %v11998_v17 = vpop.permute.xlu0 %4412  ;;  %v14034_v29 = vld [vmem:[#allocation95_spill] sm:$0xff]  ;;  %v14036_v32 = vld [vmem:[#allocation166_spill] sm:$0xff]  ;;  %v4583_v5 = vsub.f32 %v14041_v38, %v4448_v22 }
 0x97c   : > { %v11984_v35 = vpop.eup %7723  ;;  %7743 = vpow2.f32 %v4726_v45  ;;  %v14032_v45 = vld [vmem:[#allocation94_spill] sm:$0xff]  ;;  %v4744_v24 = vmul.f32 1.442695, %v4548_v43  ;;  %v4748_v28 = vmul.f32 1.442695, %v4550_v62 }
 0x97d   : > { %v11987_v23 = vpop.eup %7725  ;;  %7745 = vpow2.f32 %v4728_v41  ;;  %v4572_v49 = vsub.f32 %v14032_v45, %v11982_v26  ;;  %v4782_v41 = vmul.f32 1.442695, %v4567_v25  ;;  %v14037_v45 = vld [vmem:[#allocation167_spill] sm:$0xff]  ;;  %v4746_v25 = vmul.f32 1.442695, %v4549_v7  ;;  %v14038_v7 = vld [vmem:[#allocation98_spill] sm:$0xff] }
 0x97e   : > { %v11990_v27 = vpop.eup %7727  ;;  %7747 = vpow2.f32 %v4730_v50  ;;  %v4573_v50 = vsub.f32 %v14034_v29, %v11982_v26  ;;  %v4575_v42 = vsub.f32 %v14037_v45, %v11982_v26  ;;  %v5403_v45 = vpack.c.bf16 %v11987_v23, %v11973_v10  ;;  %v14040_v62 = vld [vmem:[#allocation170_spill] sm:$0xff] }
 0x97f   : > { %v11993_v30 = vpop.eup %7729  ;;  %7749 = vpow2.f32 %v4732_v60  ;;  %v4574_v60 = vsub.f32 %v14036_v32, %v11982_v26  ;;  %v5404_v8 = vpack.c.bf16 %v11990_v27, %v11976_v46  ;;  %v4792_v29 = vmul.f32 1.442695, %v4572_v49  ;;  %v12032_v16 = vpop.permute.xlu0 %4417 }
 0x980   : > { %v12000_v2 = vpop.eup %7731  ;;  %7751 = vpow2.f32 %v4734_v47  ;;  %v5402_v47 = vpack.c.bf16 %v11984_v35, %v11970_v12  ;;  %v5401_v26 = vpack.c.bf16 %v11979_v4, %v11967_v63  ;;  %v4580_v32 = vsub.f32 %v14038_v7, %v4448_v22 }
 0x981   : > { %v12005_v53 = vpop.eup %7733  ;;  %7753 = vpow2.f32 %v4776_v59  ;;  %5682 = vmatprep.mubr.bf16.mxu1 %v5404_v8  ;;  %v4582_v44 = vsub.f32 %v14040_v62, %v4448_v22  ;;  %v4796_v7 = vmul.f32 1.442695, %v4574_v60 }
 0x982   : > { %v12011_v37 = vpop.eup %7735  ;;  %7755 = vpow2.f32 %v4778_v14  ;;  %v4750_v14 = vmul.f32 1.442695, %v4551_v11  ;;  %5521 = vmatprep.mubr.bf16.mxu0 %v5402_v47  ;;  %v4794_v11 = vmul.f32 1.442695, %v4573_v50  ;;  %v14042_v47 = vld [vmem:[#allocation84_spill] sm:$0xff]  ;;  %5683 = vmatmul.mubr.bf16.gmra.mrb[24].mxu1 %v5403_v45 }
 0x983   : > { %v12018_v59 = vpop.eup %7737  ;;  %7757 = vpow2.f32 %v4780_v6  ;;  %v14039_v6 = vld [vmem:[#allocation99_spill] sm:$0xff]  ;;  %5522 = vmatmul.mubr.bf16.gmra.mrb[24].mxu0 %v5401_v26  ;;  %v4552_v8 = vsub.f32 %v14042_v47, %v11998_v17  ;;  %v4798_v50 = vmul.f32 1.442695, %v4575_v42  ;;  %v4812_v45 = vmul.f32 1.442695, %v4582_v44 }
 0x984   : > { %v12022_v43 = vpop.eup %7739  ;;  %7759 = vpow2.f32 %v4782_v41  ;;  %v4581_v49 = vsub.f32 %v14039_v6, %v4448_v22  ;;  %v14043_v6 = vld [vmem:[#allocation85_spill] sm:$0xff]  ;;  %v12043_v22 = vpop.permute.xlu1 %4457  ;;  %v4814_v47 = vmul.f32 1.442695, %v4583_v5 }
 0x985   : > { %7761 = vpow2.f32 %v4744_v24  ;;  %v4553_v38 = vsub.f32 %v14043_v6, %v11998_v17  ;;  %v4752_v1 = vmul.f32 1.442695, %v4552_v8  ;;  %v12061_v5 = vpop.permute.xlu0 %4422 }
 0x986   : > { %4936 = vadd.xlane.f32.xlu1 %v11875_v21  ;;  %v12027_v21 = vpop.eup %7741  ;;  %7763 = vpow2.f32 %v4746_v25  ;;  %v4808_v25 = vmul.f32 1.442695, %v4580_v32  ;;  %v4562_v54 = vsub.f32 %v14058_v52, %v12061_v5 }
 0x987   : > { %v12034_v41 = vpop.eup %7743  ;;  %7765 = vpow2.f32 %v4748_v28  ;;  %v14044_v28 = vld [vmem:[#allocation156_spill] sm:$0xff] }
 0x988   : > { %v12039_v24 = vpop.eup %7745  ;;  %7767 = vpow2.f32 %v4750_v14  ;;  %v4554_v6 = vsub.f32 %v14044_v28, %v11998_v17  ;;  %v4754_v14 = vmul.f32 1.442695, %v4553_v38  ;;  %v14049_v38 = vld [vmem:[#allocation87_spill] sm:$0xff] }
 0x989   : > { %v12046_v26 = vpop.eup %7747  ;;  %7769 = vpow2.f32 %v4792_v29  ;;  %v14046_v29 = vld [vmem:[#allocation102_spill] sm:$0xff]  ;;  %v4557_v28 = vsub.f32 %v14049_v38, %v12032_v16 }
 0x98a   : > { %4931 = vadd.xlane.f32.xlu0 %v11879_v20  ;;  %4951 = vadd.xlane.f32.xlu1 %v11882_v40  ;;  %v12048_v62 = vpop.eup %7749  ;;  %v4810_v20 = vmul.f32 1.442695, %v4581_v49  ;;  %7771 = vpow2.f32 %v4794_v11  ;;  %v4555_v40 = vsub.f32 %v14045_v18, %v11998_v17  ;;  %v4588_v44 = vsub.f32 %v14046_v29, %v12043_v22  ;;  %v14047_v18 = vld [vmem:[#allocation103_spill] sm:$0xff]  ;;  %v14048_v17 = vld [vmem:[#allocation86_spill] sm:$0xff]  ;;  %v12078_v29 = vpop.permute.xlu1 %4467 }
 0x98b   : > { %v12050_v60 = vpop.eup %7751  ;;  %7773 = vpow2.f32 %v4796_v7  ;;  %v5406_v32 = vpack.c.bf16 %v12046_v26, %v12022_v43  ;;  %v4556_v11 = vsub.f32 %v14048_v17, %v12032_v16  ;;  %v4756_v17 = vmul.f32 1.442695, %v4554_v6 }
 0x98c   : > { %v12057_v42 = vpop.eup %7753  ;;  %7775 = vpow2.f32 %v4798_v50  ;;  %v5408_v8 = vpack.c.bf16 %v12050_v60, %v12034_v41  ;;  %v5407_v50 = vpack.c.bf16 %v12048_v62, %v12027_v21  ;;  %v4758_v36 = vmul.f32 1.442695, %v4555_v40 }
 0x98d   : > { %v12066_v49 = vpop.eup %7755  ;;  %7777 = vpow2.f32 %v4808_v25  ;;  %5529 = vmatprep.mubr.bf16.mxu0 %v5406_v32  ;;  %v4558_v25 = vsub.f32 %v14050_v9, %v12032_v16  ;;  %v14051_v32 = vld [vmem:[#allocation174_spill] sm:$0xff]  ;;  %v12095_v56 = vmul.f32 1.442695, %v4588_v44  ;;  %v4760_v44 = vmul.f32 1.442695, %v4556_v11  ;;  %v14057_v11 = vld [vmem:[#allocation89_spill] sm:$0xff] }
 0x98e   : > { %4941 = vadd.xlane.f32.xlu0 %v11885_v31  ;;  %4961 = vadd.xlane.f32.xlu1 %v11889_v3  ;;  %v4589_v31 = vsub.f32 %v14047_v18, %v12043_v22  ;;  %v12074_v7 = vpop.eup %7757  ;;  %v5405_v3 = vpack.c.bf16 %v12039_v24, %v12018_v59  ;;  %7779 = vpow2.f32 %v4810_v20  ;;  %v4762_v58 = vmul.f32 1.442695, %v4557_v28 }
 0x98f   : > { %v12084_v18 = vpop.eup %7759  ;;  %5690 = vmatprep.mubr.bf16.mxu1 %v5408_v8  ;;  %7781 = vpow2.f32 %v4752_v1  ;;  %v14054_v1 = vld [vmem:[#allocation106_spill] sm:$0xff]  ;;  %v4561_v28 = vsub.f32 %v14057_v11, %v12061_v5 }
 0x990   : > { %v12089_v38 = vpop.eup %7761  ;;  %5530 = vmatmul.mubr.bf16.gmra.mrb[28].mxu0 %v5405_v3  ;;  %5691 = vmatmul.mubr.bf16.gmra.mrb[28].mxu1 %v5407_v50  ;;  %7783 = vpow2.f32 %v4754_v14  ;;  %v12099_v9 = vmul.f32 1.442695, %v4589_v31  ;;  %v4596_v40 = vsub.f32 %v14054_v1, %v12078_v29  ;;  %v12108_v3 = vpop.permute.xlu0 %4432  ;;  %v4764_v50 = vmul.f32 1.442695, %v4558_v25  ;;  %v14056_v1 = vld [vmem:[#allocation88_spill] sm:$0xff] }
 0x991   : > { %v12097_v20 = vpop.eup %7763  ;;  %7785 = vpow2.f32 %v4812_v45  ;;  %v5409_v52 = vpack.c.bf16 %v12089_v38, %v11993_v30 }
 0x992   : > { %4946 = vadd.xlane.f32.xlu0 %v11892_v19  ;;  %v14053_v19 = vld [vmem:[#allocation159_spill] sm:$0xff]  ;;  %4971 = vadd.xlane.f32.xlu1 %v11902_v13  ;;  %v12106_v8 = vpop.eup %7765  ;;  %v5410_v14 = vpack.c.bf16 %v12097_v20, %v12000_v2  ;;  %7787 = vpow2.f32 %v4814_v47  ;;  %v4560_v13 = vsub.f32 %v14056_v1, %v12061_v5  ;;  %v4840_v1 = vmul.f32 1.442695, %v4596_v40 }
 0x993   : > { %v4559_v6 = vsub.f32 %v14053_v19, %v12032_v16  ;;  %v12112_v31 = vpop.eup %7767  ;;  %v14055_v16 = vld [vmem:[#allocation107_spill] sm:$0xff]  ;;  %7789 = vpow2.f32 %v4756_v17 }
 0x994   : > { %v12119_v45 = vpop.eup %7769  ;;  %5537 = vmatprep.mubr.bf16.mxu0 %v5410_v14  ;;  %v5412_v47 = vpack.c.bf16 %v12112_v31, %v12011_v37  ;;  %7791 = vpow2.f32 %v4758_v36  ;;  %v5411_v14 = vpack.c.bf16 %v12106_v8, %v12005_v53  ;;  %v4988_v36 = vadd.f32 %v11970_v12, %v11967_v63  ;;  %v4443_v51 = vpop.permute.xlu0 %4442  ;;  %v14061_v12 = vld [vmem:[#allocation93_spill] sm:$0xff] }
 0x995   : > { %v12127_v25 = vpop.eup %7771  ;;  %v4766_v19 = vmul.f32 1.442695, %v4559_v6  ;;  %7793 = vpow2.f32 %v4760_v44  ;;  %v4768_v40 = vmul.f32 1.442695, %v4560_v13  ;;  %v4998_v44 = vadd.f32 %v12022_v43, %v12018_v59 }
 0x996   : > { %4956 = vadd.xlane.f32.xlu0 %v11905_v55  ;;  %v14059_v55 = vld [vmem:[#allocation161_spill] sm:$0xff]  ;;  %4981 = vadd.xlane.f32.xlu1 %v11913_v57  ;;  %v12132_v17 = vpop.eup %7773  ;;  %7795 = vpow2.f32 %v4762_v58  ;;  %v4989_v63 = vadd.f32 %v11973_v10, %v4988_v36  ;;  %v4569_v13 = vsub.f32 %v14061_v12, %v12108_v3  ;;  %v4993_v59 = vadd.f32 %v11984_v35, %v11979_v4  ;;  %v14064_v12 = vld [vmem:[#allocation96_spill] sm:$0xff] }
 0x997   : > { %v4563_v0 = vsub.f32 %v14059_v55, %v12061_v5  ;;  %5698 = vmatprep.mubr.bf16.mxu1 %v5412_v47  ;;  %v12140_v6 = vpop.eup %7775  ;;  %v14060_v5 = vld [vmem:[#allocation92_spill] sm:$0xff]  ;;  %7797 = vpow2.f32 %v4764_v50  ;;  %v4770_v47 = vmul.f32 1.442695, %v4561_v28  ;;  %v4772_v55 = vmul.f32 1.442695, %v4562_v54 }
 0x998   : > { %v4568_v57 = vsub.f32 %v14060_v5, %v12108_v3  ;;  %v12147_v11 = vpop.eup %7777  ;;  %5538 = vmatmul.mubr.bf16.gmra.mrb[32].mxu0 %v5409_v52  ;;  %5699 = vmatmul.mubr.bf16.gmra.mrb[32].mxu1 %v5411_v14  ;;  %7799 = vpow2.f32 %v4766_v19  ;;  %v4990_v50 = vadd.f32 %v11976_v46, %v4989_v63  ;;  %v4999_v28 = vadd.f32 %v12027_v21, %v4998_v44  ;;  %v14063_v52 = vld [vmem:[#allocation165_spill] sm:$0xff]  ;;  %v14066_v35 = vld [vmem:[#allocation168_spill] sm:$0xff]  ;;  %v12179_v44 = vpop.permute.xlu0 %4452 }
 0x999   : > { %v12150_v58 = vpop.eup %7779  ;;  %v4774_v54 = vmul.f32 1.442695, %v4563_v0  ;;  %v5008_v10 = vadd.f32 %v12000_v2, %v11993_v30  ;;  %7801 = vpow2.f32 %v12095_v56  ;;  %v4571_v14 = vsub.f32 %v14063_v52, %v12108_v3  ;;  %v14065_v0 = vld [vmem:[#allocation97_spill] sm:$0xff] }
 0x99a   : > { %4966 = vadd.xlane.f32.xlu0 %v11907_v33  ;;  %v14062_v33 = vld [vmem:[#allocation164_spill] sm:$0xff]  ;;  %v12158_v43 = vpop.eup %7781  ;;  %v4784_v36 = vmul.f32 1.442695, %v4568_v57  ;;  %7803 = vpow2.f32 %v12099_v9  ;;  %v4577_v46 = vsub.f32 %v14065_v0, %v4443_v51  ;;  %v4578_v21 = vsub.f32 %v14066_v35, %v4443_v51  ;;  %4991 = vadd.xlane.f32.xlu1 %v4990_v50 }
 0x99b   : > { %v4570_v5 = vsub.f32 %v14062_v33, %v12108_v3  ;;  %v7784_v19 = vpop.eup %7783  ;;  %v4576_v33 = vsub.f32 %v14064_v12, %v4443_v51  ;;  %v5003_v56 = vadd.f32 %v12046_v26, %v12039_v24  ;;  %7805 = vpow2.f32 %v4840_v1  ;;  %v14067_v26 = vld [vmem:[#allocation169_spill] sm:$0xff] }
 0x99c   : > { %v12169_v4 = vpop.eup %7785  ;;  %v4786_v2 = vmul.f32 1.442695, %v4569_v13  ;;  %v4994_v57 = vadd.f32 %v11987_v23, %v4993_v59  ;;  %7807 = vpow2.f32 %v4768_v40  ;;  %v5000_v9 = vadd.f32 %v12034_v41, %v4999_v28 }
 0x99d   : > { %v12176_v30 = vpop.eup %7787  ;;  %v4788_v3 = vmul.f32 1.442695, %v4570_v5  ;;  %v5009_v63 = vadd.f32 %v12005_v53, %v5008_v10  ;;  %v5018_v50 = vadd.f32 %v7784_v19, %v12158_v43  ;;  %7809 = vpow2.f32 %v4770_v47  ;;  %v14068_v53 = vld [vmem:[#allocation100_spill] sm:$0xff] }
 0x99e   : > { %4976 = vadd.xlane.f32.xlu0 %v11911_v61  ;;  %v7790_v61 = vpop.eup %7789  ;;  %v4790_v24 = vmul.f32 1.442695, %v4571_v14  ;;  %v4579_v12 = vsub.f32 %v14067_v26, %v4443_v51  ;;  %v4800_v1 = vmul.f32 1.442695, %v4576_v33  ;;  %7811 = vpow2.f32 %v4772_v55  ;;  %5001 = vadd.xlane.f32.xlu1 %v5000_v9 }
 0x99f   : > { %v7792_v52 = vpop.eup %7791  ;;  %v4802_v23 = vmul.f32 1.442695, %v4577_v46  ;;  %v4804_v40 = vmul.f32 1.442695, %v4578_v21  ;;  %v5004_v5 = vadd.f32 %v12048_v62, %v5003_v56  ;;  %7813 = vpow2.f32 %v4774_v54  ;;  %v14069_v54 = vld [vmem:[#allocation101_spill] sm:$0xff] }
 0x9a0   : > { %v7794_v13 = vpop.eup %7793  ;;  %v4584_v59 = vsub.f32 %v14068_v53, %v12179_v44  ;;  %v4995_v47 = vadd.f32 %v11990_v27, %v4994_v57  ;;  %v5013_v51 = vadd.f32 %v12097_v20, %v12089_v38  ;;  %7815 = vpow2.f32 %v4784_v36  ;;  %v14070_v27 = vld [vmem:[#allocation172_spill] sm:$0xff] }
 0x9a1   : > { %v7796_v41 = vpop.eup %7795  ;;  %v5010_v55 = vadd.f32 %v12011_v37, %v5009_v63  ;;  %v5019_v10 = vadd.f32 %v7790_v61, %v5018_v50  ;;  %7817 = vpow2.f32 %v4786_v2  ;;  %v4806_v62 = vmul.f32 1.442695, %v4579_v12 }
 0x9a2   : > { %4986 = vadd.xlane.f32.xlu0 %v11919_v39  ;;  %v7798_v28 = vpop.eup %7797  ;;  %v5414_v39 = vpack.c.bf16 %v7796_v41, %v7784_v19  ;;  %v4585_v33 = vsub.f32 %v14069_v54, %v12179_v44  ;;  %v5413_v0 = vpack.c.bf16 %v7794_v13, %v12158_v43  ;;  %7819 = vpow2.f32 %v4788_v3 }
 0x9a3   : > { %v12193_v14 = vpop.eup %7799  ;;  %v4586_v38 = vsub.f32 %v14070_v27, %v12179_v44  ;;  %5011 = vadd.xlane.f32.xlu1 %v5010_v55  ;;  %v5005_v37 = vadd.f32 %v12050_v60, %v5004_v5  ;;  %7821 = vpow2.f32 %v4790_v24  ;;  %v5415_v36 = vpack.c.bf16 %v7798_v28, %v7790_v61  ;;  %v14072_v60 = vld [vmem:[#allocation178_spill] sm:$0xff]  ;;  %v14073_v61 = vld [vmem:[#allocation173_spill] sm:$0xff] }
 0x9a4   : > { %5545 = vmatprep.mubr.bf16.mxu0 %v5414_v39  ;;  %v5416_v20 = vpack.c.bf16 %v12193_v14, %v7792_v52  ;;  %v12202_v19 = vpop.eup %7801  ;;  %v5014_v46 = vadd.f32 %v12106_v8, %v5013_v51  ;;  %v5023_v35 = vadd.f32 %v7796_v41, %v7794_v13  ;;  %v14071_v21 = vsub.f32 %v14051_v32, %v12043_v22  ;;  %v14076_v41 = vld [vmem:[#allocation179_spill] sm:$0xff] }
 0x9a5   : > { %5546 = vmatmul.mubr.bf16.gmra.mrb[36].mxu0 %v5413_v0  ;;  %v12205_v43 = vpop.eup %7803  ;;  %7823 = vpow2.f32 %v4800_v1  ;;  %v4816_v2 = vmul.f32 1.442695, %v4584_v59  ;;  %v5020_v3 = vadd.f32 %v7792_v52, %v5019_v10  ;;  %v4598_v9 = vsub.f32 %v14072_v60, %v12078_v29 }
 0x9a6   : > { %4996 = vadd.xlane.f32.xlu0 %v4995_v47  ;;  %v4828_v56 = vmul.f32 1.442695, %v14071_v21  ;;  %5706 = vmatprep.mubr.bf16.mxu1 %v5416_v20  ;;  %v12210_v57 = vpop.eup %7805  ;;  %7825 = vpow2.f32 %v4802_v23  ;;  %v4587_v8 = vsub.f32 %v14073_v61, %v12179_v44  ;;  %v4818_v63 = vmul.f32 1.442695, %v4585_v33 }
 0x9a7   : > { %5707 = vmatmul.mubr.bf16.gmra.mrb[36].mxu1 %v5415_v36  ;;  %v7808_v50 = vpop.eup %7807  ;;  %v14074_v32 = vsub.f32 %v14052_v48, %v12043_v22  ;;  %v14075_v52 = vsub.f32 %v14055_v16, %v12078_v29  ;;  %7827 = vpow2.f32 %v4804_v40  ;;  %5021 = vadd.xlane.f32.xlu1 %v5020_v3  ;;  %v5033_v12 = vadd.f32 %v12066_v49, %v12057_v42 }
 0x9a8   : > { %v7810_v1 = vpop.eup %7809  ;;  %7829 = vpow2.f32 %v4806_v62  ;;  %v4820_v44 = vmul.f32 1.442695, %v4586_v38  ;;  %v5015_v13 = vadd.f32 %v12112_v31, %v5014_v46  ;;  %v5024_v23 = vadd.f32 %v7798_v28, %v5023_v35 }
 0x9a9   : > { %v4830_v24 = vmul.f32 1.442695, %v14074_v32  ;;  %v4842_v26 = vmul.f32 1.442695, %v14075_v52  ;;  %v7812_v5 = vpop.eup %7811  ;;  %v4599_v48 = vsub.f32 %v14076_v41, %v12078_v29  ;;  %7831 = vpow2.f32 %v4816_v2 }
 0x9aa   : > { %5006 = vadd.xlane.f32.xlu0 %v5005_v37  ;;  %v5418_v22 = vpack.c.bf16 %v12066_v49, %v7810_v1  ;;  %v5028_v16 = vadd.f32 %v7810_v1, %v7808_v50  ;;  %v7814_v53 = vpop.eup %7813  ;;  %v4844_v40 = vmul.f32 1.442695, %v4598_v9  ;;  %7833 = vpow2.f32 %v4818_v63 }
 0x9ab   : > { %v4822_v59 = vmul.f32 1.442695, %v4587_v8  ;;  %v5417_v47 = vpack.c.bf16 %v12057_v42, %v7808_v50  ;;  %v7816_v51 = vpop.eup %7815  ;;  %7835 = vpow2.f32 %v4842_v26  ;;  %v5420_v31 = vpack.c.bf16 %v12084_v18, %v7814_v53 }
 0x9ac   : > { %5553 = vmatprep.mubr.bf16.mxu0 %v5418_v22  ;;  %v5029_v28 = vadd.f32 %v7812_v5, %v5028_v16  ;;  %v5034_v39 = vadd.f32 %v12074_v7, %v5033_v12  ;;  %v7818_v29 = vpop.eup %7817  ;;  %7837 = vpow2.f32 %v4820_v44  ;;  %v5419_v49 = vpack.c.bf16 %v12074_v7, %v7812_v5 }
 0x9ad   : > { %5554 = vmatmul.mubr.bf16.gmra.mrb[40].mxu0 %v5417_v47  ;;  %v5025_v55 = vadd.f32 %v12193_v14, %v5024_v23  ;;  %v5043_v10 = vadd.f32 %v12127_v25, %v12119_v45  ;;  %v7820_v42 = vpop.eup %7819  ;;  %7839 = vpow2.f32 %v4828_v56  ;;  %5714 = vmatprep.mubr.bf16.mxu1 %v5420_v31  ;;  %v5422_v62 = vpack.c.bf16 %v12127_v25, %v7818_v29 }
 0x9ae   : > { %5016 = vadd.xlane.f32.xlu0 %v5015_v13  ;;  %v5030_v54 = vadd.f32 %v7814_v53, %v5029_v28  ;;  %v5038_v33 = vadd.f32 %v7818_v29, %v7816_v51  ;;  %v7822_v0 = vpop.eup %7821  ;;  %7841 = vpow2.f32 %v4822_v59  ;;  %v5035_v20 = vadd.f32 %v12084_v18, %v5034_v39  ;;  %v14079_v39 = vld [vmem:[#allocation176_spill] sm:$0xff] }
 0x9af   : > { %5715 = vmatmul.mubr.bf16.gmra.mrb[40].mxu1 %v5419_v49  ;;  %v7824_v27 = vpop.eup %7823  ;;  %5561 = vmatprep.mubr.bf16.mxu0 %v5422_v62  ;;  %v5424_v7 = vpack.c.bf16 %v12140_v6, %v7822_v0  ;;  %7843 = vpow2.f32 %v4830_v24  ;;  %v5044_v37 = vadd.f32 %v12132_v17, %v5043_v10  ;;  %v5053_v25 = vadd.f32 %v12150_v58, %v12147_v11  ;;  %v14080_v49 = vld [vmem:[#allocation177_spill] sm:$0xff] }
 0x9b0   : > { %5031 = vadd.xlane.f32.xlu1 %v5030_v54  ;;  %v5039_v14 = vadd.f32 %v7820_v42, %v5038_v33  ;;  %v7826_v38 = vpop.eup %7825  ;;  %7845 = vpow2.f32 %v4844_v40  ;;  %v4846_v46 = vmul.f32 1.442695, %v4599_v48  ;;  %v5421_v2 = vpack.c.bf16 %v12119_v45, %v7816_v51  ;;  %v14077_v51 = vld [vmem:[#allocation104_spill] sm:$0xff] }
 0x9b1   : > { %v7828_v36 = vpop.eup %7827  ;;  %5722 = vmatprep.mubr.bf16.mxu1 %v5424_v7  ;;  %v5048_v21 = vadd.f32 %v7826_v38, %v7824_v27  ;;  %v5426_v60 = vpack.c.bf16 %v12150_v58, %v7826_v38  ;;  %v5423_v61 = vpack.c.bf16 %v12132_v17, %v7820_v42  ;;  %v5045_v8 = vadd.f32 %v12140_v6, %v5044_v37 }
 0x9b2   : > { %5026 = vadd.xlane.f32.xlu0 %v5025_v55  ;;  %v5040_v35 = vadd.f32 %v7822_v0, %v5039_v14  ;;  %v7830_v56 = vpop.eup %7829  ;;  %v5054_v63 = vadd.f32 %v12169_v4, %v5053_v25  ;;  %v5063_v50 = vadd.f32 %v12205_v43, %v12202_v19  ;;  %7847 = vpow2.f32 %v4846_v46  ;;  %v14083_v14 = vld [vmem:[#allocation182_spill] sm:$0xff] }
 0x9b3   : > { %v7832_v3 = vpop.eup %7831  ;;  %v5049_v18 = vadd.f32 %v7828_v36, %v5048_v21  ;;  %v5428_v45 = vpack.c.bf16 %v12176_v30, %v7830_v56  ;;  %v5425_v5 = vpack.c.bf16 %v12147_v11, %v7824_v27  ;;  %v5427_v22 = vpack.c.bf16 %v12169_v4, %v7828_v36  ;;  %v14078_v4 = vld [vmem:[#allocation105_spill] sm:$0xff]  ;;  %v14082_v27 = vld [vmem:[#allocation111_spill] sm:$0xff]  ;;  %v14084_v21 = vld [vmem:[#allocation108_spill] sm:$0xff] }
 0x9b4   : > { %5041 = vadd.xlane.f32.xlu1 %v5040_v35  ;;  %v7834_v9 = vpop.eup %7833  ;;  %v5055_v12 = vadd.f32 %v12176_v30, %v5054_v63  ;;  %v5429_v11 = vpack.c.bf16 %v12202_v19, %v7832_v3  ;;  %v14081_v19 = vld [vmem:[#allocation110_spill] sm:$0xff] }
 0x9b5   : > { %5562 = vmatmul.mubr.bf16.gmra.mrb[44].mxu0 %v5421_v2  ;;  %v12248_v32 = vpop.eup %7835  ;;  %v5050_v58 = vadd.f32 %v7830_v56, %v5049_v18  ;;  %v5058_v24 = vadd.f32 %v7834_v9, %v7832_v3  ;;  %v5430_v48 = vpack.c.bf16 %v12205_v43, %v7834_v9  ;;  %v14085_v2 = vld [vmem:[#allocation109_spill] sm:$0xff] }
 0x9b6   : > { %5036 = vadd.xlane.f32.xlu0 %v5035_v20  ;;  %5569 = vmatprep.mubr.bf16.mxu0 %v5426_v60  ;;  %v7838_v52 = vpop.eup %7837  ;;  %v5073_v44 = vadd.f32 %v12248_v32, %v12210_v57  ;;  %v14086_v18 = vld [vmem:[#allocation181_spill] sm:$0xff] }
 0x9b7   : > { %5723 = vmatmul.mubr.bf16.gmra.mrb[44].mxu1 %v5423_v61  ;;  %v7840_v26 = vpop.eup %7839  ;;  %v5059_v17 = vadd.f32 %v7838_v52, %v5058_v24 }
 0x9b8   : > { %5730 = vmatprep.mubr.bf16.mxu1 %v5428_v45  ;;  %5051 = vadd.xlane.f32.xlu1 %v5050_v58  ;;  %v7842_v6 = vpop.eup %7841  ;;  %v5064_v1 = vadd.f32 %v7840_v26, %v5063_v50  ;;  %v5431_v47 = vpack.c.bf16 %v7840_v26, %v7838_v52 }
 0x9b9   : > { %v5060_v13 = vadd.f32 %v7842_v6, %v5059_v17  ;;  %v7844_v23 = vpop.eup %7843 }
 0x9ba   : > { %5046 = vadd.xlane.f32.xlu0 %v5045_v8  ;;  %v12255_v41 = vpop.eup %7845  ;;  %v5065_v16 = vadd.f32 %v7844_v23, %v5064_v1  ;;  %v5432_v53 = vpack.c.bf16 %v7844_v23, %v7842_v6 }
 0x9bb   : > { %v5074_v30 = vadd.f32 %v12255_v41, %v5073_v44 }
 0x9bc   : > { %5061 = vadd.xlane.f32.xlu1 %v5060_v13  ;;  %v7848_v40 = vpop.eup %7847 }
 0x9bd   : > { %5570 = vmatmul.mubr.bf16.gmra.mrb[48].mxu0 %v5425_v5  ;;  %v5075_v59 = vadd.f32 %v7848_v40, %v5074_v30 }
 0x9be   : > { %5056 = vadd.xlane.f32.xlu0 %v5055_v12  ;;  %5577 = vmatprep.mubr.bf16.mxu0 %v5430_v48 }
 0x9bf   : > { %5731 = vmatmul.mubr.bf16.gmra.mrb[48].mxu1 %v5427_v22 }
 0x9c0   : > { %5738 = vmatprep.mubr.bf16.mxu1 %v5432_v53 }
 0x9c2   : > { %5066 = vadd.xlane.f32.xlu0 %v5065_v16 }
 0x9c5   : > { %5578 = vmatmul.mubr.bf16.gmra.mrb[52].mxu0 %v5429_v11 }
 0x9c6   : > { %5076 = vadd.xlane.f32.xlu0 %v5075_v59 }
 0x9c7   : > { %5739 = vmatmul.mubr.bf16.gmra.mrb[52].mxu1 %v5431_v47 }
 0x9dd   : > { %v4463_v43 = vpop.permute.xlu0 %4462 }
 0x9de   : > { %v4592_v31 = vsub.f32 %v14077_v51, %v4463_v43  ;;  %v4593_v28 = vsub.f32 %v14078_v4, %v4463_v43  ;;  %v4594_v29 = vsub.f32 %v14079_v39, %v4463_v43  ;;  %v4595_v55 = vsub.f32 %v14080_v49, %v4463_v43  ;;  %v14087_v51 = vld [vmem:[#allocation340_spill] sm:$0xff]  ;;  %v14091_v49 = vld [vmem:[#allocation338_spill] sm:$0xff] }
 0x9e0   : > { %v4832_v10 = vmul.f32 1.442695, %v4592_v31  ;;  %v4834_v42 = vmul.f32 1.442695, %v4593_v28  ;;  %v4836_v62 = vmul.f32 1.442695, %v4594_v29 }
 0x9e1   : > { %v4838_v54 = vmul.f32 1.442695, %v4595_v55  ;;  %v4478_v33 = vpop.permute.xlu1 %4477  ;;  %v14088_v31 = vld [vmem:[#allocation342_spill] sm:$0xff]  ;;  %v14090_v29 = vld [vmem:[#allocation336_spill] sm:$0xff] }
 0x9e2   : > { %7849 = vpow2.f32 %v4832_v10  ;;  %v4604_v0 = vsub.f32 %v14081_v19, %v4478_v33  ;;  %v4605_v7 = vsub.f32 %v14082_v27, %v4478_v33  ;;  %v4606_v38 = vsub.f32 %v14083_v14, %v4478_v33  ;;  %v14096_v19 = vld [vmem:[#allocation337_spill] sm:$0xff]  ;;  %v14099_v14 = vld [vmem:[#allocation348_spill] sm:$0xff] }
 0x9e3   : > { %7851 = vpow2.f32 %v4834_v42  ;;  %v4607_v20 = vsub.f32 %v13980_v15, %v4478_v33  ;;  %v14089_v4 = vsub.f32 %v14087_v51, %v14088_v31  ;;  %v14092_v55 = vsub.f32 %v14090_v29, %v14091_v49  ;;  %v14093_v42 = vld [vmem:[#allocation344_spill] sm:$0xff]  ;;  %v14121_v29 = vld [vmem:[#allocation355_spill] sm:$0xff] }
 0x9e4   : > { %7853 = vpow2.f32 %v4836_v62  ;;  %v4856_v37 = vmul.f32 1.442695, %v4604_v0  ;;  %v4858_v25 = vmul.f32 1.442695, %v4605_v7  ;;  %v4860_v36 = vmul.f32 1.442695, %v4606_v38 }
 0x9e5   : > { %7855 = vpow2.f32 %v4838_v54  ;;  %v4862_v46 = vmul.f32 1.442695, %v4607_v20  ;;  %v4258_v28 = vmul.f32 1.442695, %v14089_v4  ;;  %v4256_v10 = vmul.f32 1.442695, %v14092_v55 }
 0x9e6   : > { %7857 = vpow2.f32 %v4856_v37  ;;  %v14094_v62 = vld [vmem:[#allocation346_spill] sm:$0xff]  ;;  %v14097_v0 = vld [vmem:[#allocation339_spill] sm:$0xff] }
 0x9e7   : > { %7859 = vpow2.f32 %v4858_v25  ;;  %v14095_v54 = vsub.f32 %v14093_v42, %v14094_v62  ;;  %v14098_v27 = vsub.f32 %v14096_v19, %v14097_v0  ;;  %v14100_v38 = vld [vmem:[#allocation350_spill] sm:$0xff]  ;;  %v14102_v25 = vld [vmem:[#allocation341_spill] sm:$0xff]  ;;  %v4868_v62 = vld [vmem:[#allocation4 + $0x20] sm:$0xff] }
 0x9e8   : > { %7861 = vpow2.f32 %v4860_v36  ;;  %v14101_v20 = vsub.f32 %v14099_v14, %v14100_v38  ;;  %v14103_v36 = vld [vmem:[#allocation343_spill] sm:$0xff] }
 0x9e9   : > { %7863 = vpow2.f32 %v4862_v46  ;;  %v4264_v33 = vmul.f32 1.442695, %v14095_v54  ;;  %v4260_v7 = vmul.f32 1.442695, %v14098_v27  ;;  %v14104_v46 = vsub.f32 %v14102_v25, %v14103_v36  ;;  %v4864_v54 = vld [vmem:[#allocation4] sm:$0xff]  ;;  %v14124_v19 = vld [vmem:[#allocation367_spill] sm:$0xff] }
 0x9ea   : > { %v4473_v35 = vpop.permute.xlu0 %4472  ;;  %v4268_v37 = vmul.f32 1.442695, %v14101_v20 }
 0x9eb   : > { %v4600_v56 = vsub.f32 %v14084_v21, %v4473_v35  ;;  %v4601_v3 = vsub.f32 %v14085_v2, %v4473_v35  ;;  %v4602_v60 = vsub.f32 %v13985_v34, %v4473_v35  ;;  %v4603_v9 = vsub.f32 %v14086_v18, %v4473_v35  ;;  %v14105_v21 = vld [vmem:[#allocation352_spill] sm:$0xff]  ;;  %v14108_v18 = vld [vmem:[#allocation345_spill] sm:$0xff] }
 0x9ec   : > { %v7850_v15 = vpop.eup %7849  ;;  %v4262_v35 = vmul.f32 1.442695, %v14104_v46 }
 0x9ed   : > { %v7852_v61 = vpop.eup %7851  ;;  %v4848_v8 = vmul.f32 1.442695, %v4600_v56  ;;  %v4850_v63 = vmul.f32 1.442695, %v4601_v3  ;;  %v4852_v50 = vmul.f32 1.442695, %v4602_v60  ;;  %v5433_v45 = vpack.c.bf16 %v12210_v57, %v7850_v15 }
 0x9ee   : > { %v7854_v58 = vpop.eup %7853  ;;  %v4854_v24 = vmul.f32 1.442695, %v4603_v9  ;;  %v5434_v52 = vpack.c.bf16 %v12248_v32, %v7852_v61  ;;  %v5068_v26 = vadd.f32 %v7852_v61, %v7850_v15  ;;  %v14106_v56 = vld [vmem:[#allocation354_spill] sm:$0xff]  ;;  %v14109_v9 = vld [vmem:[#allocation347_spill] sm:$0xff] }
 0x9ef   : > { %v7856_v17 = vpop.eup %7855  ;;  %7865 = vpow2.f32 %v4848_v8  ;;  %v5435_v6 = vpack.c.bf16 %v12255_v41, %v7854_v58  ;;  %v14107_v2 = vsub.f32 %v14105_v21, %v14106_v56  ;;  %v14110_v15 = vsub.f32 %v14108_v18, %v14109_v9 }
 0x9f0   : > { %v7858_v12 = vpop.eup %7857  ;;  %7867 = vpow2.f32 %v4850_v63  ;;  %5585 = vmatprep.mubr.bf16.mxu0 %v5434_v52  ;;  %v5436_v34 = vpack.c.bf16 %v7848_v40, %v7856_v17  ;;  %v5069_v1 = vadd.f32 %v7854_v58, %v5068_v26  ;;  %v14112_v58 = vld [vmem:[#allocation358_spill] sm:$0xff] }
 0x9f1   : > { %v7860_v44 = vpop.eup %7859  ;;  %7869 = vpow2.f32 %v4852_v50  ;;  %5586 = vmatmul.mubr.bf16.gmra.mrb[56].mxu0 %v5433_v45  ;;  %v4272_v3 = vmul.f32 1.442695, %v14107_v2  ;;  %v4266_v61 = vmul.f32 1.442695, %v14110_v15  ;;  %v4865_v50 = vld [vmem:[#allocation4 + $0x8] sm:$0xff]  ;;  %v14111_v45 = vld [vmem:[#allocation356_spill] sm:$0xff] }
 0x9f2   : > { %7871 = vpow2.f32 %v4854_v24  ;;  %5746 = vmatprep.mubr.bf16.mxu1 %v5436_v34  ;;  %v5070_v57 = vadd.f32 %v7856_v17, %v5069_v1  ;;  %v5083_v13 = vadd.f32 %v7860_v44, %v7858_v12  ;;  %v7862_v23 = vpop.eup %7861  ;;  %v14113_v24 = vsub.f32 %v14111_v45, %v14112_v58  ;;  %v14129_v58 = vld [vmem:[#allocation369_spill] sm:$0xff] }
 0x9f3   : > { %5747 = vmatmul.mubr.bf16.gmra.mrb[56].mxu1 %v5435_v6  ;;  %v7864_v32 = vpop.eup %7863  ;;  %7873 = vpow2.f32 %v4258_v28 }
 0x9f4   : > { %5071 = vadd.xlane.f32.xlu1 %v5070_v57  ;;  %v5084_v5 = vadd.f32 %v7862_v23, %v5083_v13  ;;  %7875 = vpow2.f32 %v4256_v10  ;;  %v4276_v52 = vmul.f32 1.442695, %v14113_v24  ;;  %v14130_v24 = vld [vmem:[#allocation371_spill] sm:$0xff] }
 0x9f5   : > { %7877 = vpow2.f32 %v4264_v33  ;;  %v14123_v33 = vld [vmem:[#allocation365_spill] sm:$0xff] }
 0x9f6   : > { %v5085_v48 = vadd.f32 %v7864_v32, %v5084_v5  ;;  %7879 = vpow2.f32 %v4260_v7  ;;  %v14114_v5 = vld [vmem:[#allocation349_spill] sm:$0xff]  ;;  %v14125_v0 = vsub.f32 %v14123_v33, %v14124_v19 }
 0x9f7   : > { %7881 = vpow2.f32 %v4268_v37 }
 0x9f8   : > { %5086 = vadd.xlane.f32.xlu0 %v5085_v48  ;;  %7883 = vpow2.f32 %v4262_v35  ;;  %v14115_v48 = vld [vmem:[#allocation351_spill] sm:$0xff]  ;;  %v4284_v27 = vmul.f32 1.442695, %v14125_v0 }
 0x9f9   : > { %v7866_v41 = vpop.eup %7865  ;;  %7885 = vpow2.f32 %v4272_v3  ;;  %v14126_v3 = vld [vmem:[#allocation357_spill] sm:$0xff] }
 0x9fa   : > { %v7868_v22 = vpop.eup %7867  ;;  %v5437_v16 = vpack.c.bf16 %v7858_v12, %v7866_v41  ;;  %7887 = vpow2.f32 %v4266_v61 }
 0x9fb   : > { %v7870_v30 = vpop.eup %7869  ;;  %v5438_v53 = vpack.c.bf16 %v7860_v44, %v7868_v22  ;;  %v5078_v40 = vadd.f32 %v7868_v22, %v7866_v41  ;;  %v14116_v41 = vsub.f32 %v14114_v5, %v14115_v48  ;;  %7889 = vpow2.f32 %v4276_v52 }
 0x9fc   : > { %v7872_v59 = vpop.eup %7871  ;;  %v5439_v11 = vpack.c.bf16 %v7862_v23, %v7870_v30  ;;  %v14131_v52 = vsub.f32 %v14129_v58, %v14130_v24  ;;  %v14149_v58 = vld [vmem:[#allocation372_spill] sm:$0xff] }
 0x9fd   : > { %5593 = vmatprep.mubr.bf16.mxu0 %v5438_v53  ;;  %v5440_v47 = vpack.c.bf16 %v7864_v32, %v7872_v59  ;;  %v5079_v43 = vadd.f32 %v7870_v30, %v5078_v40  ;;  %v7874_v60 = vpop.eup %7873  ;;  %v4270_v22 = vmul.f32 1.442695, %v14116_v41  ;;  %v14117_v40 = vld [vmem:[#allocation361_spill] sm:$0xff] }
 0x9fe   : > { %5594 = vmatmul.mubr.bf16.gmra.mrb[60].mxu0 %v5437_v16  ;;  %v7876_v6 = vpop.eup %7875  ;;  %v4897_v32 = vmul.f32 %v7874_v60, %v4865_v50 }
 0x9ff   : > { %5754 = vmatprep.mubr.bf16.mxu1 %v5440_v47  ;;  %v5080_v39 = vadd.f32 %v7872_v59, %v5079_v43  ;;  %v7878_v57 = vpop.eup %7877  ;;  %v14118_v59 = vld [vmem:[#allocation363_spill] sm:$0xff]  ;;  %7891 = vpow2.f32 %v4270_v22  ;;  %v4896_v2 = vmul.f32 %v7876_v6, %v4864_v54 }
 0xa00   : > { %5755 = vmatmul.mubr.bf16.gmra.mrb[60].mxu1 %v5439_v11  ;;  %v14119_v11 = vsub.f32 %v14117_v40, %v14118_v59  ;;  %v12311_v51 = vpop.eup %7879  ;;  %v4900_v56 = vmul.f32 %v7878_v57, %v4868_v62  ;;  %v14138_v40 = vld [vmem:[#allocation378_spill] sm:$0xff]  ;;  %v14139_v59 = vld [vmem:[#allocation376_spill] sm:$0xff] }
 0xa01   : > { %5081 = vadd.xlane.f32.xlu1 %v5080_v39  ;;  %v12315_v28 = vpop.eup %7881  ;;  %v14120_v39 = vld [vmem:[#allocation353_spill] sm:$0xff]  ;;  %v14141_v62 = vld [vmem:[#allocation366_spill] sm:$0xff] }
 0xa02   : > { %v4280_v47 = vmul.f32 1.442695, %v14119_v11  ;;  %v14122_v49 = vsub.f32 %v14120_v39, %v14121_v29  ;;  %v12326_v38 = vpop.eup %7883  ;;  %v4244_v11 = vsub.f32 %v14139_v59, %v14138_v40  ;;  %v14152_v40 = vld [vmem:[#allocation390_spill] sm:$0xff]  ;;  %v14153_v59 = vld [vmem:[#allocation388_spill] sm:$0xff] }
 0xa03   : > { %v12328_v46 = vpop.eup %7885 }
 0xa04   : > { %v4274_v55 = vmul.f32 1.442695, %v14122_v49  ;;  %7893 = vpow2.f32 %v4280_v47  ;;  %v12337_v45 = vpop.eup %7887 }
 0xa06   : > { %7895 = vpow2.f32 %v4274_v55 }
 0xa07   : > { %7897 = vpow2.f32 %v4284_v27 }
 0xa0c   : > { %v6785_v8 = vpop.f32.mrb[0].mxu0 }
 0xa0d   : > { %v6897_v63 = vpop.f32.mrb[0].mxu1  ;;  %v6786_v26 = vpop.f32.mrb[1].mxu0 }
 0xa0e   : > { %5192 = vperm.xlu0 %7615, %v7874_v60   ;;  %v6898_v17 = vpop.f32.mrb[1].mxu1  ;;  %v6787_v12 = vadd.f32 %v6786_v26, %v6785_v8  ;;  %v6788_v1 = vpop.f32.mrb[2].mxu0  ;;  %v14127_v60 = vld [vmem:[#allocation359_spill] sm:$0xff]  ;;  %v4288_v26 = vmul.f32 1.442695, %v14131_v52 }
 0xa0f   : > { %v6899_v34 = vadd.f32 %v6898_v17, %v6897_v63  ;;  %v6900_v44 = vpop.f32.mrb[2].mxu1  ;;  %v6789_v13 = vpop.f32.mrb[3].mxu0  ;;  %v14128_v18 = vsub.f32 %v14126_v3, %v14127_v60 }
 0xa10   : > { %v6901_v23 = vpop.f32.mrb[3].mxu1  ;;  %v6790_v30 = vadd.f32 %v6789_v13, %v6788_v1  ;;  %v14132_v1 = vld [vmem:[#allocation360_spill] sm:$0xff] }
 0xa11   : > { %v12306_v16 = vadd.f32 %v6899_v34, %v6787_v12  ;;  %v6902_v53 = vadd.f32 %v6901_v23, %v6900_v44  ;;  %v4278_v9 = vmul.f32 1.442695, %v14128_v18  ;;  %v12344_v34 = vpop.eup %7889  ;;  %v14133_v44 = vld [vmem:[#allocation362_spill] sm:$0xff]  ;;  %v14135_v23 = vld [vmem:[#allocation373_spill] sm:$0xff] }
 0xa12   : > { %5207 = vperm.xlu0 %7615, %v7878_v57   ;;  %5187 = vperm.xlu1 %7616, %v7876_v6   ;;  %v14134_v57 = vsub.f32 %v14132_v1, %v14133_v44  ;;  %v14150_v44 = vld [vmem:[#allocation387_spill] sm:$0xff] }
 0xa13   : > { %v4937_v43 = vpop.xlane.xlu1 %4936  ;;  %v12313_v31 = vadd.f32 %v6902_v53, %v6790_v30  ;;  %7899 = vpow2.f32 %v4278_v9  ;;  %v4870_v30 = vld [vmem:[#allocation4 + $0x30] sm:$0xff]  ;;  %v14145_v9 = vld [vmem:[#allocation368_spill] sm:$0xff] }
 0xa14   : > { %v5089_v4 = vadd.f32 %v4937_v43, %v4897_v32  ;;  %v6791_v10 = vpop.f32.mrb[4].mxu0  ;;  %v4282_v13 = vmul.f32 1.442695, %v14134_v57  ;;  %v14136_v32 = vld [vmem:[#allocation375_spill] sm:$0xff]  ;;  %v4866_v53 = vld [vmem:[#allocation4 + $0x10] sm:$0xff]  ;;  %7901 = vpow2.f32 %v4288_v26  ;;  %v4902_v27 = vmul.f32 %v12315_v28, %v4870_v30  ;;  %v14151_v57 = vld [vmem:[#allocation385_spill] sm:$0xff] }
 0xa15   : > { %v6903_v42 = vpop.f32.mrb[4].mxu1  ;;  %v6792_v7 = vpop.f32.mrb[5].mxu0  ;;  %v14137_v5 = vsub.f32 %v14135_v23, %v14136_v32 }
 0xa16   : > { %5122 = vst.msk [vmem:[#allocation4 + $0x8] sm:$0xff] %vm5120_vm6, %v5089_v4  ;;  %5217 = vperm.xlu0 %7615, %v12315_v28   ;;  %5197 = vperm.xlu1 %7616, %v12311_v51   ;;  %v6904_v14 = vpop.f32.mrb[5].mxu1  ;;  %v6793_v20 = vadd.f32 %v6792_v7, %v6791_v10  ;;  %v6794_v25 = vpop.f32.mrb[6].mxu0  ;;  %7903 = vpow2.f32 %v4282_v13  ;;  %v4898_v7 = vmul.f32 %v12311_v51, %v4866_v53 }
 0xa17   : > { %v6905_v37 = vadd.f32 %v6904_v14, %v6903_v42  ;;  %v6906_v36 = vpop.f32.mrb[6].mxu1  ;;  %v6795_v35 = vpop.f32.mrb[7].mxu0  ;;  %v4292_v48 = vmul.f32 1.442695, %v14137_v5  ;;  %v14140_v42 = vld [vmem:[#allocation364_spill] sm:$0xff]  ;;  %v4248_v13 = vsub.f32 %v14151_v57, %v14150_v44  ;;  %v14157_v57 = vld [vmem:[#allocation381_spill] sm:$0xff] }
 0xa18   : > { %v6907_v21 = vpop.f32.mrb[7].mxu1  ;;  %v6796_v61 = vadd.f32 %v6795_v35, %v6794_v25  ;;  %v4952_v63 = vpop.xlane.xlu1 %4951  ;;  %v14142_v54 = vsub.f32 %v14140_v42, %v14141_v62 }
 0xa19   : > { %v12333_v15 = vadd.f32 %v6905_v37, %v6793_v20  ;;  %v6908_v8 = vadd.f32 %v6907_v21, %v6906_v36  ;;  %v4932_v50 = vpop.xlane.xlu0 %4931  ;;  %v5092_v17 = vadd.f32 %v4952_v63, %v4900_v56  ;;  %v12358_v4 = vpop.eup %7891  ;;  %7905 = vpow2.f32 %v4292_v48  ;;  %v14143_v56 = vld [vmem:[#allocation382_spill] sm:$0xff] }
 0xa1a   : > { %5227 = vperm.xlu0 %7615, %v12328_v46   ;;  %5202 = vperm.xlu1 %7616, %v12326_v38   ;;  %v5088_v6 = vadd.f32 %v4932_v50, %v4896_v2  ;;  %v12360_v10 = vpop.eup %7893  ;;  %v4286_v33 = vmul.f32 1.442695, %v14142_v54  ;;  %v4296_v21 = vmul.f32 1.442695, %v4244_v11  ;;  %v14144_v2 = vld [vmem:[#allocation380_spill] sm:$0xff]  ;;  %v14148_v50 = vld [vmem:[#allocation374_spill] sm:$0xff]  ;;  %v4250_v11 = vsub.f32 %v14153_v59, %v14152_v40 }
 0xa1b   : > { %v12342_v12 = vadd.f32 %v6908_v8, %v6796_v61  ;;  %5125 = vst.msk [vmem:[#allocation4 + $0x20] sm:$0xff] %vm5120_vm6, %v5092_v17  ;;  %v12371_v35 = vpop.eup %7895  ;;  %v4246_v3 = vsub.f32 %v14144_v2, %v14143_v56  ;;  %v14146_v61 = vld [vmem:[#allocation370_spill] sm:$0xff]  ;;  %v4243_v24 = vsub.f32 %v14149_v58, %v14148_v50  ;;  %v4872_v17 = vld [vmem:[#allocation4 + $0x40] sm:$0xff] }
 0xa1c   : > { %5121 = vst.msk [vmem:[#allocation4] sm:$0xff] %vm5120_vm6, %v5088_v6  ;;  %v6797_v41 = vpop.f32.mrb[8].mxu0  ;;  %v4962_v25 = vpop.xlane.xlu1 %4961  ;;  %v14147_v8 = vsub.f32 %v14145_v9, %v14146_v61  ;;  %7907 = vpow2.f32 %v4286_v33  ;;  %v4867_v6 = vld [vmem:[#allocation4 + $0x18] sm:$0xff]  ;;  %v4876_v58 = vld [vmem:[#allocation4 + $0x60] sm:$0xff]  ;;  %v14160_v59 = vld [vmem:[#allocation394_spill] sm:$0xff] }
 0xa1d   : > { %v6909_v22 = vpop.f32.mrb[8].mxu1  ;;  %v6798_v47 = vpop.f32.mrb[9].mxu0  ;;  %v5094_v28 = vadd.f32 %v4962_v25, %v4902_v27  ;;  %7909 = vpow2.f32 %v4296_v21  ;;  %v4300_v1 = vmul.f32 1.442695, %v4246_v3  ;;  %v14154_v25 = vld [vmem:[#allocation377_spill] sm:$0xff] }
 0xa1e   : > { %5237 = vperm.xlu0 %7615, %v12344_v34   ;;  %5212 = vperm.xlu1 %7616, %v12337_v45   ;;  %v6910_v43 = vpop.f32.mrb[9].mxu1  ;;  %v6799_v39 = vadd.f32 %v6798_v47, %v6797_v41  ;;  %v6800_v49 = vpop.f32.mrb[10].mxu0  ;;  %v4290_v63 = vmul.f32 1.442695, %v14147_v8 }
 0xa1f   : > { %v6911_v29 = vadd.f32 %v6910_v43, %v6909_v22  ;;  %v6912_v55 = vpop.f32.mrb[10].mxu1  ;;  %v6801_v19 = vpop.f32.mrb[11].mxu0  ;;  %5127 = vst.msk [vmem:[#allocation4 + $0x30] sm:$0xff] %vm5120_vm6, %v5094_v28  ;;  %v4308_v28 = vmul.f32 1.442695, %v4250_v11  ;;  %v14161_v11 = vld [vmem:[#allocation395_spill] sm:$0xff] }
 0xa20   : > { %v6913_v0 = vpop.f32.mrb[11].mxu1  ;;  %v6802_v20 = vadd.f32 %v6801_v19, %v6800_v49  ;;  %v4942_v36 = vpop.xlane.xlu0 %4941  ;;  %7911 = vpow2.f32 %v4290_v63  ;;  %v4294_v49 = vmul.f32 1.442695, %v4243_v24  ;;  %v4874_v19 = vld [vmem:[#allocation4 + $0x50] sm:$0xff]  ;;  %v4871_v24 = vld [vmem:[#allocation4 + $0x38] sm:$0xff] }
 0xa21   : > { %v12367_v14 = vadd.f32 %v6911_v29, %v6799_v39  ;;  %v6914_v37 = vadd.f32 %v6913_v0, %v6912_v55  ;;  %v5090_v60 = vadd.f32 %v4942_v36, %v4898_v7  ;;  %v12377_v18 = vpop.eup %7897  ;;  %v4904_v39 = vmul.f32 %v12328_v46, %v4872_v17  ;;  %v4972_v54 = vpop.xlane.xlu1 %4971  ;;  %v4869_v0 = vld [vmem:[#allocation4 + $0x28] sm:$0xff]  ;;  %v14155_v36 = vld [vmem:[#allocation379_spill] sm:$0xff] }
 0xa22   : > { %5247 = vperm.xlu0 %7615, %v12360_v10   ;;  %5222 = vperm.xlu1 %7616, %v12358_v4   ;;  %v12390_v5 = vpop.eup %7899  ;;  %v4899_v29 = vmul.f32 %v12326_v38, %v4867_v6  ;;  %7913 = vpow2.f32 %v4300_v1  ;;  %v4304_v7 = vmul.f32 1.442695, %v4248_v13  ;;  %v14156_v21 = vsub.f32 %v14154_v25, %v14155_v36  ;;  %v14158_v13 = vld [vmem:[#allocation383_spill] sm:$0xff] }
 0xa23   : > { %v12375_v51 = vadd.f32 %v6914_v37, %v6802_v20  ;;  %5123 = vst.msk [vmem:[#allocation4 + $0x10] sm:$0xff] %vm5120_vm6, %v5090_v60  ;;  %v12392_v53 = vpop.eup %7901  ;;  %v5096_v46 = vadd.f32 %v4972_v54, %v4904_v39  ;;  %v4906_v2 = vmul.f32 %v12344_v34, %v4874_v19  ;;  %v4901_v3 = vmul.f32 %v12337_v45, %v4869_v0  ;;  %v4878_v54 = vld [vmem:[#allocation4 + $0x70] sm:$0xff] }
 0xa24   : > { %v6803_v52 = vpop.f32.mrb[12].mxu0  ;;  %v4947_v33 = vpop.xlane.xlu0 %4946  ;;  %v4298_v56 = vmul.f32 1.442695, %v14156_v21  ;;  %7915 = vpow2.f32 %v4294_v49  ;;  %v4910_v36 = vmul.f32 %v12377_v18, %v4878_v54 }
 0xa25   : > { %v6915_v26 = vpop.f32.mrb[12].mxu1  ;;  %v6804_v23 = vpop.f32.mrb[13].mxu0  ;;  %v5091_v20 = vadd.f32 %v4947_v33, %v4899_v29  ;;  %5129 = vst.msk [vmem:[#allocation4 + $0x40] sm:$0xff] %vm5120_vm6, %v5096_v46  ;;  %7917 = vpow2.f32 %v4304_v7  ;;  %v14163_v7 = vld [vmem:[#allocation384_spill] sm:$0xff]  ;;  %v14164_v46 = vld [vmem:[#allocation386_spill] sm:$0xff] }
 0xa26   : > { %5257 = vperm.xlu0 %7615, %v12377_v18   ;;  %5232 = vperm.xlu1 %7616, %v12371_v35   ;;  %v6916_v32 = vpop.f32.mrb[13].mxu1  ;;  %v6805_v48 = vadd.f32 %v6804_v23, %v6803_v52  ;;  %v6806_v22 = vpop.f32.mrb[14].mxu0  ;;  %7919 = vpow2.f32 %v4298_v56  ;;  %v14159_v23 = vsub.f32 %v14157_v57, %v14158_v13  ;;  %v14169_v57 = vld [vmem:[#allocation389_spill] sm:$0xff]  ;;  %v14170_v13 = vld [vmem:[#allocation391_spill] sm:$0xff] }
 0xa27   : > { %v6917_v41 = vadd.f32 %v6916_v32, %v6915_v26  ;;  %v6918_v30 = vpop.f32.mrb[14].mxu1  ;;  %v6807_v47 = vpop.f32.mrb[15].mxu0  ;;  %5124 = vst.msk [vmem:[#allocation4 + $0x18] sm:$0xff] %vm5120_vm6, %v5091_v20  ;;  %7921 = vpow2.f32 %v4308_v28  ;;  %v14165_v20 = vsub.f32 %v14163_v7, %v14164_v46  ;;  %v14167_v28 = vld [vmem:[#allocation399_spill] sm:$0xff]  ;;  %v14172_v7 = vld [vmem:[#allocation392_spill] sm:$0xff]  ;;  %v14173_v46 = vld [vmem:[#allocation393_spill] sm:$0xff] }
 0xa28   : > { %v6919_v43 = vpop.f32.mrb[15].mxu1  ;;  %v6808_v42 = vadd.f32 %v6807_v47, %v6806_v22  ;;  %v12402_v27 = vpop.eup %7903  ;;  %v4302_v32 = vmul.f32 1.442695, %v14159_v23  ;;  %v4908_v22 = vmul.f32 %v12360_v10, %v4876_v58  ;;  %v14162_v47 = vsub.f32 %v14160_v59, %v14161_v11  ;;  %v4873_v10 = vld [vmem:[#allocation4 + $0x48] sm:$0xff] }
 0xa29   : > { %v12398_v55 = vadd.f32 %v6917_v41, %v6805_v48  ;;  %v6920_v62 = vadd.f32 %v6919_v43, %v6918_v30  ;;  %v12404_v38 = vpop.eup %7905  ;;  %v4982_v60 = vpop.xlane.xlu1 %4981  ;;  %v4903_v30 = vmul.f32 %v12358_v4, %v4871_v24  ;;  %v4306_v25 = vmul.f32 1.442695, %v14165_v20 }
 0xa2a   : > { %5267 = vperm.xlu0 %7615, %v12392_v53   ;;  %5242 = vperm.xlu1 %7616, %v12390_v5   ;;  %v4957_v9 = vpop.xlane.xlu0 %4956  ;;  %v5098_v61 = vadd.f32 %v4982_v60, %v4906_v2  ;;  %v12417_v52 = vpop.eup %7907  ;;  %v4312_v43 = vmul.f32 1.442695, %v14162_v47  ;;  %7923 = vpow2.f32 %v4302_v32  ;;  %v4905_v21 = vmul.f32 %v12371_v35, %v4873_v10 }
 0xa2b   : > { %v12406_v37 = vadd.f32 %v6920_v62, %v6808_v42  ;;  %v5093_v8 = vadd.f32 %v4957_v9, %v4901_v3  ;;  %v12419_v45 = vpop.eup %7909  ;;  %v14166_v3 = vld [vmem:[#allocation398_spill] sm:$0xff]  ;;  %v14171_v23 = vsub.f32 %v14169_v57, %v14170_v13  ;;  %v14174_v20 = vsub.f32 %v14172_v7, %v14173_v46 }
 0xa2c   : > { %v6809_v63 = vpop.f32.mrb[16].mxu0  ;;  %5131 = vst.msk [vmem:[#allocation4 + $0x50] sm:$0xff] %vm5120_vm6, %v5098_v61  ;;  %v12430_v40 = vpop.eup %7911  ;;  %7925 = vpow2.f32 %v4312_v43  ;;  %v14168_v60 = vsub.f32 %v14166_v3, %v14167_v28 }
 0xa2d   : > { %v6921_v50 = vpop.f32.mrb[16].mxu1  ;;  %v6810_v34 = vpop.f32.mrb[17].mxu0  ;;  %5126 = vst.msk [vmem:[#allocation4 + $0x28] sm:$0xff] %vm5120_vm6, %v5093_v8  ;;  %7927 = vpow2.f32 %v4306_v25  ;;  %v4310_v32 = vmul.f32 1.442695, %v14171_v23  ;;  %v4888_v23 = vld [vmem:[#allocation4 + $0xc0] sm:$0xff] }
 0xa2e   : > { %5277 = vperm.xlu0 %7615, %v12404_v38   ;;  %5252 = vperm.xlu1 %7616, %v12402_v27   ;;  %v6922_v26 = vpop.f32.mrb[17].mxu1  ;;  %v6811_v17 = vadd.f32 %v6810_v34, %v6809_v63  ;;  %v6812_v1 = vpop.f32.mrb[18].mxu0  ;;  %v4316_v9 = vmul.f32 1.442695, %v14168_v60  ;;  %v4880_v63 = vld [vmem:[#allocation4 + $0x80] sm:$0xff] }
 0xa2f   : > { %v6923_v6 = vadd.f32 %v6922_v26, %v6921_v50  ;;  %v6924_v44 = vpop.f32.mrb[18].mxu1  ;;  %v6813_v48 = vpop.f32.mrb[19].mxu0  ;;  %v4875_v50 = vld [vmem:[#allocation4 + $0x58] sm:$0xff]  ;;  %v4314_v25 = vmul.f32 1.442695, %v14174_v20 }
 0xa30   : > { %v6925_v41 = vpop.f32.mrb[19].mxu1  ;;  %v6814_v29 = vadd.f32 %v6813_v48, %v6812_v1  ;;  %v4992_v42 = vpop.xlane.xlu1 %4991  ;;  %7929 = vpow2.f32 %v4316_v9 }
 0xa31   : > { %v12435_v39 = vadd.f32 %v6923_v6, %v6811_v17  ;;  %v6926_v49 = vadd.f32 %v6925_v41, %v6924_v44  ;;  %v4967_v62 = vpop.xlane.xlu0 %4966  ;;  %v5100_v33 = vadd.f32 %v4992_v42, %v4908_v22  ;;  %v12437_v19 = vpop.eup %7913  ;;  %v4912_v22 = vmul.f32 %v12392_v53, %v4880_v63  ;;  %v4882_v42 = vld [vmem:[#allocation4 + $0x90] sm:$0xff] }
 0xa32   : > { %5287 = vperm.xlu0 %7615, %v12419_v45   ;;  %5262 = vperm.xlu1 %7616, %v12417_v52   ;;  %v5095_v4 = vadd.f32 %v4967_v62, %v4903_v30  ;;  %v12453_v58 = vpop.eup %7915  ;;  %v4907_v30 = vmul.f32 %v12390_v5, %v4875_v50  ;;  %v4877_v62 = vld [vmem:[#allocation4 + $0x68] sm:$0xff]  ;;  %7931 = vpow2.f32 %v4310_v32  ;;  %v4883_v32 = vld [vmem:[#allocation4 + $0x98] sm:$0xff] }
 0xa33   : > { %v12439_v0 = vadd.f32 %v6926_v49, %v6814_v29  ;;  %5133 = vst.msk [vmem:[#allocation4 + $0x60] sm:$0xff] %vm5120_vm6, %v5100_v33  ;;  %v12455_v26 = vpop.eup %7917  ;;  %v4914_v33 = vmul.f32 %v12404_v38, %v4882_v42  ;;  %7933 = vpow2.f32 %v4314_v25 }
 0xa34   : > { %5128 = vst.msk [vmem:[#allocation4 + $0x38] sm:$0xff] %vm5120_vm6, %v5095_v4  ;;  %v6815_v56 = vpop.f32.mrb[20].mxu0  ;;  %v5002_v61 = vpop.xlane.xlu1 %5001  ;;  %v4909_v4 = vmul.f32 %v12402_v27, %v4877_v62 }
 0xa35   : > { %v6927_v2 = vpop.f32.mrb[20].mxu1  ;;  %v4977_v8 = vpop.xlane.xlu0 %4976  ;;  %v5102_v18 = vadd.f32 %v5002_v61, %v4910_v36  ;;  %v14175_v61 = vld [vmem:[#allocation396_spill] sm:$0xff] }
 0xa36   : > { %5297 = vperm.xlu0 %7615, %v12437_v19   ;;  %5272 = vperm.xlu1 %7616, %v12430_v40   ;;  %v5097_v24 = vadd.f32 %v4977_v8, %v4905_v21  ;;  %v6816_v35 = vpop.f32.mrb[21].mxu0  ;;  %v6928_v34 = vpop.f32.mrb[21].mxu1  ;;  %v14176_v8 = vld [vmem:[#allocation397_spill] sm:$0xff] }
 0xa37   : > { %v6817_v17 = vadd.f32 %v6816_v35, %v6815_v56  ;;  %v6929_v6 = vadd.f32 %v6928_v34, %v6927_v2  ;;  %v6818_v1 = vpop.f32.mrb[22].mxu0  ;;  %v6930_v44 = vpop.f32.mrb[22].mxu1  ;;  %5135 = vst.msk [vmem:[#allocation4 + $0x70] sm:$0xff] %vm5120_vm6, %v5102_v18  ;;  %v4884_v56 = vld [vmem:[#allocation4 + $0xa0] sm:$0xff]  ;;  %v4879_v2 = vld [vmem:[#allocation4 + $0x78] sm:$0xff]  ;;  %v14177_v63 = vsub.f32 %v14175_v61, %v14176_v8  ;;  %v4886_v35 = vld [vmem:[#allocation4 + $0xb0] sm:$0xff] }
 0xa38   : > { %5130 = vst.msk [vmem:[#allocation4 + $0x48] sm:$0xff] %vm5120_vm6, %v5097_v24  ;;  %v6819_v48 = vpop.f32.mrb[23].mxu0  ;;  %v6931_v41 = vpop.f32.mrb[23].mxu1  ;;  %v4916_v27 = vmul.f32 %v12419_v45, %v4884_v56  ;;  %v4911_v38 = vmul.f32 %v12417_v52, %v4879_v2  ;;  %v4881_v34 = vld [vmem:[#allocation4 + $0x88] sm:$0xff]  ;;  %v4918_v52 = vmul.f32 %v12437_v19, %v4886_v35  ;;  %v4915_v19 = vmul.f32 %v12453_v58, %v4883_v32  ;;  %v4891_v56 = vld [vmem:[#allocation4 + $0xd8] sm:$0xff] }
 0xa39   : > { %v12466_v59 = vpop.eup %7919  ;;  %v12468_v11 = vadd.f32 %v6929_v6, %v6817_v17  ;;  %v6820_v47 = vadd.f32 %v6819_v48, %v6818_v1  ;;  %v6932_v43 = vadd.f32 %v6931_v41, %v6930_v44  ;;  %v5012_v29 = vpop.xlane.xlu1 %5011  ;;  %v4318_v50 = vmul.f32 1.442695, %v14177_v63 }
 0xa3a   : > { %5307 = vperm.xlu0 %7615, %v12455_v26   ;;  %5282 = vperm.xlu1 %7616, %v12453_v58   ;;  %v4987_v49 = vpop.xlane.xlu0 %4986  ;;  %v12470_v54 = vpop.eup %7921  ;;  %v5104_v53 = vadd.f32 %v5012_v29, %v4912_v22  ;;  %v4913_v45 = vmul.f32 %v12430_v40, %v4881_v34  ;;  %v4885_v29 = vld [vmem:[#allocation4 + $0xa8] sm:$0xff]  ;;  %v4887_v58 = vld [vmem:[#allocation4 + $0xb8] sm:$0xff] }
 0xa3b   : > { %v5099_v10 = vadd.f32 %v4987_v49, %v4907_v30  ;;  %v12472_v5 = vadd.f32 %v6932_v43, %v6820_v47  ;;  %v7924_v3 = vpop.eup %7923  ;;  %7935 = vpow2.f32 %v4318_v50  ;;  %v4920_v30 = vmul.f32 %v12455_v26, %v4888_v23  ;;  %v4890_v43 = vld [vmem:[#allocation4 + $0xd0] sm:$0xff] }
 0xa3c   : > { %5137 = vst.msk [vmem:[#allocation4 + $0x80] sm:$0xff] %vm5120_vm6, %v5104_v53  ;;  %v12483_v9 = vpop.eup %7925  ;;  %v4922_v53 = vmul.f32 %v12470_v54, %v4890_v43  ;;  %v4919_v20 = vmul.f32 %v7924_v3, %v4887_v58 }
 0xa3d   : > { %5132 = vst.msk [vmem:[#allocation4 + $0x58] sm:$0xff] %vm5120_vm6, %v5099_v10  ;;  %v5022_v36 = vpop.xlane.xlu1 %5021  ;;  %v7928_v17 = vpop.eup %7927  ;;  %v4917_v10 = vmul.f32 %v12466_v59, %v4885_v29 }
 0xa3e   : > { %5317 = vperm.xlu0 %7615, %v12470_v54   ;;  %5292 = vperm.xlu1 %7616, %v12466_v59   ;;  %v4997_v21 = vpop.xlane.xlu0 %4996  ;;  %v5106_v28 = vadd.f32 %v5022_v36, %v4914_v33  ;;  %v12493_v44 = vpop.eup %7929  ;;  %v4889_v36 = vld [vmem:[#allocation4 + $0xc8] sm:$0xff] }
 0xa3f   : > { %v5101_v60 = vadd.f32 %v4997_v21, %v4909_v4  ;;  %v7932_v22 = vpop.eup %7931  ;;  %v4921_v59 = vmul.f32 %v7928_v17, %v4889_v36 }
 0xa40   : > { %5139 = vst.msk [vmem:[#allocation4 + $0x90] sm:$0xff] %vm5120_vm6, %v5106_v28  ;;  %v7934_v62 = vpop.eup %7933  ;;  %v4923_v28 = vmul.f32 %v7932_v22, %v4891_v56 }
 0xa41   : > { %5134 = vst.msk [vmem:[#allocation4 + $0x68] sm:$0xff] %vm5120_vm6, %v5101_v60  ;;  %v5032_v18 = vpop.xlane.xlu1 %5031 }
 0xa42   : > { %5327 = vperm.xlu0 %7615, %v12483_v9   ;;  %5302 = vperm.xlu1 %7616, %v7924_v3   ;;  %v5007_v24 = vpop.xlane.xlu0 %5006  ;;  %v5108_v6 = vadd.f32 %v5032_v18, %v4916_v27  ;;  %v4893_v27 = vld [vmem:[#allocation4 + $0xe8] sm:$0xff] }
 0xa43   : > { %v5103_v1 = vadd.f32 %v5007_v24, %v4911_v38  ;;  %v4925_v24 = vmul.f32 %v7934_v62, %v4893_v27 }
 0xa44   : > { %5141 = vst.msk [vmem:[#allocation4 + $0xa0] sm:$0xff] %vm5120_vm6, %v5108_v6 }
 0xa45   : > { %5136 = vst.msk [vmem:[#allocation4 + $0x78] sm:$0xff] %vm5120_vm6, %v5103_v1  ;;  %v5042_v57 = vpop.xlane.xlu1 %5041  ;;  %v12508_v46 = vpop.eup %7935 }
 0xa46   : > { %5337 = vperm.xlu0 %7615, %v12493_v44   ;;  %5312 = vperm.xlu1 %7616, %v7928_v17   ;;  %v5017_v13 = vpop.xlane.xlu0 %5016  ;;  %v5110_v48 = vadd.f32 %v5042_v57, %v4918_v52 }
 0xa47   : > { %v5105_v41 = vadd.f32 %v5017_v13, %v4913_v45 }
 0xa48   : > { %5143 = vst.msk [vmem:[#allocation4 + $0xb0] sm:$0xff] %vm5120_vm6, %v5110_v48 }
 0xa49   : > { %5138 = vst.msk [vmem:[#allocation4 + $0x88] sm:$0xff] %vm5120_vm6, %v5105_v41  ;;  %v5052_v40 = vpop.xlane.xlu1 %5051 }
 0xa4a   : > { %5322 = vperm.xlu1 %7616, %v7932_v22   ;;  %v5027_v47 = vpop.xlane.xlu0 %5026  ;;  %v5112_v49 = vadd.f32 %v5052_v40, %v4920_v30 }
 0xa4b   : > { %v5107_v42 = vadd.f32 %v5027_v47, %v4915_v19 }
 0xa4c   : > { %5145 = vst.msk [vmem:[#allocation4 + $0xc0] sm:$0xff] %vm5120_vm6, %v5112_v49 }
 0xa4d   : > { %5140 = vst.msk [vmem:[#allocation4 + $0x98] sm:$0xff] %vm5120_vm6, %v5107_v42  ;;  %v5062_v26 = vpop.xlane.xlu1 %5061 }
 0xa4e   : > { %5332 = vperm.xlu1 %7616, %v7934_v62   ;;  %v5037_v33 = vpop.xlane.xlu0 %5036  ;;  %v5114_v4 = vadd.f32 %v5062_v26, %v4922_v53 }
 0xa4f   : > { %v5109_v7 = vadd.f32 %v5037_v33, %v4917_v10 }
 0xa50   : > { %5147 = vst.msk [vmem:[#allocation4 + $0xd0] sm:$0xff] %vm5120_vm6, %v5114_v4 }
 0xa51   : > { %5142 = vst.msk [vmem:[#allocation4 + $0xa8] sm:$0xff] %vm5120_vm6, %v5109_v7 }
 0xa52   : > { %5342 = vperm.xlu1 %7616, %v12508_v46   ;;  %v5047_v25 = vpop.xlane.xlu0 %5046 }
 0xa53   : > { %v5111_v54 = vadd.f32 %v5047_v25, %v4919_v20 }
 0xa55   : > { %5144 = vst.msk [vmem:[#allocation4 + $0xb8] sm:$0xff] %vm5120_vm6, %v5111_v54  ;;  %v6933_v8 = vpop.f32.mrb[24].mxu1 }
 0xa56   : > { %v5057_v21 = vpop.xlane.xlu0 %5056  ;;  %v6821_v61 = vpop.f32.mrb[24].mxu0 }
 0xa57   : > { %v5113_v2 = vadd.f32 %v5057_v21, %v4921_v59  ;;  %v6822_v3 = vpop.f32.mrb[25].mxu0  ;;  %v6934_v50 = vpop.f32.mrb[25].mxu1 }
 0xa58   : > { %v6823_v63 = vadd.f32 %v6822_v3, %v6821_v61  ;;  %v6824_v18 = vpop.f32.mrb[26].mxu0  ;;  %v6935_v35 = vadd.f32 %v6934_v50, %v6933_v8  ;;  %v6936_v34 = vpop.f32.mrb[26].mxu1  ;;  %v4892_v8 = vld [vmem:[#allocation4 + $0xe0] sm:$0xff] }
 0xa59   : > { %5146 = vst.msk [vmem:[#allocation4 + $0xc8] sm:$0xff] %vm5120_vm6, %v5113_v2  ;;  %v6825_v1 = vpop.f32.mrb[27].mxu0  ;;  %v6937_v52 = vpop.f32.mrb[27].mxu1 }
 0xa5a   : > { %v5067_v60 = vpop.xlane.xlu0 %5066  ;;  %v12516_v45 = vadd.f32 %v6935_v35, %v6823_v63  ;;  %v6826_v57 = vadd.f32 %v6825_v1, %v6824_v18  ;;  %v6938_v13 = vadd.f32 %v6937_v52, %v6936_v34  ;;  %v4924_v34 = vmul.f32 %v12483_v9, %v4892_v8 }
 0xa5b   : > { %v5115_v38 = vadd.f32 %v5067_v60, %v4923_v28 }
 0xa5c   : > { %v12519_v23 = vadd.f32 %v6938_v13, %v6826_v57 }
 0xa5d   : > { %5148 = vst.msk [vmem:[#allocation4 + $0xd8] sm:$0xff] %vm5120_vm6, %v5115_v38 }
 0xa5e   : > { %v5077_v17 = vpop.xlane.xlu0 %5076 }
 0xa5f   : > { %v5117_v6 = vadd.f32 %v5077_v17, %v4925_v24 }
 0xa61   : > { %5150 = vst.msk [vmem:[#allocation4 + $0xe8] sm:$0xff] %vm5120_vm6, %v5117_v6 }
 0xa63   : > { %v6827_v32 = vpop.f32.mrb[28].mxu0  ;;  %v6939_v48 = vpop.f32.mrb[28].mxu1 }
 0xa64   : > { %v6828_v41 = vpop.f32.mrb[29].mxu0  ;;  %v6940_v22 = vpop.f32.mrb[29].mxu1 }
 0xa65   : > { %v6829_v30 = vadd.f32 %v6828_v41, %v6827_v32  ;;  %v6941_v19 = vadd.f32 %v6940_v22, %v6939_v48  ;;  %v6830_v40 = vpop.f32.mrb[30].mxu0  ;;  %v6942_v47 = vpop.f32.mrb[30].mxu1  ;;  %v4895_v32 = vld [vmem:[#allocation4 + $0xf8] sm:$0xff] }
 0xa66   : > { %v6831_v43 = vpop.f32.mrb[31].mxu0  ;;  %v6943_v29 = vpop.f32.mrb[31].mxu1 }
 0xa67   : > { %v12521_v49 = vadd.f32 %v6941_v19, %v6829_v30  ;;  %v6832_v42 = vadd.f32 %v6831_v43, %v6830_v40  ;;  %v6944_v62 = vadd.f32 %v6943_v29, %v6942_v47  ;;  %v4927_v47 = vmul.f32 %v12508_v46, %v4895_v32  ;;  %v5154_v46 = vld [vmem:[#allocation5 + $0x8] sm:$0xff] }
 0xa69   : > { %v12523_v53 = vadd.f32 %v6944_v62, %v6832_v42 }
 0xa6b   : > { %v6833_v10 = vpop.f32.mrb[32].mxu0  ;;  %v6945_v26 = vpop.f32.mrb[32].mxu1 }
 0xa6c   : > { %v6834_v33 = vpop.f32.mrb[33].mxu0  ;;  %v6946_v58 = vpop.f32.mrb[33].mxu1 }
 0xa6d   : > { %v6835_v4 = vadd.f32 %v6834_v33, %v6833_v10  ;;  %v6947_v7 = vadd.f32 %v6946_v58, %v6945_v26  ;;  %v6836_v20 = vpop.f32.mrb[34].mxu0  ;;  %v6948_v25 = vpop.f32.mrb[34].mxu1 }
 0xa6e   : > { %v6837_v36 = vpop.f32.mrb[35].mxu0  ;;  %v6949_v54 = vpop.f32.mrb[35].mxu1 }
 0xa6f   : > { %v12525_v59 = vadd.f32 %v6947_v7, %v6835_v4  ;;  %v6838_v21 = vadd.f32 %v6837_v36, %v6836_v20  ;;  %v6950_v56 = vadd.f32 %v6949_v54, %v6948_v25  ;;  %v4894_v20 = vld [vmem:[#allocation4 + $0xf0] sm:$0xff] }
 0xa71   : > { %v12527_v2 = vadd.f32 %v6950_v56, %v6838_v21 }
 0xa78   : > { %v6839_v28 = vpop.f32.mrb[36].mxu0 }
 0xa79   : > { %v6840_v60 = vpop.f32.mrb[37].mxu0 }
 0xa7a   : > { %v6951_v27 = vpop.f32.mrb[36].mxu1  ;;  %v6841_v38 = vadd.f32 %v6840_v60, %v6839_v28  ;;  %v6842_v61 = vpop.f32.mrb[38].mxu0 }
 0xa7b   : > { %v6952_v3 = vpop.f32.mrb[37].mxu1  ;;  %v6843_v63 = vpop.f32.mrb[39].mxu0 }
 0xa7c   : > { %v6953_v50 = vadd.f32 %v6952_v3, %v6951_v27  ;;  %v6954_v18 = vpop.f32.mrb[38].mxu1  ;;  %v6844_v24 = vadd.f32 %v6843_v63, %v6842_v61  ;;  %v4926_v61 = vmul.f32 %v12493_v44, %v4894_v20 }
 0xa7d   : > { %v6955_v35 = vpop.f32.mrb[39].mxu1 }
 0xa7e   : > { %v12530_v17 = vadd.f32 %v6953_v50, %v6841_v38  ;;  %v6956_v6 = vadd.f32 %v6955_v35, %v6954_v18  ;;  %v5157_v35 = vld [vmem:[#allocation5 + $0x20] sm:$0xff] }
 0xa80   : > { %v12532_v57 = vadd.f32 %v6956_v6, %v6844_v24  ;;  %v6845_v13 = vpop.f32.mrb[40].mxu0  ;;  %v5153_v6 = vld [vmem:[#allocation5] sm:$0xff] }
 0xa81   : > { %v5072_v1 = vpop.xlane.xlu1 %5071  ;;  %v6846_v48 = vpop.f32.mrb[41].mxu0 }
 0xa82   : > { %v5116_v52 = vadd.f32 %v5072_v1, %v4924_v34  ;;  %v6957_v41 = vpop.f32.mrb[40].mxu1  ;;  %v6847_v22 = vadd.f32 %v6846_v48, %v6845_v13  ;;  %v6848_v30 = vpop.f32.mrb[42].mxu0 }
 0xa83   : > { %v6958_v19 = vpop.f32.mrb[41].mxu1  ;;  %v6849_v40 = vpop.f32.mrb[43].mxu0 }
 0xa84   : > { %5149 = vst.msk [vmem:[#allocation4 + $0xe0] sm:$0xff] %vm5120_vm6, %v5116_v52  ;;  %v6959_v9 = vadd.f32 %v6958_v19, %v6957_v41  ;;  %v6960_v43 = vpop.f32.mrb[42].mxu1  ;;  %v6850_v29 = vadd.f32 %v6849_v40, %v6848_v30  ;;  %v5159_v40 = vld [vmem:[#allocation5 + $0x30] sm:$0xff] }
 0xa85   : > { %v5087_v42 = vpop.xlane.xlu0 %5086  ;;  %v6961_v62 = vpop.f32.mrb[43].mxu1 }
 0xa86   : > { %v5119_v10 = vadd.f32 %v5087_v42, %v4927_v47  ;;  %v12536_v26 = vadd.f32 %v6959_v9, %v6847_v22  ;;  %v6962_v33 = vadd.f32 %v6961_v62, %v6960_v43  ;;  %v5155_v43 = vld [vmem:[#allocation5 + $0x10] sm:$0xff] }
 0xa88   : > { %5152 = vst.msk [vmem:[#allocation4 + $0xf8] sm:$0xff] %vm5120_vm6, %v5119_v10  ;;  %v12539_v58 = vadd.f32 %v6962_v33, %v6850_v29  ;;  %v6851_v4 = vpop.f32.mrb[44].mxu0 }
 0xa89   : > { %v6852_v7 = vpop.f32.mrb[45].mxu0 }
 0xa8a   : > { %v6963_v25 = vpop.f32.mrb[44].mxu1  ;;  %v6853_v36 = vadd.f32 %v6852_v7, %v6851_v4  ;;  %v6854_v54 = vpop.f32.mrb[46].mxu0 }
 0xa8b   : > { %v6964_v21 = vpop.f32.mrb[45].mxu1  ;;  %v6855_v56 = vpop.f32.mrb[47].mxu0 }
 0xa8c   : > { %v6965_v28 = vadd.f32 %v6964_v21, %v6963_v25  ;;  %v6966_v60 = vpop.f32.mrb[46].mxu1  ;;  %v6856_v27 = vadd.f32 %v6855_v56, %v6854_v54 }
 0xa8d   : > { %v5193_v38 = vpop.permute.xlu0 %5192  ;;  %v6967_v8 = vpop.f32.mrb[47].mxu1 }
 0xa8e   : > { %v5346_v3 = vmul.f32 %v5193_v38, %v5154_v46  ;;  %v5082_v63 = vpop.xlane.xlu1 %5081  ;;  %v12542_v50 = vadd.f32 %v6965_v28, %v6853_v36  ;;  %v6968_v18 = vadd.f32 %v6967_v8, %v6966_v60  ;;  %v5161_v46 = vld [vmem:[#allocation5 + $0x40] sm:$0xff] }
 0xa8f   : > { %v5118_v24 = vadd.f32 %v5082_v63, %v4926_v61 }
 0xa90   : > { %v5764_v34 = vadd.f32 %v12313_v31, %v5346_v3  ;;  %v12545_v1 = vadd.f32 %v6968_v18, %v6856_v27  ;;  %v6857_v52 = vpop.f32.mrb[48].mxu0 }
 0xa91   : > { %5151 = vst.msk [vmem:[#allocation4 + $0xf0] sm:$0xff] %vm5120_vm6, %v5118_v24  ;;  %v5208_v13 = vpop.permute.xlu0 %5207  ;;  %v6858_v32 = vpop.f32.mrb[49].mxu0  ;;  %v5163_v24 = vld [vmem:[#allocation5 + $0x50] sm:$0xff] }
 0xa92   : > { %5796 = vst [vmem:[#allocation5 + $0x8] sm:$0xff] %v5764_v34  ;;  %v5349_v44 = vmul.f32 %v5208_v13, %v5157_v35  ;;  %v5188_v48 = vpop.permute.xlu1 %5187  ;;  %v6969_v41 = vpop.f32.mrb[48].mxu1  ;;  %v6859_v22 = vadd.f32 %v6858_v32, %v6857_v52 }
 0xa93   : > { %v6860_v30 = vpop.f32.mrb[50].mxu0  ;;  %v5345_v19 = vmul.f32 %v5188_v48, %v5153_v6  ;;  %v6970_v47 = vpop.f32.mrb[49].mxu1  ;;  %v5158_v6 = vld [vmem:[#allocation5 + $0x28] sm:$0xff] }
 0xa94   : > { %v6861_v9 = vpop.f32.mrb[51].mxu0  ;;  %v5767_v31 = vadd.f32 %v12367_v14, %v5349_v44  ;;  %v6971_v29 = vadd.f32 %v6970_v47, %v6969_v41  ;;  %v6972_v42 = vpop.f32.mrb[50].mxu1  ;;  %v5156_v14 = vld [vmem:[#allocation5 + $0x18] sm:$0xff]  ;;  %v5165_v47 = vld [vmem:[#allocation5 + $0x60] sm:$0xff] }
 0xa95   : > { %v6862_v62 = vadd.f32 %v6861_v9, %v6860_v30  ;;  %v5763_v10 = vadd.f32 %v12306_v16, %v5345_v19  ;;  %v5218_v33 = vpop.permute.xlu0 %5217  ;;  %v6973_v4 = vpop.f32.mrb[51].mxu1 }
 0xa96   : > { %5799 = vst [vmem:[#allocation5 + $0x20] sm:$0xff] %v5767_v31  ;;  %v5351_v7 = vmul.f32 %v5218_v33, %v5159_v40  ;;  %v5198_v20 = vpop.permute.xlu1 %5197  ;;  %v12550_v25 = vadd.f32 %v6971_v29, %v6859_v22  ;;  %v6974_v36 = vadd.f32 %v6973_v4, %v6972_v42  ;;  %v5162_v4 = vld [vmem:[#allocation5 + $0x48] sm:$0xff] }
 0xa97   : > { %5795 = vst [vmem:[#allocation5] sm:$0xff] %v5763_v10  ;;  %v5347_v54 = vmul.f32 %v5198_v20, %v5155_v43  ;;  %v5167_v10 = vld [vmem:[#allocation5 + $0x70] sm:$0xff] }
 0xa98   : > { %v5769_v21 = vadd.f32 %v12398_v55, %v5351_v7  ;;  %v12553_v56 = vadd.f32 %v6974_v36, %v6862_v62  ;;  %v6863_v28 = vpop.f32.mrb[52].mxu0 }
 0xa99   : > { %v5765_v60 = vadd.f32 %v12333_v15, %v5347_v54  ;;  %v5228_v16 = vpop.permute.xlu0 %5227  ;;  %v6864_v27 = vpop.f32.mrb[53].mxu0 }
 0xa9a   : > { %5801 = vst [vmem:[#allocation5 + $0x30] sm:$0xff] %v5769_v21  ;;  %v5353_v38 = vmul.f32 %v5228_v16, %v5161_v46  ;;  %v5203_v61 = vpop.permute.xlu1 %5202  ;;  %v6975_v8 = vpop.f32.mrb[52].mxu1  ;;  %v6865_v3 = vadd.f32 %v6864_v27, %v6863_v28  ;;  %v5169_v46 = vld [vmem:[#allocation5 + $0x80] sm:$0xff]  ;;  %v5164_v21 = vld [vmem:[#allocation5 + $0x58] sm:$0xff]  ;;  %v5171_v27 = vld [vmem:[#allocation5 + $0x90] sm:$0xff] }
 0xa9b   : > { %v6866_v63 = vpop.f32.mrb[54].mxu0  ;;  %5797 = vst [vmem:[#allocation5 + $0x10] sm:$0xff] %v5765_v60  ;;  %v5348_v18 = vmul.f32 %v5203_v61, %v5156_v14  ;;  %v6976_v35 = vpop.f32.mrb[53].mxu1 }
 0xa9c   : > { %v6867_v34 = vpop.f32.mrb[55].mxu0  ;;  %v5771_v55 = vadd.f32 %v12435_v39, %v5353_v38  ;;  %v6977_v52 = vadd.f32 %v6976_v35, %v6975_v8  ;;  %v6978_v13 = vpop.f32.mrb[54].mxu1  ;;  %v5160_v39 = vld [vmem:[#allocation5 + $0x38] sm:$0xff]  ;;  %v5166_v38 = vld [vmem:[#allocation5 + $0x68] sm:$0xff] }
 0xa9d   : > { %v6868_v32 = vadd.f32 %v6867_v34, %v6866_v63  ;;  %v5766_v15 = vadd.f32 %v12342_v12, %v5348_v18  ;;  %v5238_v44 = vpop.permute.xlu0 %5237  ;;  %v6979_v48 = vpop.f32.mrb[55].mxu1  ;;  %v5173_v18 = vld [vmem:[#allocation5 + $0xa0] sm:$0xff] }
 0xa9e   : > { %5803 = vst [vmem:[#allocation5 + $0x40] sm:$0xff] %v5771_v55  ;;  %v5355_v41 = vmul.f32 %v5238_v44, %v5163_v24  ;;  %v5213_v22 = vpop.permute.xlu1 %5212  ;;  %v12558_v30 = vadd.f32 %v6977_v52, %v6865_v3  ;;  %v6980_v19 = vadd.f32 %v6979_v48, %v6978_v13  ;;  %v5168_v24 = vld [vmem:[#allocation5 + $0x78] sm:$0xff]  ;;  %v5175_v52 = vld [vmem:[#allocation5 + $0xb0] sm:$0xff]  ;;  %v5170_v13 = vld [vmem:[#allocation5 + $0x88] sm:$0xff] }
 0xa9f   : > { %5798 = vst [vmem:[#allocation5 + $0x18] sm:$0xff] %v5766_v15  ;;  %v5350_v40 = vmul.f32 %v5213_v22, %v5158_v6  ;;  %v5172_v22 = vld [vmem:[#allocation5 + $0x98] sm:$0xff] }
 0xaa0   : > { %v5773_v9 = vadd.f32 %v12468_v11, %v5355_v41  ;;  %v12561_v31 = vadd.f32 %v6980_v19, %v6868_v32  ;;  %v5177_v41 = vld [vmem:[#allocation5 + $0xc0] sm:$0xff] }
 0xaa1   : > { %v5768_v43 = vadd.f32 %v12375_v51, %v5350_v40  ;;  %v5248_v29 = vpop.permute.xlu0 %5247 }
 0xaa2   : > { %5805 = vst [vmem:[#allocation5 + $0x50] sm:$0xff] %v5773_v9  ;;  %v5357_v12 = vmul.f32 %v5248_v29, %v5165_v47  ;;  %v5223_v42 = vpop.permute.xlu1 %5222 }
 0xaa3   : > { %5800 = vst [vmem:[#allocation5 + $0x28] sm:$0xff] %v5768_v43  ;;  %v5352_v62 = vmul.f32 %v5223_v42, %v5160_v39  ;;  %v5179_v39 = vld [vmem:[#allocation5 + $0xd0] sm:$0xff]  ;;  %v5174_v43 = vld [vmem:[#allocation5 + $0xa8] sm:$0xff] }
 0xaa4   : > { %v5775_v33 = vadd.f32 %v12516_v45, %v5357_v12 }
 0xaa5   : > { %v5770_v7 = vadd.f32 %v12406_v37, %v5352_v62  ;;  %v5258_v20 = vpop.permute.xlu0 %5257 }
 0xaa6   : > { %5807 = vst [vmem:[#allocation5 + $0x60] sm:$0xff] %v5775_v33  ;;  %v5359_v11 = vmul.f32 %v5258_v20, %v5167_v10  ;;  %v5233_v36 = vpop.permute.xlu1 %5232  ;;  %v5176_v10 = vld [vmem:[#allocation5 + $0xb8] sm:$0xff] }
 0xaa7   : > { %5802 = vst [vmem:[#allocation5 + $0x38] sm:$0xff] %v5770_v7  ;;  %v5354_v54 = vmul.f32 %v5233_v36, %v5162_v4 }
 0xaa8   : > { %v5777_v51 = vadd.f32 %v12521_v49, %v5359_v11 }
 0xaa9   : > { %v5772_v14 = vadd.f32 %v12439_v0, %v5354_v54  ;;  %v5268_v28 = vpop.permute.xlu0 %5267  ;;  %v5178_v54 = vld [vmem:[#allocation5 + $0xc8] sm:$0xff] }
 0xaaa   : > { %5809 = vst [vmem:[#allocation5 + $0x70] sm:$0xff] %v5777_v51  ;;  %v5361_v60 = vmul.f32 %v5268_v28, %v5169_v46  ;;  %v5243_v16 = vpop.permute.xlu1 %5242  ;;  %v5181_v46 = vld [vmem:[#allocation5 + $0xe0] sm:$0xff] }
 0xaab   : > { %5804 = vst [vmem:[#allocation5 + $0x48] sm:$0xff] %v5772_v14  ;;  %v5356_v45 = vmul.f32 %v5243_v16, %v5164_v21 }
 0xaac   : > { %v5779_v37 = vadd.f32 %v12525_v59, %v5361_v60 }
 0xaad   : > { %v5774_v61 = vadd.f32 %v12472_v5, %v5356_v45  ;;  %v5278_v8 = vpop.permute.xlu0 %5277 }
 0xaae   : > { %5811 = vst [vmem:[#allocation5 + $0x80] sm:$0xff] %v5779_v37  ;;  %v5363_v3 = vmul.f32 %v5278_v8, %v5171_v27  ;;  %v5253_v63 = vpop.permute.xlu1 %5252  ;;  %v5180_v8 = vld [vmem:[#allocation5 + $0xd8] sm:$0xff] }
 0xaaf   : > { %5806 = vst [vmem:[#allocation5 + $0x58] sm:$0xff] %v5774_v61  ;;  %v5358_v49 = vmul.f32 %v5253_v63, %v5166_v38 }
 0xab0   : > { %v5781_v0 = vadd.f32 %v12530_v17, %v5363_v3 }
 0xab1   : > { %v5776_v35 = vadd.f32 %v12519_v23, %v5358_v49  ;;  %v5288_v34 = vpop.permute.xlu0 %5287 }
 0xab2   : > { %5813 = vst [vmem:[#allocation5 + $0x90] sm:$0xff] %v5781_v0  ;;  %v5365_v55 = vmul.f32 %v5288_v34, %v5173_v18  ;;  %v5263_v6 = vpop.permute.xlu1 %5262  ;;  %v5182_v0 = vld [vmem:[#allocation5 + $0xe8] sm:$0xff] }
 0xab3   : > { %5808 = vst [vmem:[#allocation5 + $0x68] sm:$0xff] %v5776_v35  ;;  %v5360_v59 = vmul.f32 %v5263_v6, %v5168_v24 }
 0xab4   : > { %v5783_v5 = vadd.f32 %v12536_v26, %v5365_v55 }
 0xab5   : > { %v5778_v32 = vadd.f32 %v12523_v53, %v5360_v59  ;;  %v5298_v15 = vpop.permute.xlu0 %5297 }
 0xab6   : > { %5815 = vst [vmem:[#allocation5 + $0xa0] sm:$0xff] %v5783_v5  ;;  %v5367_v44 = vmul.f32 %v5298_v15, %v5175_v52  ;;  %v5273_v48 = vpop.permute.xlu1 %5272 }
 0xab7   : > { %5810 = vst [vmem:[#allocation5 + $0x78] sm:$0xff] %v5778_v32  ;;  %v5362_v17 = vmul.f32 %v5273_v48, %v5170_v13  ;;  %v5183_v32 = vld [vmem:[#allocation5 + $0xf0] sm:$0xff] }
 0xab8   : > { %v5785_v23 = vadd.f32 %v12542_v50, %v5367_v44 }
 0xab9   : > { %v5780_v19 = vadd.f32 %v12527_v2, %v5362_v17  ;;  %v5308_v40 = vpop.permute.xlu0 %5307 }
 0xaba   : > { %5817 = vst [vmem:[#allocation5 + $0xb0] sm:$0xff] %v5785_v23  ;;  %v5369_v47 = vmul.f32 %v5308_v40, %v5177_v41  ;;  %v5283_v9 = vpop.permute.xlu1 %5282  ;;  %v5184_v41 = vld [vmem:[#allocation5 + $0xf8] sm:$0xff] }
 0xabb   : > { %5812 = vst [vmem:[#allocation5 + $0x88] sm:$0xff] %v5780_v19  ;;  %v5364_v26 = vmul.f32 %v5283_v9, %v5172_v22 }
 0xabc   : > { %v5787_v53 = vadd.f32 %v12550_v25, %v5369_v47 }
 0xabd   : > { %v5782_v29 = vadd.f32 %v12532_v57, %v5364_v26  ;;  %v5318_v12 = vpop.permute.xlu0 %5317 }
 0xabe   : > { %5819 = vst [vmem:[#allocation5 + $0xc0] sm:$0xff] %v5787_v53  ;;  %v5371_v42 = vmul.f32 %v5318_v12, %v5179_v39  ;;  %v5293_v62 = vpop.permute.xlu1 %5292 }
 0xabf   : > { %5814 = vst [vmem:[#allocation5 + $0x98] sm:$0xff] %v5782_v29  ;;  %v5366_v50 = vmul.f32 %v5293_v62, %v5174_v43 }
 0xac0   : > { %v5789_v2 = vadd.f32 %v12558_v30, %v5371_v42 }
 0xac1   : > { %v5784_v33 = vadd.f32 %v12539_v58, %v5366_v50  ;;  %v5328_v51 = vpop.permute.xlu0 %5327 }
 0xac2   : > { %5821 = vst [vmem:[#allocation5 + $0xd0] sm:$0xff] %v5789_v2  ;;  %v5303_v4 = vpop.permute.xlu1 %5302  ;;  %v5373_v27 = vmul.f32 %v5328_v51, %v5181_v46 }
 0xac3   : > { %5816 = vst [vmem:[#allocation5 + $0xa8] sm:$0xff] %v5784_v33  ;;  %v5368_v20 = vmul.f32 %v5303_v4, %v5176_v10 }
 0xac4   : > { %v6869_v7 = vpop.f32.mrb[56].mxu0 }
 0xac5   : > { %v6870_v25 = vpop.f32.mrb[57].mxu0  ;;  %v5786_v21 = vadd.f32 %v12545_v1, %v5368_v20 }
 0xac6   : > { %v6981_v11 = vpop.f32.mrb[56].mxu1  ;;  %v6871_v36 = vadd.f32 %v6870_v25, %v6869_v7  ;;  %v6872_v57 = vpop.f32.mrb[58].mxu0 }
 0xac7   : > { %v6982_v14 = vpop.f32.mrb[57].mxu1  ;;  %v5313_v60 = vpop.permute.xlu1 %5312  ;;  %5818 = vst [vmem:[#allocation5 + $0xb8] sm:$0xff] %v5786_v21 }
 0xac8   : > { %v6983_v28 = vadd.f32 %v6982_v14, %v6981_v11  ;;  %v6984_v30 = vpop.f32.mrb[58].mxu1  ;;  %v5370_v58 = vmul.f32 %v5313_v60, %v5178_v54  ;;  %v6873_v16 = vpop.f32.mrb[59].mxu0 }
 0xac9   : > { %v6985_v45 = vpop.f32.mrb[59].mxu1  ;;  %v6874_v38 = vadd.f32 %v6873_v16, %v6872_v57 }
 0xaca   : > { %v5749_v37 = vadd.f32 %v6983_v28, %v6871_v36  ;;  %v6986_v61 = vadd.f32 %v6985_v45, %v6984_v30  ;;  %v5788_v3 = vadd.f32 %v12553_v56, %v5370_v58  ;;  %v5338_v56 = vpop.permute.xlu0 %5337 }
 0xacb   : > { %v5323_v18 = vpop.permute.xlu1 %5322  ;;  %v5375_v19 = vmul.f32 %v5338_v56, %v5183_v32 }
 0xacc   : > { %v5791_v63 = vadd.f32 %v5749_v37, %v5373_v27  ;;  %v5752_v49 = vadd.f32 %v6986_v61, %v6874_v38  ;;  %5820 = vst [vmem:[#allocation5 + $0xc8] sm:$0xff] %v5788_v3  ;;  %v5372_v1 = vmul.f32 %v5323_v18, %v5180_v8 }
 0xace   : > { %5823 = vst [vmem:[#allocation5 + $0xe0] sm:$0xff] %v5791_v63  ;;  %v5790_v24 = vadd.f32 %v12561_v31, %v5372_v1 }
 0xacf   : > { %v5333_v35 = vpop.permute.xlu1 %5332 }
 0xad0   : > { %5822 = vst [vmem:[#allocation5 + $0xd8] sm:$0xff] %v5790_v24  ;;  %v5374_v34 = vmul.f32 %v5333_v35, %v5182_v0 }
 0xad1   : > { %v6875_v55 = vpop.f32.mrb[60].mxu0 }
 0xad2   : > { %v6876_v6 = vpop.f32.mrb[61].mxu0  ;;  %v5792_v59 = vadd.f32 %v5752_v49, %v5374_v34 }
 0xad3   : > { %v6987_v52 = vpop.f32.mrb[60].mxu1  ;;  %v6877_v5 = vadd.f32 %v6876_v6, %v6875_v55  ;;  %v6878_v13 = vpop.f32.mrb[62].mxu0 }
 0xad4   : > { %v6988_v15 = vpop.f32.mrb[61].mxu1  ;;  %5824 = vst [vmem:[#allocation5 + $0xe8] sm:$0xff] %v5792_v59  ;;  %v6879_v17 = vpop.f32.mrb[63].mxu0 }
 0xad5   : > { %v6989_v44 = vadd.f32 %v6988_v15, %v6987_v52  ;;  %v6990_v48 = vpop.f32.mrb[62].mxu1  ;;  %v5343_v23 = vpop.permute.xlu1 %5342  ;;  %v6880_v22 = vadd.f32 %v6879_v17, %v6878_v13 }
 0xad6   : > { %v6991_v31 = vpop.f32.mrb[63].mxu1  ;;  %v5376_v26 = vmul.f32 %v5343_v23, %v5184_v41 }
 0xad7   : > { %v5757_v40 = vadd.f32 %v6989_v44, %v6877_v5  ;;  %v6992_v47 = vadd.f32 %v6991_v31, %v6990_v48 }
 0xad9   : > { %v5793_v9 = vadd.f32 %v5757_v40, %v5375_v19  ;;  %v5760_v39 = vadd.f32 %v6992_v47, %v6880_v22 }
 0xadb   : > { %5825 = vst [vmem:[#allocation5 + $0xf0] sm:$0xff] %v5793_v9  ;;  %v5794_v53 = vadd.f32 %v5760_v39, %v5376_v26 }
 0xadd   : > { %5826 = vst [vmem:[#allocation5 + $0xf8] sm:$0xff] %v5794_v53 }
 0xade PF: > { %5861 = sbr.rel (%p6413_p2) target bundleno = 2986 (0xbaa), region = 68  ;;  %v5864_v43 = vld [vmem:[#allocation4 + $0x10] sm:$0xff] (!%p6413_p2)  ;;  %v5862_v29 = vld [vmem:[#allocation4] sm:$0xff] (!%p6413_p2)  ;;  %v5865_v12 = vld [vmem:[#allocation4 + $0x18] sm:$0xff] (!%p6413_p2)  ;;  %v8268_v42 = vmov (!%p6413_p2), 0  }
 0xadf   : > { %7938 = vset.pattern.permute.xlu1 (!%p6413_p2), %v8268_v42  ;;  %7937 = vset.pattern.permute.xlu0 (!%p6413_p2), %v8268_v42  ;;  %7939 = vrcp.f32 (!%p6413_p2), %v5864_v43  ;;  %v5863_v62 = vld [vmem:[#allocation4 + $0x8] sm:$0xff] (!%p6413_p2)  ;;  %v5866_v2 = vld [vmem:[#allocation4 + $0x20] sm:$0xff] (!%p6413_p2)  ;;  %v5869_v10 = vld [vmem:[#allocation4 + $0x38] sm:$0xff] (!%p6413_p2) }
 0xae0   : > { %7941 = vrcp.f32 (!%p6413_p2), %v5862_v29  ;;  %v5867_v50 = vld [vmem:[#allocation4 + $0x28] sm:$0xff] (!%p6413_p2)  ;;  %v5868_v33 = vld [vmem:[#allocation4 + $0x30] sm:$0xff] (!%p6413_p2)  ;;  %v5870_v11 = vld [vmem:[#allocation4 + $0x40] sm:$0xff] (!%p6413_p2) }
 0xae1   : > { %7943 = vrcp.f32 (!%p6413_p2), %v5865_v12  ;;  %v5871_v20 = vld [vmem:[#allocation4 + $0x48] sm:$0xff] (!%p6413_p2)  ;;  %v5873_v57 = vld [vmem:[#allocation4 + $0x58] sm:$0xff] (!%p6413_p2)  ;;  %v5872_v46 = vld [vmem:[#allocation4 + $0x50] sm:$0xff] (!%p6413_p2) }
 0xae2   : > { %7945 = vrcp.f32 (!%p6413_p2), %v5863_v62  ;;  %v5875_v21 = vld [vmem:[#allocation4 + $0x68] sm:$0xff] (!%p6413_p2)  ;;  %v5874_v28 = vld [vmem:[#allocation4 + $0x60] sm:$0xff] (!%p6413_p2)  ;;  %v5877_v60 = vld [vmem:[#allocation4 + $0x78] sm:$0xff] (!%p6413_p2) }
 0xae3   : > { %7947 = vrcp.f32 (!%p6413_p2), %v5867_v50  ;;  %v5876_v16 = vld [vmem:[#allocation4 + $0x70] sm:$0xff] (!%p6413_p2)  ;;  %v5879_v27 = vld [vmem:[#allocation4 + $0x88] sm:$0xff] (!%p6413_p2)  ;;  %v5878_v38 = vld [vmem:[#allocation4 + $0x80] sm:$0xff] (!%p6413_p2) }
 0xae4   : > { %7949 = vrcp.f32 (!%p6413_p2), %v5866_v2  ;;  %v5881_v8 = vld [vmem:[#allocation4 + $0x98] sm:$0xff] (!%p6413_p2)  ;;  %v5880_v63 = vld [vmem:[#allocation4 + $0x90] sm:$0xff] (!%p6413_p2)  ;;  %v5883_v18 = vld [vmem:[#allocation4 + $0xa8] sm:$0xff] (!%p6413_p2) }
 0xae5   : > { %7951 = vrcp.f32 %v5869_v10  ;;  %v5882_v0 = vld [vmem:[#allocation4 + $0xa0] sm:$0xff]  ;;  %v5885_v35 = vld [vmem:[#allocation4 + $0xb8] sm:$0xff]  ;;  %v5884_v55 = vld [vmem:[#allocation4 + $0xb0] sm:$0xff] }
 0xae6   : > { %7953 = vrcp.f32 %v5868_v33  ;;  %v5887_v59 = vld [vmem:[#allocation4 + $0xc8] sm:$0xff]  ;;  %v5886_v5 = vld [vmem:[#allocation4 + $0xc0] sm:$0xff]  ;;  %v5889_v32 = vld [vmem:[#allocation4 + $0xd8] sm:$0xff] }
 0xae7   : > { %7955 = vrcp.f32 %v5871_v20  ;;  %v5888_v15 = vld [vmem:[#allocation4 + $0xd0] sm:$0xff]  ;;  %v5891_v48 = vld [vmem:[#allocation4 + $0xe8] sm:$0xff]  ;;  %v5890_v41 = vld [vmem:[#allocation4 + $0xe0] sm:$0xff] }
 0xae8   : > { %7957 = vrcp.f32 %v5870_v11  ;;  %v5893_v22 = vld [vmem:[#allocation4 + $0xf8] sm:$0xff]  ;;  %v5892_v19 = vld [vmem:[#allocation4 + $0xf0] sm:$0xff]  ;;  %v5926_v12 = vld [vmem:[#allocation5] sm:$0xff] }
 0xae9   : > { %v7940_v4 = vpop.eup %7939  ;;  %7959 = vrcp.f32 %v5873_v57  ;;  %v5928_v29 = vld [vmem:[#allocation5 + $0x10] sm:$0xff]  ;;  %v5929_v10 = vld [vmem:[#allocation5 + $0x18] sm:$0xff]  ;;  %v5927_v33 = vld [vmem:[#allocation5 + $0x8] sm:$0xff] }
 0xaea   : > { %v7942_v7 = vpop.eup %7941  ;;  %5970 = vperm.xlu1 %7938, %v7940_v4   ;;  %7961 = vrcp.f32 %v5872_v46  ;;  %v5931_v11 = vld [vmem:[#allocation5 + $0x28] sm:$0xff] }
 0xaeb   : > { %v7944_v25 = vpop.eup %7943  ;;  %5960 = vperm.xlu0 %7937, %v7942_v7   ;;  %7963 = vrcp.f32 %v5875_v21  ;;  %v5933_v21 = vld [vmem:[#allocation5 + $0x38] sm:$0xff] }
 0xaec   : > { %v7946_v36 = vpop.eup %7945  ;;  %7965 = vrcp.f32 %v5874_v28 }
 0xaed   : > { %v7948_v54 = vpop.eup %7947  ;;  %7967 = vrcp.f32 %v5877_v60 }
 0xaee   : > { %5975 = vperm.xlu1 %7938, %v7944_v25   ;;  %v7950_v51 = vpop.eup %7949  ;;  %7969 = vrcp.f32 %v5876_v16  ;;  %v5935_v16 = vld [vmem:[#allocation5 + $0x48] sm:$0xff] }
 0xaef   : > { %5965 = vperm.xlu0 %7937, %v7946_v36   ;;  %v7952_v14 = vpop.eup %7951  ;;  %7971 = vrcp.f32 %v5879_v27  ;;  %v5930_v36 = vld [vmem:[#allocation5 + $0x20] sm:$0xff] }
 0xaf0   : > { %v7954_v30 = vpop.eup %7953  ;;  %7973 = vrcp.f32 %v5878_v38 }
 0xaf1   : > { %v7956_v58 = vpop.eup %7955  ;;  %7975 = vrcp.f32 %v5881_v8  ;;  %v5937_v8 = vld [vmem:[#allocation5 + $0x58] sm:$0xff] }
 0xaf2   : > { %5985 = vperm.xlu1 %7938, %v7948_v54   ;;  %v7958_v45 = vpop.eup %7957  ;;  %7977 = vrcp.f32 %v5880_v63 }
 0xaf3   : > { %5980 = vperm.xlu0 %7937, %v7950_v51   ;;  %v7960_v37 = vpop.eup %7959  ;;  %7979 = vrcp.f32 %v5883_v18 }
 0xaf4   : > { %v7962_v61 = vpop.eup %7961  ;;  %7981 = vrcp.f32 %v5882_v0  ;;  %v5939_v0 = vld [vmem:[#allocation5 + $0x68] sm:$0xff] }
 0xaf5   : > { %v7964_v3 = vpop.eup %7963  ;;  %7983 = vrcp.f32 %v5885_v35 }
 0xaf6   : > { %5995 = vperm.xlu1 %7938, %v7952_v14   ;;  %v7966_v49 = vpop.eup %7965  ;;  %7985 = vrcp.f32 %v5884_v55  ;;  %v5932_v14 = vld [vmem:[#allocation5 + $0x30] sm:$0xff] }
 0xaf7   : > { %5990 = vperm.xlu0 %7937, %v7954_v30   ;;  %v7968_v1 = vpop.eup %7967  ;;  %7987 = vrcp.f32 %v5887_v59  ;;  %v5941_v59 = vld [vmem:[#allocation5 + $0x78] sm:$0xff] }
 0xaf8   : > { %v7970_v24 = vpop.eup %7969  ;;  %7989 = vrcp.f32 %v5886_v5 }
 0xaf9   : > { %v7972_v34 = vpop.eup %7971  ;;  %7991 = vrcp.f32 %v5889_v32 }
 0xafa   : > { %6005 = vperm.xlu1 %7938, %v7956_v58   ;;  %v7974_v6 = vpop.eup %7973  ;;  %7993 = vrcp.f32 %v5888_v15  ;;  %v5943_v15 = vld [vmem:[#allocation5 + $0x88] sm:$0xff] }
 0xafb   : > { %6000 = vperm.xlu0 %7937, %v7958_v45   ;;  %v7976_v52 = vpop.eup %7975  ;;  %7995 = vrcp.f32 %v5891_v48  ;;  %v5934_v45 = vld [vmem:[#allocation5 + $0x40] sm:$0xff] }
 0xafc   : > { %v7978_v13 = vpop.eup %7977  ;;  %7997 = vrcp.f32 %v5890_v41 }
 0xafd   : > { %v7980_v56 = vpop.eup %7979  ;;  %7999 = vrcp.f32 %v5893_v22  ;;  %v5945_v22 = vld [vmem:[#allocation5 + $0x98] sm:$0xff] }
 0xafe   : > { %6015 = vperm.xlu1 %7938, %v7960_v37   ;;  %v7982_v44 = vpop.eup %7981  ;;  %8001 = vrcp.f32 %v5892_v19 }
 0xaff   : > { %6010 = vperm.xlu0 %7937, %v7962_v61   ;;  %v7984_v17 = vpop.eup %7983 }
 0xb00   : > { %v7986_v23 = vpop.eup %7985 }
 0xb01   : > { %v7988_v31 = vpop.eup %7987 }
 0xb02   : > { %6025 = vperm.xlu1 %7938, %v7964_v3   ;;  %v7990_v40 = vpop.eup %7989  ;;  %v5936_v3 = vld [vmem:[#allocation5 + $0x50] sm:$0xff] }
 0xb03   : > { %6020 = vperm.xlu0 %7937, %v7966_v49   ;;  %v7992_v47 = vpop.eup %7991 }
 0xb04   : > { %v7994_v9 = vpop.eup %7993 }
 0xb05   : > { %v7996_v26 = vpop.eup %7995 }
 0xb06   : > { %6035 = vperm.xlu1 %7938, %v7968_v1   ;;  %v7998_v39 = vpop.eup %7997 }
 0xb07   : > { %6030 = vperm.xlu0 %7937, %v7970_v24   ;;  %v8000_v53 = vpop.eup %7999  ;;  %v5938_v24 = vld [vmem:[#allocation5 + $0x60] sm:$0xff] }
 0xb08   : > { %v8002_v43 = vpop.eup %8001 }
 0xb0a   : > { %6045 = vperm.xlu1 %7938, %v7972_v34  }
 0xb0b   : > { %6040 = vperm.xlu0 %7937, %v7974_v6  }
 0xb0e   : > { %6055 = vperm.xlu1 %7938, %v7976_v52   ;;  %v5940_v52 = vld [vmem:[#allocation5 + $0x70] sm:$0xff] }
 0xb0f   : > { %6050 = vperm.xlu0 %7937, %v7978_v13  }
 0xb12   : > { %6065 = vperm.xlu1 %7938, %v7980_v56  }
 0xb13   : > { %6060 = vperm.xlu0 %7937, %v7982_v44   ;;  %v5942_v44 = vld [vmem:[#allocation5 + $0x80] sm:$0xff] }
 0xb16   : > { %6075 = vperm.xlu1 %7938, %v7984_v17  }
 0xb17   : > { %6070 = vperm.xlu0 %7937, %v7986_v23  }
 0xb1a   : > { %6085 = vperm.xlu1 %7938, %v7988_v31   ;;  %v5944_v31 = vld [vmem:[#allocation5 + $0x90] sm:$0xff] }
 0xb1b   : > { %6080 = vperm.xlu0 %7937, %v7990_v40  }
 0xb1e   : > { %6095 = vperm.xlu1 %7938, %v7992_v47  }
 0xb1f   : > { %6090 = vperm.xlu0 %7937, %v7994_v9  }
 0xb22   : > { %6105 = vperm.xlu1 %7938, %v7996_v26   ;;  %v5947_v26 = vld [vmem:[#allocation5 + $0xa8] sm:$0xff] }
 0xb23   : > { %6100 = vperm.xlu0 %7937, %v7998_v39   ;;  %v5946_v39 = vld [vmem:[#allocation5 + $0xa0] sm:$0xff] }
 0xb26   : > { %6115 = vperm.xlu1 %7938, %v8000_v53  }
 0xb27   : > { %6110 = vperm.xlu0 %7937, %v8002_v43  }
 0xb69   : > { %v5971_v42 = vpop.permute.xlu1 %5970 }
 0xb6a   : > { %v6120_v62 = vmul.f32 %v5971_v42, %v5928_v29  ;;  %v5961_v50 = vpop.permute.xlu0 %5960  ;;  %v5949_v42 = vld [vmem:[#allocation5 + $0xb8] sm:$0xff] }
 0xb6b   : > { %v6118_v2 = vmul.f32 %v5961_v50, %v5926_v12 }
 0xb6c   : > { %6152 = vst [vmem:[%s8607_s0 + $0x10] sm:$0xff] %v6120_v62  ;;  %v5948_v62 = vld [vmem:[#allocation5 + $0xb0] sm:$0xff] }
 0xb6d   : > { %6150 = vst [vmem:[%s8607_s0] sm:$0xff] %v6118_v2  ;;  %v5976_v4 = vpop.permute.xlu1 %5975 }
 0xb6e   : > { %v6121_v7 = vmul.f32 %v5976_v4, %v5929_v10  ;;  %v5966_v20 = vpop.permute.xlu0 %5965  ;;  %v5951_v4 = vld [vmem:[#allocation5 + $0xc8] sm:$0xff] }
 0xb6f   : > { %v6119_v25 = vmul.f32 %v5966_v20, %v5927_v33 }
 0xb70   : > { %6153 = vst [vmem:[%s8607_s0 + $0x18] sm:$0xff] %v6121_v7  ;;  %v5950_v7 = vld [vmem:[#allocation5 + $0xc0] sm:$0xff] }
 0xb71   : > { %6151 = vst [vmem:[%s8607_s0 + $0x8] sm:$0xff] %v6119_v25  ;;  %v5986_v57 = vpop.permute.xlu1 %5985 }
 0xb72   : > { %v6123_v54 = vmul.f32 %v5986_v57, %v5931_v11  ;;  %v5981_v46 = vpop.permute.xlu0 %5980  ;;  %v5953_v57 = vld [vmem:[#allocation5 + $0xd8] sm:$0xff] }
 0xb73   : > { %v6122_v51 = vmul.f32 %v5981_v46, %v5930_v36 }
 0xb74   : > { %6155 = vst [vmem:[%s8607_s0 + $0x28] sm:$0xff] %v6123_v54  ;;  %v5952_v54 = vld [vmem:[#allocation5 + $0xd0] sm:$0xff] }
 0xb75   : > { %6154 = vst [vmem:[%s8607_s0 + $0x20] sm:$0xff] %v6122_v51  ;;  %v5996_v28 = vpop.permute.xlu1 %5995 }
 0xb76   : > { %v6125_v30 = vmul.f32 %v5996_v28, %v5933_v21  ;;  %v5991_v60 = vpop.permute.xlu0 %5990  ;;  %v5955_v28 = vld [vmem:[#allocation5 + $0xe8] sm:$0xff] }
 0xb77   : > { %v6124_v58 = vmul.f32 %v5991_v60, %v5932_v14 }
 0xb78   : > { %6157 = vst [vmem:[%s8607_s0 + $0x38] sm:$0xff] %v6125_v30  ;;  %v5954_v30 = vld [vmem:[#allocation5 + $0xe0] sm:$0xff] }
 0xb79   : > { %6156 = vst [vmem:[%s8607_s0 + $0x30] sm:$0xff] %v6124_v58  ;;  %v6006_v27 = vpop.permute.xlu1 %6005 }
 0xb7a   : > { %v6127_v37 = vmul.f32 %v6006_v27, %v5935_v16  ;;  %v6001_v38 = vpop.permute.xlu0 %6000  ;;  %v5957_v27 = vld [vmem:[#allocation5 + $0xf8] sm:$0xff] }
 0xb7b   : > { %v6126_v61 = vmul.f32 %v6001_v38, %v5934_v45 }
 0xb7c   : > { %6159 = vst [vmem:[%s8607_s0 + $0x48] sm:$0xff] %v6127_v37  ;;  %v5956_v37 = vld [vmem:[#allocation5 + $0xf0] sm:$0xff] }
 0xb7d   : > { %6158 = vst [vmem:[%s8607_s0 + $0x40] sm:$0xff] %v6126_v61  ;;  %v6016_v63 = vpop.permute.xlu1 %6015 }
 0xb7e   : > { %v6129_v49 = vmul.f32 %v6016_v63, %v5937_v8  ;;  %v6011_v18 = vpop.permute.xlu0 %6010 }
 0xb7f   : > { %v6128_v1 = vmul.f32 %v6011_v18, %v5936_v3 }
 0xb80   : > { %6161 = vst [vmem:[%s8607_s0 + $0x58] sm:$0xff] %v6129_v49 }
 0xb81   : > { %6160 = vst [vmem:[%s8607_s0 + $0x50] sm:$0xff] %v6128_v1  ;;  %v6026_v35 = vpop.permute.xlu1 %6025 }
 0xb82   : > { %v6131_v34 = vmul.f32 %v6026_v35, %v5939_v0  ;;  %v6021_v55 = vpop.permute.xlu0 %6020 }
 0xb83   : > { %v6130_v6 = vmul.f32 %v6021_v55, %v5938_v24 }
 0xb84   : > { %6163 = vst [vmem:[%s8607_s0 + $0x68] sm:$0xff] %v6131_v34 }
 0xb85   : > { %6162 = vst [vmem:[%s8607_s0 + $0x60] sm:$0xff] %v6130_v6  ;;  %v6036_v5 = vpop.permute.xlu1 %6035 }
 0xb86   : > { %v6133_v13 = vmul.f32 %v6036_v5, %v5941_v59  ;;  %v6031_v32 = vpop.permute.xlu0 %6030 }
 0xb87   : > { %v6132_v56 = vmul.f32 %v6031_v32, %v5940_v52 }
 0xb88   : > { %6165 = vst [vmem:[%s8607_s0 + $0x78] sm:$0xff] %v6133_v13 }
 0xb89   : > { %6164 = vst [vmem:[%s8607_s0 + $0x70] sm:$0xff] %v6132_v56  ;;  %v6046_v48 = vpop.permute.xlu1 %6045 }
 0xb8a   : > { %v6135_v17 = vmul.f32 %v6046_v48, %v5943_v15  ;;  %v6041_v41 = vpop.permute.xlu0 %6040 }
 0xb8b   : > { %v6134_v23 = vmul.f32 %v6041_v41, %v5942_v44 }
 0xb8c   : > { %6167 = vst [vmem:[%s8607_s0 + $0x88] sm:$0xff] %v6135_v17 }
 0xb8d   : > { %6166 = vst [vmem:[%s8607_s0 + $0x80] sm:$0xff] %v6134_v23  ;;  %v6056_v19 = vpop.permute.xlu1 %6055 }
 0xb8e   : > { %v6137_v40 = vmul.f32 %v6056_v19, %v5945_v22  ;;  %v6051_v47 = vpop.permute.xlu0 %6050 }
 0xb8f   : > { %v6136_v9 = vmul.f32 %v6051_v47, %v5944_v31 }
 0xb90   : > { %6169 = vst [vmem:[%s8607_s0 + $0x98] sm:$0xff] %v6137_v40 }
 0xb91   : > { %6168 = vst [vmem:[%s8607_s0 + $0x90] sm:$0xff] %v6136_v9  ;;  %v6066_v53 = vpop.permute.xlu1 %6065 }
 0xb92   : > { %v6139_v43 = vmul.f32 %v6066_v53, %v5947_v26  ;;  %v6061_v29 = vpop.permute.xlu0 %6060 }
 0xb93   : > { %v6138_v12 = vmul.f32 %v6061_v29, %v5946_v39 }
 0xb94   : > { %6171 = vst [vmem:[%s8607_s0 + $0xa8] sm:$0xff] %v6139_v43 }
 0xb95   : > { %6170 = vst [vmem:[%s8607_s0 + $0xa0] sm:$0xff] %v6138_v12  ;;  %v6076_v50 = vpop.permute.xlu1 %6075 }
 0xb96   : > { %v6141_v2 = vmul.f32 %v6076_v50, %v5949_v42  ;;  %v6071_v10 = vpop.permute.xlu0 %6070 }
 0xb97   : > { %v6140_v33 = vmul.f32 %v6071_v10, %v5948_v62 }
 0xb98   : > { %6173 = vst [vmem:[%s8607_s0 + $0xb8] sm:$0xff] %v6141_v2 }
 0xb99   : > { %6172 = vst [vmem:[%s8607_s0 + $0xb0] sm:$0xff] %v6140_v33  ;;  %v6086_v20 = vpop.permute.xlu1 %6085 }
 0xb9a   : > { %v6143_v25 = vmul.f32 %v6086_v20, %v5951_v4  ;;  %v6081_v11 = vpop.permute.xlu0 %6080 }
 0xb9b   : > { %v6142_v36 = vmul.f32 %v6081_v11, %v5950_v7 }
 0xb9c   : > { %6175 = vst [vmem:[%s8607_s0 + $0xc8] sm:$0xff] %v6143_v25 }
 0xb9d   : > { %6174 = vst [vmem:[%s8607_s0 + $0xc0] sm:$0xff] %v6142_v36  ;;  %v6096_v46 = vpop.permute.xlu1 %6095 }
 0xb9e   : > { %v6145_v51 = vmul.f32 %v6096_v46, %v5953_v57  ;;  %v6091_v21 = vpop.permute.xlu0 %6090 }
 0xb9f   : > { %v6144_v14 = vmul.f32 %v6091_v21, %v5952_v54 }
 0xba0   : > { %6177 = vst [vmem:[%s8607_s0 + $0xd8] sm:$0xff] %v6145_v51 }
 0xba1   : > { %6176 = vst [vmem:[%s8607_s0 + $0xd0] sm:$0xff] %v6144_v14  ;;  %v6106_v60 = vpop.permute.xlu1 %6105 }
 0xba2   : > { %v6147_v58 = vmul.f32 %v6106_v60, %v5955_v28  ;;  %v6101_v16 = vpop.permute.xlu0 %6100 }
 0xba3   : > { %v6146_v45 = vmul.f32 %v6101_v16, %v5954_v30 }
 0xba4   : > { %6179 = vst [vmem:[%s8607_s0 + $0xe8] sm:$0xff] %v6147_v58 }
 0xba5   : > { %6178 = vst [vmem:[%s8607_s0 + $0xe0] sm:$0xff] %v6146_v45  ;;  %v6116_v38 = vpop.permute.xlu1 %6115 }
 0xba6   : > { %v6149_v61 = vmul.f32 %v6116_v38, %v5957_v27  ;;  %v6111_v8 = vpop.permute.xlu0 %6110 }
 0xba7   : > { %v6148_v3 = vmul.f32 %v6111_v8, %v5956_v37 }
 0xba8   : > { %6181 = vst [vmem:[%s8607_s0 + $0xf8] sm:$0xff] %v6149_v61 }
 0xba9   : > { %6180 = vst [vmem:[%s8607_s0 + $0xf0] sm:$0xff] %v6148_v3 }
 0xbaa PF: > { %s6424_s29 = sshll.u32 %s8241_s22, 12  ;;  %s14179_s15 = sld [smem:[#allocation403_spill]] }
 0xbab   : > { %s6196_s11 = sshll.u32 %s8607_s0, 4  ;;  %s6183_s4 = scalar_lea.sflag [#allocation8], %s8580_s18  ;;  %s12624_s11 = int_to_ptr.vmem [resolvable:$true] %s6196_s11 }
 0xbac   : > { %s8119_s9 = scalar_lea.vmem %s12624_s11, 4096  ;;  %s8269_s2 = smov [#allocation14]  }
 0xbad   : > { %p8120_p1 = scmp.ne.s32.totalorder %s12624_s11, %s8119_s9  ;;  %s8123_s5 = sshll.u32 %s8269_s2, 4  ;;  %s8124_s5 = int_to_ptr.vmem [resolvable:$false] %s8123_s5 }
 0xbae   : > { %s8125_s22 = scalar_lea.vmem %s8124_s5, 8192  ;;  %p8126_p7 = scmp.lt.s32.totalorder %s12624_s11, %s8124_s5 }
 0xbaf   : > { %p8121_p3 = pnand %p8120_p1, %p8451_p8  ;;  %p8127_p11 = scmp.lt.s32.totalorder %s8125_s22, %s8119_s9 }
 0xbb0   : > { %s14180_s12 = smov %s14179_s15  ;;  %s12621_s7 = scalar_lea.hbm %s14179_s15, %s6424_s29 }
 0xbb1   : > { %p8122_p13 = pneg %p8121_p3  ;;  %p8128_p10 = por %p8127_p11, %p8126_p7 }
 0xbb3   : > { %p8129_p5 = pnand %p8128_p10, %p8122_p13 }
 0xbb5   : > { %8132 = shalt.err (!%p8129_p5)
}
 0xbb6   : > { %s8133_s27 = scalar_lea.hbm %s12621_s7, 4096  ;;  %s8137_s28 = scalar_lea.hbm %s14180_s12, 16384 }
 0xbb7   : > { %p8134_p0 = scmp.ne.s32.totalorder %s12621_s7, %s8133_s27  ;;  %p8138_p6 = scmp.lt.u32.totalorder %s12621_s7, %s14180_s12 }
 0xbb8   : > { %p8139_p2 = scmp.lt.u32.totalorder %s8137_s28, %s8133_s27  ;;  %p8141_p1 = scmp.lt.u32.totalorder %s8133_s27, %s12621_s7 }
 0xbb9   : > { %p8135_p12 = pnand %p8134_p0, %p8451_p8 }
 0xbba   : > { %p8140_p9 = por %p8139_p2, %p8138_p6 }
 0xbbb   : > { %p8136_p4 = pneg %p8135_p12 }
 0xbbc   : > { %p8142_p3 = por %p8141_p1, %p8140_p9 }
 0xbbe   : > { %p8143_p13 = pnand %p8142_p3, %p8136_p4 }
 0xbc0   : > { %8146 = shalt.err (!%p8143_p13)
}
 0xbc1   : > { %s8270_s29 = smov 128   ;;  %s8271_s6 = smov 8  }
 0xbc2   : > { %7085 = dma.vmem_to_hbm [thread:$0]  (%p8451_p8), %s12624_s11, 4096, %s12621_s7, %s6183_s4, %s8270_s29, %s8270_s29, %s8271_s6  }
 0xbc3 PF: > { %s14181_s8 = sld [smem:[#allocation20_spill]]  ;;  %s14182_s15 = sld [smem:[#allocation21_spill]] }
 0xbc4   : > { %p7110_p7 = scmp.ge.s32.totalorder %s8253_s25, 2 }
 0xbc9   : > { %s6211_s9 = sand.u32 1, %s14181_s8   ;;  %p14183_p11 = scmp.ne.s32.totalorder %s14182_s15, 0 }
 0xbca   : > { %s6212_s2 = scalar_lea.sflag [#allocation8], %s6211_s9 }
 0xbcb   : > { %p7102_p10 = pnand %p7110_p7, %p14183_p11 }
 0xbcd   : > { %8208 = dma.done.wait (!%p7102_p10), %s6212_s2, 4096  }
 0xbce   : > { %8210 = vsyncadd (!%p7102_p10), %s6212_s2, 4294963200  ;;  %s24_s25 = sadd.s32 1, %s8253_s25   ;;  %s14184_s7 = sld [smem:[#allocation23_spill]] }
 0xbcf   : > { %p21_p5 = scmp.ge.s32.totalorder %s24_s25, 10   ;;  %s14185_s15 = smov %s8217_s16 }
 0xbd0   : > { %s14186_s16 = smov %s8221_s17  ;;  %s14187_s17 = smov %s8523_s30 }
 0xbd1   : > { %s14188_s18 = smov %s8229_s19  ;;  %s14189_s19 = smov %s8233_s20 }
 0xbd2   : > { %s14190_s20 = smov %s8529_s3  ;;  %s14191_s21 = smov %s8245_s23 }
 0xbd3   : > { %s14192_s22 = smov %s8249_s24  ;;  %s14194_s24 = smov %s14200_s14 }
 0xbd4   : > { %s14193_s23 = smov %s14184_s7  ;;  %23 = sbr.rel (!%p21_p5) target bundleno = 17 (0x11), region = 118 }
 0xbdb   :  { %6217 = vsyncpa [#allocation7], 1 }
 0xbdc   :  { %6219 = vsyncpa [#allocation7 + $0x1], 1 }
 0xbdd   :  { %6220 = vsyncpa [#allocation10], 1 }
 0xbde   :  { %6222 = vsyncpa [#allocation10 + $0x1], 1 }
 0xbdf   :  { %6223 = vsyncpa [#allocation13], 1 }
 0xbe0   :  { %6224 = vsyncpa [#allocation8], 1 }
 0xbe1   :  { %6226 = vsyncpa [#allocation8 + $0x1], 1 }

</bundles_post_ra>
